<compile_context>
chip_gen: v7x
topology: tpu7x:2x2x1
jax: 0.10.0
libtpu: 0.0.40
codegen_flags: <defaults>
</compile_context>

<pallas_src>
import functools
import math

import jax
import jax.numpy as jnp
from jax import lax
from jax.experimental import pallas as pl
from jax.experimental.pallas import tpu as pltpu

EPS = 1e-3  # BatchNorm eps in the PyTorch module


# ----------------------------- small helpers ---------------------------------

def _round_up(v, m):
    return ((v + m - 1) // m) * m


def _parallel():
    return pltpu.CompilerParams(dimension_semantics=("parallel",))


def _full_spec(shape):
    """Whole-array block, identical for every grid step (weights / BN vectors)."""
    nd = len(shape)
    return pl.BlockSpec(shape, lambda *_args, _nd=nd: (0,) * _nd)


def _per_image_spec(block_shape):
    """Select image `n` along the leading axis, full extent elsewhere."""
    nd = len(block_shape)
    return pl.BlockSpec(block_shape, lambda n, _nd=nd: (n,) + (0,) * (_nd - 1))


# ------------------ kernel 1: 1x1 conv + partial BN stats --------------------

def _conv1x1_kernel(x_ref, w_ref, o_ref, st_ref, *, rows_total, tm):
    # x_ref: (tm, 256) f32   w_ref: (256, 192) bf16
    y = jnp.dot(x_ref[...].astype(jnp.bfloat16), w_ref[...],
                preferred_element_type=jnp.float32)            # (tm, 192) f32
    o_ref[...] = y.astype(jnp.bfloat16)
    # Partial BN statistics (mask rows of the last, partial tile).
    rid = lax.broadcasted_iota(jnp.int32, (tm, 1), 0) + pl.program_id(0) * tm
    yv = jnp.where(rid < rows_total, y, 0.0)
    st_ref[0, 0:1, :] = jnp.sum(yv, axis=0, keepdims=True)
    st_ref[0, 1:2, :] = jnp.sum(yv * yv, axis=0, keepdims=True)


def _conv1x1(x2d, w_bf):
    r, cin = x2d.shape
    cout = w_bf.shape[1]
    tm = min(512, _round_up(r, 8))
    g = pl.cdiv(r, tm)
    kern = functools.partial(_conv1x1_kernel, rows_total=r, tm=tm)
    return pl.pallas_call(
        kern,
        out_shape=(jax.ShapeDtypeStruct((r, cout), jnp.bfloat16),
                   jax.ShapeDtypeStruct((g, 2, cout), jnp.float32)),
        grid=(g,),
        in_specs=[pl.BlockSpec((tm, cin), lambda i: (i, 0)),
                  _full_spec((cin, cout))],
        out_specs=(pl.BlockSpec((tm, cout), lambda i: (i, 0)),
                   pl.BlockSpec((1, 2, cout), lambda i: (i, 0, 0))),
        compiler_params=_parallel(),
    )(x2d, w_bf)


# -------- kernel 2: fused BN/ReLU + 3x3 stride-1 pad-1 conv + stats ----------

def _conv3x3_same_kernel(s1_ref, w_ref, sc_ref, sh_ref, o_ref, st_ref, pad_ref,
                         *, H, W):
    """s1 -> relu(bn(s1)) built into a zero-padded VMEM scratch, then a 3x3
    stride-1 pad-1 conv as 9 statically shifted matmuls on the flattened
    padded image.  Output: only the L = H*(W+2)-2 flat rows that cover every
    valid position (2 ignorable wrap rows per image row)."""
    wp = W + 2
    L = H * wp - 2
    cin = s1_ref.shape[-1]
    cout = w_ref.shape[-1]

    act = jnp.maximum(s1_ref[0].astype(jnp.float32) * sc_ref[...] + sh_ref[...],
                      0.0)                                     # (H*W, cin) f32

    pad_ref[...] = jnp.zeros_like(pad_ref)                     # zero padding ring
    for y in range(H):                                         # interior rows
        base = (y + 1) * wp + 1
        pad_ref[base:base + W, :] = act[y * W:(y + 1) * W, :]

    acc = jnp.zeros((L, cout), jnp.float32)
    for t in range(9):
        ky, kx = t // 3, t % 3
        s = ky * wp + kx                                       # static offset
        tap = pad_ref[s:s + L, :].astype(jnp.bfloat16)
        acc = acc + jnp.dot(tap, w_ref[t], preferred_element_type=jnp.float32)

    o_ref[0] = acc.astype(jnp.bfloat16)

    # Partial BN statistics over valid rows only (mask the 2 wrap cols/row).
    col = lax.broadcasted_iota(jnp.int32, (L, 1), 0) % wp
    av = jnp.where(col < W, acc, 0.0)
    st_ref[0, 0:1, :] = jnp.sum(av, axis=0, keepdims=True)
    st_ref[0, 1:2, :] = jnp.sum(av * av, axis=0, keepdims=True)


def _conv3x3_same(s1_img, w9, scale, shift, H, W):
    n, hw, cin = s1_img.shape
    cout = w9.shape[-1]
    lp = (H + 2) * (W + 2)
    L = H * (W + 2) - 2
    kern = functools.partial(_conv3x3_same_kernel, H=H, W=W)
    return pl.pallas_call(
        kern,
        out_shape=(jax.ShapeDtypeStruct((n, L, cout), jnp.bfloat16),
                   jax.ShapeDtypeStruct((n, 2, cout), jnp.float32)),
        grid=(n,),
        in_specs=[_per_image_spec((1, hw, cin)),
                  _full_spec(w9.shape),
                  _full_spec(scale.shape),
                  _full_spec(shift.shape)],
        out_specs=(_per_image_spec((1, L, cout)),
                   _per_image_spec((1, 2, cout))),
        scratch_shapes=[pltpu.VMEM((lp, cin), jnp.float32)],
        compiler_params=_parallel(),
    )(s1_img, w9, scale, shift)


# ----- kernel 3: reduction head (both stride-2 convs + max-pool + stats) -----

def _head_kernel(xp_ref, sp_ref, w0_ref, w1_ref, sc_ref, sh_ref, o_ref, st_ref,
                 *, hh, wh, ho, wo):
    """Inputs are parity planes: plane p = 2*(row%2)+(col%2) holds
    a[2*ih + row%2, 2*iw + col%2] at flat row ih*wh + iw.  Tap (ky,kx) of a
    3x3/stride-2 conv is then a contiguous slice of one plane, shared by the
    branch0 conv, the branch1 conv #3 (BN2+ReLU fused) and the max-pool."""
    lh = (ho - 1) * wh + wo
    c0 = w0_ref.shape[-1]                                      # 384
    c1 = w1_ref.shape[-1]                                      # 256

    x_pl = [xp_ref[0, p] for p in range(4)]                    # (hh*wh, 256) bf16
    s_act = []
    for p in range(4):                                         # BN2 + ReLU fused
        a = sp_ref[0, p].astype(jnp.float32) * sc_ref[...] + sh_ref[...]
        s_act.append(jnp.maximum(a, 0.0).astype(jnp.bfloat16))

    y0 = jnp.zeros((lh, c0), jnp.float32)
    y1 = jnp.zeros((lh, c1), jnp.float32)
    pool = None
    for t in range(9):
        ky, kx = t // 3, t % 3
        p = 2 * (ky % 2) + (kx % 2)
        s = (ky // 2) * wh + (kx // 2)
        x_tap = x_pl[p][s:s + lh, :]                           # (lh, 256) bf16
        y0 = y0 + jnp.dot(x_tap, w0_ref[t], preferred_element_type=jnp.float32)
        s_tap = s_act[p][s:s + lh, :]
        y1 = y1 + jnp.dot(s_tap, w1_ref[t], preferred_element_type=jnp.float32)
        pool = x_tap if pool is None else jnp.maximum(pool, x_tap)

    o_ref[0, :, 0:c0] = y0.astype(jnp.bfloat16)
    o_ref[0, :, c0:c0 + c1] = y1.astype(jnp.bfloat16)
    o_ref[0, :, c0 + c1:c0 + c1 + 256] = pool

    valid = (lax.broadcasted_iota(jnp.int32, (lh, 1), 0) % wh) < wo
    y0v = jnp.where(valid, y0, 0.0)
    y1v = jnp.where(valid, y1, 0.0)
    st_ref[0, 0:1, 0:c0] = jnp.sum(y0v, axis=0, keepdims=True)
    st_ref[0, 0:1, c0:c0 + c1] = jnp.sum(y1v, axis=0, keepdims=True)
    st_ref[0, 1:2, 0:c0] = jnp.sum(y0v * y0v, axis=0, keepdims=True)
    st_ref[0, 1:2, c0:c0 + c1] = jnp.sum(y1v * y1v, axis=0, keepdims=True)


def _head(x_planes, s2_planes, w0_r, w1c_r, sc2, sh2, hh, wh, ho, wo):
    n = x_planes.shape[0]
    lh = (ho - 1) * wh + wo
    kern = functools.partial(_head_kernel, hh=hh, wh=wh, ho=ho, wo=wo)
    return pl.pallas_call(
        kern,
        out_shape=(jax.ShapeDtypeStruct((n, lh, 896), jnp.bfloat16),
                   jax.ShapeDtypeStruct((n, 2, 640), jnp.float32)),
        grid=(n,),
        in_specs=[_per_image_spec((1, 4, hh * wh, 256)),
                  _per_image_spec((1, 4, hh * wh, 192)),
                  _full_spec(w0_r.shape),
                  _full_spec(w1c_r.shape),
                  _full_spec(sc2.shape),
                  _full_spec(sh2.shape)],
        out_specs=(_per_image_spec((1, lh, 896)),
                   _per_image_spec((1, 2, 640))),
        compiler_params=_parallel(),
    )(x_planes, s2_planes, w0_r, w1c_r, sc2, sh2)


# -------------- kernel 4: final BN + ReLU on the conv branches ---------------

def _final_kernel(r_ref, sc_ref, sh_ref, o_ref, *, c_bn):
    r = r_ref[...].astype(jnp.float32)                         # (tm, 896)
    ct = r.shape[-1]
    o_ref[:, 0:c_bn] = jnp.maximum(r[:, 0:c_bn] * sc_ref[...] + sh_ref[...], 0.0)
    o_ref[:, c_bn:ct] = r[:, c_bn:ct]                          # pool: passthrough


def _finalize(raw2d, scale_f, shift_f):
    r, c = raw2d.shape
    c_bn = scale_f.shape[-1]
    tm = min(512, _round_up(r, 8))
    g = pl.cdiv(r, tm)
    kern = functools.partial(_final_kernel, c_bn=c_bn)
    return pl.pallas_call(
        kern,
        out_shape=jax.ShapeDtypeStruct((r, c), jnp.float32),
        grid=(g,),
        in_specs=[pl.BlockSpec((tm, c), lambda i: (i, 0)),
                  _full_spec(scale_f.shape),
                  _full_spec(shift_f.shape)],
        out_specs=pl.BlockSpec((tm, c), lambda i: (i, 0)),
        compiler_params=_parallel(),
    )(raw2d, scale_f, shift_f)


# ------------------------------ wrapper glue ---------------------------------

def _fold_bn(stat_partials, count, gamma, beta):
    """Combine per-tile (sum, sumsq) partials into BN scale/shift (f32)."""
    s = jnp.sum(stat_partials[:, 0, :], axis=0)
    q = jnp.sum(stat_partials[:, 1, :], axis=0)
    mean = s / count
    var = q / count - mean * mean                              # biased variance
    scale = gamma * lax.rsqrt(var + EPS)
    shift = beta - mean * scale
    return scale.reshape(1, -1), shift.reshape(1, -1)


def _parity_planes(a_nhwc, dtype):
    """(N,H,W,C) -> (N, 4, ceil(H/2)*ceil(W/2), C) parity planes (layout only)."""
    n, H, W, C = a_nhwc.shape
    he, we = H + (H % 2), W + (W % 2)
    hh, wh = he // 2, we // 2
    a = jnp.pad(a_nhwc, ((0, 0), (0, he - H), (0, we - W), (0, 0)))
    a = a.reshape(n, hh, 2, wh, 2, C).transpose(0, 2, 4, 1, 3, 5)
    return a.reshape(n, 4, hh * wh, C).astype(dtype), hh, wh


def mixed6a_forward(x_nchw, params):
    (w0, g0, b0,
     w1a, g1a, b1a,
     w1b, g1b, b1b,
     w1c, g1c, b1c) = params

    n, c, h, w = x_nchw.shape
    assert c == 256, "Mixed_6a expects 256 input channels"
    ho, wo = (h - 3) // 2 + 1, (w - 3) // 2 + 1
    wp = w + 2
    L = h * wp - 2

    x_nhwc = jnp.transpose(x_nchw, (0, 2, 3, 1)).astype(jnp.float32)

    # ---- branch1 conv #1 (1x1 stem), flattened row grid, bf16 out + stats ----
    s1_flat, stats1 = _conv1x1(x_nhwc.reshape(n * h * w, c),
                               w1a.astype(jnp.bfloat16))
    sc1, sh1 = _fold_bn(stats1, n * h * w, g1a, b1a)

    # ---- branch1 conv #2 (3x3 / s1 / p1), BN1+ReLU fused, VMEM padding -------
    w1b_r = w1b.reshape(9, 192, 192).astype(jnp.bfloat16)
    s2_flat, stats2 = _conv3x3_same(s1_flat.reshape(n, h * w, 192),
                                    w1b_r, sc1, sh1, h, w)
    sc2, sh2 = _fold_bn(stats2, n * h * w, g1b, b1b)

    # ---- parity-plane views for the stride-2 head (layout only, bf16) --------
    x_planes, hh, wh = _parity_planes(x_nhwc, jnp.bfloat16)
    s2_sp = jnp.pad(s2_flat, ((0, 0), (0, 2), (0, 0)))
    s2_sp = s2_sp.reshape(n, h, wp, 192)[:, :, :w, :]          # (n, h, w, 192)
    s2_planes, _, _ = _parity_planes(s2_sp, jnp.bfloat16)

    # ---- branch0 conv + branch1 conv #3 (BN2+ReLU fused) + max-pool ----------
    w0_r = w0.reshape(9, 256, 384).astype(jnp.bfloat16)
    w1c_r = w1c.reshape(9, 192, 256).astype(jnp.bfloat16)
    raw_cat, stats_h = _head(x_planes, s2_planes, w0_r, w1c_r, sc2, sh2,
                             hh, wh, ho, wo)                   # (n, lh, 896) bf16

    sc0, sh0 = _fold_bn(stats_h[:, :, 0:384], n * ho * wo, g0, b0)
    sc3, sh3 = _fold_bn(stats_h[:, :, 384:640], n * ho * wo, g1c, b1c)
    scale_f = jnp.concatenate([sc0, sc3], axis=1)              # (1, 640)
    shift_f = jnp.concatenate([sh0, sh3], axis=1)

    # ---- final BN + ReLU on the conv branches, pool passthrough --------------
    lh = (ho - 1) * wh + wo
    out_flat = _finalize(raw_cat.reshape(n * lh, 896), scale_f, shift_f)

    out = jnp.pad(out_flat.reshape(n, lh, 896), ((0, 0), (0, wh - wo), (0, 0)))
    out = out.reshape(n, ho, wh, 896)[:, :, :wo, :]            # strip wrap rows
    return jnp.transpose(out, (0, 3, 1, 2))                    # NCHW


# ------------------------- parameters (synthetic) ----------------------------

def init_params(key):
    ks = jax.random.split(key, 8)

    def conv_w(k, shape, fan_in):
        bound = 1.0 / math.sqrt(fan_in)
        wgt = jax.random.uniform(k, shape, jnp.float32, -bound, bound)
        # Round weights to bf16-representable values so the kernel's bf16 MXU
        # path and the f32 reference use identical weights.
        return wgt.astype(jnp.bfloat16).astype(jnp.float32)

    def bn_p(k, ch):
        kg, kb = jax.random.split(k)
        gamma = jax.random.uniform(kg, (ch,), jnp.float32, 0.5, 1.5)
        beta = jax.random.uniform(kb, (ch,), jnp.float32, -0.5, 0.5)
        return gamma, beta

    w0 = conv_w(ks[0], (3, 3, 256, 384), 256 * 9);  g0, b0 = bn_p(ks[1], 384)
    w1a = conv_w(ks[2], (256, 192), 256);           g1a, b1a = bn_p(ks[3], 192)
    w1b = conv_w(ks[4], (3, 3, 192, 192), 192 * 9); g1b, b1b = bn_p(ks[5], 192)
    w1c = conv_w(ks[6], (3, 3, 192, 256), 192 * 9); g1c, b1c = bn_p(ks[7], 256)

    return (w0, g0, b0, w1a, g1a, b1a, w1b, g1b, b1b, w1c, g1c, b1c)


# ---------------------- pure-JAX reference (for check) -----------------------

def mixed6a_reference(x_nchw, params):
    (w0, g0, b0, w1a, g1a, b1a, w1b, g1b, b1b, w1c, g1c, b1c) = params
    x = jnp.transpose(x_nchw, (0, 2, 3, 1)).astype(jnp.float32)

    def conv(z, w_hwio, stride, pad):
        return lax.conv_general_dilated(
            z, w_hwio, (stride, stride), [(pad, pad), (pad, pad)],
            dimension_numbers=("NHWC", "HWIO", "NHWC"))

    def bn_relu(y, gamma, beta):
        mu = y.mean(axis=(0, 1, 2), keepdims=True)
        var = ((y - mu) ** 2).mean(axis=(0, 1, 2), keepdims=True)
        yn = (y - mu) * lax.rsqrt(var + EPS)
        return jnp.maximum(yn * gamma.reshape(1, 1, 1, -1)
                           + beta.reshape(1, 1, 1, -1), 0.0)

    x0 = bn_relu(conv(x, w0, 2, 0), g0, b0)
    x1 = bn_relu(conv(x, w1a.reshape(1, 1, 256, 192), 1, 0), g1a, b1a)
    x1 = bn_relu(conv(x1, w1b, 1, 1), g1b, b1b)
    x1 = bn_relu(conv(x1, w1c, 2, 0), g1c, b1c)
    x2 = lax.reduce_window(x, -jnp.inf, lax.max,
                           (1, 3, 3, 1), (1, 2, 2, 1), "VALID")
    out = jnp.concatenate([x0, x1, x2], axis=-1)
    return jnp.transpose(out, (0, 3, 1, 2))


# ---------------------------------- main -------------------------------------

if __name__ == "__main__":
    key = jax.random.PRNGKey(0)
    kx, kp = jax.random.split(key)

    # Small shapes; 256 input channels are dictated by Mixed_6a itself.
    N, C, H, W = 2, 256, 9, 9
    Ho, Wo = (H - 3) // 2 + 1, (W - 3) // 2 + 1

    x = jax.random.normal(kx, (N, C, H, W), jnp.float32)
    params = init_params(kp)

    fwd = jax.jit(mixed6a_forward)
    out = jax.block_until_ready(fwd(x, params))

    ref = mixed6a_reference(x, params)
    assert out.shape == ref.shape == (N, 384 + 256 + 256, Ho, Wo)

    # bf16 inter-kernel activations -> mixed absolute/relative tolerance.
    err = jnp.abs(out - ref)
    tol = 5e-2 + 2e-2 * jnp.abs(ref)
    if not bool(jnp.all(err <= tol)):
        raise AssertionError(
            "Pallas kernel mismatch vs reference: "
            f"max_abs={float(jnp.max(err)):.4f} "
            f"max_excess={float(jnp.max(err - tol)):.4f}")

    print("KERNEL_OK")
</pallas_src>

<mosaic_0001>
module attributes {stable_mosaic.version = 11 : i64} {
  func.func @_conv1x1_kernel(%arg0: i32, %arg1: memref<168x256xf32, #tpu.memory_space<vmem>>, %arg2: memref<256x192xbf16, #tpu.memory_space<vmem>>, %arg3: memref<168x192xbf16, #tpu.memory_space<vmem>>, %arg4: memref<1x2x192xf32, #tpu.memory_space<vmem>>) attributes {dimension_semantics = [#tpu.dimension_semantics<parallel>], iteration_bounds = array<i64: 1>, scalar_prefetch = 0 : i64, scratch_operands = 0 : i64, tpu.core_type = #tpu.core_type<tc>, window_params = [{transform_indices = @transform_0, window_bounds = array<i64: 168, 256>}, {pipeline_mode = #tpu.pipeline_mode<synchronous>, transform_indices = @transform_1, window_bounds = array<i64: 256, 192>}, {transform_indices = @transform_2, window_bounds = array<i64: 168, 192>}, {transform_indices = @transform_3, window_bounds = array<i64: 1, 2, 192>}]} {
    %c0 = arith.constant 0 : index
    %c0_0 = arith.constant 0 : index
    %0 = vector.load %arg1[%c0, %c0_0] : memref<168x256xf32, #tpu.memory_space<vmem>>, vector<168x256xf32>
    %1 = arith.truncf %0 : vector<168x256xf32> to vector<168x256xbf16>
    %c0_1 = arith.constant 0 : index
    %c0_2 = arith.constant 0 : index
    %2 = vector.load %arg2[%c0_1, %c0_2] : memref<256x192xbf16, #tpu.memory_space<vmem>>, vector<256x192xbf16>
    %cst = arith.constant dense<0.000000e+00> : vector<168x192xf32>
    %3 = tpu.matmul %1, %2, %cst {dimension_numbers = #tpu.dot_dimension_numbers<[1], [0], [0], [1], [0, 0, 1, 1], [], []>} : vector<168x256xbf16>, vector<256x192xbf16>, vector<168x192xf32> -> vector<168x192xf32>
    %4 = arith.truncf %3 : vector<168x192xf32> to vector<168x192xbf16>
    %c0_3 = arith.constant 0 : index
    %c0_4 = arith.constant 0 : index
    %5 = vector.load %arg3[%c0_3, %c0_4] : memref<168x192xbf16, #tpu.memory_space<vmem>>, vector<168x192xbf16>
    tpu.vector_store %arg3[%c0_3, %c0_4], %4 {strides = array<i32>} : memref<168x192xbf16, #tpu.memory_space<vmem>>, vector<168x192xbf16>,
    %6 = tpu.iota {dimensions = array<i32: 0>} : vector<168x1xi32>
    %c168_i32 = arith.constant 168 : i32
    %7 = arith.muli %arg0, %c168_i32 : i32
    %8 = vector.broadcast %7 : i32 to vector<168x1xi32>
    %9 = arith.addi %6, %8 : vector<168x1xi32>
    %c162_i32 = arith.constant 162 : i32
    %10 = vector.broadcast %c162_i32 : i32 to vector<168x1xi32>
    %11 = arith.cmpi slt, %9, %10 : vector<168x1xi32>
    %cst_5 = arith.constant 0.000000e+00 : f32
    %12 = vector.shape_cast %11 : vector<168x1xi1> to vector<168x1xi1>
    %13 = vector.broadcast %12 : vector<168x1xi1> to vector<168x192xi1>
    %14 = vector.broadcast %cst_5 : f32 to vector<168x192xf32>
    %15 = arith.select %13, %3, %14 : vector<168x192xi1>, vector<168x192xf32>
    %cst_6 = arith.constant dense<0.000000e+00> : vector<192xf32>
    %16 = vector.multi_reduction <add>, %15, %cst_6 [0] : vector<168x192xf32> to vector<192xf32>
    %17 = vector.shape_cast %16 : vector<192xf32> to vector<1x192xf32>
    %c0_7 = arith.constant 0 : index
    %c0_8 = arith.constant 0 : index
    %c0_9 = arith.constant 0 : index
    %18 = vector.load %arg4[%c0_7, %c0_8, %c0_9] : memref<1x2x192xf32, #tpu.memory_space<vmem>>, vector<1x1x192xf32>
    %19 = vector.shape_cast %18 : vector<1x1x192xf32> to vector<1x192xf32>
    %20 = vector.shape_cast %17 : vector<1x192xf32> to vector<1x1x192xf32>
    tpu.vector_store %arg4[%c0_7, %c0_8, %c0_9], %20 {strides = array<i32>} : memref<1x2x192xf32, #tpu.memory_space<vmem>>, vector<1x1x192xf32>,
    %21 = arith.mulf %15, %15 : vector<168x192xf32>
    %cst_10 = arith.constant dense<0.000000e+00> : vector<192xf32>
    %22 = vector.multi_reduction <add>, %21, %cst_10 [0] : vector<168x192xf32> to vector<192xf32>
    %23 = vector.shape_cast %22 : vector<192xf32> to vector<1x192xf32>
    %c0_11 = arith.constant 0 : index
    %c1 = arith.constant 1 : index
    %c0_12 = arith.constant 0 : index
    %24 = vector.load %arg4[%c0_11, %c1, %c0_12] : memref<1x2x192xf32, #tpu.memory_space<vmem>>, vector<1x1x192xf32>
    %25 = vector.shape_cast %24 : vector<1x1x192xf32> to vector<1x192xf32>
    %26 = vector.shape_cast %23 : vector<1x192xf32> to vector<1x1x192xf32>
    tpu.vector_store %arg4[%c0_11, %c1, %c0_12], %26 {strides = array<i32>} : memref<1x2x192xf32, #tpu.memory_space<vmem>>, vector<1x1x192xf32>,
    return
  }
  func.func @transform_0(%arg0: i32) -> (i32, i32) {
    %c0_i32 = arith.constant 0 : i32
    %c0_i32_0 = arith.constant 0 : i32
    return %arg0, %c0_i32 : i32, i32
  }
  func.func @transform_1(%arg0: i32) -> (i32, i32) {
    %c0_i32 = arith.constant 0 : i32
    %c0_i32_0 = arith.constant 0 : i32
    %c0_i32_1 = arith.constant 0 : i32
    return %c0_i32, %c0_i32_0 : i32, i32
  }
  func.func @transform_2(%arg0: i32) -> (i32, i32) {
    %c0_i32 = arith.constant 0 : i32
    %c0_i32_0 = arith.constant 0 : i32
    return %arg0, %c0_i32 : i32, i32
  }
  func.func @transform_3(%arg0: i32) -> (i32, i32, i32) {
    %c0_i32 = arith.constant 0 : i32
    %c0_i32_0 = arith.constant 0 : i32
    %c0_i32_1 = arith.constant 0 : i32
    return %arg0, %c0_i32, %c0_i32_0 : i32, i32, i32
  }
}

module attributes {stable_mosaic.version = 11 : i64} {
  func.func @_conv3x3_same_kernel(%arg0: i32, %arg1: memref<1x81x192xbf16, #tpu.memory_space<vmem>>, %arg2: memref<9x192x192xbf16, #tpu.memory_space<vmem>>, %arg3: memref<1x192xf32, #tpu.memory_space<vmem>>, %arg4: memref<1x192xf32, #tpu.memory_space<vmem>>, %arg5: memref<1x97x192xbf16, #tpu.memory_space<vmem>>, %arg6: memref<1x2x192xf32, #tpu.memory_space<vmem>>, %arg7: memref<121x192xf32, #tpu.memory_space<vmem>>) attributes {dimension_semantics = [#tpu.dimension_semantics<parallel>], iteration_bounds = array<i64: 2>, scalar_prefetch = 0 : i64, scratch_operands = 1 : i64, tpu.core_type = #tpu.core_type<tc>, window_params = [{transform_indices = @transform_0, window_bounds = array<i64: 1, 81, 192>}, {pipeline_mode = #tpu.pipeline_mode<synchronous>, transform_indices = @transform_1, window_bounds = array<i64: 9, 192, 192>}, {pipeline_mode = #tpu.pipeline_mode<synchronous>, transform_indices = @transform_2, window_bounds = array<i64: 1, 192>}, {pipeline_mode = #tpu.pipeline_mode<synchronous>, transform_indices = @transform_3, window_bounds = array<i64: 1, 192>}, {transform_indices = @transform_4, window_bounds = array<i64: 1, 97, 192>}, {transform_indices = @transform_5, window_bounds = array<i64: 1, 2, 192>}]} {
    %c0 = arith.constant 0 : index
    %c0_0 = arith.constant 0 : index
    %c0_1 = arith.constant 0 : index
    %0 = vector.load %arg1[%c0, %c0_0, %c0_1] : memref<1x81x192xbf16, #tpu.memory_space<vmem>>, vector<1x81x192xbf16>
    %1 = vector.shape_cast %0 : vector<1x81x192xbf16> to vector<81x192xbf16>
    %2 = arith.extf %1 : vector<81x192xbf16> to vector<81x192xf32>
    %c0_2 = arith.constant 0 : index
    %c0_3 = arith.constant 0 : index
    %3 = vector.load %arg3[%c0_2, %c0_3] : memref<1x192xf32, #tpu.memory_space<vmem>>, vector<1x192xf32>
    %4 = vector.broadcast %3 : vector<1x192xf32> to vector<81x192xf32>
    %5 = arith.mulf %2, %4 : vector<81x192xf32>
    %c0_4 = arith.constant 0 : index
    %c0_5 = arith.constant 0 : index
    %6 = vector.load %arg4[%c0_4, %c0_5] : memref<1x192xf32, #tpu.memory_space<vmem>>, vector<1x192xf32>
    %7 = vector.broadcast %6 : vector<1x192xf32> to vector<81x192xf32>
    %8 = arith.addf %5, %7 : vector<81x192xf32>
    %cst = arith.constant 0.000000e+00 : f32
    %9 = vector.broadcast %cst : f32 to vector<81x192xf32>
    %10 = arith.maximumf %8, %9 : vector<81x192xf32>
    %cst_6 = arith.constant 0.000000e+00 : f32
    %11 = vector.broadcast %cst_6 : f32 to vector<121x192xf32>
    %c0_7 = arith.constant 0 : index
    %c0_8 = arith.constant 0 : index
    %12 = vector.load %arg7[%c0_7, %c0_8] : memref<121x192xf32, #tpu.memory_space<vmem>>, vector<121x192xf32>
    tpu.vector_store %arg7[%c0_7, %c0_8], %11 {strides = array<i32>} : memref<121x192xf32, #tpu.memory_space<vmem>>, vector<121x192xf32>,
    %13 = vector.extract_strided_slice %10 {offsets = [0, 0], sizes = [9, 192], strides = [1, 1]} : vector<81x192xf32> to vector<9x192xf32>
    %c12 = arith.constant 12 : index
    %c0_9 = arith.constant 0 : index
    %14 = vector.load %arg7[%c12, %c0_9] : memref<121x192xf32, #tpu.memory_space<vmem>>, vector<9x192xf32>
    tpu.vector_store %arg7[%c12, %c0_9], %13 {strides = array<i32>} : memref<121x192xf32, #tpu.memory_space<vmem>>, vector<9x192xf32>,
    %15 = vector.extract_strided_slice %10 {offsets = [9, 0], sizes = [9, 192], strides = [1, 1]} : vector<81x192xf32> to vector<9x192xf32>
    %c23 = arith.constant 23 : index
    %c0_10 = arith.constant 0 : index
    %16 = vector.load %arg7[%c23, %c0_10] : memref<121x192xf32, #tpu.memory_space<vmem>>, vector<9x192xf32>
    tpu.vector_store %arg7[%c23, %c0_10], %15 {strides = array<i32>} : memref<121x192xf32, #tpu.memory_space<vmem>>, vector<9x192xf32>,
    %17 = vector.extract_strided_slice %10 {offsets = [18, 0], sizes = [9, 192], strides = [1, 1]} : vector<81x192xf32> to vector<9x192xf32>
    %c34 = arith.constant 34 : index
    %c0_11 = arith.constant 0 : index
    %18 = vector.load %arg7[%c34, %c0_11] : memref<121x192xf32, #tpu.memory_space<vmem>>, vector<9x192xf32>
    tpu.vector_store %arg7[%c34, %c0_11], %17 {strides = array<i32>} : memref<121x192xf32, #tpu.memory_space<vmem>>, vector<9x192xf32>,
    %19 = vector.extract_strided_slice %10 {offsets = [27, 0], sizes = [9, 192], strides = [1, 1]} : vector<81x192xf32> to vector<9x192xf32>
    %c45 = arith.constant 45 : index
    %c0_12 = arith.constant 0 : index
    %20 = vector.load %arg7[%c45, %c0_12] : memref<121x192xf32, #tpu.memory_space<vmem>>, vector<9x192xf32>
    tpu.vector_store %arg7[%c45, %c0_12], %19 {strides = array<i32>} : memref<121x192xf32, #tpu.memory_space<vmem>>, vector<9x192xf32>,
    %21 = vector.extract_strided_slice %10 {offsets = [36, 0], sizes = [9, 192], strides = [1, 1]} : vector<81x192xf32> to vector<9x192xf32>
    %c56 = arith.constant 56 : index
    %c0_13 = arith.constant 0 : index
    %22 = vector.load %arg7[%c56, %c0_13] : memref<121x192xf32, #tpu.memory_space<vmem>>, vector<9x192xf32>
    tpu.vector_store %arg7[%c56, %c0_13], %21 {strides = array<i32>} : memref<121x192xf32, #tpu.memory_space<vmem>>, vector<9x192xf32>,
    %23 = vector.extract_strided_slice %10 {offsets = [45, 0], sizes = [9, 192], strides = [1, 1]} : vector<81x192xf32> to vector<9x192xf32>
    %c67 = arith.constant 67 : index
    %c0_14 = arith.constant 0 : index
    %24 = vector.load %arg7[%c67, %c0_14] : memref<121x192xf32, #tpu.memory_space<vmem>>, vector<9x192xf32>
    tpu.vector_store %arg7[%c67, %c0_14], %23 {strides = array<i32>} : memref<121x192xf32, #tpu.memory_space<vmem>>, vector<9x192xf32>,
    %25 = vector.extract_strided_slice %10 {offsets = [54, 0], sizes = [9, 192], strides = [1, 1]} : vector<81x192xf32> to vector<9x192xf32>
    %c78 = arith.constant 78 : index
    %c0_15 = arith.constant 0 : index
    %26 = vector.load %arg7[%c78, %c0_15] : memref<121x192xf32, #tpu.memory_space<vmem>>, vector<9x192xf32>
    tpu.vector_store %arg7[%c78, %c0_15], %25 {strides = array<i32>} : memref<121x192xf32, #tpu.memory_space<vmem>>, vector<9x192xf32>,
    %27 = vector.extract_strided_slice %10 {offsets = [63, 0], sizes = [9, 192], strides = [1, 1]} : vector<81x192xf32> to vector<9x192xf32>
    %c89 = arith.constant 89 : index
    %c0_16 = arith.constant 0 : index
    %28 = vector.load %arg7[%c89, %c0_16] : memref<121x192xf32, #tpu.memory_space<vmem>>, vector<9x192xf32>
    tpu.vector_store %arg7[%c89, %c0_16], %27 {strides = array<i32>} : memref<121x192xf32, #tpu.memory_space<vmem>>, vector<9x192xf32>,
    %29 = vector.extract_strided_slice %10 {offsets = [72, 0], sizes = [9, 192], strides = [1, 1]} : vector<81x192xf32> to vector<9x192xf32>
    %c100 = arith.constant 100 : index
    %c0_17 = arith.constant 0 : index
    %30 = vector.load %arg7[%c100, %c0_17] : memref<121x192xf32, #tpu.memory_space<vmem>>, vector<9x192xf32>
    tpu.vector_store %arg7[%c100, %c0_17], %29 {strides = array<i32>} : memref<121x192xf32, #tpu.memory_space<vmem>>, vector<9x192xf32>,
    %cst_18 = arith.constant 0.000000e+00 : f32
    %31 = vector.broadcast %cst_18 : f32 to vector<97x192xf32>
    %c0_19 = arith.constant 0 : index
    %c0_20 = arith.constant 0 : index
    %32 = vector.load %arg7[%c0_19, %c0_20] : memref<121x192xf32, #tpu.memory_space<vmem>>, vector<97x192xf32>
    %33 = arith.truncf %32 : vector<97x192xf32> to vector<97x192xbf16>
    %c0_21 = arith.constant 0 : index
    %c0_22 = arith.constant 0 : index
    %c0_23 = arith.constant 0 : index
    %34 = vector.load %arg2[%c0_21, %c0_22, %c0_23] : memref<9x192x192xbf16, #tpu.memory_space<vmem>>, vector<1x192x192xbf16>
    %35 = vector.shape_cast %34 : vector<1x192x192xbf16> to vector<192x192xbf16>
    %cst_24 = arith.constant dense<0.000000e+00> : vector<97x192xf32>
    %36 = tpu.matmul %33, %35, %cst_24 {dimension_numbers = #tpu.dot_dimension_numbers<[1], [0], [0], [1], [0, 0, 1, 1], [], []>} : vector<97x192xbf16>, vector<192x192xbf16>, vector<97x192xf32> -> vector<97x192xf32>
    %37 = arith.addf %31, %36 : vector<97x192xf32>
    %c1 = arith.constant 1 : index
    %c0_25 = arith.constant 0 : index
    %38 = vector.load %arg7[%c1, %c0_25] : memref<121x192xf32, #tpu.memory_space<vmem>>, vector<97x192xf32>
    %39 = arith.truncf %38 : vector<97x192xf32> to vector<97x192xbf16>
    %c1_26 = arith.constant 1 : index
    %c0_27 = arith.constant 0 : index
    %c0_28 = arith.constant 0 : index
    %40 = vector.load %arg2[%c1_26, %c0_27, %c0_28] : memref<9x192x192xbf16, #tpu.memory_space<vmem>>, vector<1x192x192xbf16>
    %41 = vector.shape_cast %40 : vector<1x192x192xbf16> to vector<192x192xbf16>
    %cst_29 = arith.constant dense<0.000000e+00> : vector<97x192xf32>
    %42 = tpu.matmul %39, %41, %cst_29 {dimension_numbers = #tpu.dot_dimension_numbers<[1], [0], [0], [1], [0, 0, 1, 1], [], []>} : vector<97x192xbf16>, vector<192x192xbf16>, vector<97x192xf32> -> vector<97x192xf32>
    %43 = arith.addf %37, %42 : vector<97x192xf32>
    %c2 = arith.constant 2 : index
    %c0_30 = arith.constant 0 : index
    %44 = vector.load %arg7[%c2, %c0_30] : memref<121x192xf32, #tpu.memory_space<vmem>>, vector<97x192xf32>
    %45 = arith.truncf %44 : vector<97x192xf32> to vector<97x192xbf16>
    %c2_31 = arith.constant 2 : index
    %c0_32 = arith.constant 0 : index
    %c0_33 = arith.constant 0 : index
    %46 = vector.load %arg2[%c2_31, %c0_32, %c0_33] : memref<9x192x192xbf16, #tpu.memory_space<vmem>>, vector<1x192x192xbf16>
    %47 = vector.shape_cast %46 : vector<1x192x192xbf16> to vector<192x192xbf16>
    %cst_34 = arith.constant dense<0.000000e+00> : vector<97x192xf32>
    %48 = tpu.matmul %45, %47, %cst_34 {dimension_numbers = #tpu.dot_dimension_numbers<[1], [0], [0], [1], [0, 0, 1, 1], [], []>} : vector<97x192xbf16>, vector<192x192xbf16>, vector<97x192xf32> -> vector<97x192xf32>
    %49 = arith.addf %43, %48 : vector<97x192xf32>
    %c11 = arith.constant 11 : index
    %c0_35 = arith.constant 0 : index
    %50 = vector.load %arg7[%c11, %c0_35] : memref<121x192xf32, #tpu.memory_space<vmem>>, vector<97x192xf32>
    %51 = arith.truncf %50 : vector<97x192xf32> to vector<97x192xbf16>
    %c3 = arith.constant 3 : index
    %c0_36 = arith.constant 0 : index
    %c0_37 = arith.constant 0 : index
    %52 = vector.load %arg2[%c3, %c0_36, %c0_37] : memref<9x192x192xbf16, #tpu.memory_space<vmem>>, vector<1x192x192xbf16>
    %53 = vector.shape_cast %52 : vector<1x192x192xbf16> to vector<192x192xbf16>
    %cst_38 = arith.constant dense<0.000000e+00> : vector<97x192xf32>
    %54 = tpu.matmul %51, %53, %cst_38 {dimension_numbers = #tpu.dot_dimension_numbers<[1], [0], [0], [1], [0, 0, 1, 1], [], []>} : vector<97x192xbf16>, vector<192x192xbf16>, vector<97x192xf32> -> vector<97x192xf32>
    %55 = arith.addf %49, %54 : vector<97x192xf32>
    %c12_39 = arith.constant 12 : index
    %c0_40 = arith.constant 0 : index
    %56 = vector.load %arg7[%c12_39, %c0_40] : memref<121x192xf32, #tpu.memory_space<vmem>>, vector<97x192xf32>
    %57 = arith.truncf %56 : vector<97x192xf32> to vector<97x192xbf16>
    %c4 = arith.constant 4 : index
    %c0_41 = arith.constant 0 : index
    %c0_42 = arith.constant 0 : index
    %58 = vector.load %arg2[%c4, %c0_41, %c0_42] : memref<9x192x192xbf16, #tpu.memory_space<vmem>>, vector<1x192x192xbf16>
    %59 = vector.shape_cast %58 : vector<1x192x192xbf16> to vector<192x192xbf16>
    %cst_43 = arith.constant dense<0.000000e+00> : vector<97x192xf32>
    %60 = tpu.matmul %57, %59, %cst_43 {dimension_numbers = #tpu.dot_dimension_numbers<[1], [0], [0], [1], [0, 0, 1, 1], [], []>} : vector<97x192xbf16>, vector<192x192xbf16>, vector<97x192xf32> -> vector<97x192xf32>
    %61 = arith.addf %55, %60 : vector<97x192xf32>
    %c13 = arith.constant 13 : index
    %c0_44 = arith.constant 0 : index
    %62 = vector.load %arg7[%c13, %c0_44] : memref<121x192xf32, #tpu.memory_space<vmem>>, vector<97x192xf32>
    %63 = arith.truncf %62 : vector<97x192xf32> to vector<97x192xbf16>
    %c5 = arith.constant 5 : index
    %c0_45 = arith.constant 0 : index
    %c0_46 = arith.constant 0 : index
    %64 = vector.load %arg2[%c5, %c0_45, %c0_46] : memref<9x192x192xbf16, #tpu.memory_space<vmem>>, vector<1x192x192xbf16>
    %65 = vector.shape_cast %64 : vector<1x192x192xbf16> to vector<192x192xbf16>
    %cst_47 = arith.constant dense<0.000000e+00> : vector<97x192xf32>
    %66 = tpu.matmul %63, %65, %cst_47 {dimension_numbers = #tpu.dot_dimension_numbers<[1], [0], [0], [1], [0, 0, 1, 1], [], []>} : vector<97x192xbf16>, vector<192x192xbf16>, vector<97x192xf32> -> vector<97x192xf32>
    %67 = arith.addf %61, %66 : vector<97x192xf32>
    %c22 = arith.constant 22 : index
    %c0_48 = arith.constant 0 : index
    %68 = vector.load %arg7[%c22, %c0_48] : memref<121x192xf32, #tpu.memory_space<vmem>>, vector<97x192xf32>
    %69 = arith.truncf %68 : vector<97x192xf32> to vector<97x192xbf16>
    %c6 = arith.constant 6 : index
    %c0_49 = arith.constant 0 : index
    %c0_50 = arith.constant 0 : index
    %70 = vector.load %arg2[%c6, %c0_49, %c0_50] : memref<9x192x192xbf16, #tpu.memory_space<vmem>>, vector<1x192x192xbf16>
    %71 = vector.shape_cast %70 : vector<1x192x192xbf16> to vector<192x192xbf16>
    %cst_51 = arith.constant dense<0.000000e+00> : vector<97x192xf32>
    %72 = tpu.matmul %69, %71, %cst_51 {dimension_numbers = #tpu.dot_dimension_numbers<[1], [0], [0], [1], [0, 0, 1, 1], [], []>} : vector<97x192xbf16>, vector<192x192xbf16>, vector<97x192xf32> -> vector<97x192xf32>
    %73 = arith.addf %67, %72 : vector<97x192xf32>
    %c23_52 = arith.constant 23 : index
    %c0_53 = arith.constant 0 : index
    %74 = vector.load %arg7[%c23_52, %c0_53] : memref<121x192xf32, #tpu.memory_space<vmem>>, vector<97x192xf32>
    %75 = arith.truncf %74 : vector<97x192xf32> to vector<97x192xbf16>
    %c7 = arith.constant 7 : index
    %c0_54 = arith.constant 0 : index
    %c0_55 = arith.constant 0 : index
    %76 = vector.load %arg2[%c7, %c0_54, %c0_55] : memref<9x192x192xbf16, #tpu.memory_space<vmem>>, vector<1x192x192xbf16>
    %77 = vector.shape_cast %76 : vector<1x192x192xbf16> to vector<192x192xbf16>
    %cst_56 = arith.constant dense<0.000000e+00> : vector<97x192xf32>
    %78 = tpu.matmul %75, %77, %cst_56 {dimension_numbers = #tpu.dot_dimension_numbers<[1], [0], [0], [1], [0, 0, 1, 1], [], []>} : vector<97x192xbf16>, vector<192x192xbf16>, vector<97x192xf32> -> vector<97x192xf32>
    %79 = arith.addf %73, %78 : vector<97x192xf32>
    %c24 = arith.constant 24 : index
    %c0_57 = arith.constant 0 : index
    %80 = vector.load %arg7[%c24, %c0_57] : memref<121x192xf32, #tpu.memory_space<vmem>>, vector<97x192xf32>
    %81 = arith.truncf %80 : vector<97x192xf32> to vector<97x192xbf16>
    %c8 = arith.constant 8 : index
    %c0_58 = arith.constant 0 : index
    %c0_59 = arith.constant 0 : index
    %82 = vector.load %arg2[%c8, %c0_58, %c0_59] : memref<9x192x192xbf16, #tpu.memory_space<vmem>>, vector<1x192x192xbf16>
    %83 = vector.shape_cast %82 : vector<1x192x192xbf16> to vector<192x192xbf16>
    %cst_60 = arith.constant dense<0.000000e+00> : vector<97x192xf32>
    %84 = tpu.matmul %81, %83, %cst_60 {dimension_numbers = #tpu.dot_dimension_numbers<[1], [0], [0], [1], [0, 0, 1, 1], [], []>} : vector<97x192xbf16>, vector<192x192xbf16>, vector<97x192xf32> -> vector<97x192xf32>
    %85 = arith.addf %79, %84 : vector<97x192xf32>
    %86 = arith.truncf %85 : vector<97x192xf32> to vector<97x192xbf16>
    %c0_61 = arith.constant 0 : index
    %c0_62 = arith.constant 0 : index
    %c0_63 = arith.constant 0 : index
    %87 = vector.load %arg5[%c0_61, %c0_62, %c0_63] : memref<1x97x192xbf16, #tpu.memory_space<vmem>>, vector<1x97x192xbf16>
    %88 = vector.shape_cast %87 : vector<1x97x192xbf16> to vector<97x192xbf16>
    %89 = vector.shape_cast %86 : vector<97x192xbf16> to vector<1x97x192xbf16>
    tpu.vector_store %arg5[%c0_61, %c0_62, %c0_63], %89 {strides = array<i32>} : memref<1x97x192xbf16, #tpu.memory_space<vmem>>, vector<1x97x192xbf16>,
    %90 = tpu.iota {dimensions = array<i32: 0>} : vector<97x1xi32>
    %c11_i32 = arith.constant 11 : i32
    %c0_i32 = arith.constant 0 : i32
    %91 = arith.cmpi eq, %c11_i32, %c0_i32 : i32
    %c1_i32 = arith.constant 1 : i32
    %92 = arith.select %91, %c1_i32, %c11_i32 : i32
    %93 = vector.broadcast %92 : i32 to vector<97x1xi32>
    %94 = arith.remsi %90, %93 : vector<97x1xi32>
    %c0_i32_64 = arith.constant 0 : i32
    %95 = vector.broadcast %c0_i32_64 : i32 to vector<97x1xi32>
    %96 = arith.cmpi ne, %94, %95 : vector<97x1xi32>
    %c0_i32_65 = arith.constant 0 : i32
    %97 = vector.broadcast %c0_i32_65 : i32 to vector<97x1xi32>
    %98 = arith.cmpi slt, %94, %97 : vector<97x1xi32>
    %c0_i32_66 = arith.constant 0 : i32
    %99 = arith.cmpi slt, %92, %c0_i32_66 : i32
    %100 = vector.broadcast %99 : i1 to vector<97x1xi1>
    %101 = vector.broadcast %100 : vector<97x1xi1> to vector<97x1xi1>
    %102 = arith.xori %98, %101 : vector<97x1xi1>
    %103 = arith.andi %102, %96 : vector<97x1xi1>
    %104 = vector.broadcast %92 : i32 to vector<97x1xi32>
    %105 = arith.addi %94, %104 : vector<97x1xi32>
    %106 = arith.select %103, %105, %94 : vector<97x1xi1>, vector<97x1xi32>
    %c9_i32 = arith.constant 9 : i32
    %107 = vector.broadcast %c9_i32 : i32 to vector<97x1xi32>
    %108 = arith.cmpi slt, %106, %107 : vector<97x1xi32>
    %cst_67 = arith.constant 0.000000e+00 : f32
    %109 = vector.shape_cast %108 : vector<97x1xi1> to vector<97x1xi1>
    %110 = vector.broadcast %109 : vector<97x1xi1> to vector<97x192xi1>
    %111 = vector.broadcast %cst_67 : f32 to vector<97x192xf32>
    %112 = arith.select %110, %85, %111 : vector<97x192xi1>, vector<97x192xf32>
    %cst_68 = arith.constant dense<0.000000e+00> : vector<192xf32>
    %113 = vector.multi_reduction <add>, %112, %cst_68 [0] : vector<97x192xf32> to vector<192xf32>
    %114 = vector.shape_cast %113 : vector<192xf32> to vector<1x192xf32>
    %c0_69 = arith.constant 0 : index
    %c0_70 = arith.constant 0 : index
    %c0_71 = arith.constant 0 : index
    %115 = vector.load %arg6[%c0_69, %c0_70, %c0_71] : memref<1x2x192xf32, #tpu.memory_space<vmem>>, vector<1x1x192xf32>
    %116 = vector.shape_cast %115 : vector<1x1x192xf32> to vector<1x192xf32>
    %117 = vector.shape_cast %114 : vector<1x192xf32> to vector<1x1x192xf32>
    tpu.vector_store %arg6[%c0_69, %c0_70, %c0_71], %117 {strides = array<i32>} : memref<1x2x192xf32, #tpu.memory_space<vmem>>, vector<1x1x192xf32>,
    %118 = arith.mulf %112, %112 : vector<97x192xf32>
    %cst_72 = arith.constant dense<0.000000e+00> : vector<192xf32>
    %119 = vector.multi_reduction <add>, %118, %cst_72 [0] : vector<97x192xf32> to vector<192xf32>
    %120 = vector.shape_cast %119 : vector<192xf32> to vector<1x192xf32>
    %c0_73 = arith.constant 0 : index
    %c1_74 = arith.constant 1 : index
    %c0_75 = arith.constant 0 : index
    %121 = vector.load %arg6[%c0_73, %c1_74, %c0_75] : memref<1x2x192xf32, #tpu.memory_space<vmem>>, vector<1x1x192xf32>
    %122 = vector.shape_cast %121 : vector<1x1x192xf32> to vector<1x192xf32>
    %123 = vector.shape_cast %120 : vector<1x192xf32> to vector<1x1x192xf32>
    tpu.vector_store %arg6[%c0_73, %c1_74, %c0_75], %123 {strides = array<i32>} : memref<1x2x192xf32, #tpu.memory_space<vmem>>, vector<1x1x192xf32>,
    return
  }
  func.func @transform_0(%arg0: i32) -> (i32, i32, i32) {
    %c0_i32 = arith.constant 0 : i32
    %c0_i32_0 = arith.constant 0 : i32
    %c0_i32_1 = arith.constant 0 : i32
    return %arg0, %c0_i32, %c0_i32_0 : i32, i32, i32
  }
  func.func @transform_1(%arg0: i32) -> (i32, i32, i32) {
    %c0_i32 = arith.constant 0 : i32
    %c0_i32_0 = arith.constant 0 : i32
    %c0_i32_1 = arith.constant 0 : i32
    %c0_i32_2 = arith.constant 0 : i32
    return %c0_i32, %c0_i32_0, %c0_i32_1 : i32, i32, i32
  }
  func.func @transform_2(%arg0: i32) -> (i32, i32) {
    %c0_i32 = arith.constant 0 : i32
    %c0_i32_0 = arith.constant 0 : i32
    %c0_i32_1 = arith.constant 0 : i32
    return %c0_i32, %c0_i32_0 : i32, i32
  }
  func.func @transform_3(%arg0: i32) -> (i32, i32) {
    %c0_i32 = arith.constant 0 : i32
    %c0_i32_0 = arith.constant 0 : i32
    %c0_i32_1 = arith.constant 0 : i32
    return %c0_i32, %c0_i32_0 : i32, i32
  }
  func.func @transform_4(%arg0: i32) -> (i32, i32, i32) {
    %c0_i32 = arith.constant 0 : i32
    %c0_i32_0 = arith.constant 0 : i32
    %c0_i32_1 = arith.constant 0 : i32
    return %arg0, %c0_i32, %c0_i32_0 : i32, i32, i32
  }
  func.func @transform_5(%arg0: i32) -> (i32, i32, i32) {
    %c0_i32 = arith.constant 0 : i32
    %c0_i32_0 = arith.constant 0 : i32
    %c0_i32_1 = arith.constant 0 : i32
    return %arg0, %c0_i32, %c0_i32_0 : i32, i32, i32
  }
}

module attributes {stable_mosaic.version = 11 : i64} {
  func.func @_head_kernel(%arg0: i32, %arg1: memref<1x4x25x256xbf16, #tpu.memory_space<vmem>>, %arg2: memref<1x4x25x192xbf16, #tpu.memory_space<vmem>>, %arg3: memref<9x256x384xbf16, #tpu.memory_space<vmem>>, %arg4: memref<9x192x256xbf16, #tpu.memory_space<vmem>>, %arg5: memref<1x192xf32, #tpu.memory_space<vmem>>, %arg6: memref<1x192xf32, #tpu.memory_space<vmem>>, %arg7: memref<1x19x896xbf16, #tpu.memory_space<vmem>>, %arg8: memref<1x2x640xf32, #tpu.memory_space<vmem>>) attributes {dimension_semantics = [#tpu.dimension_semantics<parallel>], iteration_bounds = array<i64: 2>, scalar_prefetch = 0 : i64, scratch_operands = 0 : i64, tpu.core_type = #tpu.core_type<tc>, window_params = [{transform_indices = @transform_0, window_bounds = array<i64: 1, 4, 25, 256>}, {transform_indices = @transform_1, window_bounds = array<i64: 1, 4, 25, 192>}, {pipeline_mode = #tpu.pipeline_mode<synchronous>, transform_indices = @transform_2, window_bounds = array<i64: 9, 256, 384>}, {pipeline_mode = #tpu.pipeline_mode<synchronous>, transform_indices = @transform_3, window_bounds = array<i64: 9, 192, 256>}, {pipeline_mode = #tpu.pipeline_mode<synchronous>, transform_indices = @transform_4, window_bounds = array<i64: 1, 192>}, {pipeline_mode = #tpu.pipeline_mode<synchronous>, transform_indices = @transform_5, window_bounds = array<i64: 1, 192>}, {transform_indices = @transform_6, window_bounds = array<i64: 1, 19, 896>}, {transform_indices = @transform_7, window_bounds = array<i64: 1, 2, 640>}]} {
    %c0 = arith.constant 0 : index
    %c0_0 = arith.constant 0 : index
    %c0_1 = arith.constant 0 : index
    %c0_2 = arith.constant 0 : index
    %0 = vector.load %arg1[%c0, %c0_0, %c0_1, %c0_2] : memref<1x4x25x256xbf16, #tpu.memory_space<vmem>>, vector<1x1x25x256xbf16>
    %1 = vector.shape_cast %0 : vector<1x1x25x256xbf16> to vector<25x256xbf16>
    %c0_3 = arith.constant 0 : index
    %c1 = arith.constant 1 : index
    %c0_4 = arith.constant 0 : index
    %c0_5 = arith.constant 0 : index
    %2 = vector.load %arg1[%c0_3, %c1, %c0_4, %c0_5] : memref<1x4x25x256xbf16, #tpu.memory_space<vmem>>, vector<1x1x25x256xbf16>
    %3 = vector.shape_cast %2 : vector<1x1x25x256xbf16> to vector<25x256xbf16>
    %c0_6 = arith.constant 0 : index
    %c2 = arith.constant 2 : index
    %c0_7 = arith.constant 0 : index
    %c0_8 = arith.constant 0 : index
    %4 = vector.load %arg1[%c0_6, %c2, %c0_7, %c0_8] : memref<1x4x25x256xbf16, #tpu.memory_space<vmem>>, vector<1x1x25x256xbf16>
    %5 = vector.shape_cast %4 : vector<1x1x25x256xbf16> to vector<25x256xbf16>
    %c0_9 = arith.constant 0 : index
    %c3 = arith.constant 3 : index
    %c0_10 = arith.constant 0 : index
    %c0_11 = arith.constant 0 : index
    %6 = vector.load %arg1[%c0_9, %c3, %c0_10, %c0_11] : memref<1x4x25x256xbf16, #tpu.memory_space<vmem>>, vector<1x1x25x256xbf16>
    %7 = vector.shape_cast %6 : vector<1x1x25x256xbf16> to vector<25x256xbf16>
    %c0_12 = arith.constant 0 : index
    %c0_13 = arith.constant 0 : index
    %c0_14 = arith.constant 0 : index
    %c0_15 = arith.constant 0 : index
    %8 = vector.load %arg2[%c0_12, %c0_13, %c0_14, %c0_15] : memref<1x4x25x192xbf16, #tpu.memory_space<vmem>>, vector<1x1x25x192xbf16>
    %9 = vector.shape_cast %8 : vector<1x1x25x192xbf16> to vector<25x192xbf16>
    %10 = arith.extf %9 : vector<25x192xbf16> to vector<25x192xf32>
    %c0_16 = arith.constant 0 : index
    %c0_17 = arith.constant 0 : index
    %11 = vector.load %arg5[%c0_16, %c0_17] : memref<1x192xf32, #tpu.memory_space<vmem>>, vector<1x192xf32>
    %12 = vector.broadcast %11 : vector<1x192xf32> to vector<25x192xf32>
    %13 = arith.mulf %10, %12 : vector<25x192xf32>
    %c0_18 = arith.constant 0 : index
    %c0_19 = arith.constant 0 : index
    %14 = vector.load %arg6[%c0_18, %c0_19] : memref<1x192xf32, #tpu.memory_space<vmem>>, vector<1x192xf32>
    %15 = vector.broadcast %14 : vector<1x192xf32> to vector<25x192xf32>
    %16 = arith.addf %13, %15 : vector<25x192xf32>
    %cst = arith.constant 0.000000e+00 : f32
    %17 = vector.broadcast %cst : f32 to vector<25x192xf32>
    %18 = arith.maximumf %16, %17 : vector<25x192xf32>
    %19 = arith.truncf %18 : vector<25x192xf32> to vector<25x192xbf16>
    %c0_20 = arith.constant 0 : index
    %c1_21 = arith.constant 1 : index
    %c0_22 = arith.constant 0 : index
    %c0_23 = arith.constant 0 : index
    %20 = vector.load %arg2[%c0_20, %c1_21, %c0_22, %c0_23] : memref<1x4x25x192xbf16, #tpu.memory_space<vmem>>, vector<1x1x25x192xbf16>
    %21 = vector.shape_cast %20 : vector<1x1x25x192xbf16> to vector<25x192xbf16>
    %22 = arith.extf %21 : vector<25x192xbf16> to vector<25x192xf32>
    %c0_24 = arith.constant 0 : index
    %c0_25 = arith.constant 0 : index
    %23 = vector.load %arg5[%c0_24, %c0_25] : memref<1x192xf32, #tpu.memory_space<vmem>>, vector<1x192xf32>
    %24 = vector.broadcast %23 : vector<1x192xf32> to vector<25x192xf32>
    %25 = arith.mulf %22, %24 : vector<25x192xf32>
    %c0_26 = arith.constant 0 : index
    %c0_27 = arith.constant 0 : index
    %26 = vector.load %arg6[%c0_26, %c0_27] : memref<1x192xf32, #tpu.memory_space<vmem>>, vector<1x192xf32>
    %27 = vector.broadcast %26 : vector<1x192xf32> to vector<25x192xf32>
    %28 = arith.addf %25, %27 : vector<25x192xf32>
    %cst_28 = arith.constant 0.000000e+00 : f32
    %29 = vector.broadcast %cst_28 : f32 to vector<25x192xf32>
    %30 = arith.maximumf %28, %29 : vector<25x192xf32>
    %31 = arith.truncf %30 : vector<25x192xf32> to vector<25x192xbf16>
    %c0_29 = arith.constant 0 : index
    %c2_30 = arith.constant 2 : index
    %c0_31 = arith.constant 0 : index
    %c0_32 = arith.constant 0 : index
    %32 = vector.load %arg2[%c0_29, %c2_30, %c0_31, %c0_32] : memref<1x4x25x192xbf16, #tpu.memory_space<vmem>>, vector<1x1x25x192xbf16>
    %33 = vector.shape_cast %32 : vector<1x1x25x192xbf16> to vector<25x192xbf16>
    %34 = arith.extf %33 : vector<25x192xbf16> to vector<25x192xf32>
    %c0_33 = arith.constant 0 : index
    %c0_34 = arith.constant 0 : index
    %35 = vector.load %arg5[%c0_33, %c0_34] : memref<1x192xf32, #tpu.memory_space<vmem>>, vector<1x192xf32>
    %36 = vector.broadcast %35 : vector<1x192xf32> to vector<25x192xf32>
    %37 = arith.mulf %34, %36 : vector<25x192xf32>
    %c0_35 = arith.constant 0 : index
    %c0_36 = arith.constant 0 : index
    %38 = vector.load %arg6[%c0_35, %c0_36] : memref<1x192xf32, #tpu.memory_space<vmem>>, vector<1x192xf32>
    %39 = vector.broadcast %38 : vector<1x192xf32> to vector<25x192xf32>
    %40 = arith.addf %37, %39 : vector<25x192xf32>
    %cst_37 = arith.constant 0.000000e+00 : f32
    %41 = vector.broadcast %cst_37 : f32 to vector<25x192xf32>
    %42 = arith.maximumf %40, %41 : vector<25x192xf32>
    %43 = arith.truncf %42 : vector<25x192xf32> to vector<25x192xbf16>
    %c0_38 = arith.constant 0 : index
    %c3_39 = arith.constant 3 : index
    %c0_40 = arith.constant 0 : index
    %c0_41 = arith.constant 0 : index
    %44 = vector.load %arg2[%c0_38, %c3_39, %c0_40, %c0_41] : memref<1x4x25x192xbf16, #tpu.memory_space<vmem>>, vector<1x1x25x192xbf16>
    %45 = vector.shape_cast %44 : vector<1x1x25x192xbf16> to vector<25x192xbf16>
    %46 = arith.extf %45 : vector<25x192xbf16> to vector<25x192xf32>
    %c0_42 = arith.constant 0 : index
    %c0_43 = arith.constant 0 : index
    %47 = vector.load %arg5[%c0_42, %c0_43] : memref<1x192xf32, #tpu.memory_space<vmem>>, vector<1x192xf32>
    %48 = vector.broadcast %47 : vector<1x192xf32> to vector<25x192xf32>
    %49 = arith.mulf %46, %48 : vector<25x192xf32>
    %c0_44 = arith.constant 0 : index
    %c0_45 = arith.constant 0 : index
    %50 = vector.load %arg6[%c0_44, %c0_45] : memref<1x192xf32, #tpu.memory_space<vmem>>, vector<1x192xf32>
    %51 = vector.broadcast %50 : vector<1x192xf32> to vector<25x192xf32>
    %52 = arith.addf %49, %51 : vector<25x192xf32>
    %cst_46 = arith.constant 0.000000e+00 : f32
    %53 = vector.broadcast %cst_46 : f32 to vector<25x192xf32>
    %54 = arith.maximumf %52, %53 : vector<25x192xf32>
    %55 = arith.truncf %54 : vector<25x192xf32> to vector<25x192xbf16>
    %cst_47 = arith.constant 0.000000e+00 : f32
    %56 = vector.broadcast %cst_47 : f32 to vector<19x384xf32>
    %cst_48 = arith.constant 0.000000e+00 : f32
    %57 = vector.broadcast %cst_48 : f32 to vector<19x256xf32>
    %58 = vector.extract_strided_slice %1 {offsets = [0, 0], sizes = [19, 256], strides = [1, 1]} : vector<25x256xbf16> to vector<19x256xbf16>
    %c0_49 = arith.constant 0 : index
    %c0_50 = arith.constant 0 : index
    %c0_51 = arith.constant 0 : index
    %59 = vector.load %arg3[%c0_49, %c0_50, %c0_51] : memref<9x256x384xbf16, #tpu.memory_space<vmem>>, vector<1x256x384xbf16>
    %60 = vector.shape_cast %59 : vector<1x256x384xbf16> to vector<256x384xbf16>
    %cst_52 = arith.constant dense<0.000000e+00> : vector<19x384xf32>
    %61 = tpu.matmul %58, %60, %cst_52 {dimension_numbers = #tpu.dot_dimension_numbers<[1], [0], [0], [1], [0, 0, 1, 1], [], []>} : vector<19x256xbf16>, vector<256x384xbf16>, vector<19x384xf32> -> vector<19x384xf32>
    %62 = arith.addf %56, %61 : vector<19x384xf32>
    %63 = vector.extract_strided_slice %19 {offsets = [0, 0], sizes = [19, 192], strides = [1, 1]} : vector<25x192xbf16> to vector<19x192xbf16>
    %c0_53 = arith.constant 0 : index
    %c0_54 = arith.constant 0 : index
    %c0_55 = arith.constant 0 : index
    %64 = vector.load %arg4[%c0_53, %c0_54, %c0_55] : memref<9x192x256xbf16, #tpu.memory_space<vmem>>, vector<1x192x256xbf16>
    %65 = vector.shape_cast %64 : vector<1x192x256xbf16> to vector<192x256xbf16>
    %cst_56 = arith.constant dense<0.000000e+00> : vector<19x256xf32>
    %66 = tpu.matmul %63, %65, %cst_56 {dimension_numbers = #tpu.dot_dimension_numbers<[1], [0], [0], [1], [0, 0, 1, 1], [], []>} : vector<19x192xbf16>, vector<192x256xbf16>, vector<19x256xf32> -> vector<19x256xf32>
    %67 = arith.addf %57, %66 : vector<19x256xf32>
    %68 = vector.extract_strided_slice %3 {offsets = [0, 0], sizes = [19, 256], strides = [1, 1]} : vector<25x256xbf16> to vector<19x256xbf16>
    %c1_57 = arith.constant 1 : index
    %c0_58 = arith.constant 0 : index
    %c0_59 = arith.constant 0 : index
    %69 = vector.load %arg3[%c1_57, %c0_58, %c0_59] : memref<9x256x384xbf16, #tpu.memory_space<vmem>>, vector<1x256x384xbf16>
    %70 = vector.shape_cast %69 : vector<1x256x384xbf16> to vector<256x384xbf16>
    %cst_60 = arith.constant dense<0.000000e+00> : vector<19x384xf32>
    %71 = tpu.matmul %68, %70, %cst_60 {dimension_numbers = #tpu.dot_dimension_numbers<[1], [0], [0], [1], [0, 0, 1, 1], [], []>} : vector<19x256xbf16>, vector<256x384xbf16>, vector<19x384xf32> -> vector<19x384xf32>
    %72 = arith.addf %62, %71 : vector<19x384xf32>
    %73 = vector.extract_strided_slice %31 {offsets = [0, 0], sizes = [19, 192], strides = [1, 1]} : vector<25x192xbf16> to vector<19x192xbf16>
    %c1_61 = arith.constant 1 : index
    %c0_62 = arith.constant 0 : index
    %c0_63 = arith.constant 0 : index
    %74 = vector.load %arg4[%c1_61, %c0_62, %c0_63] : memref<9x192x256xbf16, #tpu.memory_space<vmem>>, vector<1x192x256xbf16>
    %75 = vector.shape_cast %74 : vector<1x192x256xbf16> to vector<192x256xbf16>
    %cst_64 = arith.constant dense<0.000000e+00> : vector<19x256xf32>
    %76 = tpu.matmul %73, %75, %cst_64 {dimension_numbers = #tpu.dot_dimension_numbers<[1], [0], [0], [1], [0, 0, 1, 1], [], []>} : vector<19x192xbf16>, vector<192x256xbf16>, vector<19x256xf32> -> vector<19x256xf32>
    %77 = arith.addf %67, %76 : vector<19x256xf32>
    %78 = arith.maximumf %58, %68 : vector<19x256xbf16>
    %79 = vector.extract_strided_slice %1 {offsets = [1, 0], sizes = [19, 256], strides = [1, 1]} : vector<25x256xbf16> to vector<19x256xbf16>
    %c2_65 = arith.constant 2 : index
    %c0_66 = arith.constant 0 : index
    %c0_67 = arith.constant 0 : index
    %80 = vector.load %arg3[%c2_65, %c0_66, %c0_67] : memref<9x256x384xbf16, #tpu.memory_space<vmem>>, vector<1x256x384xbf16>
    %81 = vector.shape_cast %80 : vector<1x256x384xbf16> to vector<256x384xbf16>
    %cst_68 = arith.constant dense<0.000000e+00> : vector<19x384xf32>
    %82 = tpu.matmul %79, %81, %cst_68 {dimension_numbers = #tpu.dot_dimension_numbers<[1], [0], [0], [1], [0, 0, 1, 1], [], []>} : vector<19x256xbf16>, vector<256x384xbf16>, vector<19x384xf32> -> vector<19x384xf32>
    %83 = arith.addf %72, %82 : vector<19x384xf32>
    %84 = vector.extract_strided_slice %19 {offsets = [1, 0], sizes = [19, 192], strides = [1, 1]} : vector<25x192xbf16> to vector<19x192xbf16>
    %c2_69 = arith.constant 2 : index
    %c0_70 = arith.constant 0 : index
    %c0_71 = arith.constant 0 : index
    %85 = vector.load %arg4[%c2_69, %c0_70, %c0_71] : memref<9x192x256xbf16, #tpu.memory_space<vmem>>, vector<1x192x256xbf16>
    %86 = vector.shape_cast %85 : vector<1x192x256xbf16> to vector<192x256xbf16>
    %cst_72 = arith.constant dense<0.000000e+00> : vector<19x256xf32>
    %87 = tpu.matmul %84, %86, %cst_72 {dimension_numbers = #tpu.dot_dimension_numbers<[1], [0], [0], [1], [0, 0, 1, 1], [], []>} : vector<19x192xbf16>, vector<192x256xbf16>, vector<19x256xf32> -> vector<19x256xf32>
    %88 = arith.addf %77, %87 : vector<19x256xf32>
    %89 = arith.maximumf %78, %79 : vector<19x256xbf16>
    %90 = vector.extract_strided_slice %5 {offsets = [0, 0], sizes = [19, 256], strides = [1, 1]} : vector<25x256xbf16> to vector<19x256xbf16>
    %c3_73 = arith.constant 3 : index
    %c0_74 = arith.constant 0 : index
    %c0_75 = arith.constant 0 : index
    %91 = vector.load %arg3[%c3_73, %c0_74, %c0_75] : memref<9x256x384xbf16, #tpu.memory_space<vmem>>, vector<1x256x384xbf16>
    %92 = vector.shape_cast %91 : vector<1x256x384xbf16> to vector<256x384xbf16>
    %cst_76 = arith.constant dense<0.000000e+00> : vector<19x384xf32>
    %93 = tpu.matmul %90, %92, %cst_76 {dimension_numbers = #tpu.dot_dimension_numbers<[1], [0], [0], [1], [0, 0, 1, 1], [], []>} : vector<19x256xbf16>, vector<256x384xbf16>, vector<19x384xf32> -> vector<19x384xf32>
    %94 = arith.addf %83, %93 : vector<19x384xf32>
    %95 = vector.extract_strided_slice %43 {offsets = [0, 0], sizes = [19, 192], strides = [1, 1]} : vector<25x192xbf16> to vector<19x192xbf16>
    %c3_77 = arith.constant 3 : index
    %c0_78 = arith.constant 0 : index
    %c0_79 = arith.constant 0 : index
    %96 = vector.load %arg4[%c3_77, %c0_78, %c0_79] : memref<9x192x256xbf16, #tpu.memory_space<vmem>>, vector<1x192x256xbf16>
    %97 = vector.shape_cast %96 : vector<1x192x256xbf16> to vector<192x256xbf16>
    %cst_80 = arith.constant dense<0.000000e+00> : vector<19x256xf32>
    %98 = tpu.matmul %95, %97, %cst_80 {dimension_numbers = #tpu.dot_dimension_numbers<[1], [0], [0], [1], [0, 0, 1, 1], [], []>} : vector<19x192xbf16>, vector<192x256xbf16>, vector<19x256xf32> -> vector<19x256xf32>
    %99 = arith.addf %88, %98 : vector<19x256xf32>
    %100 = arith.maximumf %89, %90 : vector<19x256xbf16>
    %101 = vector.extract_strided_slice %7 {offsets = [0, 0], sizes = [19, 256], strides = [1, 1]} : vector<25x256xbf16> to vector<19x256xbf16>
    %c4 = arith.constant 4 : index
    %c0_81 = arith.constant 0 : index
    %c0_82 = arith.constant 0 : index
    %102 = vector.load %arg3[%c4, %c0_81, %c0_82] : memref<9x256x384xbf16, #tpu.memory_space<vmem>>, vector<1x256x384xbf16>
    %103 = vector.shape_cast %102 : vector<1x256x384xbf16> to vector<256x384xbf16>
    %cst_83 = arith.constant dense<0.000000e+00> : vector<19x384xf32>
    %104 = tpu.matmul %101, %103, %cst_83 {dimension_numbers = #tpu.dot_dimension_numbers<[1], [0], [0], [1], [0, 0, 1, 1], [], []>} : vector<19x256xbf16>, vector<256x384xbf16>, vector<19x384xf32> -> vector<19x384xf32>
    %105 = arith.addf %94, %104 : vector<19x384xf32>
    %106 = vector.extract_strided_slice %55 {offsets = [0, 0], sizes = [19, 192], strides = [1, 1]} : vector<25x192xbf16> to vector<19x192xbf16>
    %c4_84 = arith.constant 4 : index
    %c0_85 = arith.constant 0 : index
    %c0_86 = arith.constant 0 : index
    %107 = vector.load %arg4[%c4_84, %c0_85, %c0_86] : memref<9x192x256xbf16, #tpu.memory_space<vmem>>, vector<1x192x256xbf16>
    %108 = vector.shape_cast %107 : vector<1x192x256xbf16> to vector<192x256xbf16>
    %cst_87 = arith.constant dense<0.000000e+00> : vector<19x256xf32>
    %109 = tpu.matmul %106, %108, %cst_87 {dimension_numbers = #tpu.dot_dimension_numbers<[1], [0], [0], [1], [0, 0, 1, 1], [], []>} : vector<19x192xbf16>, vector<192x256xbf16>, vector<19x256xf32> -> vector<19x256xf32>
    %110 = arith.addf %99, %109 : vector<19x256xf32>
    %111 = arith.maximumf %100, %101 : vector<19x256xbf16>
    %112 = vector.extract_strided_slice %5 {offsets = [1, 0], sizes = [19, 256], strides = [1, 1]} : vector<25x256xbf16> to vector<19x256xbf16>
    %c5 = arith.constant 5 : index
    %c0_88 = arith.constant 0 : index
    %c0_89 = arith.constant 0 : index
    %113 = vector.load %arg3[%c5, %c0_88, %c0_89] : memref<9x256x384xbf16, #tpu.memory_space<vmem>>, vector<1x256x384xbf16>
    %114 = vector.shape_cast %113 : vector<1x256x384xbf16> to vector<256x384xbf16>
    %cst_90 = arith.constant dense<0.000000e+00> : vector<19x384xf32>
    %115 = tpu.matmul %112, %114, %cst_90 {dimension_numbers = #tpu.dot_dimension_numbers<[1], [0], [0], [1], [0, 0, 1, 1], [], []>} : vector<19x256xbf16>, vector<256x384xbf16>, vector<19x384xf32> -> vector<19x384xf32>
    %116 = arith.addf %105, %115 : vector<19x384xf32>
    %117 = vector.extract_strided_slice %43 {offsets = [1, 0], sizes = [19, 192], strides = [1, 1]} : vector<25x192xbf16> to vector<19x192xbf16>
    %c5_91 = arith.constant 5 : index
    %c0_92 = arith.constant 0 : index
    %c0_93 = arith.constant 0 : index
    %118 = vector.load %arg4[%c5_91, %c0_92, %c0_93] : memref<9x192x256xbf16, #tpu.memory_space<vmem>>, vector<1x192x256xbf16>
    %119 = vector.shape_cast %118 : vector<1x192x256xbf16> to vector<192x256xbf16>
    %cst_94 = arith.constant dense<0.000000e+00> : vector<19x256xf32>
    %120 = tpu.matmul %117, %119, %cst_94 {dimension_numbers = #tpu.dot_dimension_numbers<[1], [0], [0], [1], [0, 0, 1, 1], [], []>} : vector<19x192xbf16>, vector<192x256xbf16>, vector<19x256xf32> -> vector<19x256xf32>
    %121 = arith.addf %110, %120 : vector<19x256xf32>
    %122 = arith.maximumf %111, %112 : vector<19x256xbf16>
    %123 = vector.extract_strided_slice %1 {offsets = [5, 0], sizes = [19, 256], strides = [1, 1]} : vector<25x256xbf16> to vector<19x256xbf16>
    %c6 = arith.constant 6 : index
    %c0_95 = arith.constant 0 : index
    %c0_96 = arith.constant 0 : index
    %124 = vector.load %arg3[%c6, %c0_95, %c0_96] : memref<9x256x384xbf16, #tpu.memory_space<vmem>>, vector<1x256x384xbf16>
    %125 = vector.shape_cast %124 : vector<1x256x384xbf16> to vector<256x384xbf16>
    %cst_97 = arith.constant dense<0.000000e+00> : vector<19x384xf32>
    %126 = tpu.matmul %123, %125, %cst_97 {dimension_numbers = #tpu.dot_dimension_numbers<[1], [0], [0], [1], [0, 0, 1, 1], [], []>} : vector<19x256xbf16>, vector<256x384xbf16>, vector<19x384xf32> -> vector<19x384xf32>
    %127 = arith.addf %116, %126 : vector<19x384xf32>
    %128 = vector.extract_strided_slice %19 {offsets = [5, 0], sizes = [19, 192], strides = [1, 1]} : vector<25x192xbf16> to vector<19x192xbf16>
    %c6_98 = arith.constant 6 : index
    %c0_99 = arith.constant 0 : index
    %c0_100 = arith.constant 0 : index
    %129 = vector.load %arg4[%c6_98, %c0_99, %c0_100] : memref<9x192x256xbf16, #tpu.memory_space<vmem>>, vector<1x192x256xbf16>
    %130 = vector.shape_cast %129 : vector<1x192x256xbf16> to vector<192x256xbf16>
    %cst_101 = arith.constant dense<0.000000e+00> : vector<19x256xf32>
    %131 = tpu.matmul %128, %130, %cst_101 {dimension_numbers = #tpu.dot_dimension_numbers<[1], [0], [0], [1], [0, 0, 1, 1], [], []>} : vector<19x192xbf16>, vector<192x256xbf16>, vector<19x256xf32> -> vector<19x256xf32>
    %132 = arith.addf %121, %131 : vector<19x256xf32>
    %133 = arith.maximumf %122, %123 : vector<19x256xbf16>
    %134 = vector.extract_strided_slice %3 {offsets = [5, 0], sizes = [19, 256], strides = [1, 1]} : vector<25x256xbf16> to vector<19x256xbf16>
    %c7 = arith.constant 7 : index
    %c0_102 = arith.constant 0 : index
    %c0_103 = arith.constant 0 : index
    %135 = vector.load %arg3[%c7, %c0_102, %c0_103] : memref<9x256x384xbf16, #tpu.memory_space<vmem>>, vector<1x256x384xbf16>
    %136 = vector.shape_cast %135 : vector<1x256x384xbf16> to vector<256x384xbf16>
    %cst_104 = arith.constant dense<0.000000e+00> : vector<19x384xf32>
    %137 = tpu.matmul %134, %136, %cst_104 {dimension_numbers = #tpu.dot_dimension_numbers<[1], [0], [0], [1], [0, 0, 1, 1], [], []>} : vector<19x256xbf16>, vector<256x384xbf16>, vector<19x384xf32> -> vector<19x384xf32>
    %138 = arith.addf %127, %137 : vector<19x384xf32>
    %139 = vector.extract_strided_slice %31 {offsets = [5, 0], sizes = [19, 192], strides = [1, 1]} : vector<25x192xbf16> to vector<19x192xbf16>
    %c7_105 = arith.constant 7 : index
    %c0_106 = arith.constant 0 : index
    %c0_107 = arith.constant 0 : index
    %140 = vector.load %arg4[%c7_105, %c0_106, %c0_107] : memref<9x192x256xbf16, #tpu.memory_space<vmem>>, vector<1x192x256xbf16>
    %141 = vector.shape_cast %140 : vector<1x192x256xbf16> to vector<192x256xbf16>
    %cst_108 = arith.constant dense<0.000000e+00> : vector<19x256xf32>
    %142 = tpu.matmul %139, %141, %cst_108 {dimension_numbers = #tpu.dot_dimension_numbers<[1], [0], [0], [1], [0, 0, 1, 1], [], []>} : vector<19x192xbf16>, vector<192x256xbf16>, vector<19x256xf32> -> vector<19x256xf32>
    %143 = arith.addf %132, %142 : vector<19x256xf32>
    %144 = arith.maximumf %133, %134 : vector<19x256xbf16>
    %145 = vector.extract_strided_slice %1 {offsets = [6, 0], sizes = [19, 256], strides = [1, 1]} : vector<25x256xbf16> to vector<19x256xbf16>
    %c8 = arith.constant 8 : index
    %c0_109 = arith.constant 0 : index
    %c0_110 = arith.constant 0 : index
    %146 = vector.load %arg3[%c8, %c0_109, %c0_110] : memref<9x256x384xbf16, #tpu.memory_space<vmem>>, vector<1x256x384xbf16>
    %147 = vector.shape_cast %146 : vector<1x256x384xbf16> to vector<256x384xbf16>
    %cst_111 = arith.constant dense<0.000000e+00> : vector<19x384xf32>
    %148 = tpu.matmul %145, %147, %cst_111 {dimension_numbers = #tpu.dot_dimension_numbers<[1], [0], [0], [1], [0, 0, 1, 1], [], []>} : vector<19x256xbf16>, vector<256x384xbf16>, vector<19x384xf32> -> vector<19x384xf32>
    %149 = arith.addf %138, %148 : vector<19x384xf32>
    %150 = vector.extract_strided_slice %19 {offsets = [6, 0], sizes = [19, 192], strides = [1, 1]} : vector<25x192xbf16> to vector<19x192xbf16>
    %c8_112 = arith.constant 8 : index
    %c0_113 = arith.constant 0 : index
    %c0_114 = arith.constant 0 : index
    %151 = vector.load %arg4[%c8_112, %c0_113, %c0_114] : memref<9x192x256xbf16, #tpu.memory_space<vmem>>, vector<1x192x256xbf16>
    %152 = vector.shape_cast %151 : vector<1x192x256xbf16> to vector<192x256xbf16>
    %cst_115 = arith.constant dense<0.000000e+00> : vector<19x256xf32>
    %153 = tpu.matmul %150, %152, %cst_115 {dimension_numbers = #tpu.dot_dimension_numbers<[1], [0], [0], [1], [0, 0, 1, 1], [], []>} : vector<19x192xbf16>, vector<192x256xbf16>, vector<19x256xf32> -> vector<19x256xf32>
    %154 = arith.addf %143, %153 : vector<19x256xf32>
    %155 = arith.maximumf %144, %145 : vector<19x256xbf16>
    %156 = arith.truncf %149 : vector<19x384xf32> to vector<19x384xbf16>
    %c0_116 = arith.constant 0 : index
    %c0_117 = arith.constant 0 : index
    %c0_118 = arith.constant 0 : index
    %157 = vector.load %arg7[%c0_116, %c0_117, %c0_118] : memref<1x19x896xbf16, #tpu.memory_space<vmem>>, vector<1x19x384xbf16>
    %158 = vector.shape_cast %157 : vector<1x19x384xbf16> to vector<19x384xbf16>
    %159 = vector.shape_cast %156 : vector<19x384xbf16> to vector<1x19x384xbf16>
    tpu.vector_store %arg7[%c0_116, %c0_117, %c0_118], %159 {strides = array<i32>} : memref<1x19x896xbf16, #tpu.memory_space<vmem>>, vector<1x19x384xbf16>,
    %160 = arith.truncf %154 : vector<19x256xf32> to vector<19x256xbf16>
    %c0_119 = arith.constant 0 : index
    %c0_120 = arith.constant 0 : index
    %c384 = arith.constant 384 : index
    %161 = vector.load %arg7[%c0_119, %c0_120, %c384] : memref<1x19x896xbf16, #tpu.memory_space<vmem>>, vector<1x19x256xbf16>
    %162 = vector.shape_cast %161 : vector<1x19x256xbf16> to vector<19x256xbf16>
    %163 = vector.shape_cast %160 : vector<19x256xbf16> to vector<1x19x256xbf16>
    tpu.vector_store %arg7[%c0_119, %c0_120, %c384], %163 {strides = array<i32>} : memref<1x19x896xbf16, #tpu.memory_space<vmem>>, vector<1x19x256xbf16>,
    %c0_121 = arith.constant 0 : index
    %c0_122 = arith.constant 0 : index
    %c640 = arith.constant 640 : index
    %164 = vector.load %arg7[%c0_121, %c0_122, %c640] : memref<1x19x896xbf16, #tpu.memory_space<vmem>>, vector<1x19x256xbf16>
    %165 = vector.shape_cast %164 : vector<1x19x256xbf16> to vector<19x256xbf16>
    %166 = vector.shape_cast %155 : vector<19x256xbf16> to vector<1x19x256xbf16>
    tpu.vector_store %arg7[%c0_121, %c0_122, %c640], %166 {strides = array<i32>} : memref<1x19x896xbf16, #tpu.memory_space<vmem>>, vector<1x19x256xbf16>,
    %167 = tpu.iota {dimensions = array<i32: 0>} : vector<19x1xi32>
    %c5_i32 = arith.constant 5 : i32
    %c0_i32 = arith.constant 0 : i32
    %168 = arith.cmpi eq, %c5_i32, %c0_i32 : i32
    %c1_i32 = arith.constant 1 : i32
    %169 = arith.select %168, %c1_i32, %c5_i32 : i32
    %170 = vector.broadcast %169 : i32 to vector<19x1xi32>
    %171 = arith.remsi %167, %170 : vector<19x1xi32>
    %c0_i32_123 = arith.constant 0 : i32
    %172 = vector.broadcast %c0_i32_123 : i32 to vector<19x1xi32>
    %173 = arith.cmpi ne, %171, %172 : vector<19x1xi32>
    %c0_i32_124 = arith.constant 0 : i32
    %174 = vector.broadcast %c0_i32_124 : i32 to vector<19x1xi32>
    %175 = arith.cmpi slt, %171, %174 : vector<19x1xi32>
    %c0_i32_125 = arith.constant 0 : i32
    %176 = arith.cmpi slt, %169, %c0_i32_125 : i32
    %177 = vector.broadcast %176 : i1 to vector<19x1xi1>
    %178 = vector.broadcast %177 : vector<19x1xi1> to vector<19x1xi1>
    %179 = arith.xori %175, %178 : vector<19x1xi1>
    %180 = arith.andi %179, %173 : vector<19x1xi1>
    %181 = vector.broadcast %169 : i32 to vector<19x1xi32>
    %182 = arith.addi %171, %181 : vector<19x1xi32>
    %183 = arith.select %180, %182, %171 : vector<19x1xi1>, vector<19x1xi32>
    %c4_i32 = arith.constant 4 : i32
    %184 = vector.broadcast %c4_i32 : i32 to vector<19x1xi32>
    %185 = arith.cmpi slt, %183, %184 : vector<19x1xi32>
    %cst_126 = arith.constant 0.000000e+00 : f32
    %186 = vector.shape_cast %185 : vector<19x1xi1> to vector<19x1xi1>
    %187 = vector.broadcast %186 : vector<19x1xi1> to vector<19x384xi1>
    %188 = vector.broadcast %cst_126 : f32 to vector<19x384xf32>
    %189 = arith.select %187, %149, %188 : vector<19x384xi1>, vector<19x384xf32>
    %cst_127 = arith.constant 0.000000e+00 : f32
    %190 = vector.shape_cast %185 : vector<19x1xi1> to vector<19x1xi1>
    %191 = vector.broadcast %190 : vector<19x1xi1> to vector<19x256xi1>
    %192 = vector.broadcast %cst_127 : f32 to vector<19x256xf32>
    %193 = arith.select %191, %154, %192 : vector<19x256xi1>, vector<19x256xf32>
    %cst_128 = arith.constant dense<0.000000e+00> : vector<384xf32>
    %194 = vector.multi_reduction <add>, %189, %cst_128 [0] : vector<19x384xf32> to vector<384xf32>
    %195 = vector.shape_cast %194 : vector<384xf32> to vector<1x384xf32>
    %c0_129 = arith.constant 0 : index
    %c0_130 = arith.constant 0 : index
    %c0_131 = arith.constant 0 : index
    %196 = vector.load %arg8[%c0_129, %c0_130, %c0_131] : memref<1x2x640xf32, #tpu.memory_space<vmem>>, vector<1x1x384xf32>
    %197 = vector.shape_cast %196 : vector<1x1x384xf32> to vector<1x384xf32>
    %198 = vector.shape_cast %195 : vector<1x384xf32> to vector<1x1x384xf32>
    tpu.vector_store %arg8[%c0_129, %c0_130, %c0_131], %198 {strides = array<i32>} : memref<1x2x640xf32, #tpu.memory_space<vmem>>, vector<1x1x384xf32>,
    %cst_132 = arith.constant dense<0.000000e+00> : vector<256xf32>
    %199 = vector.multi_reduction <add>, %193, %cst_132 [0] : vector<19x256xf32> to vector<256xf32>
    %200 = vector.shape_cast %199 : vector<256xf32> to vector<1x256xf32>
    %c0_133 = arith.constant 0 : index
    %c0_134 = arith.constant 0 : index
    %c384_135 = arith.constant 384 : index
    %201 = vector.load %arg8[%c0_133, %c0_134, %c384_135] : memref<1x2x640xf32, #tpu.memory_space<vmem>>, vector<1x1x256xf32>
    %202 = vector.shape_cast %201 : vector<1x1x256xf32> to vector<1x256xf32>
    %203 = vector.shape_cast %200 : vector<1x256xf32> to vector<1x1x256xf32>
    tpu.vector_store %arg8[%c0_133, %c0_134, %c384_135], %203 {strides = array<i32>} : memref<1x2x640xf32, #tpu.memory_space<vmem>>, vector<1x1x256xf32>,
    %204 = arith.mulf %189, %189 : vector<19x384xf32>
    %cst_136 = arith.constant dense<0.000000e+00> : vector<384xf32>
    %205 = vector.multi_reduction <add>, %204, %cst_136 [0] : vector<19x384xf32> to vector<384xf32>
    %206 = vector.shape_cast %205 : vector<384xf32> to vector<1x384xf32>
    %c0_137 = arith.constant 0 : index
    %c1_138 = arith.constant 1 : index
    %c0_139 = arith.constant 0 : index
    %207 = vector.load %arg8[%c0_137, %c1_138, %c0_139] : memref<1x2x640xf32, #tpu.memory_space<vmem>>, vector<1x1x384xf32>
    %208 = vector.shape_cast %207 : vector<1x1x384xf32> to vector<1x384xf32>
    %209 = vector.shape_cast %206 : vector<1x384xf32> to vector<1x1x384xf32>
    tpu.vector_store %arg8[%c0_137, %c1_138, %c0_139], %209 {strides = array<i32>} : memref<1x2x640xf32, #tpu.memory_space<vmem>>, vector<1x1x384xf32>,
    %210 = arith.mulf %193, %193 : vector<19x256xf32>
    %cst_140 = arith.constant dense<0.000000e+00> : vector<256xf32>
    %211 = vector.multi_reduction <add>, %210, %cst_140 [0] : vector<19x256xf32> to vector<256xf32>
    %212 = vector.shape_cast %211 : vector<256xf32> to vector<1x256xf32>
    %c0_141 = arith.constant 0 : index
    %c1_142 = arith.constant 1 : index
    %c384_143 = arith.constant 384 : index
    %213 = vector.load %arg8[%c0_141, %c1_142, %c384_143] : memref<1x2x640xf32, #tpu.memory_space<vmem>>, vector<1x1x256xf32>
    %214 = vector.shape_cast %213 : vector<1x1x256xf32> to vector<1x256xf32>
    %215 = vector.shape_cast %212 : vector<1x256xf32> to vector<1x1x256xf32>
    tpu.vector_store %arg8[%c0_141, %c1_142, %c384_143], %215 {strides = array<i32>} : memref<1x2x640xf32, #tpu.memory_space<vmem>>, vector<1x1x256xf32>,
    return
  }
  func.func @transform_0(%arg0: i32) -> (i32, i32, i32, i32) {
    %c0_i32 = arith.constant 0 : i32
    %c0_i32_0 = arith.constant 0 : i32
    %c0_i32_1 = arith.constant 0 : i32
    %c0_i32_2 = arith.constant 0 : i32
    return %arg0, %c0_i32, %c0_i32_0, %c0_i32_1 : i32, i32, i32, i32
  }
  func.func @transform_1(%arg0: i32) -> (i32, i32, i32, i32) {
    %c0_i32 = arith.constant 0 : i32
    %c0_i32_0 = arith.constant 0 : i32
    %c0_i32_1 = arith.constant 0 : i32
    %c0_i32_2 = arith.constant 0 : i32
    return %arg0, %c0_i32, %c0_i32_0, %c0_i32_1 : i32, i32, i32, i32
  }
  func.func @transform_2(%arg0: i32) -> (i32, i32, i32) {
    %c0_i32 = arith.constant 0 : i32
    %c0_i32_0 = arith.constant 0 : i32
    %c0_i32_1 = arith.constant 0 : i32
    %c0_i32_2 = arith.constant 0 : i32
    return %c0_i32, %c0_i32_0, %c0_i32_1 : i32, i32, i32
  }
  func.func @transform_3(%arg0: i32) -> (i32, i32, i32) {
    %c0_i32 = arith.constant 0 : i32
    %c0_i32_0 = arith.constant 0 : i32
    %c0_i32_1 = arith.constant 0 : i32
    %c0_i32_2 = arith.constant 0 : i32
    return %c0_i32, %c0_i32_0, %c0_i32_1 : i32, i32, i32
  }
  func.func @transform_4(%arg0: i32) -> (i32, i32) {
    %c0_i32 = arith.constant 0 : i32
    %c0_i32_0 = arith.constant 0 : i32
    %c0_i32_1 = arith.constant 0 : i32
    return %c0_i32, %c0_i32_0 : i32, i32
  }
  func.func @transform_5(%arg0: i32) -> (i32, i32) {
    %c0_i32 = arith.constant 0 : i32
    %c0_i32_0 = arith.constant 0 : i32
    %c0_i32_1 = arith.constant 0 : i32
    return %c0_i32, %c0_i32_0 : i32, i32
  }
  func.func @transform_6(%arg0: i32) -> (i32, i32, i32) {
    %c0_i32 = arith.constant 0 : i32
    %c0_i32_0 = arith.constant 0 : i32
    %c0_i32_1 = arith.constant 0 : i32
    return %arg0, %c0_i32, %c0_i32_0 : i32, i32, i32
  }
  func.func @transform_7(%arg0: i32) -> (i32, i32, i32) {
    %c0_i32 = arith.constant 0 : i32
    %c0_i32_0 = arith.constant 0 : i32
    %c0_i32_1 = arith.constant 0 : i32
    return %arg0, %c0_i32, %c0_i32_0 : i32, i32, i32
  }
}

module attributes {stable_mosaic.version = 11 : i64} {
  func.func @_final_kernel(%arg0: i32, %arg1: memref<40x896xbf16, #tpu.memory_space<vmem>>, %arg2: memref<1x640xf32, #tpu.memory_space<vmem>>, %arg3: memref<1x640xf32, #tpu.memory_space<vmem>>, %arg4: memref<40x896xf32, #tpu.memory_space<vmem>>) attributes {dimension_semantics = [#tpu.dimension_semantics<parallel>], iteration_bounds = array<i64: 1>, scalar_prefetch = 0 : i64, scratch_operands = 0 : i64, tpu.core_type = #tpu.core_type<tc>, window_params = [{transform_indices = @transform_0, window_bounds = array<i64: 40, 896>}, {pipeline_mode = #tpu.pipeline_mode<synchronous>, transform_indices = @transform_1, window_bounds = array<i64: 1, 640>}, {pipeline_mode = #tpu.pipeline_mode<synchronous>, transform_indices = @transform_2, window_bounds = array<i64: 1, 640>}, {transform_indices = @transform_3, window_bounds = array<i64: 40, 896>}]} {
    %c0 = arith.constant 0 : index
    %c0_0 = arith.constant 0 : index
    %0 = vector.load %arg1[%c0, %c0_0] : memref<40x896xbf16, #tpu.memory_space<vmem>>, vector<40x896xbf16>
    %1 = arith.extf %0 : vector<40x896xbf16> to vector<40x896xf32>
    %2 = vector.extract_strided_slice %1 {offsets = [0, 0], sizes = [40, 640], strides = [1, 1]} : vector<40x896xf32> to vector<40x640xf32>
    %c0_1 = arith.constant 0 : index
    %c0_2 = arith.constant 0 : index
    %3 = vector.load %arg2[%c0_1, %c0_2] : memref<1x640xf32, #tpu.memory_space<vmem>>, vector<1x640xf32>
    %4 = vector.broadcast %3 : vector<1x640xf32> to vector<40x640xf32>
    %5 = arith.mulf %2, %4 : vector<40x640xf32>
    %c0_3 = arith.constant 0 : index
    %c0_4 = arith.constant 0 : index
    %6 = vector.load %arg3[%c0_3, %c0_4] : memref<1x640xf32, #tpu.memory_space<vmem>>, vector<1x640xf32>
    %7 = vector.broadcast %6 : vector<1x640xf32> to vector<40x640xf32>
    %8 = arith.addf %5, %7 : vector<40x640xf32>
    %cst = arith.constant 0.000000e+00 : f32
    %9 = vector.broadcast %cst : f32 to vector<40x640xf32>
    %10 = arith.maximumf %8, %9 : vector<40x640xf32>
    %c0_5 = arith.constant 0 : index
    %c0_6 = arith.constant 0 : index
    %11 = vector.load %arg4[%c0_5, %c0_6] : memref<40x896xf32, #tpu.memory_space<vmem>>, vector<40x640xf32>
    tpu.vector_store %arg4[%c0_5, %c0_6], %10 {strides = array<i32>} : memref<40x896xf32, #tpu.memory_space<vmem>>, vector<40x640xf32>,
    %12 = vector.extract_strided_slice %1 {offsets = [0, 640], sizes = [40, 256], strides = [1, 1]} : vector<40x896xf32> to vector<40x256xf32>
    %c0_7 = arith.constant 0 : index
    %c640 = arith.constant 640 : index
    %13 = vector.load %arg4[%c0_7, %c640] : memref<40x896xf32, #tpu.memory_space<vmem>>, vector<40x256xf32>
    tpu.vector_store %arg4[%c0_7, %c640], %12 {strides = array<i32>} : memref<40x896xf32, #tpu.memory_space<vmem>>, vector<40x256xf32>,
    return
  }
  func.func @transform_0(%arg0: i32) -> (i32, i32) {
    %c0_i32 = arith.constant 0 : i32
    %c0_i32_0 = arith.constant 0 : i32
    return %arg0, %c0_i32 : i32, i32
  }
  func.func @transform_1(%arg0: i32) -> (i32, i32) {
    %c0_i32 = arith.constant 0 : i32
    %c0_i32_0 = arith.constant 0 : i32
    %c0_i32_1 = arith.constant 0 : i32
    return %c0_i32, %c0_i32_0 : i32, i32
  }
  func.func @transform_2(%arg0: i32) -> (i32, i32) {
    %c0_i32 = arith.constant 0 : i32
    %c0_i32_0 = arith.constant 0 : i32
    %c0_i32_1 = arith.constant 0 : i32
    return %c0_i32, %c0_i32_0 : i32, i32
  }
  func.func @transform_3(%arg0: i32) -> (i32, i32) {
    %c0_i32 = arith.constant 0 : i32
    %c0_i32_0 = arith.constant 0 : i32
    return %arg0, %c0_i32 : i32, i32
  }
}

</mosaic_0001>

<bundles_post_ra>
// kernel: mixed6a_forward.4
= control target key start
LH: loop header
LB: loop body
LE: loop exit
PB: predicated region body
PF: predicated region fallthrough
CT: control target
= control target key end

     0   :  { %vm538_vm0 = vcmask 1043456   ;;  %vm539_vm1 = vcmask 523268   ;;  %vm738_vm3 = vcmask 523264   ;;  %s1625_s1 = inlined_call_operand.vmem [shape: bf16[256,192], index: 1, kind: input, shape index: {}]   ;;  %s1626_s0 = inlined_call_operand.vmem [shape: f32[162,256], index: 0, kind: input, shape index: {}]   ;;  %s1627_s2 = inlined_call_operand.vmem [shape: bf16[162,192], index: 2, kind: output, shape index: {0}]   ;;  %s1628_s3 = inlined_call_operand.vmem [shape: f32[1,2,192], index: 3, kind: output, shape index: {1}]  }
   0x1   :  { %v1060_v0 = vld [vmem:[%s1625_s1 + $0x4] ss:$8 sps:$4 sm:$0xff]   ;;  %v1062_v1 = vld [vmem:[%s1625_s1] ss:$8 sps:$4 sm:$0xff]   ;;  %v1063_v2 = vld [vmem:[%s1625_s1 + $0x14] ss:$8 sps:$4 sm:$0xff]  }
   0x2   :  { %269 = vmatprep.subr.bf16.mxu0 %v1060_v0  ;;  %1027 = vmatprep.subr.bf16.mxu1 %v1060_v0  ;;  %v1065_v3 = vld [vmem:[%s1625_s1 + $0x10] ss:$8 sps:$4 sm:$0xff]   ;;  %v1066_v4 = vld [vmem:[%s1625_s1 + $0x24] ss:$8 sps:$4 sm:$0xff]   ;;  %v1068_v5 = vld [vmem:[%s1625_s1 + $0x20] ss:$8 sps:$4 sm:$0xff]  }
   0x3   :  { %270 = vmatpush1.bf16.msra.mxu0 %v1062_v1  ;;  %1043 = vmatpush1.bf16.msra.mxu1 %v1062_v1  ;;  %v1069_v6 = vld [vmem:[%s1625_s1 + $0x34] ss:$8 sps:$4 sm:$0xff]   ;;  %v1071_v7 = vld [vmem:[%s1625_s1 + $0x30] ss:$8 sps:$4 sm:$0xff]   ;;  %v1072_v8 = vld [vmem:[%s1625_s1 + $0x44] ss:$8 sps:$4 sm:$0xff]  }
   0x4   :  { %271 = vmatprep.subr.bf16.mxu0 %v1063_v2  ;;  %1028 = vmatprep.subr.bf16.mxu1 %v1063_v2  ;;  %v1074_v9 = vld [vmem:[%s1625_s1 + $0x40] ss:$8 sps:$4 sm:$0xff]   ;;  %v1075_v10 = vld [vmem:[%s1625_s1 + $0x54] ss:$8 sps:$4 sm:$0xff]   ;;  %v1077_v11 = vld [vmem:[%s1625_s1 + $0x50] ss:$8 sps:$4 sm:$0xff]  }
   0x5   :  { %v1078_v12 = vld [vmem:[%s1625_s1 + $0x64] ss:$8 sps:$4 sm:$0xff]   ;;  %v16_v14 = vld [vmem:[%s1626_s0 + $0x18] sm:$0xff]  ;;  %v1080_v16 = vld [vmem:[%s1625_s1 + $0x60] ss:$8 sps:$4 sm:$0xff]  }
   0x6   :  { %v14_v13 = vld [vmem:[%s1626_s0 + $0x8] sm:$0xff]  ;;  %v1081_v17 = vld [vmem:[%s1625_s1 + $0x74] ss:$8 sps:$4 sm:$0xff]   ;;  %v1083_v20 = vld [vmem:[%s1625_s1 + $0x70] ss:$8 sps:$4 sm:$0xff]  }
   0x7   :  { %272 = vmatpush1.bf16.msra.mxu0 %v1065_v3  ;;  %1044 = vmatpush1.bf16.msra.mxu1 %v1065_v3  ;;  %v56_v15 = vpack.c.bf16 %v16_v14, %v14_v13  ;;  %v38_v18 = vld [vmem:[%s1626_s0 + $0xc8] sm:$0xff]  ;;  %v40_v19 = vld [vmem:[%s1626_s0 + $0xd8] sm:$0xff]  ;;  %v13_v38 = vld [vmem:[%s1626_s0] sm:$0xff] }
   0x8   :  { %273 = vmatprep.subr.bf16.mxu0 %v1066_v4  ;;  %1029 = vmatprep.subr.bf16.mxu1 %v1066_v4  ;;  %v68_v21 = vpack.c.bf16 %v40_v19, %v38_v18  ;;  %v1084_v22 = vld [vmem:[%s1625_s1 + $0x84] ss:$8 sps:$4 sm:$0xff]   ;;  %v1086_v23 = vld [vmem:[%s1625_s1 + $0x80] ss:$8 sps:$4 sm:$0xff]   ;;  %v1087_v24 = vld [vmem:[%s1625_s1 + $0x94] ss:$8 sps:$4 sm:$0xff]  }
   0x9   :  { %301 = vmatprep.mubr.bf16.mxu0 %v56_v15  ;;  %v1089_v25 = vld [vmem:[%s1625_s1 + $0x90] ss:$8 sps:$4 sm:$0xff]   ;;  %v1090_v26 = vld [vmem:[%s1625_s1 + $0xa4] ss:$8 sps:$4 sm:$0xff]   ;;  %v1092_v27 = vld [vmem:[%s1625_s1 + $0xa0] ss:$8 sps:$4 sm:$0xff]  }
   0xa   :  { %361 = vmatprep.mubr.bf16.mxu1 %v68_v21  ;;  %v1093_v28 = vld [vmem:[%s1625_s1 + $0xb4] ss:$8 sps:$4 sm:$0xff]   ;;  %v1095_v29 = vld [vmem:[%s1625_s1 + $0xb0] ss:$8 sps:$4 sm:$0xff]   ;;  %v1096_v30 = vld [vmem:[%s1625_s1 + $0xc4] ss:$8 sps:$4 sm:$0xff]  }
   0xb   :  { %274 = vmatpush1.bf16.msra.mxu0 %v1068_v5  ;;  %1045 = vmatpush1.bf16.msra.mxu1 %v1068_v5  ;;  %v1098_v31 = vld [vmem:[%s1625_s1 + $0xc0] ss:$8 sps:$4 sm:$0xff]   ;;  %v1099_v32 = vld [vmem:[%s1625_s1 + $0xd4] ss:$8 sps:$4 sm:$0xff]   ;;  %v1101_v33 = vld [vmem:[%s1625_s1 + $0xd0] ss:$8 sps:$4 sm:$0xff]  }
   0xc   :  { %275 = vmatprep.subr.bf16.mxu0 %v1069_v6  ;;  %1030 = vmatprep.subr.bf16.mxu1 %v1069_v6  ;;  %v1102_v34 = vld [vmem:[%s1625_s1 + $0xe4] ss:$8 sps:$4 sm:$0xff]   ;;  %v1104_v35 = vld [vmem:[%s1625_s1 + $0xe0] ss:$8 sps:$4 sm:$0xff]   ;;  %v1105_v36 = vld [vmem:[%s1625_s1 + $0xf4] ss:$8 sps:$4 sm:$0xff]  }
   0xd   :  { %v1107_v37 = vld [vmem:[%s1625_s1 + $0xf0] ss:$8 sps:$4 sm:$0xff]   ;;  %v18_v40 = vld [vmem:[%s1626_s0 + $0x28] sm:$0xff]  ;;  %v37_v41 = vld [vmem:[%s1626_s0 + $0xc0] sm:$0xff] }
   0xe   :  { %v15_v39 = vld [vmem:[%s1626_s0 + $0x10] sm:$0xff]  ;;  %v20_v43 = vld [vmem:[%s1626_s0 + $0x38] sm:$0xff]  ;;  %v42_v44 = vld [vmem:[%s1626_s0 + $0xe8] sm:$0xff] }
   0xf   :  { %276 = vmatpush1.bf16.msra.mxu0 %v1071_v7  ;;  %1046 = vmatpush1.bf16.msra.mxu1 %v1071_v7  ;;  %v39_v42 = vld [vmem:[%s1626_s0 + $0xd0] sm:$0xff]  ;;  %v44_v45 = vld [vmem:[%s1626_s0 + $0xf8] sm:$0xff]  ;;  %v55_v46 = vpack.c.bf16 %v15_v39, %v13_v38  ;;  %v58_v48 = vpack.c.bf16 %v20_v43, %v18_v40  ;;  %v17_v50 = vld [vmem:[%s1626_s0 + $0x20] sm:$0xff] }
  0x10   :  { %277 = vmatprep.subr.bf16.mxu0 %v1072_v8  ;;  %1031 = vmatprep.subr.bf16.mxu1 %v1072_v8  ;;  %v67_v47 = vpack.c.bf16 %v39_v42, %v37_v41  ;;  %v70_v49 = vpack.c.bf16 %v44_v45, %v42_v44  ;;  %v19_v51 = vld [vmem:[%s1626_s0 + $0x30] sm:$0xff]  ;;  %v22_v52 = vld [vmem:[%s1626_s0 + $0x48] sm:$0xff]  ;;  %v41_v53 = vld [vmem:[%s1626_s0 + $0xe0] sm:$0xff] }
  0x11   :  { %v43_v54 = vld [vmem:[%s1626_s0 + $0xf0] sm:$0xff]  ;;  %v24_v55 = vld [vmem:[%s1626_s0 + $0x58] sm:$0xff]  ;;  %v46_v56 = vld [vmem:[%s1626_s0 + $0x108] sm:$0xff]  ;;  %v57_v58 = vpack.c.bf16 %v19_v51, %v17_v50 }
  0x12   :  { %v48_v57 = vld [vmem:[%s1626_s0 + $0x118] sm:$0xff]  ;;  %v69_v59 = vpack.c.bf16 %v43_v54, %v41_v53  ;;  %v60_v60 = vpack.c.bf16 %v24_v55, %v22_v52  ;;  %v21_v62 = vld [vmem:[%s1626_s0 + $0x40] sm:$0xff]  ;;  %v23_v63 = vld [vmem:[%s1626_s0 + $0x50] sm:$0xff] }
  0x13   :  { %278 = vmatpush1.bf16.msra.mxu0 %v1074_v9  ;;  %1047 = vmatpush1.bf16.msra.mxu1 %v1074_v9  ;;  %v72_v61 = vpack.c.bf16 %v48_v57, %v46_v56  ;;  %v26_v0 = vld [vmem:[%s1626_s0 + $0x68] sm:$0xff]  ;;  %v45_v1 = vld [vmem:[%s1626_s0 + $0x100] sm:$0xff]  ;;  %v47_v2 = vld [vmem:[%s1626_s0 + $0x110] sm:$0xff]  ;;  %v59_v6 = vpack.c.bf16 %v23_v63, %v21_v62 }
  0x14   :  { %279 = vmatprep.subr.bf16.mxu0 %v1075_v10  ;;  %1032 = vmatprep.subr.bf16.mxu1 %v1075_v10  ;;  %v28_v3 = vld [vmem:[%s1626_s0 + $0x78] sm:$0xff]  ;;  %v50_v4 = vld [vmem:[%s1626_s0 + $0x128] sm:$0xff]  ;;  %v71_v7 = vpack.c.bf16 %v47_v2, %v45_v1  ;;  %v25_v10 = vld [vmem:[%s1626_s0 + $0x60] sm:$0xff] }
  0x15   :  { %v52_v5 = vld [vmem:[%s1626_s0 + $0x138] sm:$0xff]  ;;  %v62_v8 = vpack.c.bf16 %v28_v3, %v26_v0  ;;  %v51_v13 = vld [vmem:[%s1626_s0 + $0x130] sm:$0xff]  ;;  %v30_v14 = vld [vmem:[%s1626_s0 + $0x88] sm:$0xff] }
  0x16   :  { %v74_v9 = vpack.c.bf16 %v52_v5, %v50_v4  ;;  %v32_v15 = vld [vmem:[%s1626_s0 + $0x98] sm:$0xff]  ;;  %v29_v21 = vld [vmem:[%s1626_s0 + $0x80] sm:$0xff]  ;;  %vm1353_vm2 = vmor %vm539_vm1, %vm538_vm0 }
  0x17   :  { %280 = vmatpush1.bf16.msra.mxu0 %v1077_v11  ;;  %1048 = vmatpush1.bf16.msra.mxu1 %v1077_v11  ;;  %v27_v11 = vld [vmem:[%s1626_s0 + $0x70] sm:$0xff]  ;;  %v64_v19 = vpack.c.bf16 %v32_v15, %v30_v14 }
  0x18   :  { %281 = vmatprep.subr.bf16.mxu0 %v1078_v12  ;;  %1033 = vmatprep.subr.bf16.mxu1 %v1078_v12  ;;  %v49_v12 = vld [vmem:[%s1626_s0 + $0x120] sm:$0xff] }
  0x19   :  { %v73_v18 = vpack.c.bf16 %v51_v13, %v49_v12 }
  0x1b   :  { %282 = vmatpush1.bf16.msra.mxu0 %v1080_v16  ;;  %1049 = vmatpush1.bf16.msra.mxu1 %v1080_v16  ;;  %v54_v16 = vld [vmem:[%s1626_s0 + $0x148] sm:$0xff] }
  0x1c   :  { %283 = vmatprep.subr.bf16.mxu0 %v1081_v17  ;;  %1034 = vmatprep.subr.bf16.mxu1 %v1081_v17  ;;  %v61_v17 = vpack.c.bf16 %v27_v11, %v25_v10 }
  0x1f   :  { %284 = vmatpush1.bf16.msra.mxu0 %v1083_v20  ;;  %1050 = vmatpush1.bf16.msra.mxu1 %v1083_v20  ;;  %v76_v20 = vpack.c.bf16 %v54_v16, %v54_v16 }
  0x20   :  { %285 = vmatprep.subr.bf16.mxu0 %v1084_v22  ;;  %1035 = vmatprep.subr.bf16.mxu1 %v1084_v22  ;;  %v31_v22 = vld [vmem:[%s1626_s0 + $0x90] sm:$0xff] }
  0x23   :  { %286 = vmatpush1.bf16.msra.mxu0 %v1086_v23  ;;  %1051 = vmatpush1.bf16.msra.mxu1 %v1086_v23  ;;  %v53_v23 = vld [vmem:[%s1626_s0 + $0x140] sm:$0xff] }
  0x24   :  { %287 = vmatprep.subr.bf16.mxu0 %v1087_v24  ;;  %1036 = vmatprep.subr.bf16.mxu1 %v1087_v24  ;;  %v34_v24 = vld [vmem:[%s1626_s0 + $0xa8] sm:$0xff] }
  0x27   :  { %288 = vmatpush1.bf16.msra.mxu0 %v1089_v25  ;;  %1052 = vmatpush1.bf16.msra.mxu1 %v1089_v25  ;;  %v36_v25 = vld [vmem:[%s1626_s0 + $0xb8] sm:$0xff] }
  0x28   :  { %289 = vmatprep.subr.bf16.mxu0 %v1090_v26  ;;  %1037 = vmatprep.subr.bf16.mxu1 %v1090_v26  ;;  %v63_v26 = vpack.c.bf16 %v31_v22, %v29_v21 }
  0x2b   :  { %290 = vmatpush1.bf16.msra.mxu0 %v1092_v27  ;;  %1053 = vmatpush1.bf16.msra.mxu1 %v1092_v27  ;;  %v75_v27 = vpack.c.bf16 %v53_v23, %v53_v23 }
  0x2c   :  { %291 = vmatprep.subr.bf16.mxu0 %v1093_v28  ;;  %1038 = vmatprep.subr.bf16.mxu1 %v1093_v28  ;;  %v66_v28 = vpack.c.bf16 %v36_v25, %v34_v24 }
  0x2f   :  { %292 = vmatpush1.bf16.msra.mxu0 %v1095_v29  ;;  %1054 = vmatpush1.bf16.msra.mxu1 %v1095_v29  ;;  %v33_v29 = vld [vmem:[%s1626_s0 + $0xa0] sm:$0xff] }
  0x30   :  { %293 = vmatprep.subr.bf16.mxu0 %v1096_v30  ;;  %1039 = vmatprep.subr.bf16.mxu1 %v1096_v30  ;;  %v35_v30 = vld [vmem:[%s1626_s0 + $0xb0] sm:$0xff] }
  0x33   :  { %294 = vmatpush1.bf16.msra.mxu0 %v1098_v31  ;;  %1055 = vmatpush1.bf16.msra.mxu1 %v1098_v31  ;;  %v65_v31 = vpack.c.bf16 %v35_v30, %v33_v29 }
  0x34   :  { %295 = vmatprep.subr.bf16.mxu0 %v1099_v32  ;;  %1040 = vmatprep.subr.bf16.mxu1 %v1099_v32 }
  0x37   :  { %296 = vmatpush1.bf16.msra.mxu0 %v1101_v33  ;;  %1056 = vmatpush1.bf16.msra.mxu1 %v1101_v33 }
  0x38   :  { %297 = vmatprep.subr.bf16.mxu0 %v1102_v34  ;;  %1041 = vmatprep.subr.bf16.mxu1 %v1102_v34 }
  0x3b   :  { %298 = vmatpush1.bf16.msra.mxu0 %v1104_v35  ;;  %1057 = vmatpush1.bf16.msra.mxu1 %v1104_v35 }
  0x3c   :  { %299 = vmatprep.subr.bf16.mxu0 %v1105_v36  ;;  %1042 = vmatprep.subr.bf16.mxu1 %v1105_v36 }
  0x3f   :  { %300 = vmatpush1.bf16.msra.mxu0 %v1107_v37  ;;  %1058 = vmatpush1.bf16.msra.mxu1 %v1107_v37 }
  0x42   :  { %302 = vmatmul.mubr.bf16.vlgmr.msra.gmra.mrb[0].mxu0 %v55_v46  ;;  %362 = vmatmul.mubr.bf16.vlgmr.msra.gmra.mrb[0].mxu1 %v67_v47 }
  0x43   :  { %311 = vmatprep.mubr.bf16.mxu0 %v58_v48  ;;  %371 = vmatprep.mubr.bf16.mxu1 %v70_v49 }
  0x4a   :  { %312 = vmatmul.mubr.bf16.gmra.mrb[4].mxu0 %v57_v58  ;;  %372 = vmatmul.mubr.bf16.gmra.mrb[4].mxu1 %v69_v59 }
  0x4b   :  { %321 = vmatprep.mubr.bf16.mxu0 %v60_v60  ;;  %381 = vmatprep.mubr.bf16.mxu1 %v72_v61 }
  0x52   :  { %322 = vmatmul.mubr.bf16.gmra.mrb[8].mxu0 %v59_v6  ;;  %382 = vmatmul.mubr.bf16.gmra.mrb[8].mxu1 %v71_v7 }
  0x53   :  { %331 = vmatprep.mubr.bf16.mxu0 %v62_v8  ;;  %391 = vmatprep.mubr.bf16.mxu1 %v74_v9 }
  0x5a   :  { %332 = vmatmul.mubr.bf16.gmra.mrb[12].mxu0 %v61_v17  ;;  %392 = vmatmul.mubr.bf16.gmra.mrb[12].mxu1 %v73_v18 }
  0x5b   :  { %341 = vmatprep.mubr.bf16.mxu0 %v64_v19  ;;  %401 = vmatprep.mubr.bf16.mxu1 %v76_v20 }
  0x62   :  { %342 = vmatmul.mubr.bf16.gmra.mrb[16].mxu0 %v63_v26  ;;  %402 = vmatmul.mubr.bf16.gmra.mrb[16].mxu1 %v75_v27 }
  0x63   :  { %351 = vmatprep.mubr.bf16.mxu0 %v66_v28 }
  0x6a   :  { %352 = vmatmul.mubr.bf16.gmra.mrb[20].mxu0 %v65_v31 }
 0x115   :  { %v303_v32 = vpop.f32.mrb[0].mxu0  ;;  %v1351_v33 = vpop.f32.mrb[0].mxu1 }
 0x116   :  { %v305_v34 = vpop.f32.mrb[1].mxu0  ;;  %v1357_v36 = vpop.f32.mrb[1].mxu1  ;;  %v809_v42 = vmul.f32 %v303_v32, %v303_v32 }
 0x117   :  { %v1006_v37 = vpack.c.bf16 %v305_v34, %v303_v32  ;;  %v810_v38 = vmul.f32 %v305_v34, %v305_v34  ;;  %v307_v39 = vpop.f32.mrb[2].mxu0  ;;  %v1018_v40 = vpack.c.bf16 %v1357_v36, %v1351_v33  ;;  %v1361_v41 = vpop.f32.mrb[2].mxu1  ;;  %v739_v47 = vsel %vm738_vm3, %v305_v34, 0.0 }
 0x118   :  { %v712_v43 = vadd.f32 %v307_v39, %v303_v32  ;;  %v811_v44 = vmul.f32 %v307_v39, %v307_v39  ;;  %v309_v45 = vpop.f32.mrb[3].mxu0  ;;  %v1363_v46 = vpop.f32.mrb[3].mxu1 }
 0x119   :  { %541 = vst.msk [vmem:[%s1627_s2] sm:$0xff] %vm1353_vm2, %v1006_v37  ;;  %v1007_v48 = vpack.c.bf16 %v309_v45, %v307_v39  ;;  %v740_v49 = vsel %vm738_vm3, %v309_v45, 0.0  ;;  %v812_v50 = vmul.f32 %v309_v45, %v309_v45  ;;  %553 = vst.msk [vmem:[%s1627_s2 + $0x60] sm:$0xff] %vm1353_vm2, %v1018_v40  ;;  %v877_v53 = vsel %vm738_vm3, %v810_v38, 0.0 }
 0x11a   :  { %v851_v51 = vadd.f32 %v811_v44, %v809_v42  ;;  %v741_v52 = vadd.f32 %v740_v49, %v739_v47  ;;  %v1019_v55 = vpack.c.bf16 %v1363_v46, %v1361_v41 }
 0x11b   :  { %542 = vst.msk [vmem:[%s1627_s2 + $0x8] sm:$0xff] %vm1353_vm2, %v1007_v48  ;;  %v878_v54 = vsel %vm738_vm3, %v812_v50, 0.0 }
 0x11c   :  { %v879_v56 = vadd.f32 %v878_v54, %v877_v53  ;;  %554 = vst.msk [vmem:[%s1627_s2 + $0x68] sm:$0xff] %vm1353_vm2, %v1019_v55 }
 0x11d   :  { %v313_v57 = vpop.f32.mrb[4].mxu0  ;;  %v1391_v58 = vpop.f32.mrb[4].mxu1 }
 0x11e   :  { %v713_v59 = vadd.f32 %v712_v43, %v313_v57  ;;  %v813_v60 = vmul.f32 %v313_v57, %v313_v57  ;;  %v315_v61 = vpop.f32.mrb[5].mxu0  ;;  %v1393_v62 = vpop.f32.mrb[5].mxu1 }
 0x11f   :  { %v1008_v63 = vpack.c.bf16 %v315_v61, %v313_v57  ;;  %v742_v0 = vsel %vm738_vm3, %v315_v61, 0.0  ;;  %v814_v1 = vmul.f32 %v315_v61, %v315_v61  ;;  %v317_v2 = vpop.f32.mrb[6].mxu0  ;;  %v1020_v3 = vpack.c.bf16 %v1393_v62, %v1391_v58  ;;  %v1398_v4 = vpop.f32.mrb[6].mxu1 }
 0x120   :  { %v852_v5 = vadd.f32 %v851_v51, %v813_v60  ;;  %v743_v6 = vadd.f32 %v742_v0, %v741_v52  ;;  %v714_v7 = vadd.f32 %v713_v59, %v317_v2  ;;  %v815_v8 = vmul.f32 %v317_v2, %v317_v2  ;;  %v319_v9 = vpop.f32.mrb[7].mxu0  ;;  %v1400_v10 = vpop.f32.mrb[7].mxu1 }
 0x121   :  { %543 = vst.msk [vmem:[%s1627_s2 + $0x10] sm:$0xff] %vm1353_vm2, %v1008_v63  ;;  %v880_v11 = vsel %vm738_vm3, %v814_v1, 0.0  ;;  %v1009_v12 = vpack.c.bf16 %v319_v9, %v317_v2  ;;  %v744_v13 = vsel %vm738_vm3, %v319_v9, 0.0  ;;  %v816_v14 = vmul.f32 %v319_v9, %v319_v9  ;;  %555 = vst.msk [vmem:[%s1627_s2 + $0x70] sm:$0xff] %vm1353_vm2, %v1020_v3 }
 0x122   :  { %v881_v15 = vadd.f32 %v880_v11, %v879_v56  ;;  %v853_v16 = vadd.f32 %v852_v5, %v815_v8  ;;  %v745_v17 = vadd.f32 %v744_v13, %v743_v6  ;;  %v1021_v19 = vpack.c.bf16 %v1400_v10, %v1398_v4 }
 0x123   :  { %544 = vst.msk [vmem:[%s1627_s2 + $0x18] sm:$0xff] %vm1353_vm2, %v1009_v12  ;;  %v882_v18 = vsel %vm738_vm3, %v816_v14, 0.0  ;;  %v839_v35 = vmul.f32 %v1398_v4, %v1398_v4 }
 0x124   :  { %v883_v20 = vadd.f32 %v882_v18, %v881_v15  ;;  %556 = vst.msk [vmem:[%s1627_s2 + $0x78] sm:$0xff] %vm1353_vm2, %v1021_v19  ;;  %v562_v19 = vlaneseq }
 0x125   :  { %v323_v21 = vpop.f32.mrb[8].mxu0  ;;  %v1427_v22 = vpop.f32.mrb[8].mxu1 }
 0x126   :  { %v715_v23 = vadd.f32 %v714_v7, %v323_v21  ;;  %v817_v24 = vmul.f32 %v323_v21, %v323_v21  ;;  %v325_v25 = vpop.f32.mrb[9].mxu0  ;;  %v1429_v26 = vpop.f32.mrb[9].mxu1  ;;  %vm806_vm5 = vcmp.lt.s32.totalorder %v562_v19, 192 }
 0x127   :  { %v1010_v27 = vpack.c.bf16 %v325_v25, %v323_v21  ;;  %v746_v28 = vsel %vm738_vm3, %v325_v25, 0.0  ;;  %v818_v29 = vmul.f32 %v325_v25, %v325_v25  ;;  %v327_v30 = vpop.f32.mrb[10].mxu0  ;;  %v1022_v31 = vpack.c.bf16 %v1429_v26, %v1427_v22  ;;  %v1434_v32 = vpop.f32.mrb[10].mxu1 }
 0x128   :  { %v854_v34 = vadd.f32 %v853_v16, %v817_v24  ;;  %v747_v37 = vadd.f32 %v746_v28, %v745_v17  ;;  %v716_v38 = vadd.f32 %v715_v23, %v327_v30  ;;  %v819_v39 = vmul.f32 %v327_v30, %v327_v30  ;;  %v329_v40 = vpop.f32.mrb[11].mxu0  ;;  %v1436_v42 = vpop.f32.mrb[11].mxu1 }
 0x129   :  { %545 = vst.msk [vmem:[%s1627_s2 + $0x20] sm:$0xff] %vm1353_vm2, %v1010_v27  ;;  %v884_v43 = vsel %vm738_vm3, %v818_v29, 0.0  ;;  %v1011_v44 = vpack.c.bf16 %v329_v40, %v327_v30  ;;  %v748_v45 = vsel %vm738_vm3, %v329_v40, 0.0  ;;  %v820_v47 = vmul.f32 %v329_v40, %v329_v40  ;;  %557 = vst.msk [vmem:[%s1627_s2 + $0x80] sm:$0xff] %vm1353_vm2, %v1022_v31 }
 0x12a   :  { %v885_v48 = vadd.f32 %v884_v43, %v883_v20  ;;  %v855_v49 = vadd.f32 %v854_v34, %v819_v39  ;;  %v749_v50 = vadd.f32 %v748_v45, %v747_v37  ;;  %v1023_v52 = vpack.c.bf16 %v1436_v42, %v1434_v32 }
 0x12b   :  { %546 = vst.msk [vmem:[%s1627_s2 + $0x28] sm:$0xff] %vm1353_vm2, %v1011_v44  ;;  %v886_v51 = vsel %vm738_vm3, %v820_v47, 0.0  ;;  %v1502_v30 = vshrl.u32 %v562_v19, 7  ;;  %v834_v34 = vmul.f32 %v1357_v36, %v1357_v36 }
 0x12c   :  { %v887_v53 = vadd.f32 %v886_v51, %v885_v48  ;;  %558 = vst.msk [vmem:[%s1627_s2 + $0x88] sm:$0xff] %vm1353_vm2, %v1023_v52 }
 0x12d   :  { %v333_v54 = vpop.f32.mrb[12].mxu0  ;;  %v1463_v55 = vpop.f32.mrb[12].mxu1 }
 0x12e   :  { %v717_v56 = vadd.f32 %v716_v38, %v333_v54  ;;  %v821_v57 = vmul.f32 %v333_v54, %v333_v54  ;;  %v335_v59 = vpop.f32.mrb[13].mxu0  ;;  %v1465_v60 = vpop.f32.mrb[13].mxu1 }
 0x12f   :  { %v1012_v61 = vpack.c.bf16 %v335_v59, %v333_v54  ;;  %v750_v63 = vsel %vm738_vm3, %v335_v59, 0.0  ;;  %v822_v0 = vmul.f32 %v335_v59, %v335_v59  ;;  %v337_v1 = vpop.f32.mrb[14].mxu0  ;;  %v1024_v2 = vpack.c.bf16 %v1465_v60, %v1463_v55  ;;  %v1470_v3 = vpop.f32.mrb[14].mxu1 }
 0x130   :  { %v856_v5 = vadd.f32 %v855_v49, %v821_v57  ;;  %v751_v6 = vadd.f32 %v750_v63, %v749_v50  ;;  %v718_v7 = vadd.f32 %v717_v56, %v337_v1  ;;  %v823_v8 = vmul.f32 %v337_v1, %v337_v1  ;;  %v339_v9 = vpop.f32.mrb[15].mxu0  ;;  %v1472_v11 = vpop.f32.mrb[15].mxu1 }
 0x131   :  { %547 = vst.msk [vmem:[%s1627_s2 + $0x30] sm:$0xff] %vm1353_vm2, %v1012_v61  ;;  %v888_v12 = vsel %vm738_vm3, %v822_v0, 0.0  ;;  %v1013_v13 = vpack.c.bf16 %v339_v9, %v337_v1  ;;  %v752_v14 = vsel %vm738_vm3, %v339_v9, 0.0  ;;  %v824_v15 = vmul.f32 %v339_v9, %v339_v9  ;;  %559 = vst.msk [vmem:[%s1627_s2 + $0x90] sm:$0xff] %vm1353_vm2, %v1024_v2 }
 0x132   :  { %v889_v16 = vadd.f32 %v888_v12, %v887_v53  ;;  %v857_v17 = vadd.f32 %v856_v5, %v823_v8  ;;  %v753_v18 = vadd.f32 %v752_v14, %v751_v6  ;;  %v1025_v21 = vpack.c.bf16 %v1472_v11, %v1470_v3 }
 0x133   :  { %548 = vst.msk [vmem:[%s1627_s2 + $0x38] sm:$0xff] %vm1353_vm2, %v1013_v13  ;;  %v890_v20 = vsel %vm738_vm3, %v824_v15, 0.0  ;;  %v1525_v1 = vadd.s32 160, %v1502_v30  ;;  %v833_v2 = vmul.f32 %v1351_v33, %v1351_v33  ;;  %v762_v5 = vsel %vm738_vm3, %v1357_v36, 0.0 }
 0x134   :  { %v891_v23 = vadd.f32 %v890_v20, %v889_v16  ;;  %560 = vst.msk [vmem:[%s1627_s2 + $0x98] sm:$0xff] %vm1353_vm2, %v1025_v21  ;;  %v835_v8 = vmul.f32 %v1361_v41, %v1361_v41  ;;  %v836_v14 = vmul.f32 %v1363_v46, %v1363_v46 }
 0x135   :  { %v343_v24 = vpop.f32.mrb[16].mxu0  ;;  %v1499_v25 = vpop.f32.mrb[16].mxu1  ;;  %vm627_vm4 = vcmp.lt.s32.totalorder %v1525_v1, 162 }
 0x136   :  { %v719_v27 = vadd.f32 %v718_v7, %v343_v24  ;;  %v825_v28 = vmul.f32 %v343_v24, %v343_v24  ;;  %v345_v29 = vpop.f32.mrb[17].mxu0  ;;  %v1504_v31 = vpop.f32.mrb[17].mxu1  ;;  %v900_v7 = vsel %vm738_vm3, %v834_v34, 0.0 }
 0x137   :  { %v1014_v37 = vpack.c.bf16 %v345_v29, %v343_v24  ;;  %v754_v38 = vsel %vm738_vm3, %v345_v29, 0.0  ;;  %v826_v39 = vmul.f32 %v345_v29, %v345_v29  ;;  %v347_v40 = vpop.f32.mrb[18].mxu0  ;;  %v407_v43 = vpop.f32.mrb[18].mxu1  ;;  %v1026_v61 = vpack.c.bf16 %v1504_v31, %v1499_v25 }
 0x138   :  { %v858_v44 = vadd.f32 %v857_v17, %v825_v28  ;;  %v755_v45 = vadd.f32 %v754_v38, %v753_v18  ;;  %v720_v47 = vadd.f32 %v719_v27, %v347_v40  ;;  %v827_v48 = vmul.f32 %v347_v40, %v347_v40  ;;  %v349_v49 = vpop.f32.mrb[19].mxu0  ;;  %v408_v50 = vpop.f32.mrb[19].mxu1 }
 0x139   :  { %549 = vst.msk [vmem:[%s1627_s2 + $0x40] sm:$0xff] %vm1353_vm2, %v1014_v37  ;;  %v892_v51 = vsel %vm738_vm3, %v826_v39, 0.0  ;;  %v1015_v52 = vpack.c.bf16 %v349_v49, %v347_v40  ;;  %v756_v53 = vsel %vm738_vm3, %v349_v49, 0.0  ;;  %v828_v54 = vmul.f32 %v349_v49, %v349_v49  ;;  %561 = vst.msk [vmem:[%s1627_s2 + $0xa0] sm:$0xff] %vm1353_vm2, %v1026_v61 }
 0x13a   :  { %v893_v56 = vadd.f32 %v892_v51, %v891_v23  ;;  %v859_v57 = vadd.f32 %v858_v44, %v827_v48  ;;  %v757_v59 = vadd.f32 %v756_v53, %v755_v45  ;;  %v764_v43 = vsel %vm738_vm3, %v1363_v46, 0.0 }
 0x13b   :  { %550 = vst.msk [vmem:[%s1627_s2 + $0x48] sm:$0xff] %vm1353_vm2, %v1015_v52  ;;  %v894_v63 = vsel %vm738_vm3, %v828_v54, 0.0  ;;  %v838_v44 = vmul.f32 %v1393_v62, %v1393_v62  ;;  %v840_v45 = vmul.f32 %v1400_v10, %v1400_v10  ;;  %v902_v46 = vsel %vm738_vm3, %v836_v14, 0.0 }
 0x13c   :  { %v895_v0 = vadd.f32 %v894_v63, %v893_v56  ;;  %v837_v51 = vmul.f32 %v1391_v58, %v1391_v58  ;;  %v766_v52 = vsel %vm738_vm3, %v1393_v62, 0.0  ;;  %v842_v63 = vmul.f32 %v1429_v26, %v1429_v26 }
 0x13d   :  { %v353_v6 = vpop.f32.mrb[20].mxu0  ;;  %v906_v61 = vsel %vm738_vm3, %v840_v45, 0.0  ;;  %v772_v14 = vsel %vm738_vm3, %v1436_v42, 0.0 }
 0x13e   :  { %v721_v9 = vadd.f32 %v720_v47, %v353_v6  ;;  %v829_v12 = vmul.f32 %v353_v6, %v353_v6  ;;  %v355_v13 = vpop.f32.mrb[21].mxu0 }
 0x13f   :  { %v1016_v15 = vpack.c.bf16 %v355_v13, %v353_v6  ;;  %v758_v16 = vsel %vm738_vm3, %v355_v13, 0.0  ;;  %v830_v17 = vmul.f32 %v355_v13, %v355_v13  ;;  %v357_v18 = vpop.f32.mrb[22].mxu0  ;;  %v770_v6 = vsel %vm738_vm3, %v1429_v26, 0.0 }
 0x140   :  { %v860_v20 = vadd.f32 %v859_v57, %v829_v12  ;;  %v759_v21 = vadd.f32 %v758_v16, %v757_v59  ;;  %v722_v36 = vadd.f32 %v721_v9, %v357_v18  ;;  %v831_v23 = vmul.f32 %v357_v18, %v357_v18  ;;  %v359_v24 = vpop.f32.mrb[23].mxu0 }
 0x141   :  { %551 = vst.msk [vmem:[%s1627_s2 + $0x50] sm:$0xff] %vm1353_vm2, %v1016_v15  ;;  %v896_v27 = vsel %vm738_vm3, %v830_v17, 0.0  ;;  %v1017_v28 = vpack.c.bf16 %v359_v24, %v357_v18  ;;  %v760_v29 = vsel %vm738_vm3, %v359_v24, 0.0  ;;  %v832_v34 = vmul.f32 %v359_v24, %v359_v24 }
 0x142   :  { %v897_v37 = vadd.f32 %v896_v27, %v895_v0  ;;  %v723_v38 = vadd.f32 %v722_v36, %v1351_v33  ;;  %v861_v39 = vadd.f32 %v860_v20, %v831_v23  ;;  %v761_v40 = vadd.f32 %v760_v29, %v759_v21 }
 0x143   :  { %552 = vst.msk [vmem:[%s1627_s2 + $0x58] sm:$0xff] %vm1353_vm2, %v1017_v28  ;;  %v898_v47 = vsel %vm738_vm3, %v832_v34, 0.0  ;;  %v768_v59 = vsel %vm738_vm3, %v1400_v10, 0.0  ;;  %v844_v10 = vmul.f32 %v1436_v42, %v1436_v42  ;;  %v908_v13 = vsel %vm738_vm3, %v842_v63, 0.0 }
 0x144   :  { %v724_v33 = vadd.f32 %v723_v38, %v1361_v41  ;;  %v862_v48 = vadd.f32 %v861_v39, %v833_v2  ;;  %v763_v49 = vadd.f32 %v762_v5, %v761_v40  ;;  %v899_v50 = vadd.f32 %v898_v47, %v897_v37 }
 0x145   :  { %v904_v41 = vsel %vm738_vm3, %v838_v44, 0.0  ;;  %v710_v26 = vsel %vm627_vm4, %v1499_v25, 0.0  ;;  %v711_v15 = vsel %vm627_vm4, %v1504_v31, 0.0  ;;  %v910_v20 = vsel %vm738_vm3, %v844_v10, 0.0 }
 0x146   :  { %v863_v53 = vadd.f32 %v862_v48, %v835_v8  ;;  %v725_v54 = vadd.f32 %v724_v33, %v1391_v58  ;;  %v765_v56 = vadd.f32 %v764_v43, %v763_v49  ;;  %v901_v57 = vadd.f32 %v900_v7, %v899_v50 }
 0x147   :  { %v841_v58 = vmul.f32 %v1427_v22, %v1427_v22  ;;  %v843_v7 = vmul.f32 %v1434_v32, %v1434_v32  ;;  %v845_v21 = vmul.f32 %v1463_v55, %v1463_v55  ;;  %v774_v42 = vsel %vm738_vm3, %v1465_v60, 0.0 }
 0x148   :  { %v726_v62 = vadd.f32 %v725_v54, %v1398_v4  ;;  %v864_v0 = vadd.f32 %v863_v53, %v837_v51  ;;  %v767_v2 = vadd.f32 %v766_v52, %v765_v56  ;;  %v903_v5 = vadd.f32 %v902_v46, %v901_v57 }
 0x149   :  { %v846_v25 = vmul.f32 %v1465_v60, %v1465_v60  ;;  %v848_v24 = vmul.f32 %v1472_v11, %v1472_v11  ;;  %v849_v27 = vmul.f32 %v710_v26, %v710_v26  ;;  %v850_v28 = vmul.f32 %v711_v15, %v711_v15 }
 0x14a   :  { %v727_v8 = vadd.f32 %v726_v62, %v1427_v22  ;;  %v865_v9 = vadd.f32 %v864_v0, %v839_v35  ;;  %v905_v12 = vadd.f32 %v904_v41, %v903_v5  ;;  %v769_v4 = vadd.f32 %v768_v59, %v767_v2 }
 0x14b   :  { %v912_v60 = vsel %vm738_vm3, %v846_v25, 0.0  ;;  %v776_v39 = vsel %vm738_vm3, %v1472_v11, 0.0  ;;  %v914_v47 = vsel %vm738_vm3, %v848_v24, 0.0  ;;  %v916_v33 = vsel %vm738_vm3, %v850_v28, 0.0 }
 0x14c   :  { %v728_v16 = vadd.f32 %v727_v8, %v1434_v32  ;;  %v866_v17 = vadd.f32 %v865_v9, %v841_v58  ;;  %v771_v22 = vadd.f32 %v770_v6, %v769_v4  ;;  %v907_v18 = vadd.f32 %v906_v61, %v905_v12 }
 0x14d   :  { %v847_v32 = vmul.f32 %v1470_v3, %v1470_v3  ;;  %v1108_v53 = vmov 1966171168  }
 0x14e   :  { %v867_v36 = vadd.f32 %v866_v17, %v843_v7  ;;  %v773_v23 = vadd.f32 %v772_v14, %v771_v22  ;;  %v909_v1 = vadd.f32 %v908_v13, %v907_v18  ;;  %v729_v31 = vadd.f32 %v728_v16, %v1463_v55 }
 0x14f   :  { %v778_v55 = vsel %vm738_vm3, %v711_v15, 0.0  ;;  %v790_v11 = vunpack.c.l.s4 %v1108_v53 }
 0x150   :  { %v911_v29 = vadd.f32 %v910_v20, %v909_v1  ;;  %v868_v34 = vadd.f32 %v867_v36, %v845_v21  ;;  %v775_v37 = vadd.f32 %v774_v42, %v773_v23  ;;  %v730_v38 = vadd.f32 %v729_v31, %v1470_v3 }
 0x151   :  { %v791_v0 = vunpack.c.0.s8 %v790_v11 }
 0x152   :  { %v913_v40 = vadd.f32 %v912_v60, %v911_v29  ;;  %v869_v43 = vadd.f32 %v868_v34, %v847_v32  ;;  %v777_v44 = vadd.f32 %v776_v39, %v775_v37  ;;  %v731_v45 = vadd.f32 %v730_v38, %v710_v26 }
 0x153   :  { %v794_v12 = vsub.s32 %v791_v0, %v1502_v30 }
 0x154   :  { %v915_v48 = vadd.f32 %v914_v47, %v913_v40  ;;  %v732_v49 = vrot.slane %v731_v45, 4  ;;  %v870_v50 = vadd.f32 %v869_v43, %v849_v27  ;;  %v779_v46 = vadd.f32 %v778_v55, %v777_v44 }
 0x156   :  { %v733_v3 = vadd.f32 %v732_v49, %v731_v45  ;;  %v871_v51 = vrot.slane %v870_v50, 4  ;;  %v780_v52 = vrot.slane %v779_v46, 4  ;;  %v917_v35 = vadd.f32 %v916_v33, %v915_v48 }
 0x158   :  { %v734_v54 = vrot.slane %v733_v3, 2  ;;  %v872_v56 = vadd.f32 %v871_v51, %v870_v50  ;;  %v781_v57 = vadd.f32 %v780_v52, %v779_v46  ;;  %v918_v41 = vrot.slane %v917_v35, 4 }
 0x15a   :  { %v735_v59 = vadd.f32 %v734_v54, %v733_v3  ;;  %v873_v61 = vrot.slane %v872_v56, 2  ;;  %v782_v63 = vrot.slane %v781_v57, 2  ;;  %v919_v62 = vadd.f32 %v918_v41, %v917_v35 }
 0x15c   :  { %v736_v2 = vrot.slane %v735_v59, 1  ;;  %v874_v5 = vadd.f32 %v873_v61, %v872_v56  ;;  %v783_v58 = vadd.f32 %v782_v63, %v781_v57  ;;  %v920_v6 = vrot.slane %v919_v62, 2 }
 0x15e   :  { %v875_v7 = vrot.slane %v874_v5, 1  ;;  %v784_v10 = vrot.slane %v783_v58, 1  ;;  %v921_v8 = vadd.f32 %v920_v6, %v919_v62  ;;  %v737_v9 = vadd.f32 %v736_v2, %v735_v59 }
 0x160   :  { %v785_v4 = vadd.f32 %v784_v10, %v783_v58  ;;  %v922_v13 = vrot.slane %v921_v8, 1  ;;  %v876_v14 = vadd.f32 %v875_v7, %v874_v5 }
 0x162   :  { %v788_v26 = vcombine.low %v737_v9, %v785_v4  ;;  %v923_v15 = vadd.f32 %v922_v13, %v921_v8 }
 0x164   :  { %v795_v16 = vrot.slane %v788_v26, %v794_v12  ;;  %v926_v17 = vcombine.low %v876_v14, %v923_v15 }
 0x166   :  { %v802_v22 = vrot.slane %v795_v16, %v794_v12  ;;  %v933_v18 = vrot.slane %v926_v17, %v794_v12 }
 0x168   :  { %808 = vst.msk [vmem:[%s1628_s3] ss:$2 sm:$0x3] %vm806_vm5, %v802_v22  ;;  %v940_v20 = vrot.slane %v933_v18, %v794_v12 }
 0x16a   :  { %1005 = vst.msk [vmem:[%s1628_s3 + $0x1] ss:$2 sm:$0x3] %vm806_vm5, %v940_v20 }

// kernel: mixed6a_forward.5
= control target key start
LH: loop header
LB: loop body
LE: loop exit
PB: predicated region body
PF: predicated region fallthrough
CT: control target
= control target key end

     0   :  { %s5734_s18 = smov 0   ;;  %s7897_s0 = inlined_call_operand.vmem [shape: bf16[2,81,192], index: 0, kind: input, shape index: {}]   ;;  %s7898_s1 = inlined_call_operand.vmem [shape: bf16[9,192,192], index: 1, kind: input, shape index: {}]   ;;  %s7899_s2 = inlined_call_operand.vmem [shape: f32[1,192], index: 2, kind: input, shape index: {}]   ;;  %s7900_s3 = inlined_call_operand.vmem [shape: f32[1,192], index: 3, kind: input, shape index: {}]   ;;  %s7901_s4 = inlined_call_operand.vmem [shape: bf16[2,97,192], index: 4, kind: output, shape index: {0}]   ;;  %s7902_s5 = inlined_call_operand.vmem [shape: f32[2,2,192], index: 5, kind: output, shape index: {1}]  }
   0x1 LB: > { %s4572_s19 = sadd.s32 4294967295, %s5700_s18   ;;  %p4576_p0 = scmp.ge.s32.totalorder %s5700_s18, 1  ;;  %s5700_s18 = sphi %s5734_s18, %s16_s18  }
   0x2   : > { %p190_p1 = scmp.lt.s32.totalorder %s5700_s18, 3 }
   0x4   : > { %p191_p2 = pnand %p4576_p0, %p190_p1 }
   0x6   : > { %194 = sbr.rel (%p191_p2) target bundleno = 583 (0x247), region = 36 }
   0xd   : > { %v5364_v0 = vld [vmem:[%s7898_s1 + $0xc4] ss:$8 sps:$4 sm:$0xff]   ;;  %vm7910_vm0 = vcmask 523264   ;;  %v5702_v2 = vmov 0.0   ;;  %v5368_v3 = vld [vmem:[%s7898_s1 + $0xc0] ss:$8 sps:$4 sm:$0xff]   ;;  %v7903_v27 = vlaneseq }
   0xe   : > { %v5366_v1 = vld [vmem:[%s7898_s1 + $0x304] ss:$8 sps:$4 sm:$0xff]   ;;  %362 = vst [vmem:[#allocation2] sm:$0xff] %v5702_v2  ;;  %365 = vst [vmem:[#allocation2 + $0x10] sm:$0xff] %v5702_v2  ;;  %894 = vmatprep.subr.bf16.mxu1 %v5364_v0  ;;  %v5369_v4 = vld [vmem:[%s7898_s1 + $0x300] ss:$8 sps:$4 sm:$0xff]  }
   0xf   : > { %367 = vst [vmem:[#allocation2 + $0x20] sm:$0xff] %v5702_v2  ;;  %371 = vst [vmem:[#allocation2 + $0x40] sm:$0xff] %v5702_v2  ;;  %2268 = vmatprep.subr.bf16.mxu0 %v5366_v1  ;;  %v5370_v5 = vld [vmem:[%s7898_s1 + $0xd4] ss:$8 sps:$4 sm:$0xff]   ;;  %895 = vmatpush1.bf16.msra.mxu1 %v5368_v3  ;;  %v5374_v7 = vld [vmem:[%s7898_s1 + $0xd0] ss:$8 sps:$4 sm:$0xff]  }
  0x10   : > { %373 = vst [vmem:[#allocation2 + $0x50] sm:$0xff] %v5702_v2  ;;  %375 = vst [vmem:[#allocation2 + $0x60] sm:$0xff] %v5702_v2  ;;  %2269 = vmatpush1.bf16.msra.mxu0 %v5369_v4  ;;  %v5372_v6 = vld [vmem:[%s7898_s1 + $0x314] ss:$8 sps:$4 sm:$0xff]   ;;  %896 = vmatprep.subr.bf16.mxu1 %v5370_v5  ;;  %v5375_v8 = vld [vmem:[%s7898_s1 + $0x310] ss:$8 sps:$4 sm:$0xff]  }
  0x11   : > { %379 = vst [vmem:[#allocation2 + $0x80] sm:$0xff] %v5702_v2  ;;  %381 = vst [vmem:[#allocation2 + $0x90] sm:$0xff] %v5702_v2  ;;  %2270 = vmatprep.subr.bf16.mxu0 %v5372_v6  ;;  %v5376_v9 = vld [vmem:[%s7898_s1 + $0xe4] ss:$8 sps:$4 sm:$0xff]   ;;  %v5380_v11 = vld [vmem:[%s7898_s1 + $0xe0] ss:$8 sps:$4 sm:$0xff]  }
  0x12   : > { %383 = vst [vmem:[#allocation2 + $0xa0] sm:$0xff] %v5702_v2  ;;  %385 = vst [vmem:[#allocation2 + $0xb0] sm:$0xff] %v5702_v2  ;;  %v5378_v10 = vld [vmem:[%s7898_s1 + $0x324] ss:$8 sps:$4 sm:$0xff]   ;;  %v5381_v12 = vld [vmem:[%s7898_s1 + $0x320] ss:$8 sps:$4 sm:$0xff]  }
  0x13   : > { %387 = vst [vmem:[#allocation2 + $0xc0] sm:$0xff] %v5702_v2  ;;  %389 = vst [vmem:[#allocation2 + $0xd0] sm:$0xff] %v5702_v2  ;;  %897 = vmatpush1.bf16.msra.mxu1 %v5374_v7  ;;  %v5382_v13 = vld [vmem:[%s7898_s1 + $0xf4] ss:$8 sps:$4 sm:$0xff]   ;;  %v5386_v15 = vld [vmem:[%s7898_s1 + $0xf0] ss:$8 sps:$4 sm:$0xff]  }
  0x14   : > { %391 = vst [vmem:[#allocation2 + $0xe0] sm:$0xff] %v5702_v2  ;;  %393 = vst [vmem:[#allocation2 + $0xf0] sm:$0x1] %v5702_v2  ;;  %2271 = vmatpush1.bf16.msra.mxu0 %v5375_v8  ;;  %898 = vmatprep.subr.bf16.mxu1 %v5376_v9  ;;  %v5384_v14 = vld [vmem:[%s7898_s1 + $0x334] ss:$8 sps:$4 sm:$0xff]   ;;  %vm7908_vm1 = vcmask 516096  }
  0x15   : > { %364 = vst.msk [vmem:[#allocation2 + $0x8] sm:$0xff] %vm7910_vm0, %v5702_v2  ;;  %366 = vst.msk [vmem:[#allocation2 + $0x18] sm:$0xff] %vm7910_vm0, %v5702_v2  ;;  %2272 = vmatprep.subr.bf16.mxu0 %v5378_v10  ;;  %v5387_v16 = vld [vmem:[%s7898_s1 + $0x330] ss:$8 sps:$4 sm:$0xff]   ;;  %v5388_v17 = vld [vmem:[%s7898_s1 + $0x104] ss:$8 sps:$4 sm:$0xff]  }
  0x16   : > { %368 = vst.msk [vmem:[#allocation2 + $0x28] sm:$0xff] %vm7910_vm0, %v5702_v2  ;;  %370 = vst.msk [vmem:[#allocation2 + $0x38] sm:$0xff] %vm7910_vm0, %v5702_v2  ;;  %v5390_v18 = vld [vmem:[%s7898_s1 + $0x344] ss:$8 sps:$4 sm:$0xff]   ;;  %v5392_v19 = vld [vmem:[%s7898_s1 + $0x100] ss:$8 sps:$4 sm:$0xff]  }
  0x17   : > { %372 = vst.msk [vmem:[#allocation2 + $0x48] sm:$0xff] %vm7910_vm0, %v5702_v2  ;;  %374 = vst.msk [vmem:[#allocation2 + $0x58] sm:$0xff] %vm7910_vm0, %v5702_v2  ;;  %899 = vmatpush1.bf16.msra.mxu1 %v5380_v11  ;;  %v5393_v20 = vld [vmem:[%s7898_s1 + $0x340] ss:$8 sps:$4 sm:$0xff]   ;;  %v5394_v21 = vld [vmem:[%s7898_s1 + $0x114] ss:$8 sps:$4 sm:$0xff]  }
  0x18   : > { %376 = vst.msk [vmem:[#allocation2 + $0x68] sm:$0xff] %vm7910_vm0, %v5702_v2  ;;  %378 = vst.msk [vmem:[#allocation2 + $0x78] sm:$0xff] %vm7910_vm0, %v5702_v2  ;;  %2273 = vmatpush1.bf16.msra.mxu0 %v5381_v12  ;;  %900 = vmatprep.subr.bf16.mxu1 %v5382_v13  ;;  %v5396_v22 = vld [vmem:[%s7898_s1 + $0x354] ss:$8 sps:$4 sm:$0xff]   ;;  %p223_p3 = scmp.lt.s32.totalorder %s4572_s19, 1  ;;  %v5856_v32 = vshrl.u32 %v7903_v27, 7 }
  0x19   : > { %380 = vst.msk [vmem:[#allocation2 + $0x88] sm:$0xff] %vm7910_vm0, %v5702_v2  ;;  %382 = vst.msk [vmem:[#allocation2 + $0x98] sm:$0xff] %vm7910_vm0, %v5702_v2  ;;  %2274 = vmatprep.subr.bf16.mxu0 %v5384_v14  ;;  %v5398_v23 = vld [vmem:[%s7898_s1 + $0x110] ss:$8 sps:$4 sm:$0xff]   ;;  %v5400_v25 = vld [vmem:[%s7898_s1 + $0x124] ss:$8 sps:$4 sm:$0xff]  }
  0x1a   : > { %384 = vst.msk [vmem:[#allocation2 + $0xa8] sm:$0xff] %vm7910_vm0, %v5702_v2  ;;  %386 = vst.msk [vmem:[#allocation2 + $0xb8] sm:$0xff] %vm7910_vm0, %v5702_v2  ;;  %v5399_v24 = vld [vmem:[%s7898_s1 + $0x350] ss:$8 sps:$4 sm:$0xff]   ;;  %v5402_v26 = vld [vmem:[%s7898_s1 + $0x364] ss:$8 sps:$4 sm:$0xff]  }
  0x1b   : > { %388 = vst.msk [vmem:[#allocation2 + $0xc8] sm:$0xff] %vm7910_vm0, %v5702_v2  ;;  %390 = vst.msk [vmem:[#allocation2 + $0xd8] sm:$0xff] %vm7910_vm0, %v5702_v2  ;;  %901 = vmatpush1.bf16.msra.mxu1 %v5386_v15  ;;  %s8028_s19 = smov (!%p223_p3, %s4572_s19), 1  ;;  %v5404_v28 = vld [vmem:[%s7898_s1 + $0x120] ss:$8 sps:$4 sm:$0xff]   ;;  %v280_v37 = vsub.s32 1, %v5856_v32 }
  0x1c   : > { %392 = vst.msk [vmem:[#allocation2 + $0xe8] sm:$0xff] %vm7910_vm0, %v5702_v2  ;;  %2275 = vmatpush1.bf16.msra.mxu0 %v5387_v16  ;;  %902 = vmatprep.subr.bf16.mxu1 %v5388_v17  ;;  %v5405_v29 = vld [vmem:[%s7898_s1 + $0x360] ss:$8 sps:$4 sm:$0xff]   ;;  %v5406_v30 = vld [vmem:[%s7898_s1 + $0x134] ss:$8 sps:$4 sm:$0xff]   ;;  %s5326_s9 = smul.u32 88, %s8028_s19 }
  0x1d   : > { %395 = vst.msk [vmem:[#allocation2 + $0xf8] sm:$0x1] %vm7908_vm1, %v5702_v2  ;;  %2276 = vmatprep.subr.bf16.mxu0 %v5390_v18  ;;  %v5408_v31 = vld [vmem:[%s7898_s1 + $0x374] ss:$8 sps:$4 sm:$0xff]   ;;  %7913 = vst [vmem:[#allocation3_spill] sm:$0xff] %v5856_v32  ;;  %v276_v38 = vsub.s32 0, %v5856_v32 }
  0x1e   : > { %v5410_v33 = vld [vmem:[%s7898_s1 + $0x130] ss:$8 sps:$4 sm:$0xff]   ;;  %v5412_v35 = vld [vmem:[%s7898_s1 + $0x144] ss:$8 sps:$4 sm:$0xff]   ;;  %s5873_s22 = scalar_lea.vmem %s7897_s0, %s5326_s9  ;;  %v5416_v39 = vld [vmem:[%s7898_s1 + $0x140] ss:$8 sps:$4 sm:$0xff]  }
  0x1f   : > { %903 = vmatpush1.bf16.msra.mxu1 %v5392_v19  ;;  %v5411_v34 = vld [vmem:[%s7898_s1 + $0x370] ss:$8 sps:$4 sm:$0xff]   ;;  %v5414_v36 = vld [vmem:[%s7898_s1 + $0x384] ss:$8 sps:$4 sm:$0xff]   ;;  %v5417_v40 = vld [vmem:[%s7898_s1 + $0x380] ss:$8 sps:$4 sm:$0xff]  }
  0x20   : > { %2277 = vmatpush1.bf16.msra.mxu0 %v5393_v20  ;;  %904 = vmatprep.subr.bf16.mxu1 %v5394_v21  ;;  %v5418_v41 = vld [vmem:[%s7898_s1 + $0x154] ss:$8 sps:$4 sm:$0xff]   ;;  %v239_v42 = vld [vmem:[%s5873_s22] sm:$0xff]  ;;  %v240_v43 = vld [vmem:[%s5873_s22 + $0x8] sm:$0xff]  ;;  %vm400_vm2 = vcmask 1043456   ;;  %vm7911_vm3 = vcmask 523268  }
  0x21   : > { %2278 = vmatprep.subr.bf16.mxu0 %v5396_v22  ;;  %v241_v44 = vld [vmem:[%s5873_s22 + $0x10] sm:$0xff]  ;;  %v251_v46 = vunpack.c.h.bf16 %v239_v42  ;;  %v253_v47 = vunpack.c.h.bf16 %v240_v43  ;;  %v272_v49 = vld [vmem:[%s7899_s2] sm:$0x3]  ;;  %vm419_vm4 = vcmask 1045504   ;;  %v250_v51 = vunpack.c.l.bf16 %v239_v42  ;;  %v5424_v60 = vld [vmem:[%s7898_s1 + $0x164] ss:$8 sps:$4 sm:$0xff]  }
  0x22   : > { %v5420_v45 = vld [vmem:[%s7898_s1 + $0x394] ss:$8 sps:$4 sm:$0xff]   ;;  %v255_v48 = vunpack.c.h.bf16 %v241_v44  ;;  %v306_v50 = vld [vmem:[%s7900_s3] sm:$0x3]  ;;  %v5898_v52 = vrot.slane %v272_v49, %v280_v37  ;;  %vm415_vm5 = vcmask 520192   ;;  %v252_v54 = vunpack.c.l.bf16 %v240_v43  ;;  %s5327_s26 = smul.u32 104, %s8028_s19 }
  0x23   : > { %905 = vmatpush1.bf16.msra.mxu1 %v5398_v23  ;;  %v5900_v53 = vrot.slane %v306_v50, %v280_v37  ;;  %v254_v55 = vunpack.c.l.bf16 %v241_v44  ;;  %v5422_v56 = vld [vmem:[%s7898_s1 + $0x150] ss:$8 sps:$4 sm:$0xff]   ;;  %vm431_vm6 = vcmask 523271   ;;  %v5908_v58 = vrot.slane %v272_v49, %v276_v38  ;;  %v5426_v61 = vld [vmem:[%s7898_s1 + $0x3a4] ss:$8 sps:$4 sm:$0xff]   ;;  %s5068_s29 = sshll.u32 %s8028_s19, 2 }
  0x24   : > { %2279 = vmatpush1.bf16.msra.mxu0 %v5399_v24  ;;  %906 = vmatprep.subr.bf16.mxu1 %v5400_v25  ;;  %v5423_v57 = vld [vmem:[%s7898_s1 + $0x390] ss:$8 sps:$4 sm:$0xff]   ;;  %v5910_v59 = vrot.slane %v306_v50, %v276_v38  ;;  %v285_v62 = vmul.f32 %v5898_v52, %v251_v46  ;;  %v287_v63 = vmul.f32 %v5898_v52, %v253_v47  ;;  %vm436_vm7 = vcmask 523266   ;;  %v5928_v5 = vld [vmem:[%s5873_s22 + $0x20] sm:$0xff]  ;;  %v5430_v16 = vld [vmem:[%s7898_s1 + $0x174] ss:$8 sps:$4 sm:$0xff]   ;;  %s7498_s28 = scalar_lea.vmem %s7901_s4, %s5327_s26  ;;  %s237_s7 = scalar_lea.vmem %s7902_s5, %s5068_s29 }
  0x25   : > { %2280 = vmatprep.subr.bf16.mxu0 %v5402_v26  ;;  %v289_v0 = vmul.f32 %v5898_v52, %v255_v48  ;;  %v284_v1 = vmul.f32 %v5908_v58, %v250_v51  ;;  %v286_v2 = vmul.f32 %v5908_v58, %v252_v54  ;;  %v288_v3 = vmul.f32 %v5908_v58, %v254_v55  ;;  %v5925_v4 = vld [vmem:[%s5873_s22 + $0x18] sm:$0xff]  ;;  %v5428_v6 = vld [vmem:[%s7898_s1 + $0x160] ss:$8 sps:$4 sm:$0xff]   ;;  %v5444_v43 = vld [vmem:[%s7898_s1 + $0x4] ss:$8 sps:$4 sm:$0xff]  }
  0x26   : > { %vm439_vm8 = vcmask 518144   ;;  %v319_v7 = vadd.f32 %v5900_v53, %v285_v62  ;;  %v321_v8 = vadd.f32 %v5900_v53, %v287_v63  ;;  %v257_v10 = vunpack.c.h.bf16 %v5925_v4  ;;  %v5429_v11 = vld [vmem:[%s7898_s1 + $0x3a0] ss:$8 sps:$4 sm:$0xff]   ;;  %v5432_v21 = vld [vmem:[%s7898_s1 + $0x3b4] ss:$8 sps:$4 sm:$0xff]  }
  0x27   : > { %907 = vmatpush1.bf16.msra.mxu1 %v5404_v28  ;;  %v323_v9 = vadd.f32 %v5900_v53, %v289_v0  ;;  %v318_v12 = vadd.f32 %v5910_v59, %v284_v1  ;;  %v320_v13 = vadd.f32 %v5910_v59, %v286_v2  ;;  %v322_v14 = vadd.f32 %v5910_v59, %v288_v3  ;;  %v5434_v26 = vld [vmem:[%s7898_s1 + $0x170] ss:$8 sps:$4 sm:$0xff]   ;;  %v244_v44 = vld [vmem:[%s5873_s22 + $0x28] sm:$0xff] }
  0x28   : > { %2281 = vmatpush1.bf16.msra.mxu0 %v5405_v29  ;;  %908 = vmatprep.subr.bf16.mxu1 %v5406_v30  ;;  %vm457_vm9 = vcmask 523269   ;;  %v259_v15 = vunpack.c.h.bf16 %v5928_v5  ;;  %v341_v17 = vmax.f32 %v319_v7, 0.0  ;;  %v343_v18 = vmax.f32 %v321_v8, 0.0  ;;  %v5435_v28 = vld [vmem:[%s7898_s1 + $0x3b0] ss:$8 sps:$4 sm:$0xff]  }
  0x29   : > { %2282 = vmatprep.subr.bf16.mxu0 %v5408_v31  ;;  %v345_v19 = vmax.f32 %v323_v9, 0.0  ;;  %v291_v20 = vmul.f32 %v5898_v52, %v257_v10  ;;  %vm445_vm10 = vcmask 1041408   ;;  %v340_v22 = vmax.f32 %v318_v12, 0.0  ;;  %v245_v49 = vld [vmem:[%s5873_s22 + $0x30] sm:$0xff]  ;;  %v605_v2 = vld [vmem:[#allocation2 + $0x8] sm:$0xfe] }
  0x2a   : > { %v342_v23 = vmax.f32 %v320_v13, 0.0  ;;  %v344_v24 = vmax.f32 %v322_v14, 0.0  ;;  %v293_v25 = vmul.f32 %v5898_v52, %v259_v15  ;;  %v402_v29 = vrot.slane %v341_v17, 4 }
  0x2b   : > { %909 = vmatpush1.bf16.msra.mxu1 %v5410_v33  ;;  %v405_v30 = vrot.slane %v343_v18, 4  ;;  %v421_v31 = vrot.slane %v343_v18, 2  ;;  %v424_v33 = vrot.slane %v345_v19, 2  ;;  %437 = vst.msk [vmem:[#allocation2 + $0x48] sm:$0xfc] %vm436_vm7, %v345_v19  ;;  %v256_v42 = vunpack.c.l.bf16 %v5925_v4 }
  0x2c   : > { %2283 = vmatpush1.bf16.msra.mxu0 %v5411_v34  ;;  %910 = vmatprep.subr.bf16.mxu1 %v5412_v35  ;;  %v401_v34 = vrot.slane %v340_v22, 4  ;;  %v403_v35 = vrot.slane %v342_v23, 4  ;;  %v422_v37 = vrot.slane %v344_v24, 2  ;;  %435 = vst [vmem:[#allocation2 + $0x40] sm:$0xfc] %v344_v24  ;;  %v327_v47 = vadd.f32 %v5900_v53, %v293_v25 }
  0x2d   : > { %2284 = vmatprep.subr.bf16.mxu0 %v5414_v36  ;;  %v420_v36 = vrot.slane %v342_v23, 2  ;;  %v406_v38 = vsel %vm400_vm2, %v402_v29, %v405_v30  ;;  %413 = vst.msk [vmem:[#allocation2 + $0x18] sm:$0xf0] %vm7911_vm3, %v402_v29  ;;  %v258_v48 = vunpack.c.l.bf16 %v5928_v5  ;;  %v290_v51 = vmul.f32 %v5908_v58, %v256_v42 }
  0x2e   : > { %432 = vst.msk [vmem:[#allocation2 + $0x28] sm:$0x80] %vm431_vm6, %v421_v31  ;;  %411 = vst [vmem:[#allocation2 + $0x10] sm:$0xf0] %v401_v34  ;;  %v261_v54 = vunpack.c.h.bf16 %v244_v44  ;;  %v263_v55 = vunpack.c.h.bf16 %v245_v49  ;;  %vm460_vm11 = vcmask 521216   ;;  %vm497_vm13 = vcmask 523270  }
  0x2f   : > { %911 = vmatpush1.bf16.msra.mxu1 %v5416_v39  ;;  %v425_v39 = vsel %vm419_vm4, %v421_v31, %v424_v33  ;;  %416 = vst.msk [vmem:[#allocation2 + $0x28] sm:$0x1f] %vm415_vm5, %v406_v38  ;;  %v423_v46 = vsel %vm419_vm4, %v420_v36, %v422_v37  ;;  %430 = vst [vmem:[#allocation2 + $0x20] sm:$0x80] %v420_v36  ;;  %v324_v63 = vadd.f32 %v5910_v59, %v290_v51  ;;  %vm637_vm12 = vsmask.f32 7424 }
  0x30   : > { %2285 = vmatpush1.bf16.msra.mxu0 %v5417_v40  ;;  %912 = vmatprep.subr.bf16.mxu1 %v5418_v41  ;;  %v5438_v40 = vld [vmem:[%s7898_s1 + $0x3c4] ss:$8 sps:$4 sm:$0xff]   ;;  %v325_v41 = vadd.f32 %v5900_v53, %v291_v20  ;;  %434 = vst.msk [vmem:[#allocation2 + $0x38] sm:$0xff] %vm7910_vm0, %v425_v39  ;;  %433 = vst [vmem:[#allocation2 + $0x30] sm:$0xff] %v423_v46  ;;  %v295_v0 = vmul.f32 %v5898_v52, %v261_v54  ;;  %vm494_vm14 = vcmask 519168   ;;  %vm491_vm15 = vcmask 523267  }
  0x31   : > { %2286 = vmatprep.subr.bf16.mxu0 %v5420_v45  ;;  %v404_v45 = vsel %vm400_vm2, %v401_v34, %v403_v35  ;;  %v297_v1 = vmul.f32 %v5898_v52, %v263_v55  ;;  %v346_v7 = vmax.f32 %v324_v63, 0.0  ;;  %vm500_vm6 = vcmask 522240  }
  0x32   : > { %414 = vst [vmem:[#allocation2 + $0x20] sm:$0x1f] %v404_v45  ;;  %v347_v50 = vmax.f32 %v325_v41, 0.0  ;;  %v5985_v3 = vld [vmem:[#allocation2 + $0x48] sm:$0xff]  ;;  %v5998_v12 = vadd.f32 %v5900_v53, %v295_v0  ;;  %v5441_v0 = vld [vmem:[%s7898_s1 + $0x3d4] ss:$8 sps:$4 sm:$0xff]  }
  0x33   : > { %913 = vmatpush1.bf16.msra.mxu1 %v5422_v56  ;;  %v349_v56 = vmax.f32 %v327_v47, 0.0  ;;  %v6003_v14 = vadd.f32 %v5900_v53, %v297_v1  ;;  %438 = vst [vmem:[#allocation2 + $0x50] sm:$0x7] %v346_v7  ;;  %v6012_v19 = vrot.slane %v346_v7, 6  ;;  %vm520_vm7 = vcmask 517120  }
  0x34   : > { %2287 = vmatpush1.bf16.msra.mxu0 %v5423_v57  ;;  %914 = vmatprep.subr.bf16.mxu1 %v5424_v60  ;;  %v292_v57 = vmul.f32 %v5908_v58, %v258_v48  ;;  %v260_v60 = vunpack.c.l.bf16 %v244_v44  ;;  %440 = vst.msk [vmem:[#allocation2 + $0x58] sm:$0x7] %vm439_vm8, %v347_v50  ;;  %v447_v62 = vrot.slane %v347_v50, 6  ;;  %v5994_v9 = vld [vmem:[#allocation2 + $0x18] sm:$0xff]  ;;  %v351_v42 = vmax.f32 %v5998_v12, 0.0 }
  0x35   : > { %2288 = vmatprep.subr.bf16.mxu0 %v5426_v61  ;;  %v262_v61 = vunpack.c.l.bf16 %v245_v49  ;;  %v450_v4 = vrot.slane %v349_v56, 6  ;;  %v2047_v10 = vld [vmem:[#allocation2 + $0x18] sm:$0xf0]  ;;  %v6000_v13 = vrot.slane %v349_v56, 4  ;;  %v609_v17 = vpack.c.bf16 %v5994_v9, %v605_v2  ;;  %v6022_v24 = vld [vmem:[#allocation2 + $0x10] sm:$0xff] }
  0x36   : > { %v5988_v5 = vadd.f32 %v5910_v59, %v292_v57  ;;  %458 = vst.msk [vmem:[#allocation2 + $0x58] sm:$0xe0] %vm457_vm9, %v447_v62  ;;  %v294_v8 = vmul.f32 %v5908_v58, %v260_v60  ;;  %v6005_v15 = vld [vmem:[#allocation2 + $0x28] sm:$0xff]  ;;  %v2046_v33 = vld [vmem:[#allocation2 + $0x10] sm:$0xf0]  ;;  %vm517_vm8 = vcmask 523265  }
  0x37   : > { %915 = vmatpush1.bf16.msra.mxu1 %v5428_v6  ;;  %v5990_v6 = vld [vmem:[#allocation2 + $0x40] sm:$0xff]  ;;  %v296_v20 = vmul.f32 %v5908_v58, %v262_v61  ;;  %v2051_v23 = vpack.c.bf16 %v6005_v15, %v2047_v10  ;;  %v651_v29 = vshrl.u32 %v609_v17, 16  ;;  %v653_v30 = vshll.u32 %v609_v17, 16  ;;  %456 = vst [vmem:[#allocation2 + $0x50] sm:$0xe0] %v6012_v19 }
  0x38   : > { %2289 = vmatpush1.bf16.msra.mxu0 %v5429_v11  ;;  %916 = vmatprep.subr.bf16.mxu1 %v5430_v16  ;;  %v451_v11 = vsel %vm445_vm10, %v447_v62, %v450_v4  ;;  %v547_v16 = vld [vmem:[#allocation2 + $0x38] sm:$0xff]  ;;  %v6009_v18 = vpack.c.bf16 %v5990_v6, %v423_v46  ;;  %v6032_v34 = vadd.f32 %v5910_v59, %v294_v8  ;;  %v5436_v57 = vld [vmem:[%s7898_s1 + $0x3c0] ss:$8 sps:$4 sm:$0xff]   ;;  %vm1279_vm9 = vcmask 1046528  }
  0x39   : > { %2290 = vmatprep.subr.bf16.mxu0 %v5432_v21  ;;  %461 = vst.msk [vmem:[#allocation2 + $0x68] sm:$0x3f] %vm460_vm11, %v451_v11  ;;  %v6016_v21 = vpack.c.bf16 %v547_v16, %v6005_v15  ;;  %v6019_v22 = vpack.c.bf16 %v5985_v3, %v547_v16  ;;  %v6024_v25 = vld [vmem:[#allocation2 + $0x20] sm:$0xff]  ;;  %v2097_v37 = vrot.slane %v2051_v23, 2  ;;  %v655_v39 = vrot.slane %v653_v30, 1 }
  0x3a   : > { %v6028_v31 = vpack.c.bf16 %v423_v46, %v6024_v25  ;;  %v2050_v45 = vpack.c.bf16 %v6024_v25, %v2046_v33  ;;  %v2095_v46 = vrot.slane %v6009_v18, 2  ;;  %v6045_v51 = vadd.f32 %v5910_v59, %v296_v20  ;;  %v5439_v4 = vld [vmem:[%s7898_s1 + $0x3d0] ss:$8 sps:$4 sm:$0xff]   ;;  %v5442_v23 = vld [vmem:[%s7898_s1] ss:$8 sps:$4 sm:$0xff]  }
  0x3b   : > { %917 = vmatpush1.bf16.msra.mxu1 %v5434_v26  ;;  %v604_v26 = vld [vmem:[#allocation2] sm:$0xfe]  ;;  %v658_v35 = vshll.u32 %v6016_v21, 16  ;;  %v670_v36 = vshrl.u32 %v6016_v21, 16  ;;  %v2098_v38 = vrot.slane %v6019_v22, 2  ;;  %v656_v48 = vor.u32 %v655_v39, %v651_v29 }
  0x3c   : > { %2291 = vmatpush1.bf16.msra.mxu0 %v5435_v28  ;;  %1131 = vmatprep.subr.bf16.mxu1 %v5444_v43  ;;  %v348_v28 = vmax.f32 %v5988_v5, 0.0  ;;  %v646_v41 = vshll.u32 %v6028_v31, 16  ;;  %v2094_v56 = vrot.slane %v2050_v45, 2  ;;  %v662_v2 = vshrl.u32 %v6028_v31, 16  ;;  %v5448_v39 = vld [vmem:[%s7898_s1 + $0x10] ss:$8 sps:$4 sm:$0xff]  }
  0x3d   : > { %2651 = vmatprep.subr.bf16.mxu0 %v5438_v40  ;;  %v608_v40 = vpack.c.bf16 %v6022_v24, %v604_v26  ;;  %v660_v43 = vrot.slane %v658_v35, 1  ;;  %v2099_v44 = vsel %vm419_vm4, %v2097_v37, %v2098_v38  ;;  %v551_v47 = vld [vmem:[#allocation2 + $0x58] sm:$0xff]  ;;  %v468_v11 = vrot.slane %v351_v42, 4  ;;  %v5447_v26 = vld [vmem:[%s7898_s1 + $0x3e4] ss:$8 sps:$4 sm:$0xff]  }
  0x3e   : > { %4825 = vmatprep.mubr.msk.bf16.mxu0 %vm7910_vm0, %v2099_v44  ;;  %v648_v55 = vrot.slane %v646_v41, 1  ;;  %v6051_v60 = vpack.c.bf16 %v551_v47, %v5985_v3  ;;  %v2096_v3 = vsel %vm419_vm4, %v2094_v56, %v2095_v46  ;;  %v6071_v8 = vld [vmem:[#allocation2 + $0x50] sm:$0xff]  ;;  %v448_v10 = vrot.slane %v348_v28, 6  ;;  %v5456_v45 = vld [vmem:[%s7898_s1 + $0x24] ss:$8 sps:$4 sm:$0xff]  }
  0x3f   : > { %v639_v49 = vshrl.u32 %v608_v40, 16  ;;  %v641_v50 = vshll.u32 %v608_v40, 16  ;;  %v672_v54 = vor.u32 %v670_v36, %v660_v43  ;;  %v661_v62 = vsel %vm637_vm12, %v656_v48, %v660_v43  ;;  %2301 = vmatmul.mubr.bf16.vlgmr.msra.gmra.mrb[0].mxu0 %v2096_v3  ;;  %477 = vst.msk [vmem:[#allocation2 + $0x88] sm:$0x1] %vm7908_vm1, %v468_v11  ;;  %v246_v40 = vld [vmem:[%s5873_s22 + $0x38] sm:$0xff]  ;;  %v6125_v56 = vld [vmem:[%s5873_s22 + $0x48] sm:$0xff] }
  0x40   : > { %v6053_v61 = vld [vmem:[#allocation2 + $0x68] sm:$0xff]  ;;  %4629 = vmatprep.mubr.msk.bf16.mxu1 %vm7910_vm0, %v661_v62  ;;  %v674_v7 = vshll.u32 %v6051_v60, 16  ;;  %v6078_v17 = vpack.c.bf16 %v6071_v8, %v5990_v6  ;;  %v664_v20 = vor.u32 %v662_v2, %v648_v55  ;;  %2652 = vmatpush1.bf16.msra.mxu0 %v5436_v57  ;;  %v449_v30 = vsel %vm445_vm10, %v6012_v19, %v448_v10  ;;  %v5450_v6 = vld [vmem:[%s7898_s1 + $0x14] ss:$8 sps:$4 sm:$0xff]  }
  0x41   : > { %v643_v63 = vrot.slane %v641_v50, 1  ;;  %v6060_v1 = vpack.c.bf16 %v6053_v61, %v551_v47  ;;  %v469_v33 = vsel %vm400_vm2, %v6000_v13, %v468_v11  ;;  %v686_v35 = vshrl.u32 %v6051_v60, 16  ;;  %2653 = vmatprep.subr.bf16.mxu0 %v5441_v0  ;;  %459 = vst [vmem:[#allocation2 + $0x60] sm:$0x3f] %v449_v30  ;;  %v5453_v5 = vld [vmem:[%s7898_s1 + $0x3f4] ss:$8 sps:$4 sm:$0xff]  }
  0x42   : > { %v676_v29 = vrot.slane %v674_v7, 1  ;;  %v666_v19 = vshll.u32 %v6078_v17, 16  ;;  %475 = vst.msk [vmem:[#allocation2 + $0x78] sm:$0xff] %vm7910_vm0, %v469_v33  ;;  %v353_v13 = vmax.f32 %v6003_v14, 0.0  ;;  %v483_v43 = vrot.slane %v351_v42, 2  ;;  %v6116_v14 = vld [vmem:[%s5873_s22 + $0x40] sm:$0xff] }
  0x43   : > { %v644_v12 = vor.u32 %v643_v63, %v639_v49  ;;  %v2102_v16 = vrot.slane %v6060_v1, 2  ;;  %v350_v44 = vmax.f32 %v6032_v34, 0.0  ;;  %v464_v49 = vrot.slane %v348_v28, 4  ;;  %v5454_v10 = vld [vmem:[%s7898_s1 + $0x20] ss:$8 sps:$4 sm:$0xff]  }
  0x44   : > { %v677_v41 = vsel %vm637_vm12, %v672_v54, %v676_v29  ;;  %v668_v47 = vrot.slane %v666_v19, 1  ;;  %v484_v48 = vrot.slane %v353_v13, 2  ;;  %v678_v42 = vshrl.u32 %v6078_v17, 16  ;;  %498 = vst.msk [vmem:[#allocation2 + $0x98] sm:$0xc0] %vm497_vm13, %v353_v13  ;;  %2654 = vmatpush1.bf16.msra.mxu0 %v5439_v4 }
  0x45   : > { %v649_v36 = vsel %vm637_vm12, %v644_v12, %v648_v55  ;;  %v2103_v37 = vsel %vm419_vm4, %v2098_v38, %v2102_v16  ;;  %v5445_v38 = vld [vmem:[%s7898_s1 + $0x3e0] ss:$8 sps:$4 sm:$0xff]   ;;  %v465_v34 = vrot.slane %v350_v44, 4  ;;  %v352_v50 = vmax.f32 %v6045_v51, 0.0  ;;  %2655 = vmatprep.subr.bf16.mxu0 %v5447_v26  ;;  %v5451_v51 = vld [vmem:[%s7898_s1 + $0x3f0] ss:$8 sps:$4 sm:$0xff]  }
  0x46   : > { %927 = vmatmul.mubr.bf16.vlgmr.msra.gmra.mrb[0].mxu1 %v649_v36  ;;  %4826 = vmatprep.mubr.msk.bf16.mxu0 %vm7910_vm0, %v2103_v37  ;;  %v480_v54 = vrot.slane %v350_v44, 2  ;;  %v265_v55 = vunpack.c.h.bf16 %v246_v40  ;;  %v669_v57 = vsel %vm637_vm12, %v664_v20, %v668_v47  ;;  %v6131_v28 = vor.u32 %v686_v35, %v676_v29  ;;  %495 = vst.msk [vmem:[#allocation2 + $0x98] sm:$0xf] %vm494_vm14, %v484_v48  ;;  %v5462_v11 = vld [vmem:[%s7898_s1 + $0x34] ss:$8 sps:$4 sm:$0xff]  }
  0x47   : > { %4630 = vmatprep.mubr.msk.bf16.mxu1 %vm7910_vm0, %v677_v41  ;;  %1132 = vmatpush1.bf16.msra.mxu1 %v5442_v23  ;;  %v485_v62 = vsel %vm419_vm4, %v483_v43, %v484_v48  ;;  %v264_v63 = vunpack.c.l.bf16 %v246_v40  ;;  %v6140_v0 = vsel %vm400_vm2, %v464_v49, %v465_v34  ;;  %476 = vst [vmem:[#allocation2 + $0x80] sm:$0x1] %v465_v34  ;;  %v481_v2 = vrot.slane %v352_v50, 2  ;;  %v6181_v44 = vld [vmem:[%s5873_s22 + $0x50] sm:$0x11] }
  0x48   : > { %1133 = vmatprep.subr.bf16.mxu1 %v5450_v6  ;;  %492 = vst.msk [vmem:[#allocation2 + $0x88] sm:$0xf8] %vm491_vm15, %v485_v62  ;;  %496 = vst [vmem:[#allocation2 + $0x90] sm:$0xc0] %v352_v50  ;;  %v299_v3 = vmul.f32 %v5898_v52, %v265_v55  ;;  %v267_v4 = vunpack.c.h.bf16 %v6116_v14  ;;  %v680_v7 = vor.u32 %v678_v42, %v668_v47  ;;  %v269_v20 = vunpack.c.h.bf16 %v6125_v56  ;;  %v1591_v26 = vld [vmem:[#allocation2 + $0x60] sm:$0xff] }
  0x49   : > { %474 = vst [vmem:[#allocation2 + $0x70] sm:$0xff] %v6140_v0  ;;  %v298_v12 = vmul.f32 %v5908_v58, %v264_v63  ;;  %v266_v23 = vunpack.c.l.bf16 %v6116_v14  ;;  %2656 = vmatpush1.bf16.msra.mxu0 %v5445_v38  ;;  %v555_v29 = vld [vmem:[#allocation2 + $0x78] sm:$0xff]  ;;  %v482_v30 = vsel %vm419_vm4, %v480_v54, %v481_v2  ;;  %493 = vst [vmem:[#allocation2 + $0x90] sm:$0xf] %v481_v2  ;;  %v268_v35 = vunpack.c.l.bf16 %v6125_v56  ;;  %v5465_v49 = vld [vmem:[%s7898_s1 + $0x44] ss:$8 sps:$4 sm:$0xff]  }
  0x4a   : > { %v333_v6 = vadd.f32 %v5900_v53, %v299_v3  ;;  %v301_v33 = vmul.f32 %v5898_v52, %v267_v4  ;;  %v6159_v36 = vpack.c.bf16 %v1591_v26, %v6071_v8  ;;  %2657 = vmatprep.subr.bf16.mxu0 %v5453_v5  ;;  %v6162_v37 = vpack.c.bf16 %v555_v29, %v6053_v61  ;;  %v5457_v8 = vld [vmem:[%s7898_s1 + $0x400] ss:$8 sps:$4 sm:$0xff]   ;;  %v5460_v61 = vld [vmem:[%s7898_s1 + $0x30] ss:$8 sps:$4 sm:$0xff]   ;;  %v5480_v56 = vld [vmem:[%s7898_s1 + $0x434] ss:$8 sps:$4 sm:$0xff]  }
  0x4b   : > { %1134 = vmatpush1.bf16.msra.mxu1 %v5448_v39  ;;  %v6165_v19 = vpack.c.bf16 %v6140_v0, %v1591_v26  ;;  %490 = vst [vmem:[#allocation2 + $0x80] sm:$0xf8] %v482_v30  ;;  %v5459_v39 = vld [vmem:[%s7898_s1 + $0x404] ss:$8 sps:$4 sm:$0xff]   ;;  %v332_v13 = vadd.f32 %v5910_v59, %v298_v12  ;;  %v303_v38 = vmul.f32 %v5898_v52, %v269_v20  ;;  %v271_v12 = vunpack.c.h.bf16 %v6181_v44 }
  0x4c   : > { %1135 = vmatprep.subr.bf16.mxu1 %v5456_v45  ;;  %v355_v40 = vmax.f32 %v333_v6, 0.0  ;;  %v335_v41 = vadd.f32 %v5900_v53, %v301_v33  ;;  %v300_v43 = vmul.f32 %v5908_v58, %v266_v23  ;;  %v2100_v45 = vrot.slane %v6159_v36, 2  ;;  %v5471_v6 = vld [vmem:[%s7898_s1 + $0x54] ss:$8 sps:$4 sm:$0xff]  }
  0x4d   : > { %v690_v14 = vshll.u32 %v6162_v37, 16  ;;  %v682_v47 = vshll.u32 %v6165_v19, 16  ;;  %v702_v48 = vshrl.u32 %v6162_v37, 16  ;;  %2658 = vmatpush1.bf16.msra.mxu0 %v5451_v51  ;;  %v559_v42 = vld [vmem:[#allocation2 + $0x98] sm:$0xff]  ;;  %v694_v50 = vshrl.u32 %v6165_v19, 16 }
  0x4e   : > { %937 = vmatmul.mubr.bf16.gmra.mrb[4].mxu1 %v669_v57  ;;  %501 = vst.msk [vmem:[#allocation2 + $0xa8] sm:$0x7f] %vm500_vm6, %v355_v40  ;;  %v509_v34 = vrot.slane %v355_v40, 6  ;;  %v354_v54 = vmax.f32 %v332_v13, 0.0  ;;  %v357_v55 = vmax.f32 %v335_v41, 0.0  ;;  %v2101_v57 = vsel %vm419_vm4, %v2095_v46, %v2100_v45  ;;  %2659 = vmatprep.subr.bf16.mxu0 %v5459_v39 }
  0x4f   : > { %1136 = vmatpush1.bf16.msra.mxu1 %v5454_v10  ;;  %v692_v5 = vrot.slane %v690_v14, 1  ;;  %v1596_v62 = vld [vmem:[#allocation2 + $0x88] sm:$0xff]  ;;  %v684_v63 = vrot.slane %v682_v47, 1  ;;  %v5468_v51 = vld [vmem:[%s7898_s1 + $0x414] ss:$8 sps:$4 sm:$0xff]   ;;  %v337_v2 = vadd.f32 %v5900_v53, %v303_v38  ;;  %2311 = vmatmul.mubr.bf16.gmra.mrb[4].mxu0 %v2101_v57  ;;  %v334_v38 = vadd.f32 %v5910_v59, %v300_v43 }
  0x50   : > { %1137 = vmatprep.subr.bf16.mxu1 %v5462_v11  ;;  %v6201_v3 = vpack.c.bf16 %v1596_v62, %v555_v29  ;;  %v6203_v4 = vpack.c.bf16 %v559_v42, %v1596_v62  ;;  %v5463_v10 = vld [vmem:[%s7898_s1 + $0x40] ss:$8 sps:$4 sm:$0xff]   ;;  %499 = vst [vmem:[#allocation2 + $0xa0] sm:$0x7f] %v354_v54  ;;  %v5466_v46 = vld [vmem:[%s7898_s1 + $0x410] ss:$8 sps:$4 sm:$0xff]   ;;  %v305_v43 = vmul.f32 %v5898_v52, %v271_v12  ;;  %v270_v12 = vunpack.c.l.bf16 %v6181_v44 }
  0x51   : > { %v510_v11 = vrot.slane %v357_v55, 6  ;;  %v693_v20 = vsel %vm637_vm12, %v6131_v28, %v692_v5  ;;  %v685_v23 = vsel %vm637_vm12, %v680_v7, %v684_v63  ;;  %v704_v26 = vor.u32 %v702_v48, %v692_v5  ;;  %v558_v29 = vld [vmem:[#allocation2 + $0x90] sm:$0xff]  ;;  %2660 = vmatpush1.bf16.msra.mxu0 %v5457_v8  ;;  %v5474_v41 = vld [vmem:[%s7898_s1 + $0x424] ss:$8 sps:$4 sm:$0xff]   ;;  %v5472_v48 = vld [vmem:[%s7898_s1 + $0x420] ss:$8 sps:$4 sm:$0xff]  }
  0x52   : > { %v506_v30 = vrot.slane %v354_v54, 6  ;;  %4631 = vmatprep.mubr.msk.bf16.mxu1 %vm7910_vm0, %v693_v20  ;;  %v2106_v33 = vrot.slane %v6201_v3, 2  ;;  %v1595_v39 = vld [vmem:[#allocation2 + $0x80] sm:$0xff]  ;;  %v706_v13 = vshll.u32 %v6203_v4, 16  ;;  %v696_v40 = vor.u32 %v694_v50, %v684_v63  ;;  %2661 = vmatprep.subr.bf16.mxu0 %v5468_v51  ;;  %v5469_v47 = vld [vmem:[%s7898_s1 + $0x50] ss:$8 sps:$4 sm:$0xff]  }
  0x53   : > { %1138 = vmatpush1.bf16.msra.mxu1 %v5460_v61  ;;  %v511_v28 = vsel %vm445_vm10, %v509_v34, %v510_v11  ;;  %521 = vst.msk [vmem:[#allocation2 + $0xc8] sm:$0x3] %vm520_vm7, %v510_v11  ;;  %v6224_v7 = vpack.c.bf16 %v1595_v39, %v6140_v0  ;;  %v6226_v61 = vpack.c.bf16 %v558_v29, %v1595_v39  ;;  %v359_v8 = vmax.f32 %v337_v2, 0.0  ;;  %v5477_v52 = vld [vmem:[%s7898_s1 + $0x64] ss:$8 sps:$4 sm:$0xff]  }
  0x54   : > { %1139 = vmatprep.subr.bf16.mxu1 %v5465_v49  ;;  %518 = vst.msk [vmem:[#allocation2 + $0xb8] sm:$0xfe] %vm517_vm8, %v511_v28  ;;  %v2107_v14 = vsel %vm419_vm4, %v2102_v16, %v2106_v33  ;;  %v708_v0 = vrot.slane %v706_v13, 1  ;;  %v302_v49 = vmul.f32 %v5908_v58, %v268_v35  ;;  %v356_v55 = vmax.f32 %v334_v38, 0.0  ;;  %v5483_v44 = vld [vmem:[%s7898_s1 + $0x74] ss:$8 sps:$4 sm:$0xff]  }
  0x55   : > { %4827 = vmatprep.mubr.msk.bf16.mxu0 %vm7910_vm0, %v2107_v14  ;;  %v2104_v16 = vrot.slane %v6224_v7, 2  ;;  %v1600_v34 = vld [vmem:[#allocation2 + $0xa8] sm:$0xff]  ;;  %v698_v50 = vshll.u32 %v6226_v61, 16  ;;  %v527_v54 = vrot.slane %v359_v8, 4  ;;  %2662 = vmatpush1.bf16.msra.mxu0 %v5466_v46  ;;  %v5478_v46 = vld [vmem:[%s7898_s1 + $0x430] ss:$8 sps:$4 sm:$0xff]   ;;  %v339_v11 = vadd.f32 %v5900_v53, %v305_v43 }
  0x56   : > { %947 = vmatmul.mubr.bf16.gmra.mrb[8].mxu1 %v685_v23  ;;  %v709_v57 = vsel %vm637_vm12, %v704_v26, %v708_v0  ;;  %v6250_v5 = vpack.c.bf16 %v1600_v34, %v559_v42  ;;  %2663 = vmatprep.subr.bf16.mxu0 %v5474_v41  ;;  %v507_v63 = vrot.slane %v356_v55, 6  ;;  %v336_v51 = vadd.f32 %v5910_v59, %v302_v49  ;;  %v5481_v49 = vld [vmem:[%s7898_s1 + $0x70] ss:$8 sps:$4 sm:$0xff]  }
  0x57   : > { %1140 = vmatpush1.bf16.msra.mxu1 %v5463_v10  ;;  %v2105_v35 = vsel %vm419_vm4, %v2100_v45, %v2104_v16  ;;  %4632 = vmatprep.mubr.msk.bf16.mxu1 %vm7910_vm0, %v709_v57  ;;  %v6262_v62 = vrot.slane %v698_v50, 1  ;;  %v6264_v42 = vld [vmem:[#allocation2 + $0xa0] sm:$0xff]  ;;  %537 = vst.msk [vmem:[#allocation2 + $0xc8] sm:$0xf0] %vm7911_vm3, %v527_v54  ;;  %v718_v23 = vshrl.u32 %v6203_v4, 16  ;;  %v304_v8 = vmul.f32 %v5908_v58, %v270_v12 }
  0x58   : > { %1141 = vmatprep.subr.bf16.mxu1 %v5471_v6  ;;  %2321 = vmatmul.mubr.bf16.gmra.mrb[8].mxu0 %v2105_v35  ;;  %v2110_v2 = vrot.slane %v6250_v5, 2  ;;  %v6270_v10 = vpack.c.bf16 %v6264_v42, %v558_v29  ;;  %v5475_v45 = vld [vmem:[%s7898_s1 + $0x60] ss:$8 sps:$4 sm:$0xff]   ;;  %v508_v26 = vsel %vm445_vm10, %v506_v30, %v507_v63  ;;  %519 = vst [vmem:[#allocation2 + $0xc0] sm:$0x3] %v507_v63  ;;  %v358_v29 = vmax.f32 %v336_v51, 0.0 }
  0x59   : > { %v701_v20 = vsel %vm637_vm12, %v696_v40, %v6262_v62  ;;  %2664 = vmatpush1.bf16.msra.mxu0 %v5472_v48  ;;  %516 = vst [vmem:[#allocation2 + $0xb0] sm:$0xfe] %v508_v26  ;;  %v361_v30 = vmax.f32 %v339_v11, 0.0  ;;  %v338_v43 = vadd.f32 %v5910_v59, %v304_v8  ;;  %v5484_v58 = vld [vmem:[%s7898_s1 + $0x440] ss:$8 sps:$4 sm:$0xff]   ;;  %vm2857_vm10 = vcmask 1044480  }
  0x5a   : > { %v607_v6 = vld [vmem:[#allocation2 + $0xc8] sm:$0x3]  ;;  %v2111_v39 = vsel %vm419_vm4, %v2106_v33, %v2110_v2  ;;  %v2108_v13 = vrot.slane %v6270_v10, 2  ;;  %v526_v41 = vrot.slane %v358_v29, 4  ;;  %2665 = vmatprep.subr.bf16.mxu0 %v5480_v56  ;;  %v5486_v33 = vld [vmem:[%s7898_s1 + $0x444] ss:$8 sps:$4 sm:$0xff]  }
  0x5b   : > { %1142 = vmatpush1.bf16.msra.mxu1 %v5469_v47  ;;  %v563_v53 = vld [vmem:[#allocation2 + $0xb8] sm:$0xff]  ;;  %v6291_v40 = vpack.c.bf16 %v607_v6, %v607_v6  ;;  %4828 = vmatprep.mubr.msk.bf16.mxu0 %vm7910_vm0, %v2111_v39  ;;  %v530_v38 = vrot.slane %v361_v30, 4  ;;  %v720_v47 = vor.u32 %v718_v23, %v708_v0  ;;  %v5489_v50 = vld [vmem:[%s7898_s1 + $0x84] ss:$8 sps:$4 sm:$0xff]   ;;  %vm7909_vm11 = vsmask.f32 4352 }
  0x5c   : > { %1143 = vmatprep.subr.bf16.mxu1 %v5477_v52  ;;  %v6294_v28 = vpack.c.bf16 %v563_v53, %v1600_v34  ;;  %v2109_v14 = vsel %vm419_vm4, %v2104_v16, %v2108_v13  ;;  %536 = vst [vmem:[#allocation2 + $0xc0] sm:$0xf0] %v526_v41  ;;  %v360_v52 = vmax.f32 %v338_v43, 0.0  ;;  %v5492_v56 = vld [vmem:[%s7898_s1 + $0x454] ss:$8 sps:$4 sm:$0xff]  }
  0x5d   : > { %2666 = vmatpush1.bf16.msra.mxu0 %v5478_v46  ;;  %v738_v16 = vshll.u32 %v6291_v40, 16  ;;  %v531_v0 = vsel %vm400_vm2, %v527_v54, %v530_v38  ;;  %v710_v54 = vshrl.u32 %v6226_v61, 16  ;;  %v5487_v46 = vld [vmem:[%s7898_s1 + $0x80] ss:$8 sps:$4 sm:$0xff]   ;;  %v5490_v11 = vld [vmem:[%s7898_s1 + $0x450] ss:$8 sps:$4 sm:$0xff]  }
  0x5e   : > { %957 = vmatmul.mubr.bf16.gmra.mrb[12].mxu1 %v701_v20  ;;  %v722_v48 = vshll.u32 %v6294_v28, 16  ;;  %v1604_v34 = vld [vmem:[#allocation2 + $0xc8] sm:$0xff]  ;;  %2667 = vmatprep.subr.bf16.mxu0 %v5486_v33  ;;  %v734_v59 = vshrl.u32 %v6294_v28, 16  ;;  %539 = vst.msk [vmem:[#allocation2 + $0xd8] sm:$0x1f] %vm415_vm5, %v531_v0  ;;  %v528_v23 = vrot.slane %v360_v52, 4 }
  0x5f   : > { %1144 = vmatpush1.bf16.msra.mxu1 %v5475_v45  ;;  %v6316_v57 = vpack.c.bf16 %v1604_v34, %v563_v53  ;;  %v606_v35 = vld [vmem:[#allocation2 + $0xc0] sm:$0x3]  ;;  %v5495_v26 = vld [vmem:[%s7898_s1 + $0x94] ss:$8 sps:$4 sm:$0xff]   ;;  %v740_v39 = vrot.slane %v738_v16, 1  ;;  %v712_v53 = vor.u32 %v710_v54, %v6262_v62 }
  0x60   : > { %1145 = vmatprep.subr.bf16.mxu1 %v5483_v44  ;;  %v724_v55 = vrot.slane %v722_v48, 1  ;;  %2331 = vmatmul.mubr.bf16.gmra.mrb[12].mxu0 %v2109_v14  ;;  %v562_v45 = vld [vmem:[#allocation2 + $0xb0] sm:$0xff]  ;;  %v6336_v20 = vpack.c.bf16 %v606_v35, %v606_v35  ;;  %v529_v33 = vsel %vm400_vm2, %v526_v41, %v528_v23  ;;  %v2396_v8 = vld [vmem:[#allocation2 + $0x18] sm:$0xe0]  ;;  %v5496_v34 = vld [vmem:[%s7898_s1 + $0x460] ss:$8 sps:$4 sm:$0xff]  }
  0x61   : > { %v2114_v51 = vrot.slane %v6316_v57, 2  ;;  %v6334_v12 = vpack.c.bf16 %v562_v45, %v6264_v42  ;;  %2668 = vmatpush1.bf16.msra.mxu0 %v5484_v58  ;;  %v5498_v42 = vld [vmem:[%s7898_s1 + $0x464] ss:$8 sps:$4 sm:$0xff]   ;;  %538 = vst [vmem:[#allocation2 + $0xd0] sm:$0x1f] %v529_v33  ;;  %v2400_v58 = vpack.c.bf16 %v6005_v15, %v2396_v8  ;;  %v1676_v23 = vshll.u32 %v6019_v22, 16 }
  0x62   : > { %v725_v63 = vsel %vm637_vm12, %v720_v47, %v724_v55  ;;  %v736_v6 = vor.u32 %v734_v59, %v724_v55  ;;  %2669 = vmatprep.subr.bf16.mxu0 %v5492_v56  ;;  %v730_v48 = vshll.u32 %v6336_v20, 16  ;;  %v5493_v41 = vld [vmem:[%s7898_s1 + $0x90] ss:$8 sps:$4 sm:$0xff]   ;;  %v5501_v0 = vld [vmem:[%s7898_s1 + $0xa4] ss:$8 sps:$4 sm:$0xff]  }
  0x63   : > { %1146 = vmatpush1.bf16.msra.mxu1 %v5481_v49  ;;  %4633 = vmatprep.mubr.msk.bf16.mxu1 %vm7910_vm0, %v725_v63  ;;  %v2115_v29 = vsel %vm419_vm4, %v2110_v2, %v2114_v51  ;;  %v714_v44 = vshll.u32 %v6334_v12, 16  ;;  %v1603_v30 = vld [vmem:[#allocation2 + $0xc0] sm:$0xff]  ;;  %v726_v47 = vshrl.u32 %v6334_v12, 16  ;;  %v5507_v15 = vld [vmem:[%s7898_s1 + $0x474] ss:$8 sps:$4 sm:$0xff]  }
  0x64   : > { %1147 = vmatprep.subr.bf16.mxu1 %v5489_v50  ;;  %4829 = vmatprep.mubr.msk.bf16.mxu0 %vm7910_vm0, %v2115_v29  ;;  %v6351_v38 = vpack.c.bf16 %v1603_v30, %v562_v45  ;;  %v741_v49 = vsel %vm637_vm12, %v736_v6, %v740_v39  ;;  %v5499_v59 = vld [vmem:[%s7898_s1 + $0xa0] ss:$8 sps:$4 sm:$0xff]   ;;  %v2395_v52 = vld [vmem:[#allocation2 + $0x10] sm:$0xe0]  ;;  %v732_v54 = vrot.slane %v730_v48, 1  ;;  %v1673_v45 = vshrl.u32 %v6019_v22, 16 }
  0x65   : > { %v716_v2 = vrot.slane %v714_v44, 1  ;;  %v2049_v14 = vld [vmem:[#allocation2 + $0xd8] sm:$0x1f]  ;;  %2670 = vmatpush1.bf16.msra.mxu0 %v5490_v11  ;;  %v744_v39 = vshrl.u32 %v6291_v40, 16  ;;  %v1659_v48 = vshll.u32 %v6009_v18, 16 }
  0x66   : > { %v2112_v62 = vrot.slane %v6351_v38, 2  ;;  %v2053_v43 = vpack.c.bf16 %v2049_v14, %v2049_v14  ;;  %2671 = vmatprep.subr.bf16.mxu0 %v5498_v42  ;;  %v5504_v35 = vld [vmem:[%s7898_s1 + $0xb4] ss:$8 sps:$4 sm:$0xff]   ;;  %v5505_v63 = vld [vmem:[%s7898_s1 + $0x470] ss:$8 sps:$4 sm:$0xff]   ;;  %v2399_v42 = vpack.c.bf16 %v6024_v25, %v2395_v52  ;;  %v2449_v8 = vrot.slane %v1673_v45, 2 }
  0x67   : > { %1148 = vmatpush1.bf16.msra.mxu1 %v5487_v46  ;;  %v717_v16 = vsel %vm637_vm12, %v712_v53, %v716_v2  ;;  %v728_v56 = vor.u32 %v726_v47, %v716_v2  ;;  %v5510_v46 = vld [vmem:[%s7898_s1 + $0x484] ss:$8 sps:$4 sm:$0xff]   ;;  %v5502_v44 = vld [vmem:[%s7898_s1 + $0xb0] ss:$8 sps:$4 sm:$0xff]   ;;  %v2450_v2 = vrot.slane %v1676_v23, 3  ;;  %v1656_v47 = vshrl.u32 %v6009_v18, 16 }
  0x68   : > { %1149 = vmatprep.subr.bf16.mxu1 %v5495_v26  ;;  %967 = vmatmul.mubr.bf16.gmra.mrb[16].mxu1 %v717_v16  ;;  %v2113_v50 = vsel %vm419_vm4, %v2108_v13, %v2112_v62  ;;  %v2118_v55 = vrot.slane %v2053_v43, 2  ;;  %v2048_v11 = vld [vmem:[#allocation2 + $0xd0] sm:$0x1f]  ;;  %v2442_v26 = vshrl.u32 %v2400_v58, 16  ;;  %v5516_v25 = vld [vmem:[%s7898_s1 + $0x184] ss:$8 sps:$4 sm:$0xff]  }
  0x69   : > { %2341 = vmatmul.mubr.bf16.gmra.mrb[16].mxu0 %v2113_v50  ;;  %4634 = vmatprep.mubr.msk.bf16.mxu1 %vm7910_vm0, %v741_v49  ;;  %v2052_v29 = vpack.c.bf16 %v2048_v11, %v2048_v11  ;;  %v733_v6 = vsel %vm637_vm12, %v728_v56, %v732_v54  ;;  %v541_v14 = vld [vmem:[#allocation2 + $0x8] sm:$0xff]  ;;  %v2430_v49 = vshrl.u32 %v2399_v42, 16  ;;  %v2433_v43 = vshll.u32 %v2399_v42, 16  ;;  %v5540_v22 = vld [vmem:[%s7898_s1 + $0x4d4] ss:$8 sps:$4 sm:$0xff]  }
  0x6a   : > { %v2119_v13 = vsel %vm419_vm4, %v2114_v51, %v2118_v55  ;;  %2672 = vmatpush1.bf16.msra.mxu0 %v5496_v34  ;;  %v2445_v51 = vshll.u32 %v2400_v58, 16  ;;  %v2444_v30 = vrot.slane %v2442_v26, 2  ;;  %v2451_v34 = vor.u32 %v2450_v2, %v2449_v8  ;;  %v5688_v26 = vld [vmem:[#allocation2] sm:$0xff]  ;;  %v5522_v8 = vld [vmem:[%s7898_s1 + $0x194] ss:$8 sps:$4 sm:$0xff]  }
  0x6b   : > { %1150 = vmatpush1.bf16.msra.mxu1 %v5493_v41  ;;  %4830 = vmatprep.mubr.msk.bf16.mxu0 %vm7910_vm0, %v2119_v13  ;;  %v2116_v53 = vrot.slane %v2052_v29, 2  ;;  %v1691_v58 = vshrl.u32 %v6060_v1, 16  ;;  %v1694_v16 = vshll.u32 %v6060_v1, 16  ;;  %v2432_v50 = vrot.slane %v2430_v49, 2  ;;  %v5558_v18 = vld [vmem:[%s7898_s1 + $0x504] ss:$8 sps:$4 sm:$0xff]  }
  0x6c   : > { %1151 = vmatprep.subr.bf16.mxu1 %v5501_v0  ;;  %2673 = vmatprep.subr.bf16.mxu0 %v5507_v15  ;;  %v2447_v33 = vrot.slane %v2445_v51, 3  ;;  %v567_v0 = vpack.c.bf16 %v5994_v9, %v541_v14  ;;  %v2438_v15 = vrot.slane %v1659_v48, 3  ;;  %v1685_v13 = vshll.u32 %v6159_v36, 16  ;;  %v5511_v14 = vld [vmem:[%s7898_s1 + $0x490] ss:$8 sps:$4 sm:$0xff]   ;;  %v2783_v1 = vld [vmem:[#allocation2 + $0x48] sm:$0xff] }
  0x6d   : > { %v2117_v40 = vsel %vm419_vm4, %v2112_v62, %v2116_v53  ;;  %v742_v62 = vshrl.u32 %v6336_v20, 16  ;;  %vm2428_vm4 = vsmask.f32 5376  ;;  %v2457_v56 = vrot.slane %v1691_v58, 2 }
  0x6e   : > { %2674 = vmatpush1.bf16.msra.mxu0 %v5505_v63  ;;  %v2448_v41 = vor.u32 %v2447_v33, %v2444_v30  ;;  %v2458_v54 = vrot.slane %v1694_v16, 3  ;;  %v1712_v11 = vshll.u32 %v6201_v3, 16  ;;  %v566_v51 = vpack.c.bf16 %v6022_v24, %v5688_v26  ;;  %v5514_v24 = vld [vmem:[%s7898_s1 + $0x180] ss:$8 sps:$4 sm:$0xff]  }
  0x6f   : > { %1152 = vmatpush1.bf16.msra.mxu1 %v5499_v59  ;;  %3032 = vmatprep.subr.bf16.mxu0 %v5510_v46  ;;  %v2437_v59 = vrot.slane %v1656_v47, 2  ;;  %v1709_v46 = vshrl.u32 %v6201_v3, 16  ;;  %v2454_v42 = vrot.slane %v1685_v13, 3  ;;  %v1700_v2 = vshrl.u32 %v6224_v7, 16 }
  0x70   : > { %1153 = vmatprep.subr.bf16.mxu1 %v5504_v35  ;;  %977 = vmatmul.mubr.bf16.gmra.mrb[20].mxu1 %v733_v6  ;;  %v2452_v52 = vsel %vm2428_vm4, %v2448_v41, %v2451_v34  ;;  %v1682_v35 = vshrl.u32 %v6159_v36, 16  ;;  %v2459_v63 = vor.u32 %v2458_v54, %v2457_v56  ;;  %v5508_v6 = vld [vmem:[%s7898_s1 + $0x480] ss:$8 sps:$4 sm:$0xff]   ;;  %v2466_v33 = vrot.slane %v1712_v11, 3  ;;  %v5582_v36 = vld [vmem:[%s7898_s1 + $0x544] ss:$8 sps:$4 sm:$0xff]  }
  0x71   : > { %2351 = vmatmul.mubr.bf16.gmra.mrb[20].mxu0 %v2117_v40  ;;  %4635 = vmatprep.mubr.msk.bf16.mxu1 %vm7910_vm0, %v744_v39  ;;  %v2439_v20 = vor.u32 %v2438_v15, %v2437_v59  ;;  %v2465_v30 = vrot.slane %v1709_v46, 2  ;;  %v1582_v40 = vld [vmem:[#allocation2 + $0x18] sm:$0xf8]  ;;  %v1730_v41 = vshll.u32 %v6250_v5, 16  ;;  %v5689_v15 = vld [vmem:[#allocation2 + $0x28] sm:$0xff] }
  0x72   : > { %4831 = vmatprep.mubr.msk.bf16.mxu0 %vm7910_vm0, %v2118_v55  ;;  %v2435_v55 = vrot.slane %v2433_v43, 3  ;;  %v2453_v39 = vrot.slane %v1682_v35, 2  ;;  %v1727_v43 = vshrl.u32 %v6250_v5, 16  ;;  %v5517_v54 = vld [vmem:[%s7898_s1 + $0x4a0] ss:$8 sps:$4 sm:$0xff]  }
  0x73   : > { %1154 = vmatpush1.bf16.msra.mxu1 %v5502_v44  ;;  %v2460_v44 = vsel %vm2428_vm4, %v2451_v34, %v2459_v63  ;;  %v5519_v34 = vld [vmem:[%s7898_s1 + $0x4a4] ss:$8 sps:$4 sm:$0xff]   ;;  %vm1646_vm5 = vsmask.f32 6400 }
  0x74   : > { %1454 = vmatprep.subr.bf16.mxu1 %v5516_v25  ;;  %v2436_v9 = vor.u32 %v2435_v55, %v2432_v50  ;;  %v1703_v25 = vshll.u32 %v6224_v7, 16  ;;  %v2455_v49 = vor.u32 %v2454_v42, %v2453_v39  ;;  %v5528_v50 = vld [vmem:[%s7898_s1 + $0x1a4] ss:$8 sps:$4 sm:$0xff]   ;;  %v2461_v55 = vrot.slane %v1700_v2, 2  ;;  %v5523_v39 = vld [vmem:[%s7898_s1 + $0x4b0] ss:$8 sps:$4 sm:$0xff]  }
  0x75   : > { %v2473_v26 = vrot.slane %v1727_v43, 2  ;;  %v5534_v42 = vld [vmem:[%s7898_s1 + $0x1b4] ss:$8 sps:$4 sm:$0xff]  }
  0x76   : > { %v2440_v29 = vsel %vm2428_vm4, %v2436_v9, %v2439_v20  ;;  %v2462_v59 = vrot.slane %v1703_v25, 3  ;;  %v2456_v56 = vsel %vm2428_vm4, %v2439_v20, %v2455_v49  ;;  %v5525_v9 = vld [vmem:[%s7898_s1 + $0x4b4] ss:$8 sps:$4 sm:$0xff]   ;;  %v5526_v20 = vld [vmem:[%s7898_s1 + $0x1a0] ss:$8 sps:$4 sm:$0xff]  }
  0x78   : > { %987 = vmatmul.mubr.bf16.gmra.mrb[24].mxu1 %v742_v62  ;;  %v5520_v62 = vld [vmem:[%s7898_s1 + $0x190] ss:$8 sps:$4 sm:$0xff]  }
  0x79   : > { %2361 = vmatmul.mubr.bf16.gmra.mrb[24].mxu0 %v2116_v53  ;;  %4660 = vmatprep.mubr.msk.bf16.mxu1 %vm7910_vm0, %v567_v0  ;;  %v5513_v53 = vld [vmem:[%s7898_s1 + $0x494] ss:$8 sps:$4 sm:$0xff]   ;;  %v2467_v0 = vor.u32 %v2466_v33, %v2465_v30  ;;  %v7907_v33 = vshrl.u32 %v6316_v57, 16 }
  0x7a   : > { %4880 = vmatprep.mubr.msk.bf16.mxu0 %vm7910_vm0, %v2452_v52  ;;  %v1608_v52 = vpack.c.bf16 %v5689_v15, %v1582_v40  ;;  %v2398_v15 = vld [vmem:[#allocation2 + $0xd8] sm:$0x3f] }
  0x7c   : > { %v1668_v40 = vshll.u32 %v1608_v52, 16 }
  0x80   : > { %1164 = vmatmul.mubr.bf16.vlgmr.msra.gmra.mrb[0].mxu1 %v566_v51  ;;  %v2474_v51 = vrot.slane %v1730_v41, 3 }
  0x81   : > { %2684 = vmatmul.mubr.bf16.vlgmr.msra.gmra.mrb[0].mxu0 %v2440_v29  ;;  %4661 = vmatprep.mubr.msk.bf16.mxu1 %vm7910_vm0, %v6016_v21  ;;  %v1581_v29 = vld [vmem:[#allocation2 + $0x10] sm:$0xf8] }
  0x82   : > { %3033 = vmatpush1.bf16.msra.mxu0 %v5508_v6  ;;  %4881 = vmatprep.mubr.msk.bf16.mxu0 %vm7910_vm0, %v2460_v44  ;;  %v2468_v6 = vsel %vm2428_vm4, %v2459_v63, %v2467_v0  ;;  %v6499_v63 = vor.u32 %v2462_v59, %v2461_v55  ;;  %v5531_v44 = vld [vmem:[%s7898_s1 + $0x4c4] ss:$8 sps:$4 sm:$0xff]   ;;  %v6506_v30 = vor.u32 %v2474_v51, %v2473_v26  ;;  %v1675_v26 = vrot.slane %v1673_v45, 1  ;;  %v5535_v45 = vld [vmem:[%s7898_s1 + $0x1c0] ss:$8 sps:$4 sm:$0xff]  }
  0x83   : > { %3034 = vmatprep.subr.bf16.mxu0 %v5513_v53  ;;  %1455 = vmatpush1.bf16.msra.mxu1 %v5514_v24  ;;  %v1718_v53 = vshrl.u32 %v6270_v10, 16  ;;  %v1721_v24 = vshll.u32 %v6270_v10, 16  ;;  %v1678_v51 = vrot.slane %v1676_v23, 2 }
  0x84   : > { %1456 = vmatprep.subr.bf16.mxu1 %v5522_v8  ;;  %v1665_v8 = vshrl.u32 %v1608_v52, 16 }
  0x85   : > { %v2469_v59 = vrot.slane %v1718_v53, 2 }
  0x86   : > { %3035 = vmatpush1.bf16.msra.mxu0 %v5511_v14  ;;  %v5532_v14 = vld [vmem:[%s7898_s1 + $0x1b0] ss:$8 sps:$4 sm:$0xff]   ;;  %v1667_v52 = vrot.slane %v1665_v8, 1  ;;  %v7905_v8 = vshrl.u32 %v6351_v38, 16 }
  0x87   : > { %3036 = vmatprep.subr.bf16.mxu0 %v5519_v34  ;;  %1457 = vmatpush1.bf16.msra.mxu1 %v5520_v62  ;;  %v5537_v34 = vld [vmem:[%s7898_s1 + $0x1c4] ss:$8 sps:$4 sm:$0xff]   ;;  %v7906_v62 = vshll.u32 %v6316_v57, 16 }
  0x88   : > { %1174 = vmatmul.mubr.bf16.gmra.mrb[4].mxu1 %v6028_v31  ;;  %1458 = vmatprep.subr.bf16.mxu1 %v5528_v50  ;;  %v5690_v50 = vld [vmem:[#allocation2 + $0x20] sm:$0xff] }
  0x89   : > { %2694 = vmatmul.mubr.bf16.gmra.mrb[4].mxu0 %v2456_v56  ;;  %4662 = vmatprep.mubr.msk.bf16.mxu1 %vm7910_vm0, %v6051_v60  ;;  %v1607_v55 = vpack.c.bf16 %v5690_v50, %v1581_v29  ;;  %v2464_v56 = vsel %vm2428_vm4, %v2455_v49, %v6499_v63  ;;  %v2476_v29 = vsel %vm2428_vm4, %v2467_v0, %v6506_v30  ;;  %v2481_v49 = vrot.slane %v7907_v33, 2  ;;  %v5541_v50 = vld [vmem:[%s7898_s1 + $0x1d0] ss:$8 sps:$4 sm:$0xff]  }
  0x8a   : > { %3037 = vmatpush1.bf16.msra.mxu0 %v5517_v54  ;;  %4882 = vmatprep.mubr.msk.bf16.mxu0 %vm7910_vm0, %v2468_v6  ;;  %v5529_v54 = vld [vmem:[%s7898_s1 + $0x4c0] ss:$8 sps:$4 sm:$0xff]   ;;  %v2470_v6 = vrot.slane %v1721_v24, 3  ;;  %v2482_v23 = vrot.slane %v7906_v62, 3  ;;  %v2402_v0 = vpack.c.bf16 %v2398_v15, %v2398_v15  ;;  %v5546_v15 = vld [vmem:[%s7898_s1 + $0x4e4] ss:$8 sps:$4 sm:$0xff]  }
  0x8b   : > { %3038 = vmatprep.subr.bf16.mxu0 %v5525_v9  ;;  %1459 = vmatpush1.bf16.msra.mxu1 %v5526_v20  ;;  %v1670_v9 = vrot.slane %v1668_v40, 2  ;;  %v7904_v40 = vshll.u32 %v6351_v38, 16 }
  0x8c   : > { %1460 = vmatprep.subr.bf16.mxu1 %v5534_v42  ;;  %v5543_v42 = vld [vmem:[%s7898_s1 + $0x1d4] ss:$8 sps:$4 sm:$0xff]  }
  0x8d   : > { %v1671_v20 = vor.u32 %v1670_v9, %v1667_v52  ;;  %v2397_v52 = vld [vmem:[#allocation2 + $0xd0] sm:$0x3f]  ;;  %v2495_v9 = vshrl.u32 %v2402_v0, 16 }
  0x8e   : > { %3039 = vmatpush1.bf16.msra.mxu0 %v5523_v39  ;;  %v6541_v39 = vor.u32 %v1678_v51, %v1675_v26  ;;  %v2498_v26 = vshll.u32 %v2402_v0, 16  ;;  %v1648_v51 = vshrl.u32 %v1607_v55, 16 }
  0x8f   : > { %3040 = vmatprep.subr.bf16.mxu0 %v5531_v44  ;;  %1461 = vmatpush1.bf16.msra.mxu1 %v5532_v14  ;;  %v5538_v44 = vld [vmem:[%s7898_s1 + $0x4d0] ss:$8 sps:$4 sm:$0xff]   ;;  %v6585_v27 = vrot.slane %v2495_v9, 2 }
  0x90   : > { %1184 = vmatmul.mubr.bf16.gmra.mrb[8].mxu1 %v6078_v17  ;;  %1462 = vmatprep.subr.bf16.mxu1 %v5537_v34  ;;  %v6556_v14 = vsel %vm1646_vm5, %v1671_v20, %v6541_v39  ;;  %v2471_v34 = vor.u32 %v2470_v6, %v2469_v59  ;;  %v5549_v59 = vld [vmem:[%s7898_s1 + $0x1e4] ss:$8 sps:$4 sm:$0xff]   ;;  %v2477_v6 = vrot.slane %v7905_v8, 2  ;;  %v5550_v9 = vld [vmem:[%s7898_s1 + $0x4f0] ss:$8 sps:$4 sm:$0xff]  }
  0x91   : > { %2704 = vmatmul.mubr.bf16.gmra.mrb[8].mxu0 %v2464_v56  ;;  %4663 = vmatprep.mubr.msk.bf16.mxu1 %vm7910_vm0, %v6162_v37  ;;  %v2483_v56 = vor.u32 %v2482_v23, %v2481_v49  ;;  %v2401_v23 = vpack.c.bf16 %v2397_v52, %v2397_v52  ;;  %v2789_v8 = vld [vmem:[#allocation2 + $0x78] sm:$0xff] }
  0x92   : > { %3041 = vmatpush1.bf16.msra.mxu0 %v5529_v54  ;;  %4883 = vmatprep.mubr.msk.bf16.mxu0 %vm7910_vm0, %v2476_v29  ;;  %v1651_v54 = vshll.u32 %v1607_v55, 16  ;;  %v5544_v29 = vld [vmem:[%s7898_s1 + $0x4e0] ss:$8 sps:$4 sm:$0xff]   ;;  %v2472_v49 = vsel %vm2428_vm4, %v6499_v63, %v2471_v34  ;;  %v1650_v55 = vrot.slane %v1648_v51, 1  ;;  %v2500_v63 = vrot.slane %v2498_v26, 3 }
  0x93   : > { %3042 = vmatprep.subr.bf16.mxu0 %v5540_v22  ;;  %1463 = vmatpush1.bf16.msra.mxu1 %v5535_v45  ;;  %v2478_v45 = vrot.slane %v7904_v40, 3  ;;  %v5547_v22 = vld [vmem:[%s7898_s1 + $0x1e0] ss:$8 sps:$4 sm:$0xff]   ;;  %v2484_v20 = vsel %vm2428_vm4, %v6506_v30, %v2483_v56  ;;  %v2486_v26 = vshrl.u32 %v2401_v23, 16  ;;  %v2489_v51 = vshll.u32 %v2401_v23, 16 }
  0x94   : > { %1464 = vmatprep.subr.bf16.mxu1 %v5543_v42  ;;  %v1653_v0 = vrot.slane %v1651_v54, 2  ;;  %v5552_v42 = vld [vmem:[%s7898_s1 + $0x4f4] ss:$8 sps:$4 sm:$0xff]   ;;  %v5561_v54 = vld [vmem:[%s7898_s1 + $0x204] ss:$8 sps:$4 sm:$0xff]  }
  0x95   : > { %v2479_v52 = vor.u32 %v2478_v45, %v2477_v6  ;;  %v5556_v45 = vld [vmem:[%s7898_s1 + $0x500] ss:$8 sps:$4 sm:$0xff]  }
  0x96   : > { %3043 = vmatpush1.bf16.msra.mxu0 %v5538_v44  ;;  %v5555_v44 = vld [vmem:[%s7898_s1 + $0x1f4] ss:$8 sps:$4 sm:$0xff]   ;;  %v1654_v30 = vor.u32 %v1653_v0, %v1650_v55  ;;  %v5559_v55 = vld [vmem:[%s7898_s1 + $0x200] ss:$8 sps:$4 sm:$0xff]   ;;  %v5562_v0 = vld [vmem:[%s7898_s1 + $0x510] ss:$8 sps:$4 sm:$0xff]  }
  0x97   : > { %3044 = vmatprep.subr.bf16.mxu0 %v5546_v15  ;;  %1465 = vmatpush1.bf16.msra.mxu1 %v5541_v50  ;;  %v1658_v50 = vrot.slane %v1656_v47, 1  ;;  %v1661_v15 = vrot.slane %v1659_v48, 2  ;;  %v5553_v47 = vld [vmem:[%s7898_s1 + $0x1f0] ss:$8 sps:$4 sm:$0xff]   ;;  %v2501_v48 = vor.u32 %v2500_v63, %v6585_v27  ;;  %v2480_v6 = vsel %vm2428_vm4, %v2471_v34, %v2479_v52  ;;  %v5564_v34 = vld [vmem:[%s7898_s1 + $0x514] ss:$8 sps:$4 sm:$0xff]  }
  0x98   : > { %1194 = vmatmul.mubr.bf16.gmra.mrb[12].mxu1 %v6165_v19  ;;  %1466 = vmatprep.subr.bf16.mxu1 %v5549_v59  ;;  %v5565_v63 = vld [vmem:[%s7898_s1 + $0x210] ss:$8 sps:$4 sm:$0xff]   ;;  %v2787_v40 = vld [vmem:[#allocation2 + $0x68] sm:$0xff] }
  0x99   : > { %2714 = vmatmul.mubr.bf16.gmra.mrb[12].mxu0 %v2472_v49  ;;  %4664 = vmatprep.mubr.msk.bf16.mxu1 %vm7910_vm0, %v6203_v4  ;;  %v6608_v59 = vor.u32 %v1661_v15, %v1658_v50  ;;  %v6621_v49 = vrot.slane %v2486_v26, 2  ;;  %v2502_v23 = vsel %vm2428_vm4, %v2483_v56, %v2501_v48  ;;  %v565_v56 = vld [vmem:[#allocation2 + $0xc8] sm:$0x1]  ;;  %v6647_v50 = vld [vmem:[#allocation2 + $0xb8] sm:$0xff]  ;;  %v1696_v15 = vrot.slane %v1694_v16, 2 }
  0x9a   : > { %3045 = vmatpush1.bf16.msra.mxu0 %v5544_v29  ;;  %4884 = vmatprep.mubr.msk.bf16.mxu0 %vm7910_vm0, %v2484_v20  ;;  %v5567_v20 = vld [vmem:[%s7898_s1 + $0x214] ss:$8 sps:$4 sm:$0xff]   ;;  %v1233_v26 = vld [vmem:[#allocation2 + $0x8] sm:$0xfc]  ;;  %v6732_v3 = vpack.c.bf16 %v2789_v8, %v2787_v40 }
  0x9b   : > { %1467 = vmatpush1.bf16.msra.mxu1 %v5547_v22  ;;  %3046 = vmatprep.subr.bf16.mxu0 %v5552_v42  ;;  %v6615_v29 = vsel %vm1646_vm5, %v1654_v30, %v6608_v59  ;;  %v2491_v22 = vrot.slane %v2489_v51, 3  ;;  %v1693_v42 = vrot.slane %v1691_v58, 1  ;;  %v6649_v30 = vld [vmem:[#allocation2 + $0xc8] sm:$0xff]  ;;  %v6697_v51 = vld [vmem:[#allocation2 + $0x30] sm:$0xff] }
  0x9c   : > { %1468 = vmatprep.subr.bf16.mxu1 %v5555_v44  ;;  %v5570_v44 = vld [vmem:[%s7898_s1 + $0x524] ss:$8 sps:$4 sm:$0xff]   ;;  %v5568_v48 = vld [vmem:[%s7898_s1 + $0x520] ss:$8 sps:$4 sm:$0xff]   ;;  %v2866_v7 = vrot.slane %v6732_v3, 3 }
  0x9d   : > { %v2492_v58 = vor.u32 %v2491_v22, %v6621_v49  ;;  %v6662_v16 = vor.u32 %v1696_v15, %v1693_v42  ;;  %v6678_v42 = vld [vmem:[#allocation2 + $0xc0] sm:$0xff]  ;;  %v5576_v15 = vld [vmem:[%s7898_s1 + $0x234] ss:$8 sps:$4 sm:$0xff]  }
  0x9e   : > { %3047 = vmatpush1.bf16.msra.mxu0 %v5550_v9  ;;  %v5573_v9 = vld [vmem:[%s7898_s1 + $0x224] ss:$8 sps:$4 sm:$0xff]  }
  0x9f   : > { %1469 = vmatpush1.bf16.msra.mxu1 %v5553_v47  ;;  %3048 = vmatprep.subr.bf16.mxu0 %v5558_v18  ;;  %v2779_v47 = vld [vmem:[#allocation2 + $0x28] sm:$0xc0]  ;;  %v6660_v18 = vld [vmem:[#allocation2 + $0x38] sm:$0xff]  ;;  %v6673_v22 = vsel %vm1646_vm5, %v6541_v39, %v6662_v16 }
  0xa0   : > { %1204 = vmatmul.mubr.bf16.gmra.mrb[16].mxu1 %v6226_v61  ;;  %1470 = vmatprep.subr.bf16.mxu1 %v5561_v54  ;;  %v2785_v54 = vld [vmem:[#allocation2 + $0x58] sm:$0xff] }
  0xa1   : > { %2724 = vmatmul.mubr.bf16.gmra.mrb[16].mxu0 %v2480_v6  ;;  %4665 = vmatprep.mubr.msk.bf16.mxu1 %vm7910_vm0, %v6294_v28  ;;  %v579_v6 = vpack.c.bf16 %v565_v56, %v565_v56  ;;  %v564_v56 = vld [vmem:[#allocation2 + $0xc0] sm:$0x1]  ;;  %v5579_v39 = vld [vmem:[%s7898_s1 + $0x534] ss:$8 sps:$4 sm:$0xff]  }
  0xa2   : > { %4885 = vmatprep.mubr.msk.bf16.mxu0 %vm7910_vm0, %v2502_v23  ;;  %3049 = vmatpush1.bf16.msra.mxu0 %v5556_v45  ;;  %v5571_v45 = vld [vmem:[%s7898_s1 + $0x220] ss:$8 sps:$4 sm:$0xff]   ;;  %v2493_v23 = vsel %vm2428_vm4, %v2479_v52, %v2492_v58  ;;  %v2805_v52 = vpack.c.bf16 %v6660_v18, %v2779_v47  ;;  %v1684_v58 = vrot.slane %v1682_v35, 1  ;;  %v1687_v47 = vrot.slane %v1685_v13, 2  ;;  %v5574_v35 = vld [vmem:[%s7898_s1 + $0x230] ss:$8 sps:$4 sm:$0xff]  }
  0xa3   : > { %1471 = vmatpush1.bf16.msra.mxu1 %v5559_v55  ;;  %3050 = vmatprep.subr.bf16.mxu0 %v5564_v34  ;;  %v5691_v55 = vld [vmem:[#allocation2 + $0x18] sm:$0xff] }
  0xa4   : > { %1472 = vmatprep.subr.bf16.mxu1 %v5567_v20  ;;  %v1237_v34 = vpack.c.bf16 %v5691_v55, %v1233_v26  ;;  %v6676_v20 = vld [vmem:[#allocation2 + $0xb0] sm:$0xff]  ;;  %v1232_v26 = vld [vmem:[#allocation2] sm:$0xfc]  ;;  %v1688_v13 = vor.u32 %v1687_v47, %v1684_v58  ;;  %v1702_v47 = vrot.slane %v1700_v2, 1 }
  0xa5   : > { %v2778_v55 = vld [vmem:[#allocation2 + $0x20] sm:$0xc0] }
  0xa6   : > { %3051 = vmatpush1.bf16.msra.mxu0 %v5562_v0  ;;  %v6687_v0 = vpack.c.bf16 %v2785_v54, %v2783_v1  ;;  %v2782_v1 = vld [vmem:[#allocation2 + $0x40] sm:$0xff]  ;;  %v1283_v54 = vrot.slane %v1237_v34, 1  ;;  %v6719_v34 = vsel %vm1646_vm5, %v6608_v59, %v1688_v13 }
  0xa7   : > { %1473 = vmatpush1.bf16.msra.mxu1 %v5565_v63  ;;  %3052 = vmatprep.subr.bf16.mxu0 %v5570_v44  ;;  %v5577_v44 = vld [vmem:[%s7898_s1 + $0x530] ss:$8 sps:$4 sm:$0xff]  }
  0xa8   : > { %1214 = vmatmul.mubr.bf16.gmra.mrb[20].mxu1 %v6334_v12  ;;  %1474 = vmatprep.subr.bf16.mxu1 %v5573_v9  ;;  %v1284_v9 = vrot.slane %v6016_v21, 1  ;;  %v2784_v63 = vld [vmem:[#allocation2 + $0x50] sm:$0xff]  ;;  %v2862_v21 = vrot.slane %v6687_v0, 3 }
  0xa9   : > { %2734 = vmatmul.mubr.bf16.gmra.mrb[20].mxu0 %v2493_v23  ;;  %4666 = vmatprep.mubr.msk.bf16.mxu1 %vm7910_vm0, %v579_v6  ;;  %v1711_v6 = vrot.slane %v1709_v46, 1  ;;  %v2861_v23 = vrot.slane %v2805_v52, 3  ;;  %v1714_v46 = vrot.slane %v1712_v11, 2  ;;  %v2804_v52 = vpack.c.bf16 %v6697_v51, %v2778_v55  ;;  %v2786_v55 = vld [vmem:[#allocation2 + $0x60] sm:$0xff] }
  0xaa   : > { %4886 = vmatprep.mubr.msk.bf16.mxu0 %vm7910_vm0, %v6585_v27  ;;  %3053 = vmatpush1.bf16.msra.mxu0 %v5568_v48  ;;  %v578_v27 = vpack.c.bf16 %v564_v56, %v564_v56  ;;  %v5588_v48 = vld [vmem:[%s7898_s1 + $0x244] ss:$8 sps:$4 sm:$0xff]   ;;  %v1285_v56 = vsel %vm1279_vm9, %v1283_v54, %v1284_v9 }
  0xab   : > { %1475 = vmatpush1.bf16.msra.mxu1 %v5571_v45  ;;  %3054 = vmatprep.subr.bf16.mxu0 %v5579_v39  ;;  %v5692_v45 = vld [vmem:[#allocation2 + $0x10] sm:$0xff]  ;;  %v6727_v58 = vor.u32 %v1714_v46, %v1711_v6  ;;  %v2863_v59 = vsel %vm2857_vm10, %v2861_v23, %v2862_v21  ;;  %v2858_v8 = vrot.slane %v2804_v52, 3 }
  0xac   : > { %1476 = vmatprep.subr.bf16.mxu1 %v5576_v15  ;;  %v1236_v39 = vpack.c.bf16 %v5692_v45, %v1232_v26  ;;  %v6725_v15 = vpack.c.bf16 %v2784_v63, %v2782_v1  ;;  %v1705_v63 = vrot.slane %v1703_v25, 2  ;;  %v1288_v26 = vrot.slane %v6051_v60, 1  ;;  %v2788_v25 = vld [vmem:[#allocation2 + $0x70] sm:$0xff]  ;;  %v5580_v60 = vld [vmem:[%s7898_s1 + $0x540] ss:$8 sps:$4 sm:$0xff]  }
  0xad   : > { %v6737_v11 = vsel %vm1646_vm5, %v6662_v16, %v6727_v58  ;;  %v6764_v6 = vpack.c.bf16 %v2788_v25, %v2786_v55  ;;  %v5585_v23 = vld [vmem:[%s7898_s1 + $0x554] ss:$8 sps:$4 sm:$0xff]   ;;  %v5583_v46 = vld [vmem:[%s7898_s1 + $0x550] ss:$8 sps:$4 sm:$0xff]   ;;  %v5591_v45 = vld [vmem:[%s7898_s1 + $0x564] ss:$8 sps:$4 sm:$0xff]  }
  0xae   : > { %3055 = vmatpush1.bf16.msra.mxu0 %v5577_v44  ;;  %v1280_v2 = vrot.slane %v1236_v39, 1  ;;  %v1281_v44 = vrot.slane %v6028_v31, 1  ;;  %v2859_v40 = vrot.slane %v6725_v15, 3  ;;  %v6747_v16 = vor.u32 %v1705_v63, %v1702_v47  ;;  %v5592_v52 = vld [vmem:[%s7898_s1 + $0x250] ss:$8 sps:$4 sm:$0xff]   ;;  %v6794_v47 = vld [vmem:[#allocation2 + $0x80] sm:$0xff] }
  0xaf   : > { %1477 = vmatpush1.bf16.msra.mxu1 %v5574_v35  ;;  %3465 = vmatprep.subr.bf16.mxu0 %v5582_v36  ;;  %v6750_v35 = vld [vmem:[#allocation2 + $0x88] sm:$0xff]  ;;  %v1289_v36 = vsel %vm1279_vm9, %v1284_v9, %v1288_v26  ;;  %v5594_v9 = vld [vmem:[%s7898_s1 + $0x254] ss:$8 sps:$4 sm:$0xff]   ;;  %v2864_v39 = vrot.slane %v6764_v6, 3 }
  0xb0   : > { %1224 = vmatmul.mubr.bf16.gmra.mrb[24].mxu1 %v578_v27  ;;  %1919 = vmatprep.subr.bf16.mxu1 %v5588_v48  ;;  %v6756_v31 = vsel %vm1646_vm5, %v1688_v13, %v6747_v16  ;;  %v1282_v1 = vsel %vm1279_vm9, %v1280_v2, %v1281_v44  ;;  %v2860_v54 = vsel %vm2857_vm10, %v2858_v8, %v2859_v40  ;;  %v5586_v13 = vld [vmem:[%s7898_s1 + $0x240] ss:$8 sps:$4 sm:$0xff]   ;;  %v5600_v63 = vld [vmem:[%s7898_s1 + $0x264] ss:$8 sps:$4 sm:$0xff]  }
  0xb1   : > { %2744 = vmatmul.mubr.bf16.gmra.mrb[24].mxu0 %v6621_v49  ;;  %4715 = vmatprep.mubr.msk.bf16.mxu1 %vm7910_vm0, %v1285_v56  ;;  %v6752_v49 = vld [vmem:[#allocation2 + $0x98] sm:$0xff]  ;;  %v2867_v27 = vsel %vm2857_vm10, %v2862_v21, %v2866_v7  ;;  %v1286_v21 = vrot.slane %v6078_v17, 1  ;;  %v1292_v56 = vrot.slane %v6162_v37, 1  ;;  %v6802_v2 = vld [vmem:[#allocation2 + $0xa8] sm:$0xff]  ;;  %v2865_v37 = vsel %vm2857_vm10, %v2859_v40, %v2864_v39 }
  0xb2   : > { %4935 = vmatprep.mubr.msk.bf16.mxu0 %vm7910_vm0, %v2863_v59  ;;  %v6775_v48 = vpack.c.bf16 %v6752_v49, %v6750_v35  ;;  %v6797_v59 = vld [vmem:[#allocation2 + $0x90] sm:$0xff]  ;;  %v5589_v55 = vld [vmem:[%s7898_s1 + $0x560] ss:$8 sps:$4 sm:$0xff]  }
  0xb3   : > { %v1287_v8 = vsel %vm1279_vm9, %v1281_v44, %v1286_v21  ;;  %v1293_v25 = vsel %vm1279_vm9, %v1288_v26, %v1292_v56  ;;  %v5598_v40 = vld [vmem:[%s7898_s1 + $0x260] ss:$8 sps:$4 sm:$0xff]   ;;  %v5606_v26 = vld [vmem:[%s7898_s1 + $0x274] ss:$8 sps:$4 sm:$0xff]  }
  0xb4   : > { %v2870_v17 = vrot.slane %v6775_v48, 3 }
  0xb6   : > { %v2871_v44 = vsel %vm2857_vm10, %v2866_v7, %v2870_v17  ;;  %v1296_v7 = vrot.slane %v6203_v4, 1 }
  0xb8   : > { %1487 = vmatmul.mubr.bf16.vlgmr.msra.gmra.mrb[0].mxu1 %v1282_v1  ;;  %v6812_v1 = vpack.c.bf16 %v6797_v59, %v6794_v47 }
  0xb9   : > { %3065 = vmatmul.mubr.bf16.vlgmr.msra.gmra.mrb[0].mxu0 %v2860_v54  ;;  %4716 = vmatprep.mubr.msk.bf16.mxu1 %vm7910_vm0, %v1289_v36  ;;  %v5597_v54 = vld [vmem:[%s7898_s1 + $0x574] ss:$8 sps:$4 sm:$0xff]   ;;  %v1290_v36 = vrot.slane %v6165_v19, 1  ;;  %v5604_v19 = vld [vmem:[%s7898_s1 + $0x270] ss:$8 sps:$4 sm:$0xff]  }
  0xba   : > { %3466 = vmatpush1.bf16.msra.mxu0 %v5580_v60  ;;  %4936 = vmatprep.mubr.msk.bf16.mxu0 %vm7910_vm0, %v2867_v27  ;;  %v6823_v60 = vpack.c.bf16 %v6647_v50, %v6802_v2  ;;  %v2868_v27 = vrot.slane %v6812_v1, 3 }
  0xbb   : > { %3467 = vmatprep.subr.bf16.mxu0 %v5585_v23  ;;  %1920 = vmatpush1.bf16.msra.mxu1 %v5586_v13  ;;  %v5595_v23 = vld [vmem:[%s7898_s1 + $0x570] ss:$8 sps:$4 sm:$0xff]   ;;  %v5603_v13 = vld [vmem:[%s7898_s1 + $0x584] ss:$8 sps:$4 sm:$0xff]  }
  0xbc   : > { %1921 = vmatprep.subr.bf16.mxu1 %v5594_v9  ;;  %v2874_v4 = vrot.slane %v6823_v60, 3  ;;  %v6843_v9 = vld [vmem:[#allocation2 + $0xa0] sm:$0xff] }
  0xbe   : > { %3468 = vmatpush1.bf16.msra.mxu0 %v5583_v46  ;;  %v5609_v46 = vld [vmem:[%s7898_s1 + $0x284] ss:$8 sps:$4 sm:$0xff]  }
  0xbf   : > { %3469 = vmatprep.subr.bf16.mxu0 %v5591_v45  ;;  %1922 = vmatpush1.bf16.msra.mxu1 %v5592_v52  ;;  %v6848_v45 = vld [vmem:[#allocation2 + $0xd8] sm:$0xff]  ;;  %v1291_v52 = vsel %vm1279_vm9, %v1286_v21, %v1290_v36  ;;  %v2875_v21 = vsel %vm2857_vm10, %v2870_v17, %v2874_v4  ;;  %v1294_v17 = vrot.slane %v6226_v61, 1  ;;  %v5618_v61 = vld [vmem:[%s7898_s1 + $0x5a4] ss:$8 sps:$4 sm:$0xff]  }
  0xc0   : > { %1497 = vmatmul.mubr.bf16.gmra.mrb[4].mxu1 %v1287_v8  ;;  %1923 = vmatprep.subr.bf16.mxu1 %v5600_v63  ;;  %v1297_v63 = vsel %vm1279_vm9, %v1292_v56, %v1296_v7  ;;  %v2869_v8 = vsel %vm2857_vm10, %v2864_v39, %v2868_v27  ;;  %v5607_v39 = vld [vmem:[%s7898_s1 + $0x280] ss:$8 sps:$4 sm:$0xff]   ;;  %v5612_v56 = vld [vmem:[%s7898_s1 + $0x594] ss:$8 sps:$4 sm:$0xff]  }
  0xc1   : > { %3075 = vmatmul.mubr.bf16.gmra.mrb[4].mxu0 %v2865_v37  ;;  %4717 = vmatprep.mubr.msk.bf16.mxu1 %vm7910_vm0, %v1293_v25  ;;  %v5601_v37 = vld [vmem:[%s7898_s1 + $0x580] ss:$8 sps:$4 sm:$0xff]  }
  0xc2   : > { %3470 = vmatpush1.bf16.msra.mxu0 %v5589_v55  ;;  %4937 = vmatprep.mubr.msk.bf16.mxu0 %vm7910_vm0, %v2871_v44  ;;  %v6858_v55 = vpack.c.bf16 %v6676_v20, %v6843_v9  ;;  %v6873_v44 = vpack.c.bf16 %v6848_v45, %v6649_v30 }
  0xc3   : > { %3471 = vmatprep.subr.bf16.mxu0 %v5597_v54  ;;  %1924 = vmatpush1.bf16.msra.mxu1 %v5598_v40  ;;  %v5615_v40 = vld [vmem:[%s7898_s1 + $0x294] ss:$8 sps:$4 sm:$0xff]  }
  0xc4   : > { %1925 = vmatprep.subr.bf16.mxu1 %v5606_v26  ;;  %v2872_v26 = vrot.slane %v6858_v55, 3  ;;  %v3264_v5 = vshrl.u32 %v6858_v55, 16 }
  0xc6   : > { %3472 = vmatpush1.bf16.msra.mxu0 %v5595_v23  ;;  %v5610_v23 = vld [vmem:[%s7898_s1 + $0x590] ss:$8 sps:$4 sm:$0xff]  }
  0xc7   : > { %3473 = vmatprep.subr.bf16.mxu0 %v5603_v13  ;;  %1926 = vmatpush1.bf16.msra.mxu1 %v5604_v19  ;;  %v5613_v13 = vld [vmem:[%s7898_s1 + $0x290] ss:$8 sps:$4 sm:$0xff]   ;;  %v1300_v19 = vrot.slane %v6294_v28, 1  ;;  %v2873_v28 = vsel %vm2857_vm10, %v2868_v27, %v2872_v26  ;;  %v5624_v27 = vld [vmem:[%s7898_s1 + $0x5b4] ss:$8 sps:$4 sm:$0xff]  }
  0xc8   : > { %1507 = vmatmul.mubr.bf16.gmra.mrb[8].mxu1 %v1291_v52  ;;  %1927 = vmatprep.subr.bf16.mxu1 %v5609_v46  ;;  %v2878_v46 = vrot.slane %v6873_v44, 3  ;;  %v6893_v52 = vld [vmem:[#allocation2 + $0xd0] sm:$0xff] }
  0xc9   : > { %3085 = vmatmul.mubr.bf16.gmra.mrb[8].mxu0 %v2869_v8  ;;  %4718 = vmatprep.mubr.msk.bf16.mxu1 %vm7910_vm0, %v1297_v63  ;;  %v1235_v63 = vld [vmem:[#allocation2 + $0xc8] sm:$0x7]  ;;  %v5621_v8 = vld [vmem:[%s7898_s1 + $0x2a4] ss:$8 sps:$4 sm:$0xff]   ;;  %v6906_v54 = vpack.c.bf16 %v6893_v52, %v6678_v42 }
  0xca   : > { %3474 = vmatpush1.bf16.msra.mxu0 %v5601_v37  ;;  %4938 = vmatprep.mubr.msk.bf16.mxu0 %vm7910_vm0, %v2875_v21  ;;  %v2803_v37 = vld [vmem:[#allocation2 + $0xe8] sm:$0x7f]  ;;  %v1295_v21 = vsel %vm1279_vm9, %v1290_v36, %v1294_v17  ;;  %v2879_v25 = vsel %vm2857_vm10, %v2874_v4, %v2878_v46  ;;  %v1298_v4 = vrot.slane %v6334_v12, 1 }
  0xcb   : > { %3475 = vmatprep.subr.bf16.mxu0 %v5612_v56  ;;  %1928 = vmatpush1.bf16.msra.mxu1 %v5607_v39  ;;  %v5616_v39 = vld [vmem:[%s7898_s1 + $0x5a0] ss:$8 sps:$4 sm:$0xff]   ;;  %v1301_v56 = vsel %vm1279_vm9, %v1296_v7, %v1300_v19  ;;  %v5627_v7 = vld [vmem:[%s7898_s1 + $0x2b4] ss:$8 sps:$4 sm:$0xff]   ;;  %v5630_v12 = vld [vmem:[%s7898_s1 + $0x5c4] ss:$8 sps:$4 sm:$0xff]  }
  0xcc   : > { %1929 = vmatprep.subr.bf16.mxu1 %v5615_v40  ;;  %v1239_v40 = vpack.c.bf16 %v1235_v63, %v1235_v63  ;;  %v5619_v36 = vld [vmem:[%s7898_s1 + $0x2a0] ss:$8 sps:$4 sm:$0xff]   ;;  %v3160_v63 = vld [vmem:[#allocation2 + $0x28] sm:$0x80] }
  0xcd   : > { %v3164_v33 = vpack.c.bf16 %v6660_v18, %v3160_v63  ;;  %v5636_v18 = vld [vmem:[%s7898_s1 + $0x5d4] ss:$8 sps:$4 sm:$0xff]  }
  0xce   : > { %3476 = vmatpush1.bf16.msra.mxu0 %v5610_v23  ;;  %v2817_v23 = vpack.c.bf16 %v2803_v37, %v2803_v37  ;;  %v1304_v37 = vrot.slane %v1239_v40, 1 }
  0xcf   : > { %3477 = vmatprep.subr.bf16.mxu0 %v5618_v61  ;;  %1930 = vmatpush1.bf16.msra.mxu1 %v5613_v13  ;;  %v5622_v13 = vld [vmem:[%s7898_s1 + $0x5b0] ss:$8 sps:$4 sm:$0xff]   ;;  %v2876_v61 = vrot.slane %v6906_v54, 3 }
  0xd0   : > { %1517 = vmatmul.mubr.bf16.gmra.mrb[12].mxu1 %v1295_v21  ;;  %1931 = vmatprep.subr.bf16.mxu1 %v5621_v8  ;;  %v5625_v8 = vld [vmem:[%s7898_s1 + $0x2b0] ss:$8 sps:$4 sm:$0xff]   ;;  %v1234_v21 = vld [vmem:[#allocation2 + $0xc0] sm:$0x7] }
  0xd1   : > { %3095 = vmatmul.mubr.bf16.gmra.mrb[12].mxu0 %v2873_v28  ;;  %4719 = vmatprep.mubr.msk.bf16.mxu1 %vm7910_vm0, %v1301_v56  ;;  %v2882_v28 = vrot.slane %v2817_v23, 3  ;;  %v2802_v56 = vld [vmem:[#allocation2 + $0xe0] sm:$0x7f]  ;;  %v1238_v62 = vpack.c.bf16 %v1234_v21, %v1234_v21  ;;  %v2877_v40 = vsel %vm2857_vm10, %v2872_v26, %v2876_v61  ;;  %v5639_v26 = vld [vmem:[%s7898_s1 + $0x2d4] ss:$8 sps:$4 sm:$0xff]   ;;  %v3214_v21 = vshll.u32 %v3164_v33, 16 }
  0xd2   : > { %3478 = vmatpush1.bf16.msra.mxu0 %v5616_v39  ;;  %4939 = vmatprep.mubr.msk.bf16.mxu0 %vm7910_vm0, %v2879_v25  ;;  %v5633_v25 = vld [vmem:[%s7898_s1 + $0x2c4] ss:$8 sps:$4 sm:$0xff]   ;;  %v1299_v39 = vsel %vm1279_vm9, %v1294_v17, %v1298_v4  ;;  %v2816_v23 = vpack.c.bf16 %v2802_v56, %v2802_v56  ;;  %v5631_v17 = vld [vmem:[%s7898_s1 + $0x2c0] ss:$8 sps:$4 sm:$0xff]   ;;  %v3219_v56 = vshrl.u32 %v6687_v0, 16 }
  0xd3   : > { %1932 = vmatpush1.bf16.msra.mxu1 %v5619_v36  ;;  %3479 = vmatprep.subr.bf16.mxu0 %v5624_v27  ;;  %v5628_v36 = vld [vmem:[%s7898_s1 + $0x5c0] ss:$8 sps:$4 sm:$0xff]   ;;  %v1305_v27 = vsel %vm1279_vm9, %v1300_v19, %v1304_v37  ;;  %v3159_v19 = vld [vmem:[#allocation2 + $0x20] sm:$0x80]  ;;  %v1302_v63 = vrot.slane %v1238_v62, 1 }
  0xd4   : > { %1933 = vmatprep.subr.bf16.mxu1 %v5627_v7  ;;  %v2883_v7 = vsel %vm2857_vm10, %v2878_v46, %v2882_v28  ;;  %v2880_v46 = vrot.slane %v2816_v23, 3  ;;  %v5642_v62 = vld [vmem:[%s7898_s1 + $0x5e4] ss:$8 sps:$4 sm:$0xff]  }
  0xd6   : > { %3480 = vmatpush1.bf16.msra.mxu0 %v5622_v13  ;;  %v5634_v13 = vld [vmem:[%s7898_s1 + $0x5d0] ss:$8 sps:$4 sm:$0xff]  }
  0xd7   : > { %1934 = vmatpush1.bf16.msra.mxu1 %v5625_v8  ;;  %3481 = vmatprep.subr.bf16.mxu0 %v5630_v12  ;;  %v3211_v8 = vshrl.u32 %v3164_v33, 16  ;;  %v5637_v12 = vld [vmem:[%s7898_s1 + $0x2d0] ss:$8 sps:$4 sm:$0xff]   ;;  %v1303_v33 = vsel %vm1279_vm9, %v1298_v4, %v1302_v63  ;;  %v5651_v4 = vld [vmem:[%s7898_s1 + $0x5f4] ss:$8 sps:$4 sm:$0xff]  }
  0xd8   : > { %1527 = vmatmul.mubr.bf16.gmra.mrb[16].mxu1 %v1299_v39  ;;  %1935 = vmatprep.subr.bf16.mxu1 %v5633_v25  ;;  %v3222_v25 = vshll.u32 %v6687_v0, 16  ;;  %v5645_v39 = vld [vmem:[%s7898_s1 + $0x2e4] ss:$8 sps:$4 sm:$0xff]   ;;  %v5643_v0 = vld [vmem:[%s7898_s1 + $0x2e0] ss:$8 sps:$4 sm:$0xff]  }
  0xd9   : > { %3105 = vmatmul.mubr.bf16.gmra.mrb[16].mxu0 %v2877_v40  ;;  %4720 = vmatprep.mubr.msk.bf16.mxu1 %vm7910_vm0, %v1305_v27  ;;  %v3163_v40 = vpack.c.bf16 %v6697_v51, %v3159_v19  ;;  %v5640_v27 = vld [vmem:[%s7898_s1 + $0x5e0] ss:$8 sps:$4 sm:$0xff]   ;;  %v3213_v23 = vrot.slane %v3211_v8, 3  ;;  %v3221_v51 = vrot.slane %v3219_v56, 3  ;;  %v3205_v8 = vshll.u32 %v6725_v15, 16 }
  0xda   : > { %4940 = vmatprep.mubr.msk.bf16.mxu0 %vm7910_vm0, %v2883_v7  ;;  %3482 = vmatpush1.bf16.msra.mxu0 %v5628_v36  ;;  %v2881_v36 = vsel %vm2857_vm10, %v2876_v61, %v2880_v46  ;;  %v3216_v7 = vrot.slane %v3214_v21, 4  ;;  %v5648_v61 = vld [vmem:[%s7898_s1 + $0x2f4] ss:$8 sps:$4 sm:$0xff]   ;;  %v5646_v21 = vld [vmem:[%s7898_s1 + $0x2f0] ss:$8 sps:$4 sm:$0xff]   ;;  %v3240_v56 = vshll.u32 %v6732_v3, 16 }
  0xdb   : > { %1936 = vmatpush1.bf16.msra.mxu1 %v5631_v17  ;;  %3483 = vmatprep.subr.bf16.mxu0 %v5636_v18  ;;  %v3224_v17 = vrot.slane %v3222_v25, 4  ;;  %v5649_v18 = vld [vmem:[%s7898_s1 + $0x5f0] ss:$8 sps:$4 sm:$0xff]   ;;  %v3197_v19 = vshll.u32 %v3163_v40, 16 }
  0xdc   : > { %1937 = vmatprep.subr.bf16.mxu1 %v5639_v26  ;;  %v3194_v26 = vshrl.u32 %v3163_v40, 16 }
  0xdd   : > { %v3199_v25 = vrot.slane %v3197_v19, 4 }
  0xde   : > { %3484 = vmatpush1.bf16.msra.mxu0 %v5634_v13  ;;  %v3202_v13 = vshrl.u32 %v6725_v15, 16  ;;  %v3196_v15 = vrot.slane %v3194_v26, 3 }
  0xdf   : > { %1938 = vmatpush1.bf16.msra.mxu1 %v5637_v12  ;;  %3485 = vmatprep.subr.bf16.mxu0 %v5642_v62  ;;  %v3225_v12 = vor.u32 %v3224_v17, %v3221_v51  ;;  %v3237_v62 = vshrl.u32 %v6732_v3, 16  ;;  %v3228_v3 = vshrl.u32 %v6764_v6, 16  ;;  %v3255_v51 = vshrl.u32 %v6775_v48, 16 }
  0xe0   : > { %1537 = vmatmul.mubr.bf16.gmra.mrb[20].mxu1 %v1303_v33  ;;  %1939 = vmatprep.subr.bf16.mxu1 %v5645_v39  ;;  %v3204_v39 = vrot.slane %v3202_v13, 3  ;;  %v3207_v33 = vrot.slane %v3205_v8, 4  ;;  %v3258_v17 = vshll.u32 %v6775_v48, 16  ;;  %v5655_v13 = vld [vmem:[%s7898_s1 + $0x610] ss:$8 sps:$4 sm:$0xff]   ;;  %v3246_v8 = vshrl.u32 %v6812_v1, 16 }
  0xe1   : > { %3115 = vmatmul.mubr.bf16.gmra.mrb[20].mxu0 %v2881_v36  ;;  %4721 = vmatprep.mubr.msk.bf16.mxu1 %vm7910_vm0, %v1304_v37  ;;  %v3217_v37 = vor.u32 %v3216_v7, %v3213_v23  ;;  %v3239_v36 = vrot.slane %v3237_v62, 3  ;;  %v3231_v23 = vshll.u32 %v6764_v6, 16  ;;  %v3200_v7 = vor.u32 %v3199_v25, %v3196_v15  ;;  %v5657_v6 = vld [vmem:[%s7898_s1 + $0x614] ss:$8 sps:$4 sm:$0xff]   ;;  %v5658_v62 = vld [vmem:[%s7898_s1 + $0x620] ss:$8 sps:$4 sm:$0xff]  }
  0xe2   : > { %4941 = vmatprep.mubr.msk.bf16.mxu0 %vm7910_vm0, %v2882_v28  ;;  %3486 = vmatpush1.bf16.msra.mxu0 %v5640_v27  ;;  %v5654_v28 = vld [vmem:[%s7898_s1 + $0x604] ss:$8 sps:$4 sm:$0xff]   ;;  %v3242_v27 = vrot.slane %v3240_v56, 4  ;;  %v3257_v26 = vrot.slane %v3255_v51, 3  ;;  %v3260_v19 = vrot.slane %v3258_v17, 4  ;;  %v1729_v15 = vrot.slane %v1727_v43, 1 }
  0xe3   : > { %1940 = vmatpush1.bf16.msra.mxu1 %v5643_v0  ;;  %3487 = vmatprep.subr.bf16.mxu0 %v5651_v4  ;;  %v3226_v40 = vsel %vm7909_vm11, %v3217_v37, %v3225_v12  ;;  %v3208_v0 = vor.u32 %v3207_v33, %v3204_v39  ;;  %v1732_v25 = vrot.slane %v1730_v41, 2  ;;  %v3267_v43 = vshll.u32 %v6858_v55, 16  ;;  %v5661_v41 = vld [vmem:[%s7898_s1 + $0x630] ss:$8 sps:$4 sm:$0xff]  }
  0xe4   : > { %1941 = vmatprep.subr.bf16.mxu1 %v5648_v61  ;;  %v3243_v4 = vor.u32 %v3242_v27, %v3239_v36  ;;  %v3230_v61 = vrot.slane %v3228_v3, 3  ;;  %v3261_v37 = vor.u32 %v3260_v19, %v3257_v26  ;;  %v3291_v3 = vshrl.u32 %v6873_v44, 16 }
  0xe5   : > { %v1733_v27 = vor.u32 %v1732_v25, %v1729_v15  ;;  %v3294_v55 = vshll.u32 %v6873_v44, 16  ;;  %v3266_v51 = vrot.slane %v3264_v5, 3  ;;  %v3269_v17 = vrot.slane %v3267_v43, 4 }
  0xe6   : > { %3488 = vmatpush1.bf16.msra.mxu0 %v5649_v18  ;;  %v3244_v18 = vsel %vm7909_vm11, %v3225_v12, %v3243_v4  ;;  %v3276_v12 = vshll.u32 %v6823_v60, 16  ;;  %v3262_v39 = vsel %vm7909_vm11, %v3243_v4, %v3261_v37  ;;  %v7059_v4 = vld [vmem:[#allocation2 + $0xe8] sm:$0xff]  ;;  %v7916_v15 = vshrl.u32 %v6351_v38, 16 }
  0xe7   : > { %1942 = vmatpush1.bf16.msra.mxu1 %v5646_v21  ;;  %3798 = vmatprep.subr.bf16.mxu0 %v5654_v28  ;;  %v3249_v21 = vshll.u32 %v6812_v1, 16  ;;  %v3248_v1 = vrot.slane %v3246_v8, 3  ;;  %v1734_v10 = vsel %vm1646_vm5, %v6727_v58, %v1733_v27  ;;  %v3296_v26 = vrot.slane %v3294_v55, 4 }
  0xe8   : > { %1547 = vmatmul.mubr.bf16.gmra.mrb[24].mxu1 %v1302_v63  ;;  %5082 = vmatprep.subr.bf16.mxu1 %v5654_v28  ;;  %v3233_v63 = vrot.slane %v3231_v23, 4  ;;  %v1606_v23 = vld [vmem:[#allocation2 + $0xd8] sm:$0xf]  ;;  %v3166_v19 = vpack.c.bf16 %v7059_v4, %v7059_v4  ;;  %v3270_v58 = vor.u32 %v3269_v17, %v3266_v51  ;;  %v1738_v25 = vrot.slane %v7916_v15, 1 }
  0xe9   : > { %3125 = vmatmul.mubr.bf16.gmra.mrb[24].mxu0 %v2880_v46  ;;  %4770 = vmatprep.mubr.msk.bf16.mxu1 %vm7910_vm0, %v6556_v14  ;;  %v3209_v46 = vsel %vm7909_vm11, %v3200_v7, %v3208_v0  ;;  %v5652_v14 = vld [vmem:[%s7898_s1 + $0x600] ss:$8 sps:$4 sm:$0xff]   ;;  %v3251_v56 = vrot.slane %v3249_v21, 4  ;;  %v1720_v7 = vrot.slane %v1718_v53, 1  ;;  %v3282_v21 = vshrl.u32 %v6906_v54, 16 }
  0xea   : > { %4990 = vmatprep.mubr.msk.bf16.mxu0 %vm7910_vm0, %v3226_v40  ;;  %v3234_v48 = vor.u32 %v3233_v63, %v3230_v61  ;;  %v3278_v40 = vrot.slane %v3276_v12, 4  ;;  %v7914_v61 = vshrl.u32 %v6316_v57, 16  ;;  %v5664_v53 = vld [vmem:[%s7898_s1 + $0x640] ss:$8 sps:$4 sm:$0xff]   ;;  %v5672_v12 = vld [vmem:[%s7898_s1 + $0x664] ss:$8 sps:$4 sm:$0xff]   ;;  %v7918_v15 = vpack.c.bf16 %v6649_v30, %v6647_v50 }
  0xeb   : > { %v3252_v36 = vor.u32 %v3251_v56, %v3248_v1  ;;  %v3312_v1 = vshll.u32 %v3166_v19, 16  ;;  %v3596_v50 = vld [vmem:[#allocation2 + $0x50] sm:$0xff]  ;;  %v3598_v30 = vld [vmem:[#allocation2 + $0x60] sm:$0xff] }
  0xec   : > { %v3235_v28 = vsel %vm7909_vm11, %v3208_v0, %v3234_v48  ;;  %v1723_v0 = vrot.slane %v1721_v24, 2  ;;  %v1747_v63 = vrot.slane %v7914_v61, 1  ;;  %v1620_v24 = vpack.c.bf16 %v1606_v23, %v1606_v23 }
  0xed   : > { %v3253_v44 = vsel %vm7909_vm11, %v3234_v48, %v3252_v36  ;;  %v3314_v23 = vrot.slane %v3312_v1, 4  ;;  %v3595_v1 = vld [vmem:[#allocation2 + $0x48] sm:$0xff] }
  0xee   : > { %v1724_v48 = vor.u32 %v1723_v0, %v1720_v7 }
  0xf0   : > { %1952 = vmatmul.mubr.bf16.vlgmr.msra.gmra.mrb[0].mxu1 %v6615_v29  ;;  %v5660_v29 = vld [vmem:[%s7898_s1 + $0x624] ss:$8 sps:$4 sm:$0xff]   ;;  %v1725_v56 = vsel %vm1646_vm5, %v6747_v16, %v1724_v48  ;;  %v5670_v16 = vld [vmem:[%s7898_s1 + $0x660] ss:$8 sps:$4 sm:$0xff]  }
  0xf1   : > { %3498 = vmatmul.mubr.bf16.vlgmr.msra.gmra.mrb[0].mxu0 %v3209_v46  ;;  %4771 = vmatprep.mubr.msk.bf16.mxu1 %vm7910_vm0, %v6673_v22  ;;  %v3273_v22 = vshrl.u32 %v6823_v60, 16  ;;  %v5663_v60 = vld [vmem:[%s7898_s1 + $0x634] ss:$8 sps:$4 sm:$0xff]   ;;  %v7915_v46 = vshll.u32 %v6316_v57, 16 }
  0xf2   : > { %3799 = vmatpush1.bf16.msra.mxu0 %v5652_v14  ;;  %4991 = vmatprep.mubr.msk.bf16.mxu0 %vm7910_vm0, %v3244_v18  ;;  %v5669_v57 = vld [vmem:[%s7898_s1 + $0x654] ss:$8 sps:$4 sm:$0xff]   ;;  %v3293_v18 = vrot.slane %v3291_v3, 3 }
  0xf3   : > { %3800 = vmatprep.subr.bf16.mxu0 %v5657_v6  ;;  %5094 = vmatpush1.bf16.msra.mxu1 %v5652_v14  ;;  %v3275_v33 = vrot.slane %v3273_v22, 3  ;;  %v1750_v14 = vrot.slane %v7915_v46, 2  ;;  %v1605_v22 = vld [vmem:[#allocation2 + $0xd0] sm:$0xf] }
  0xf4   : > { %5083 = vmatprep.subr.bf16.mxu1 %v5657_v6  ;;  %v1619_v43 = vpack.c.bf16 %v1605_v22, %v1605_v22  ;;  %v5682_v22 = vld [vmem:[%s7898_s1 + $0x6a0] ss:$8 sps:$4 sm:$0xff]  }
  0xf5   : > { %v1751_v8 = vor.u32 %v1750_v14, %v1747_v63  ;;  %v5678_v14 = vld [vmem:[%s7898_s1 + $0x684] ss:$8 sps:$4 sm:$0xff]  }
  0xf6   : > { %3801 = vmatpush1.bf16.msra.mxu0 %v5655_v13  ;;  %v1754_v0 = vshrl.u32 %v1619_v43, 16  ;;  %v1757_v51 = vshll.u32 %v1619_v43, 16 }
  0xf7   : > { %3802 = vmatprep.subr.bf16.mxu0 %v5660_v29  ;;  %5095 = vmatpush1.bf16.msra.mxu1 %v5655_v13  ;;  %v5667_v13 = vld [vmem:[%s7898_s1 + $0x650] ss:$8 sps:$4 sm:$0xff]  }
  0xf8   : > { %1962 = vmatmul.mubr.bf16.gmra.mrb[4].mxu1 %v6719_v34  ;;  %5084 = vmatprep.subr.bf16.mxu1 %v5660_v29  ;;  %v5666_v34 = vld [vmem:[%s7898_s1 + $0x644] ss:$8 sps:$4 sm:$0xff]   ;;  %v3285_v29 = vshll.u32 %v6906_v54, 16 }
  0xf9   : > { %3508 = vmatmul.mubr.bf16.gmra.mrb[4].mxu0 %v3235_v28  ;;  %4772 = vmatprep.mubr.msk.bf16.mxu1 %vm7910_vm0, %v6737_v11  ;;  %v7051_v11 = vor.u32 %v3278_v40, %v3275_v33  ;;  %v3297_v28 = vor.u32 %v3296_v26, %v3293_v18  ;;  %v7093_v54 = vld [vmem:[#allocation2] sm:$0xff]  ;;  %v1752_v33 = vsel %vm1646_vm5, %v1733_v27, %v1751_v8  ;;  %v7917_v40 = vshll.u32 %v6351_v38, 16  ;;  %v5675_v38 = vld [vmem:[%s7898_s1 + $0x674] ss:$8 sps:$4 sm:$0xff]  }
  0xfa   : > { %3803 = vmatpush1.bf16.msra.mxu0 %v5658_v62  ;;  %4992 = vmatprep.mubr.msk.bf16.mxu0 %vm7910_vm0, %v3262_v39  ;;  %v3271_v39 = vsel %vm7909_vm11, %v3252_v36, %v3270_v58 }
  0xfb   : > { %3804 = vmatprep.subr.bf16.mxu0 %v5663_v60  ;;  %5096 = vmatpush1.bf16.msra.mxu1 %v5658_v62  ;;  %v3280_v6 = vsel %vm7909_vm11, %v3261_v37, %v7051_v11  ;;  %v1763_v37 = vshrl.u32 %v1620_v24, 16  ;;  %v3309_v62 = vshrl.u32 %v3166_v19, 16  ;;  %v1741_v5 = vrot.slane %v7917_v40, 2 }
  0xfc   : > { %5085 = vmatprep.subr.bf16.mxu1 %v5663_v60  ;;  %v3165_v60 = vpack.c.bf16 %v7093_v54, %v7093_v54  ;;  %v3298_v36 = vsel %vm7909_vm11, %v7051_v11, %v3297_v28  ;;  %v5673_v11 = vld [vmem:[%s7898_s1 + $0x670] ss:$8 sps:$4 sm:$0xff]  }
  0xfd   : > { %v7104_v3 = vrot.slane %v1763_v37, 1  ;;  %v3311_v27 = vrot.slane %v3309_v62, 3  ;;  %v1742_v7 = vor.u32 %v1741_v5, %v1738_v25  ;;  %v3593_v62 = vld [vmem:[#allocation2 + $0x38] sm:$0xff]  ;;  %v3592_v25 = vld [vmem:[#allocation2 + $0x30] sm:$0xff]  ;;  %v3629_v5 = vpack.c.bf16 %v7059_v4, %v6848_v45 }
  0xfe   : > { %3805 = vmatpush1.bf16.msra.mxu0 %v5661_v41  ;;  %v3300_v63 = vshrl.u32 %v3165_v60, 16  ;;  %v3303_v46 = vshll.u32 %v3165_v60, 16  ;;  %v3594_v60 = vld [vmem:[#allocation2 + $0x40] sm:$0xff] }
  0xff   : > { %3806 = vmatprep.subr.bf16.mxu0 %v5666_v34  ;;  %5097 = vmatpush1.bf16.msra.mxu1 %v5661_v41  ;;  %v3284_v41 = vrot.slane %v3282_v21, 3  ;;  %v5679_v21 = vld [vmem:[%s7898_s1 + $0x690] ss:$8 sps:$4 sm:$0xff]   ;;  %v3618_v40 = vpack.c.bf16 %v3594_v60, %v3592_v25 }
 0x100   : > { %1972 = vmatmul.mubr.bf16.gmra.mrb[8].mxu1 %v6756_v31  ;;  %5086 = vmatprep.subr.bf16.mxu1 %v5666_v34  ;;  %v1766_v31 = vshll.u32 %v1620_v24, 16  ;;  %v3287_v34 = vrot.slane %v3285_v29, 4  ;;  %v1759_v24 = vrot.slane %v1757_v51, 2  ;;  %v3302_v26 = vrot.slane %v3300_v63, 3  ;;  %v5684_v29 = vld [vmem:[%s7898_s1 + $0x6a4] ss:$8 sps:$4 sm:$0xff]  }
 0x101   : > { %3518 = vmatmul.mubr.bf16.gmra.mrb[8].mxu0 %v3253_v44  ;;  %4773 = vmatprep.mubr.msk.bf16.mxu1 %vm7910_vm0, %v1734_v10  ;;  %v3315_v44 = vor.u32 %v3314_v23, %v3311_v27  ;;  %v1756_v10 = vrot.slane %v1754_v0, 1  ;;  %v3305_v19 = vrot.slane %v3303_v46, 4 }
 0x102   : > { %3807 = vmatpush1.bf16.msra.mxu0 %v5664_v53  ;;  %4993 = vmatprep.mubr.msk.bf16.mxu0 %vm7910_vm0, %v3280_v6  ;;  %v1768_v55 = vrot.slane %v1766_v31, 2  ;;  %v3288_v17 = vor.u32 %v3287_v34, %v3284_v41  ;;  %v3617_v41 = vld [vmem:[#allocation2 + $0xf8] sm:$0x1]  ;;  %v7204_v63 = vmul.u32.u64.low 3123612579, %v5856_v32  ;;  %v7205_v46 = vmul.u32.u64.high 3123612579, %v5856_v32, %v7204_v63 }
 0x103   : > { %3808 = vmatprep.subr.bf16.mxu0 %v5669_v57  ;;  %5098 = vmatpush1.bf16.msra.mxu1 %v5664_v53  ;;  %v1743_v53 = vsel %vm1646_vm5, %v1724_v48, %v1742_v7  ;;  %v5681_v48 = vld [vmem:[%s7898_s1 + $0x694] ss:$8 sps:$4 sm:$0xff]  }
 0x104   : > { %5087 = vmatprep.subr.bf16.mxu1 %v5669_v57  ;;  %v1769_v61 = vor.u32 %v1768_v55, %v7104_v3  ;;  %v3289_v6 = vsel %vm7909_vm11, %v3270_v58, %v3288_v17  ;;  %v5676_v57 = vld [vmem:[%s7898_s1 + $0x680] ss:$8 sps:$4 sm:$0xff]   ;;  %v1760_v58 = vor.u32 %v1759_v24, %v1756_v10  ;;  %v3601_v34 = vld [vmem:[#allocation2 + $0x78] sm:$0xff]  ;;  %v3620_v55 = vpack.c.bf16 %v3598_v30, %v3596_v50 }
 0x105   : > { %v3623_v45 = vpack.c.bf16 %v6750_v35, %v3601_v34  ;;  %v7921_v35 = vpack.c.bf16 %v6843_v9, %v6797_v59  ;;  %v4029_v9 = vadd.s32 8, %v5856_v32  ;;  %v4037_v24 = vadd.s32 72, %v5856_v32 }
 0x106   : > { %3809 = vmatpush1.bf16.msra.mxu0 %v5667_v13  ;;  %v1770_v18 = vsel %vm1646_vm5, %v1751_v8, %v1769_v61  ;;  %v3306_v8 = vor.u32 %v3305_v19, %v3302_v26  ;;  %v1761_v37 = vsel %vm1646_vm5, %v1742_v7, %v1760_v58  ;;  %v7222_v19 = vadd.s32 16, %v5856_v32 }
 0x107   : > { %3810 = vmatprep.subr.bf16.mxu0 %v5672_v12  ;;  %5099 = vmatpush1.bf16.msra.mxu1 %v5667_v13  ;;  %v3316_v13 = vsel %vm7909_vm11, %v3297_v28, %v3315_v44  ;;  %v5685_v28 = vld [vmem:[%s7898_s1 + $0x6b0] ss:$8 sps:$4 sm:$0xff]   ;;  %v4047_v58 = vshrl.u32 %v7205_v46, 3 }
 0x108   : > { %1982 = vmatmul.mubr.bf16.gmra.mrb[12].mxu1 %v1725_v56  ;;  %5088 = vmatprep.subr.bf16.mxu1 %v5672_v12  ;;  %v3307_v31 = vsel %vm7909_vm11, %v3288_v17, %v3306_v8  ;;  %v5687_v12 = vld [vmem:[%s7898_s1 + $0x6b4] ss:$8 sps:$4 sm:$0xff]   ;;  %v3619_v56 = vpack.c.bf16 %v3595_v1, %v3593_v62  ;;  %v7230_v8 = vadd.s32 80, %v5856_v32 }
 0x109   : > { %3528 = vmatmul.mubr.bf16.gmra.mrb[12].mxu0 %v3271_v39  ;;  %4774 = vmatprep.mubr.msk.bf16.mxu1 %vm7910_vm0, %v1752_v33  ;;  %v3597_v39 = vld [vmem:[#allocation2 + $0x58] sm:$0xff]  ;;  %v3599_v33 = vld [vmem:[#allocation2 + $0x68] sm:$0xff] }
 0x10a   : > { %3811 = vmatpush1.bf16.msra.mxu0 %v5670_v16  ;;  %4994 = vmatprep.mubr.msk.bf16.mxu0 %vm7910_vm0, %v3298_v36  ;;  %v3621_v43 = vpack.c.bf16 %v3599_v33, %v3597_v39  ;;  %v3631_v36 = vpack.c.bf16 %v3617_v41, %v3617_v41  ;;  %v7245_v62 = vmul.u32.u64.low 3123612579, %v7230_v8  ;;  %v7246_v1 = vmul.u32.u64.high 3123612579, %v7230_v8, %v7245_v62 }
 0x10b   : > { %5100 = vmatpush1.bf16.msra.mxu1 %v5670_v16  ;;  %3812 = vmatprep.subr.bf16.mxu0 %v5675_v38  ;;  %v7919_v16 = vpack.c.bf16 %v6678_v42, %v6676_v20  ;;  %v3616_v20 = vld [vmem:[#allocation2 + $0xf0] sm:$0x1] }
 0x10c   : > { %5089 = vmatprep.subr.bf16.mxu1 %v5675_v38  ;;  %v3600_v42 = vld [vmem:[#allocation2 + $0x70] sm:$0xff]  ;;  %v3630_v4 = vpack.c.bf16 %v3616_v20, %v3616_v20 }
 0x10d   : > { %v3622_v38 = vpack.c.bf16 %v6794_v47, %v3600_v42 }
 0x10e   : > { %3813 = vmatpush1.bf16.msra.mxu0 %v5673_v11 }
 0x10f   : > { %5101 = vmatpush1.bf16.msra.mxu1 %v5673_v11  ;;  %3814 = vmatprep.subr.bf16.mxu0 %v5678_v14 }
 0x110   : > { %1992 = vmatmul.mubr.bf16.gmra.mrb[16].mxu1 %v1743_v53  ;;  %5090 = vmatprep.subr.bf16.mxu1 %v5678_v14 }
 0x111   : > { %3538 = vmatmul.mubr.bf16.gmra.mrb[16].mxu0 %v3289_v6  ;;  %4775 = vmatprep.mubr.msk.bf16.mxu1 %vm7910_vm0, %v1770_v18 }
 0x112   : > { %4995 = vmatprep.mubr.msk.bf16.mxu0 %vm7910_vm0, %v3316_v13  ;;  %3815 = vmatpush1.bf16.msra.mxu0 %v5676_v57 }
 0x113   : > { %5102 = vmatpush1.bf16.msra.mxu1 %v5676_v57  ;;  %3816 = vmatprep.subr.bf16.mxu0 %v5681_v48  ;;  %v7216_v57 = vmul.u32.u64.low 3123612579, %v4037_v24  ;;  %v7217_v18 = vmul.u32.u64.high 3123612579, %v4037_v24, %v7216_v57 }
 0x114   : > { %5091 = vmatprep.subr.bf16.mxu1 %v5681_v48  ;;  %v7288_v57 = vadd.s32 96, %v5856_v32 }
 0x115   : > { %v4146_v39 = vshrl.u32 %v7217_v18, 3 }
 0x116   : > { %3817 = vmatpush1.bf16.msra.mxu0 %v5679_v21 }
 0x117   : > { %5103 = vmatpush1.bf16.msra.mxu1 %v5679_v21  ;;  %3818 = vmatprep.subr.bf16.mxu0 %v5684_v29  ;;  %v4147_v46 = vmul.u32 11, %v4146_v39 }
 0x118   : > { %2002 = vmatmul.mubr.bf16.gmra.mrb[20].mxu1 %v1761_v37  ;;  %5092 = vmatprep.subr.bf16.mxu1 %v5684_v29 }
 0x119   : > { %3548 = vmatmul.mubr.bf16.gmra.mrb[20].mxu0 %v3307_v31  ;;  %4776 = vmatprep.mubr.msk.bf16.mxu1 %vm7910_vm0, %v7104_v3  ;;  %v3628_v3 = vpack.c.bf16 %v7093_v54, %v6893_v52  ;;  %v7920_v52 = vpack.c.bf16 %v6802_v2, %v6752_v49  ;;  %v4036_v2 = vadd.s32 64, %v5856_v32 }
 0x11a   : > { %4996 = vmatprep.mubr.msk.bf16.mxu0 %vm7910_vm0, %v3311_v27  ;;  %3819 = vmatpush1.bf16.msra.mxu0 %v5682_v22  ;;  %v7235_v37 = vmul.u32.u64.low 3123612579, %v7222_v19  ;;  %v7236_v31 = vmul.u32.u64.high 3123612579, %v7222_v19, %v7235_v37 }
 0x11b   : > { %5104 = vmatpush1.bf16.msra.mxu1 %v5682_v22  ;;  %3820 = vmatprep.subr.bf16.mxu0 %v5687_v12  ;;  %v7207_v14 = vmul.u32.u64.low 3123612579, %v4036_v2  ;;  %v7208_v44 = vmul.u32.u64.high 3123612579, %v4036_v2, %v7207_v14  ;;  %v7239_v22 = vadd.s32 24, %v5856_v32 }
 0x11c   : > { %5093 = vmatprep.subr.bf16.mxu1 %v5687_v12  ;;  %v7242_v12 = vadd.s32 88, %v5856_v32 }
 0x11d   : > { %v4135_v21 = vshrl.u32 %v7208_v44, 3  ;;  %v4069_v44 = vshrl.u32 %v7236_v31, 3 }
 0x11e   : > { %3821 = vmatpush1.bf16.msra.mxu0 %v5685_v28 }
 0x11f   : > { %5105 = vmatpush1.bf16.msra.mxu1 %v5685_v28  ;;  %v4048_v28 = vmul.u32 11, %v4047_v58  ;;  %v4136_v25 = vmul.u32 11, %v4135_v21  ;;  %v7296_v58 = vsub.s32 %v4037_v24, %v4147_v46  ;;  %v7299_v21 = vadd.s32 48, %v5856_v32 }
 0x120   : > { %2012 = vmatmul.mubr.bf16.gmra.mrb[24].mxu1 %v1756_v10  ;;  %v7210_v53 = vmul.u32.u64.low 3123612579, %v4029_v9  ;;  %v7211_v10 = vmul.u32.u64.high 3123612579, %v4029_v9, %v7210_v53  ;;  %v4070_v31 = vmul.u32 11, %v4069_v44 }
 0x121   : > { %3558 = vmatmul.mubr.bf16.gmra.mrb[24].mxu0 %v3302_v26  ;;  %5049 = vmatprep.mubr.msk.bf16.mxu1 %vm7910_vm0, %v7918_v15  ;;  %v7268_v20 = vsub.s32 %v5856_v32, %v4048_v28  ;;  %vm4193_vm5 = vcmp.ne.s32.totalorder %v7296_v58, 0  ;;  %vm4206_vm10 = vcmp.lt.s32.totalorder %v7296_v58, 0 }
 0x122   : > { %5045 = vmatprep.mubr.msk.bf16.mxu0 %vm7910_vm0, %v3619_v56  ;;  %v4058_v29 = vshrl.u32 %v7211_v10, 3  ;;  %v7249_v56 = vadd.s32 32, %v5856_v32 }
 0x123   : > { %vm4184_vm12 = vcmp.ne.s32.totalorder %v7268_v20, 0  ;;  %vm4197_vm13 = vcmp.lt.s32.totalorder %v7268_v20, 0 }
 0x124   : > { %v4059_v60 = vmul.u32 11, %v4058_v29  ;;  %vm7321_vm8 = vmand %vm4197_vm13, %vm4184_vm12 }
 0x126   : > { %v7278_v63 = vsub.s32 %v4029_v9, %v4059_v60  ;;  %v4157_v9 = vshrl.u32 %v7246_v1, 3  ;;  %v7308_v24 = vmul.u32.u64.low 3123612579, %v7288_v57  ;;  %v7309_v60 = vmul.u32.u64.high 3123612579, %v7288_v57, %v7308_v24 }
 0x128   : > { %3871 = vmatmul.mubr.bf16.vlgmr.msra.gmra.mrb[28].mxu1 %v7919_v16  ;;  %v7257_v16 = vadd.s32 40, %v5856_v32  ;;  %vm4185_vm6 = vcmp.ne.s32.totalorder %v7278_v63, 0  ;;  %vm4198_vm7 = vcmp.lt.s32.totalorder %v7278_v63, 0 }
 0x129   : > { %3831 = vmatmul.mubr.bf16.vlgmr.msra.gmra.mrb[0].mxu0 %v3618_v40  ;;  %5050 = vmatprep.mubr.msk.bf16.mxu1 %vm7910_vm0, %v3629_v5  ;;  %vm7342_vm4 = vmand %vm4198_vm7, %vm4185_vm6 }
 0x12a   : > { %5046 = vmatprep.mubr.msk.bf16.mxu0 %vm7910_vm0, %v3621_v43  ;;  %v7253_v5 = vmul.u32.u64.low 3123612579, %v7239_v22  ;;  %v7254_v43 = vmul.u32.u64.high 3123612579, %v7239_v22, %v7253_v5  ;;  %v7284_v53 = vmul.u32.u64.low 3123612579, %v7257_v16  ;;  %v7285_v10 = vmul.u32.u64.high 3123612579, %v7257_v16, %v7284_v53 }
 0x12b   : > { %v4224_v5 = vadd.s32 11, %v7278_v63 }
 0x12c   : > { %v4080_v28 = vshrl.u32 %v7254_v43, 3  ;;  %v4102_v44 = vshrl.u32 %v7285_v10, 3 }
 0x12e   : > { %v4081_v46 = vmul.u32 11, %v4080_v28  ;;  %v4103_v24 = vmul.u32 11, %v4102_v44 }
 0x130   : > { %3881 = vmatmul.mubr.bf16.gmra.mrb[32].mxu1 %v3628_v3  ;;  %v7262_v34 = vmul.u32.u64.low 3123612579, %v7242_v12  ;;  %v7263_v3 = vmul.u32.u64.high 3123612579, %v7242_v12, %v7262_v34 }
 0x131   : > { %3841 = vmatmul.mubr.bf16.gmra.mrb[4].mxu0 %v3620_v55  ;;  %5051 = vmatprep.mubr.msk.bf16.mxu1 %vm7910_vm0, %v3631_v36 }
 0x132   : > { %5047 = vmatprep.mubr.msk.bf16.mxu0 %vm7910_vm0, %v3623_v45 }
 0x138   : > { %3891 = vmatmul.mubr.bf16.gmra.mrb[36].mxu1 %v3630_v4  ;;  %v7271_v42 = vmul.u32.u64.low 3123612579, %v7249_v56  ;;  %v7272_v4 = vmul.u32.u64.high 3123612579, %v7249_v56, %v7271_v42 }
 0x139   : > { %3851 = vmatmul.mubr.bf16.gmra.mrb[8].mxu0 %v3622_v38  ;;  %v7330_v42 = vadd.s32 56, %v5856_v32 }
 0x13a   : > { %5048 = vmatprep.mubr.msk.bf16.mxu0 %vm7910_vm0, %v7920_v52 }
 0x141   : > { %3861 = vmatmul.mubr.bf16.gmra.mrb[12].mxu0 %v7921_v35  ;;  %v7276_v35 = vsub.s32 %v4036_v2, %v4136_v25  ;;  %v4223_v2 = vadd.s32 11, %v7268_v20  ;;  %v4168_v25 = vshrl.u32 %v7263_v3, 3 }
 0x143   : > { %vm4192_vm14 = vcmp.ne.s32.totalorder %v7276_v35, 0  ;;  %vm4205_vm15 = vcmp.lt.s32.totalorder %v7276_v35, 0 }
 0x144   : > { %vm7357_vm9 = vmand %vm4205_vm15, %vm4192_vm14 }
 0x145   : > { %vm7403_vm15 = vmand %vm4206_vm10, %vm4193_vm5 }
 0x1c3   : > { %v7177_v54 = vpop.f32.mrb[0].mxu1 }
 0x1c4   : > { %v7179_v27 = vpop.f32.mrb[1].mxu1 }
 0x1c5   : > { %v7181_v23 = vpop.f32.mrb[2].mxu1 }
 0x1c6   : > { %v7183_v7 = vpop.f32.mrb[3].mxu1 }
 0x1cb   : > { %v7185_v47 = vpop.f32.mrb[4].mxu1 }
 0x1cc   : > { %v7187_v0 = vpop.f32.mrb[5].mxu1 }
 0x1cd   : > { %v7189_v51 = vpop.f32.mrb[6].mxu1 }
 0x1ce   : > { %v7191_v49 = vpop.f32.mrb[7].mxu1 }
 0x1d3   : > { %v7194_v59 = vpop.f32.mrb[8].mxu1 }
 0x1d4   : > { %v7197_v17 = vpop.f32.mrb[9].mxu1 }
 0x1d5   : > { %v7199_v11 = vpop.f32.mrb[10].mxu1 }
 0x1d6   : > { %v7201_v61 = vpop.f32.mrb[11].mxu1 }
 0x1db   : > { %v7214_v6 = vpop.f32.mrb[12].mxu1 }
 0x1dc   : > { %v7219_v26 = vpop.f32.mrb[13].mxu1 }
 0x1dd   : > { %7922 = vst [vmem:[#allocation4_spill] sm:$0xff] %v7219_v26  ;;  %v7224_v13 = vpop.f32.mrb[14].mxu1 }
 0x1de   : > { %7923 = vst [vmem:[#allocation5_spill] sm:$0xff] %v7224_v13  ;;  %v7226_v48 = vpop.f32.mrb[15].mxu1 }
 0x1df   : > { %7924 = vst [vmem:[#allocation6_spill] sm:$0xff] %v7226_v48 }
 0x1e3   : > { %v1993_v15 = vpop.f32.mrb[16].mxu1 }
 0x1e4   : > { %v3539_v33 = vpop.f32.mrb[16].mxu0  ;;  %v1995_v40 = vpop.f32.mrb[17].mxu1 }
 0x1e5   : > { %v7259_v50 = vadd.f32 %v3539_v33, %v1993_v15  ;;  %v3541_v30 = vpop.f32.mrb[17].mxu0  ;;  %v1997_v41 = vpop.f32.mrb[18].mxu1 }
 0x1e6   : > { %v7265_v55 = vadd.f32 %v3541_v30, %v1995_v40  ;;  %v3543_v36 = vpop.f32.mrb[18].mxu0  ;;  %v1999_v45 = vpop.f32.mrb[19].mxu1  ;;  %v4158_v30 = vmul.u32 11, %v4157_v9  ;;  %v4169_v9 = vmul.u32 11, %v4168_v25  ;;  %v7374_v25 = vsub.s32 %v7239_v22, %v4081_v46 }
 0x1e7   : > { %v7274_v38 = vadd.f32 %v3543_v36, %v1997_v41  ;;  %v3545_v52 = vpop.f32.mrb[19].mxu0  ;;  %v4091_v41 = vshrl.u32 %v7272_v4, 3  ;;  %v7335_v4 = vsub.s32 %v7222_v19, %v4070_v31 }
 0x1e8   : > { %v7280_v14 = vadd.f32 %v3545_v52, %v1999_v45  ;;  %v7326_v36 = vmul.u32.u64.low 3123612579, %v7299_v21  ;;  %v7327_v45 = vmul.u32.u64.high 3123612579, %v7299_v21, %v7326_v36  ;;  %v7363_v31 = vsub.s32 %v7230_v8, %v4158_v30 }
 0x1e9   : > { %v4092_v19 = vmul.u32 11, %v4091_v41  ;;  %vm4186_vm12 = vcmp.ne.s32.totalorder %v7335_v4, 0  ;;  %vm4199_vm14 = vcmp.lt.s32.totalorder %v7335_v4, 0  ;;  %v7384_v41 = vsub.s32 %v7242_v12, %v4169_v9 }
 0x1ea   : > { %v7394_v36 = vadd.s32 11, %v7296_v58  ;;  %v4225_v44 = vadd.s32 11, %v7335_v4  ;;  %vm4194_vm6 = vcmp.ne.s32.totalorder %v7363_v31, 0  ;;  %vm4207_vm7 = vcmp.lt.s32.totalorder %v7363_v31, 0 }
 0x1eb   : > { %v2003_v18 = vpop.f32.mrb[20].mxu1  ;;  %v7397_v46 = vsub.s32 %v7249_v56, %v4092_v19  ;;  %v4113_v53 = vshrl.u32 %v7327_v45, 3  ;;  %vm4187_vm5 = vcmp.ne.s32.totalorder %v7374_v25, 0  ;;  %vm4200_vm10 = vcmp.lt.s32.totalorder %v7374_v25, 0 }
 0x1ec   : > { %v3549_v29 = vpop.f32.mrb[20].mxu0  ;;  %v2005_v37 = vpop.f32.mrb[21].mxu1  ;;  %v7429_v45 = vadd.s32 11, %v7363_v31  ;;  %vm4195_vm1 = vcmp.ne.s32.totalorder %v7384_v41, 0  ;;  %vm4208_vm11 = vcmp.lt.s32.totalorder %v7384_v41, 0  ;;  %vm7452_vm3 = vmand %vm4200_vm10, %vm4187_vm5 }
 0x1ed   : > { %v7304_v62 = vadd.f32 %v3549_v29, %v2003_v18  ;;  %v3551_v1 = vpop.f32.mrb[21].mxu0  ;;  %v2007_v15 = vpop.f32.mrb[22].mxu1  ;;  %v4236_v18 = vsel %vm7321_vm8, %v4223_v2, %v7268_v20  ;;  %v7350_v29 = vadd.s32 11, %v7276_v35  ;;  %vm4201_vm0 = vcmp.lt.s32.totalorder %v7397_v46, 0 }
 0x1ee   : > { %v7311_v39 = vadd.f32 %v3551_v1, %v2005_v37  ;;  %v3553_v33 = vpop.f32.mrb[22].mxu0  ;;  %v2009_v40 = vpop.f32.mrb[23].mxu1  ;;  %v7366_v20 = vmul.u32.u64.low 3123612579, %v7330_v42  ;;  %v7367_v2 = vmul.u32.u64.high 3123612579, %v7330_v42, %v7366_v20  ;;  %vm7378_vm13 = vcmp.lt.s32.totalorder %v4236_v18, 9 }
 0x1ef   : > { %v7315_v43 = vadd.f32 %v3553_v33, %v2007_v15  ;;  %v3555_v34 = vpop.f32.mrb[23].mxu0  ;;  %v4237_v15 = vsel %vm7342_vm4, %v4224_v5, %v7278_v63  ;;  %v4179_v63 = vshrl.u32 %v7309_v60, 3  ;;  %vm7419_vm4 = vmand %vm4199_vm14, %vm4186_vm12  ;;  %v7426_v18 = vsub.s32 %v7257_v16, %v4103_v24  ;;  %v4024_v20 = vld [vmem:[%s7498_s28 + $0x60] sm:$0x11] }
 0x1f0   : > { %v7332_v52 = vadd.f32 %v3555_v34, %v2009_v40  ;;  %vm7411_vm8 = vcmp.lt.s32.totalorder %v4237_v15, 9  ;;  %vm7440_vm12 = vmand %vm4207_vm7, %vm4194_vm6  ;;  %v4226_v16 = vadd.s32 11, %v7374_v25  ;;  %vm4188_vm14 = vcmp.ne.s32.totalorder %v7397_v46, 0 }
 0x1f1   : > { %v4180_v19 = vmul.u32 11, %v4179_v63  ;;  %v7457_v24 = vadd.s32 11, %v7384_v41  ;;  %vm7467_vm6 = vmand %vm4208_vm11, %vm4195_vm1  ;;  %vm4189_vm7 = vcmp.ne.s32.totalorder %v7426_v18, 0  ;;  %vm7947_vm11 = vcmask 523268  }
 0x1f2   : > { %vm7488_vm1 = vmand %vm4201_vm0, %vm4188_vm14 }
 0x1f3   : > { %v2013_v10 = vpop.f32.mrb[24].mxu1  ;;  %vm7503_vm5 = vmor %vm7947_vm11, %vm400_vm2 }
 0x1f4   : > { %v3559_v28 = vpop.f32.mrb[24].mxu0  ;;  %v2015_v1 = vpop.f32.mrb[25].mxu1 }
 0x1f5   : > { %v7376_v33 = vadd.f32 %v3559_v28, %v2013_v10  ;;  %v3561_v8 = vpop.f32.mrb[25].mxu0  ;;  %v2017_v40 = vpop.f32.mrb[26].mxu1 }
 0x1f6   : > { %v7387_v5 = vadd.f32 %v3561_v8, %v2015_v1  ;;  %v3563_v22 = vpop.f32.mrb[26].mxu0  ;;  %v2018_v34 = vpop.f32.mrb[27].mxu1  ;;  %v4238_v1 = vsel %vm7419_vm4, %v4225_v44, %v7335_v4  ;;  %v4114_v8 = vmul.u32 11, %v4113_v53  ;;  %v4124_v40 = vshrl.u32 %v7367_v2, 3 }
 0x1f7   : > { %v3564_v12 = vpop.f32.mrb[27].mxu0  ;;  %vm4202_vm4 = vcmp.lt.s32.totalorder %v7426_v18, 0  ;;  %vm7510_vm0 = vcmp.lt.s32.totalorder %v4238_v1, 9 }
 0x1f8   : > { %v7472_v12 = vadd.s32 11, %v7397_v46  ;;  %vm7530_vm2 = vmand %vm4202_vm4, %vm4189_vm7  ;;  %vm7959_vm4 = vcmask 523264  }
 0x1f9   : > { %vm7960_vm11 = vmmov %vm7959_vm4 }
 0x1fb   : > { %v3872_v28 = vpop.f32.mrb[28].mxu1 }
 0x1fc   : > { %v3832_v63 = vpop.f32.mrb[0].mxu0  ;;  %v7461_v22 = vadd.f32 %v7259_v50, %v3872_v28  ;;  %v3874_v34 = vpop.f32.mrb[29].mxu1 }
 0x1fd   : > { %v5106_v2 = vadd.f32 %v3832_v63, %v7177_v54  ;;  %v3834_v50 = vpop.f32.mrb[1].mxu0  ;;  %v7478_v44 = vadd.f32 %v7265_v55, %v3874_v34  ;;  %v3876_v53 = vpop.f32.mrb[30].mxu1  ;;  %v7493_v54 = vsub.s32 %v7288_v57, %v4180_v19 }
 0x1fe   : > { %v5107_v55 = vadd.f32 %v3834_v50, %v7179_v27  ;;  %v3836_v34 = vpop.f32.mrb[2].mxu0  ;;  %v7508_v9 = vadd.f32 %v7274_v38, %v3876_v53  ;;  %v3878_v57 = vpop.f32.mrb[31].mxu1  ;;  %v4239_v27 = vsel %vm7452_vm3, %v4226_v16, %v7374_v25  ;;  %v7518_v50 = vadd.s32 11, %v7426_v18 }
 0x1ff   : > { %v5077_v10 = vpack.c.bf16 %v7478_v44, %v7461_v22  ;;  %v3838_v3 = vpop.f32.mrb[3].mxu0  ;;  %v7535_v25 = vsub.s32 %v7299_v21, %v4114_v8  ;;  %v4125_v16 = vmul.u32 11, %v4124_v40  ;;  %v4288_v15 = vsel %vm7378_vm13, %v5106_v2, 0.0 }
 0x200   : > { %v5069_v53 = vpack.c.bf16 %v5107_v55, %v5106_v2  ;;  %v4289_v32 = vsel %vm7378_vm13, %v5107_v55, 0.0  ;;  %v5108_v48 = vadd.f32 %v3836_v34, %v7181_v23  ;;  %vm7549_vm3 = vcmp.lt.s32.totalorder %v4239_v27, 9 }
 0x201   : > { %4014 = vst.msk [vmem:[%s7498_s28 + $0x40] sm:$0xff] %vm7503_vm5, %v5077_v10  ;;  %vm4196_vm10 = vcmp.ne.s32.totalorder %v7493_v54, 0  ;;  %vm4209_vm14 = vcmp.lt.s32.totalorder %v7493_v54, 0  ;;  %v7556_v30 = vadd.s32 11, %v7493_v54  ;;  %v4389_v8 = vmul.f32 %v4289_v32, %v4289_v32 }
 0x202   : > { %4006 = vst.msk [vmem:[%s7498_s28] sm:$0xff] %vm7503_vm5, %v5069_v53  ;;  %v5109_v40 = vadd.f32 %v3838_v3, %v7183_v7  ;;  %v7563_v10 = vadd.f32 %v7280_v14, %v3878_v57  ;;  %v4388_v2 = vmul.f32 %v4288_v15, %v4288_v15  ;;  %v4290_v55 = vsel %vm7411_vm8, %v5108_v48, 0.0 }
 0x203   : > { %v3882_v34 = vpop.f32.mrb[32].mxu1  ;;  %vm4190_vm13 = vcmp.ne.s32.totalorder %v7535_v25, 0  ;;  %v7573_v27 = vsub.s32 %v7330_v42, %v4125_v16  ;;  %v7956_v7 = vsel %vm7357_vm9, %v7350_v29, %v7276_v35  ;;  %v4314_v3 = vadd.f32 %v4290_v55, %v4288_v15  ;;  %vm7961_vm9 = vmmov %vm7959_vm4 }
 0x204   : > { %vm7580_vm7 = vcmp.lt.s32.totalorder %v7956_v7, 9  ;;  %v4390_v57 = vmul.f32 %v4290_v55, %v4290_v55  ;;  %v5070_v53 = vpack.c.bf16 %v5109_v40, %v5108_v48  ;;  %v4291_v23 = vsel %vm7411_vm8, %v5109_v40, 0.0  ;;  %v3842_v38 = vpop.f32.mrb[4].mxu0  ;;  %v3884_v42 = vpop.f32.mrb[33].mxu1  ;;  %vm7967_vm8 = vmmov %vm7961_vm9 }
 0x205   : > { %v4334_v16 = vsel %vm7959_vm4, %v4289_v32, 0.0  ;;  %v4335_v37 = vsel %vm7960_vm11, %v4291_v23, 0.0  ;;  %v4391_v13 = vmul.f32 %v4291_v23, %v4291_v23  ;;  %v5078_v35 = vpack.c.bf16 %v7563_v10, %v7508_v9  ;;  %v3844_v29 = vpop.f32.mrb[5].mxu0  ;;  %v3886_v7 = vpop.f32.mrb[34].mxu1 }
 0x206   : > { %v4433_v15 = vsel %vm7961_vm9, %v4389_v8, 0.0  ;;  %v4414_v55 = vadd.f32 %v4390_v57, %v4388_v2  ;;  %4007 = vst.msk [vmem:[%s7498_s28 + $0x8] sm:$0xff] %vm7503_vm5, %v5070_v53  ;;  %v4336_v48 = vadd.f32 %v4335_v37, %v4334_v16  ;;  %v3846_v56 = vpop.f32.mrb[6].mxu0  ;;  %v3888_v40 = vpop.f32.mrb[35].mxu1  ;;  %v5110_v23 = vadd.f32 %v3842_v38, %v7185_v47 }
 0x207   : > { %v4434_v32 = vsel %vm7959_vm4, %v4391_v13, 0.0  ;;  %4015 = vst.msk [vmem:[%s7498_s28 + $0x48] sm:$0xff] %vm7503_vm5, %v5078_v35  ;;  %v7601_v26 = vadd.f32 %v7304_v62, %v3882_v34  ;;  %v5111_v8 = vadd.f32 %v3844_v29, %v7187_v0  ;;  %v3848_v2 = vpop.f32.mrb[7].mxu0  ;;  %v7962_v57 = vsel %vm7403_vm15, %v7394_v36, %v7296_v58  ;;  %vm7626_vm15 = vmand %vm4209_vm14, %vm4196_vm10 }
 0x208   : > { %vm7609_vm4 = vcmp.lt.s32.totalorder %v7962_v57, 9  ;;  %v4435_v53 = vadd.f32 %v4434_v32, %v4433_v15  ;;  %v7614_v47 = vadd.f32 %v7311_v39, %v3884_v42  ;;  %v5112_v62 = vadd.f32 %v3846_v56, %v7189_v51 }
 0x209   : > { %v4229_v0 = vadd.s32 11, %v7535_v25  ;;  %v4292_v60 = vsel %vm7510_vm0, %v5110_v23, 0.0  ;;  %v5071_v38 = vpack.c.bf16 %v5111_v8, %v5110_v23  ;;  %v4293_v58 = vsel %vm7510_vm0, %v5111_v8, 0.0 }
 0x20a   : > { %vm4191_vm11 = vcmp.ne.s32.totalorder %v7573_v27, 0  ;;  %v4315_v51 = vadd.f32 %v4314_v3, %v4292_v60  ;;  %v4392_v39 = vmul.f32 %v4292_v60, %v4292_v60  ;;  %v4337_v34 = vsel %vm7967_vm8, %v4293_v58, 0.0 }
 0x20b   : > { %vm4204_vm9 = vcmp.lt.s32.totalorder %v7573_v27, 0  ;;  %4008 = vst.msk [vmem:[%s7498_s28 + $0x10] sm:$0xff] %vm7503_vm5, %v5071_v38  ;;  %v4338_v19 = vadd.f32 %v4337_v34, %v4336_v48  ;;  %v4393_v42 = vmul.f32 %v4293_v58, %v4293_v58  ;;  %v5079_v16 = vpack.c.bf16 %v7614_v47, %v7601_v26  ;;  %v3892_v35 = vpop.f32.mrb[36].mxu1  ;;  %v8011_v38 = vld [vmem:[#allocation6_spill] sm:$0xff] }
 0x20c   : > { %v7968_v37 = vsel %vm7488_vm1, %v7472_v12, %v7397_v46  ;;  %vm7971_vm10 = vcmp.lt.s32.totalorder %v7535_v25, 0  ;;  %v4415_v15 = vadd.f32 %v4414_v55, %v4392_v39  ;;  %v4294_v28 = vsel %vm7549_vm3, %v5112_v62, 0.0  ;;  %v3852_v48 = vpop.f32.mrb[8].mxu0  ;;  %v3894_v12 = vpop.f32.mrb[37].mxu1  ;;  %vm7974_vm1 = vmmov %vm7967_vm8 }
 0x20d   : > { %vm7643_vm0 = vcmp.lt.s32.totalorder %v7968_v37, 9  ;;  %vm7651_vm14 = vmand %vm7971_vm10, %vm4190_vm13  ;;  %v4248_v46 = vsel %vm7626_vm15, %v7556_v30, %v7493_v54  ;;  %v4230_v56 = vadd.s32 11, %v7573_v27  ;;  %v4436_v32 = vsel %vm7974_vm1, %v4393_v42, 0.0  ;;  %4016 = vst.msk [vmem:[%s7498_s28 + $0x50] sm:$0xff] %vm7503_vm5, %v5079_v16  ;;  %v3854_v57 = vpop.f32.mrb[9].mxu0 }
 0x20e   : > { %v4316_v23 = vadd.f32 %v4315_v51, %v4294_v28  ;;  %v4394_v8 = vmul.f32 %v4294_v28, %v4294_v28  ;;  %v7667_v55 = vadd.f32 %v7315_v43, %v3886_v7  ;;  %v7975_v60 = vsel %vm7530_vm2, %v7518_v50, %v7426_v18  ;;  %vm7682_vm8 = vmand %vm4204_vm9, %vm4191_vm11  ;;  %v3896_v43 = vpop.f32.mrb[38].mxu1  ;;  %v3856_v18 = vpop.f32.mrb[10].mxu0 }
 0x20f   : > { %vm7674_vm13 = vcmp.lt.s32.totalorder %v7975_v60, 9  ;;  %v4437_v7 = vadd.f32 %v4436_v32, %v4435_v53  ;;  %v5113_v51 = vadd.f32 %v3848_v2, %v7191_v49  ;;  %v7688_v1 = vadd.f32 %v7332_v52, %v3888_v40  ;;  %v3897_v39 = vpop.f32.mrb[39].mxu1  ;;  %v3858_v52 = vpop.f32.mrb[11].mxu0  ;;  %vm7980_vm2 = vmmov %vm7974_vm1 }
 0x210   : > { %v4242_v50 = vsel %vm7651_vm14, %v4229_v0, %v7535_v25  ;;  %v4305_v34 = vsel %vm7580_vm7, %v7478_v44, 0.0  ;;  %v4416_v42 = vadd.f32 %v4415_v15, %v4394_v8  ;;  %v5114_v53 = vadd.f32 %v3852_v48, %v7194_v59  ;;  %vm7987_vm10 = vmmov %vm7974_vm1 }
 0x211   : > { %v7698_v49 = vadd.f32 %v7376_v33, %v3892_v35  ;;  %v5072_v40 = vpack.c.bf16 %v5113_v51, %v5112_v62  ;;  %v4295_v2 = vsel %vm7549_vm3, %v5113_v51, 0.0  ;;  %v5080_v25 = vpack.c.bf16 %v7688_v1, %v7667_v55 }
 0x212   : > { %v4243_v0 = vsel %vm7682_vm8, %v4230_v56, %v7573_v27  ;;  %v7710_v44 = vsel %vm7580_vm7, %v7461_v22, 0.0  ;;  %v4339_v59 = vsel %vm7980_vm2, %v4295_v2, 0.0  ;;  %v4395_v33 = vmul.f32 %v4295_v2, %v4295_v2 }
 0x213   : > { %v4296_v62 = vsel %vm7643_vm0, %v5114_v53, 0.0  ;;  %v4405_v21 = vmul.f32 %v4305_v34, %v4305_v34  ;;  %4009 = vst.msk [vmem:[%s7498_s28 + $0x18] sm:$0xff] %vm7503_vm5, %v5072_v40  ;;  %v4340_v16 = vadd.f32 %v4339_v59, %v4338_v19  ;;  %4017 = vst.msk [vmem:[%s7498_s28 + $0x58] sm:$0xff] %vm7503_vm5, %v5080_v25  ;;  %vm7981_vm3 = vsmask.f32 256  ;;  %v8009_v59 = vld [vmem:[#allocation4_spill] sm:$0xff] }
 0x214   : > { %v4317_v27 = vadd.f32 %v4316_v23, %v4296_v62  ;;  %vm7982_vm11 = vcmask 1040384   ;;  %vm7727_vm7 = vcmp.lt.s32.totalorder %v4242_v50, 9  ;;  %v4307_v37 = vsel %vm7609_vm4, %v7563_v10, 0.0 }
 0x215   : > { %vm7723_vm9 = vmand %vm7982_vm11, %vm7981_vm3  ;;  %v4438_v19 = vsel %vm7987_vm10, %v4395_v33, 0.0  ;;  %v4396_v35 = vmul.f32 %v4296_v62, %v4296_v62  ;;  %vm7988_vm14 = vsmask.f32 4352  ;;  %vm7989_vm1 = vcmask 520196  }
 0x216   : > { %vm7737_vm8 = vmand %vm7989_vm1, %vm7988_vm14  ;;  %v5115_v15 = vadd.f32 %v3854_v57, %v7197_v17  ;;  %vm7742_vm2 = vcmp.lt.s32.totalorder %v4243_v0, 9  ;;  %v7748_v48 = vmul.f32 %v7710_v44, %v7710_v44  ;;  %v7756_v56 = vsel %vm7609_vm4, %v7508_v9, 0.0  ;;  %v3862_v17 = vpop.f32.mrb[12].mxu0 }
 0x217   : > { %vm7994_vm3 = vmmov %vm7987_vm10  ;;  %v4439_v32 = vadd.f32 %v4438_v19, %v4437_v7  ;;  %v7995_v23 = vsel %vm7440_vm12, %v7429_v45, %v7363_v31  ;;  %v4417_v57 = vadd.f32 %v4416_v42, %v4396_v35  ;;  %v7770_v9 = vadd.f32 %v7387_v5, %v3894_v12  ;;  %v3864_v13 = vpop.f32.mrb[13].mxu0 }
 0x218   : > { %v7751_v10 = vsel %vm7994_vm3, %v4305_v34, 0.0  ;;  %vm7763_vm11 = vcmp.lt.s32.totalorder %v7995_v23, 9  ;;  %v5073_v60 = vpack.c.bf16 %v5115_v15, %v5114_v53  ;;  %v4297_v58 = vsel %vm7643_vm0, %v5115_v15, 0.0  ;;  %vm4023_vm4 = vmor %vm7737_vm8, %vm7723_vm9  ;;  %v3866_v51 = vpop.f32.mrb[14].mxu0 }
 0x219   : > { %v4407_v43 = vmul.f32 %v4307_v37, %v4307_v37  ;;  %vm7998_vm12 = vmmov %vm7994_vm3  ;;  %v4397_v45 = vmul.f32 %v4297_v58, %v4297_v58  ;;  %v5116_v7 = vadd.f32 %v3856_v18, %v7199_v11  ;;  %v5081_v12 = vpack.c.bf16 %v7770_v9, %v7698_v49  ;;  %v3868_v39 = vpop.f32.mrb[15].mxu0 }
 0x21a   : > { %v4341_v31 = vsel %vm7998_vm12, %v4297_v58, 0.0  ;;  %vm7999_vm10 = vmmov %vm7994_vm3  ;;  %4010 = vst.msk [vmem:[%s7498_s28 + $0x20] sm:$0xff] %vm7503_vm5, %v5073_v60  ;;  %v5117_v50 = vadd.f32 %v3858_v52, %v7201_v61  ;;  %v7790_v34 = vmul.f32 %v7756_v56, %v7756_v56  ;;  %v8001_v18 = vsel %vm7467_vm6, %v7457_v24, %v7384_v41 }
 0x21b   : > { %v7780_v3 = vsel %vm7999_vm10, %v4405_v21, 0.0  ;;  %v4342_v5 = vadd.f32 %v4341_v31, %v4340_v16  ;;  %vm8000_vm0 = vmmov %vm7994_vm3  ;;  %vm7800_vm14 = vcmp.lt.s32.totalorder %v8001_v18, 9  ;;  %v4298_v61 = vsel %vm7674_vm13, %v5116_v7, 0.0  ;;  %v8010_v16 = vld [vmem:[#allocation5_spill] sm:$0xff] }
 0x21c   : > { %v7793_v11 = vsel %vm8000_vm0, %v4307_v37, 0.0  ;;  %vm8004_vm1 = vmmov %vm8000_vm0  ;;  %vm7812_vm3 = vcmp.lt.s32.totalorder %v4248_v46, 9  ;;  %v4025_v24 = vsel %vm4023_vm4, %v5081_v12, %v4024_v20  ;;  %v4318_v52 = vadd.f32 %v4317_v27, %v4298_v61 }
 0x21d   : > { %v4440_v53 = vsel %vm8004_vm1, %v4397_v45, 0.0  ;;  %v4398_v40 = vmul.f32 %v4298_v61, %v4298_v61  ;;  %vm8007_vm6 = vmmov %vm8000_vm0  ;;  %4026 = vst [vmem:[%s7498_s28 + $0x60] sm:$0x11] %v4025_v24  ;;  %v5074_v36 = vpack.c.bf16 %v5117_v50, %v5116_v7  ;;  %v4299_v54 = vsel %vm7674_vm13, %v5117_v50, 0.0 }
 0x21e   : > { %v4441_v41 = vadd.f32 %v4440_v53, %v4439_v32  ;;  %v7822_v2 = vsel %vm8007_vm6, %v4407_v43, 0.0  ;;  %v5118_v30 = vadd.f32 %v3862_v17, %v7214_v6  ;;  %vm8008_vm15 = vmmov %vm8000_vm0  ;;  %v4399_v0 = vmul.f32 %v4299_v54, %v4299_v54 }
 0x21f   : > { %v4418_v46 = vadd.f32 %v4417_v57, %v4398_v40  ;;  %v4343_v25 = vsel %vm8008_vm15, %v4299_v54, 0.0  ;;  %v5119_v33 = vadd.f32 %v3864_v13, %v8009_v59  ;;  %4011 = vst.msk [vmem:[%s7498_s28 + $0x28] sm:$0xff] %vm7503_vm5, %v5074_v36  ;;  %v5120_v27 = vadd.f32 %v3866_v51, %v8010_v16  ;;  %vm8012_vm13 = vmmov %vm8000_vm0 }
 0x220   : > { %v4344_v62 = vadd.f32 %v4343_v25, %v4342_v5  ;;  %v4300_v21 = vsel %vm7727_vm7, %v5118_v30, 0.0  ;;  %v5121_v22 = vadd.f32 %v3868_v39, %v8011_v38  ;;  %v4442_v6 = vsel %vm8012_vm13, %v4399_v0, 0.0  ;;  %vm8013_vm9 = vmmov %vm8000_vm0 }
 0x221   : > { %v4319_v37 = vadd.f32 %v4318_v52, %v4300_v21  ;;  %v4400_v19 = vmul.f32 %v4300_v21, %v4300_v21  ;;  %v5075_v35 = vpack.c.bf16 %v5119_v33, %v5118_v30  ;;  %v4443_v29 = vadd.f32 %v4442_v6, %v4441_v41  ;;  %vm8015_vm8 = vmmov %vm8000_vm0 }
 0x222   : > { %v4301_v15 = vsel %vm7727_vm7, %v5119_v33, 0.0  ;;  %v4302_v32 = vsel %vm7742_vm2, %v5120_v27, 0.0  ;;  %v5076_v17 = vpack.c.bf16 %v5121_v22, %v5120_v27  ;;  %v4308_v13 = vsel %vm7763_vm11, %v7601_v26, 0.0  ;;  %vm8014_vm7 = vmmov %vm8000_vm0 }
 0x223   : > { %v4419_v23 = vadd.f32 %v4418_v46, %v4400_v19  ;;  %4012 = vst.msk [vmem:[%s7498_s28 + $0x30] sm:$0xff] %vm7503_vm5, %v5075_v35  ;;  %v4345_v57 = vsel %vm8013_vm9, %v4301_v15, 0.0  ;;  %v4401_v60 = vmul.f32 %v4301_v15, %v4301_v15  ;;  %v4320_v58 = vadd.f32 %v4319_v37, %v4302_v32  ;;  %vm8019_vm4 = vmmov %vm8000_vm0 }
 0x224   : > { %v4346_v43 = vadd.f32 %v4345_v57, %v4344_v62  ;;  %v4402_v31 = vmul.f32 %v4302_v32, %v4302_v32  ;;  %4013 = vst.msk [vmem:[%s7498_s28 + $0x38] sm:$0xff] %vm7503_vm5, %v5076_v17  ;;  %v4303_v14 = vsel %vm7742_vm2, %v5121_v22, 0.0  ;;  %v4309_v5 = vsel %vm7763_vm11, %v7614_v47, 0.0  ;;  %vm8016_vm5 = vmmov %vm8000_vm0 }
 0x225   : > { %v4444_v45 = vsel %vm8014_vm7, %v4401_v60, 0.0  ;;  %v4321_v20 = vadd.f32 %v4320_v58, %v7710_v44  ;;  %v4347_v7 = vsel %vm8015_vm8, %v4303_v14, 0.0  ;;  %v4403_v51 = vmul.f32 %v4303_v14, %v4303_v14  ;;  %vm8017_vm2 = vmmov %vm8000_vm0 }
 0x226   : > { %v4445_v26 = vadd.f32 %v4444_v45, %v4443_v29  ;;  %v4420_v12 = vadd.f32 %v4419_v23, %v4402_v31  ;;  %v4348_v50 = vadd.f32 %v4347_v7, %v4346_v43  ;;  %v4310_v63 = vsel %vm7800_vm14, %v7667_v55, 0.0  ;;  %vm8020_vm12 = vmmov %vm8000_vm0 }
 0x227   : > { %v4311_v28 = vsel %vm7800_vm14, %v7688_v1, 0.0  ;;  %v4322_v44 = vadd.f32 %v4321_v20, %v7756_v56  ;;  %v4446_v39 = vsel %vm8016_vm5, %v4403_v51, 0.0  ;;  %v4312_v8 = vsel %vm7812_vm3, %v7698_v49, 0.0  ;;  %vm8021_vm10 = vmmov %vm8000_vm0 }
 0x228   : > { %v4421_v47 = vadd.f32 %v4420_v12, %v7748_v48  ;;  %v4350_v18 = vadd.f32 %v7751_v10, %v4348_v50  ;;  %v4447_v53 = vadd.f32 %v4446_v39, %v4445_v26  ;;  %v4408_v61 = vmul.f32 %v4308_v13, %v4308_v13  ;;  %v8025_v50 = vld [vmem:[#allocation3_spill] sm:$0xff] }
 0x229   : > { %v4353_v55 = vsel %vm8017_vm2, %v4309_v5, 0.0  ;;  %v4409_v41 = vmul.f32 %v4309_v5, %v4309_v5  ;;  %v4323_v24 = vadd.f32 %v4322_v44, %v4308_v13  ;;  %v4313_v1 = vsel %vm7812_vm3, %v7770_v9, 0.0 }
 0x22a   : > { %v4422_v56 = vadd.f32 %v4421_v47, %v7790_v34  ;;  %v4352_v42 = vadd.f32 %v7793_v11, %v4350_v18  ;;  %v4449_v49 = vadd.f32 %v7780_v3, %v4447_v53  ;;  %v4410_v52 = vmul.f32 %v4310_v63, %v4310_v63 }
 0x22b   : > { %v4411_v48 = vmul.f32 %v4311_v28, %v4311_v28  ;;  %v4412_v40 = vmul.f32 %v4312_v8, %v4312_v8  ;;  %v4324_v10 = vadd.f32 %v4323_v24, %v4310_v63  ;;  %vm8018_vm11 = vcmask 1040384  }
 0x22c   : > { %v4326_v36 = vsel %vm8018_vm11, %v4312_v8, 0.0  ;;  %v4423_v54 = vadd.f32 %v4422_v56, %v4408_v61  ;;  %v4354_v30 = vadd.f32 %v4353_v55, %v4352_v42  ;;  %v4451_v46 = vadd.f32 %v7822_v2, %v4449_v49  ;;  %vm8022_vm0 = vmmov %vm8018_vm11 }
 0x22d   : > { %v4452_v25 = vsel %vm8019_vm4, %v4409_v41, 0.0  ;;  %v4355_v9 = vsel %vm8020_vm12, %v4311_v28, 0.0  ;;  %v4413_v4 = vmul.f32 %v4313_v1, %v4313_v1  ;;  %v4327_v34 = vadd.f32 %v4326_v36, %v4324_v10 }
 0x22e   : > { %v4424_v0 = vadd.f32 %v4423_v54, %v4410_v52  ;;  %v4356_v11 = vadd.f32 %v4355_v9, %v4354_v30  ;;  %v4453_v59 = vadd.f32 %v4452_v25, %v4451_v46  ;;  %v4454_v3 = vsel %vm8021_vm10, %v4411_v48, 0.0 }
 0x22f   : > { %v4425_v33 = vsel %vm8022_vm0, %v4412_v40, 0.0  ;;  %vm8023_vm14 = vcmask 516096   ;;  %v4328_v21 = vrot.slane %v4327_v34, 4  ;;  %v5703_v29 = vmov 1966171168  }
 0x230   : > { %v4357_v62 = vsel %vm8023_vm14, %v4313_v1, 0.0  ;;  %v4426_v16 = vadd.f32 %v4425_v33, %v4424_v0  ;;  %v4455_v38 = vadd.f32 %v4454_v3, %v4453_v59  ;;  %vm8024_vm1 = vmmov %vm8023_vm14  ;;  %v4369_v15 = vunpack.c.l.s4 %v5703_v29 }
 0x231   : > { %v4358_v27 = vadd.f32 %v4357_v62, %v4356_v11  ;;  %v4456_v2 = vsel %vm8024_vm1, %v4413_v4, 0.0  ;;  %v4329_v22 = vadd.f32 %v4328_v21, %v4327_v34  ;;  %v8026_v53 = vlaneseq }
 0x232   : > { %v4427_v6 = vrot.slane %v4426_v16, 4  ;;  %v4457_v19 = vadd.f32 %v4456_v2, %v4455_v38  ;;  %v4370_v43 = vunpack.c.0.s8 %v4369_v15 }
 0x233   : > { %v4359_v37 = vrot.slane %v4358_v27, 4  ;;  %v4330_v35 = vrot.slane %v4329_v22, 2  ;;  %vm4385_vm3 = vcmp.lt.s32.totalorder %v8026_v53, 192 }
 0x234   : > { %v4428_v32 = vadd.f32 %v4427_v6, %v4426_v16  ;;  %v4458_v23 = vrot.slane %v4457_v19, 4  ;;  %v4373_v63 = vsub.s32 %v4370_v43, %v8025_v50 }
 0x235   : > { %v4360_v17 = vadd.f32 %v4359_v37, %v4358_v27  ;;  %v4331_v57 = vadd.f32 %v4330_v35, %v4329_v22 }
 0x236   : > { %v4429_v60 = vrot.slane %v4428_v32, 2  ;;  %v4459_v13 = vadd.f32 %v4458_v23, %v4457_v19 }
 0x237   : > { %v4361_v58 = vrot.slane %v4360_v17, 2  ;;  %v4332_v31 = vrot.slane %v4331_v57, 1 }
 0x238   : > { %v4430_v14 = vadd.f32 %v4429_v60, %v4428_v32  ;;  %v4460_v20 = vrot.slane %v4459_v13, 2 }
 0x239   : > { %v4362_v45 = vadd.f32 %v4361_v58, %v4360_v17  ;;  %v4333_v26 = vadd.f32 %v4332_v31, %v4331_v57 }
 0x23a   : > { %v4431_v7 = vrot.slane %v4430_v14, 1  ;;  %v4461_v5 = vadd.f32 %v4460_v20, %v4459_v13 }
 0x23b   : > { %v4363_v51 = vrot.slane %v4362_v45, 1 }
 0x23c   : > { %v4462_v28 = vrot.slane %v4461_v5, 1  ;;  %v4432_v44 = vadd.f32 %v4431_v7, %v4430_v14 }
 0x23d   : > { %v4364_v12 = vadd.f32 %v4363_v51, %v4362_v45 }
 0x23e   : > { %v4463_v8 = vadd.f32 %v4462_v28, %v4461_v5 }
 0x23f   : > { %v4367_v39 = vcombine.low %v4333_v26, %v4364_v12 }
 0x240   : > { %v4466_v18 = vcombine.low %v4432_v44, %v4463_v8 }
 0x241   : > { %v4374_v47 = vrot.slane %v4367_v39, %v4373_v63 }
 0x242   : > { %v4473_v55 = vrot.slane %v4466_v18, %v4373_v63 }
 0x243   : > { %v4381_v61 = vrot.slane %v4374_v47, %v4373_v63 }
 0x244   : > { %v4480_v41 = vrot.slane %v4473_v55, %v4373_v63 }
 0x245   : > { %4387 = vst.msk [vmem:[%s237_s7] ss:$2 sm:$0x3] %vm4385_vm3, %v4381_v61 }
 0x246   : > { %5065 = vst.msk [vmem:[%s237_s7 + $0x1] ss:$2 sm:$0x3] %vm4385_vm3, %v4480_v41 }
 0x247 PF: > { %s16_s18 = sadd.s32 1, %s5700_s18  }
 0x248   : > { %p13_p4 = scmp.ge.s32.totalorder %s16_s18, 4  }
 0x24a   :  { %15 = sbr.rel (!%p13_p4) target bundleno = 1 (0x1), region = 87 }

// kernel: mixed6a_forward.7
= control target key start
LH: loop header
LB: loop body
LE: loop exit
PB: predicated region body
PF: predicated region fallthrough
CT: control target
= control target key end

     0   :  { %v71_v0 = vlaneseq  ;;  %s508_s0 = inlined_call_operand.vmem [shape: bf16[38,896], index: 0, kind: input, shape index: {}]   ;;  %s509_s1 = inlined_call_operand.vmem [shape: f32[1,640], index: 1, kind: input, shape index: {}]   ;;  %s510_s2 = inlined_call_operand.vmem [shape: f32[1,640], index: 2, kind: input, shape index: {}]   ;;  %s511_s3 = inlined_call_operand.vmem [shape: f32[38,896], index: 3, kind: output, shape index: {}]  }
   0x1   :  { %v14_v1 = vld [vmem:[%s508_s0] sm:$0xff]  ;;  %v15_v5 = vld [vmem:[%s508_s0 + $0x8] sm:$0xff]  ;;  %v266_v6 = vld [vmem:[%s508_s0 + $0x10] sm:$0xff] }
   0x2   :  { %v34_v2 = vunpack.c.l.bf16 %v14_v1  ;;  %v72_v3 = vshrl.u32 %v71_v0, 7  ;;  %v35_v4 = vunpack.c.h.bf16 %v14_v1  ;;  %v18_v7 = vld [vmem:[%s508_s0 + $0x1c] sm:$0xff]  ;;  %v36_v10 = vunpack.c.l.bf16 %v15_v5  ;;  %v19_v14 = vld [vmem:[%s508_s0 + $0x24] sm:$0xff]  ;;  %v318_v47 = vld [vmem:[%s508_s0 + $0x2c] sm:$0xff] }
   0x3   :  { %v69_v8 = vld [vmem:[%s509_s1] sm:$0x1f]  ;;  %v37_v11 = vunpack.c.h.bf16 %v15_v5  ;;  %v38_v12 = vunpack.c.l.bf16 %v266_v6  ;;  %v41_v13 = vunpack.c.l.bf16 %v18_v7  ;;  %v42_v20 = vunpack.c.h.bf16 %v18_v7  ;;  %v22_v52 = vld [vmem:[%s508_s0 + $0x38] sm:$0xff]  ;;  %v331_v58 = vld [vmem:[%s508_s0 + $0x48] sm:$0xff] }
   0x4   :  { %v121_v9 = vld [vmem:[%s510_s2] sm:$0x1f]  ;;  %v73_v15 = vsub.s32 0, %v72_v3  ;;  %v77_v16 = vsub.s32 1, %v72_v3  ;;  %v81_v17 = vsub.s32 2, %v72_v3  ;;  %v85_v18 = vsub.s32 3, %v72_v3 }
   0x5   :  { %v89_v19 = vsub.s32 4, %v72_v3  ;;  %v43_v21 = vunpack.c.l.bf16 %v19_v14  ;;  %v44_v22 = vunpack.c.h.bf16 %v19_v14  ;;  %v23_v53 = vld [vmem:[%s508_s0 + $0x40] sm:$0xff]  ;;  %v26_v59 = vld [vmem:[%s508_s0 + $0x54] sm:$0xff]  ;;  %v45_v63 = vunpack.c.l.bf16 %v318_v47 }
   0x6   :  { %v281_v23 = vrot.slane %v69_v8, %v73_v15  ;;  %v283_v24 = vrot.slane %v121_v9, %v73_v15  ;;  %v285_v25 = vrot.slane %v69_v8, %v77_v16  ;;  %v287_v26 = vrot.slane %v121_v9, %v77_v16 }
   0x7   :  { %v289_v27 = vrot.slane %v69_v8, %v81_v17  ;;  %v291_v28 = vrot.slane %v121_v9, %v81_v17  ;;  %v293_v29 = vrot.slane %v69_v8, %v85_v18  ;;  %v295_v30 = vrot.slane %v121_v9, %v85_v18 }
   0x8   :  { %v96_v31 = vmul.f32 %v281_v23, %v34_v2  ;;  %v97_v32 = vmul.f32 %v285_v25, %v35_v4  ;;  %v299_v33 = vrot.slane %v69_v8, %v89_v19  ;;  %v301_v34 = vrot.slane %v121_v9, %v89_v19 }
   0x9   :  { %v98_v35 = vmul.f32 %v289_v27, %v36_v10  ;;  %v99_v36 = vmul.f32 %v293_v29, %v37_v11  ;;  %v101_v37 = vmul.f32 %v281_v23, %v41_v13  ;;  %v102_v38 = vmul.f32 %v285_v25, %v42_v20 }
   0xa   :  { %v148_v39 = vadd.f32 %v283_v24, %v96_v31  ;;  %v149_v40 = vadd.f32 %v287_v26, %v97_v32  ;;  %v100_v41 = vmul.f32 %v299_v33, %v38_v12  ;;  %v103_v42 = vmul.f32 %v289_v27, %v43_v21  ;;  %v27_v21 = vld [vmem:[%s508_s0 + $0x5c] sm:$0xff] }
   0xb   :  { %v150_v43 = vadd.f32 %v291_v28, %v98_v35  ;;  %v151_v44 = vadd.f32 %v295_v30, %v99_v36  ;;  %v153_v45 = vadd.f32 %v283_v24, %v101_v37  ;;  %v154_v46 = vadd.f32 %v287_v26, %v102_v38  ;;  %v387_v36 = vld [vmem:[%s508_s0 + $0x64] sm:$0xff]  ;;  %v30_v37 = vld [vmem:[%s508_s0 + $0x70] sm:$0xff] }
   0xc   :  { %v173_v48 = vmax.f32 %v148_v39, 0.0  ;;  %v174_v49 = vmax.f32 %v149_v40, 0.0  ;;  %v152_v50 = vadd.f32 %v301_v34, %v100_v41  ;;  %v155_v51 = vadd.f32 %v291_v28, %v103_v42  ;;  %v31_v42 = vld [vmem:[%s508_s0 + $0x78] sm:$0xff] }
   0xd   :  { %v175_v54 = vmax.f32 %v150_v43, 0.0  ;;  %v176_v55 = vmax.f32 %v151_v44, 0.0  ;;  %v178_v56 = vmax.f32 %v153_v45, 0.0  ;;  %v179_v57 = vmax.f32 %v154_v46, 0.0 }
   0xe   :  { %198 = vst [vmem:[%s511_s3] sm:$0xff] %v173_v48  ;;  %199 = vst [vmem:[%s511_s3 + $0x8] sm:$0xff] %v174_v49  ;;  %v177_v60 = vmax.f32 %v152_v50, 0.0  ;;  %v180_v61 = vmax.f32 %v155_v51, 0.0  ;;  %v104_v62 = vmul.f32 %v293_v29, %v44_v22  ;;  %v48_v0 = vunpack.c.l.bf16 %v22_v52 }
   0xf   :  { %200 = vst [vmem:[%s511_s3 + $0x10] sm:$0xff] %v175_v54  ;;  %201 = vst [vmem:[%s511_s3 + $0x18] sm:$0xff] %v176_v55  ;;  %v49_v1 = vunpack.c.h.bf16 %v22_v52  ;;  %v50_v2 = vunpack.c.l.bf16 %v23_v53  ;;  %v51_v3 = vunpack.c.h.bf16 %v23_v53  ;;  %v105_v5 = vmul.f32 %v299_v33, %v45_v63 }
  0x10   :  { %203 = vst [vmem:[%s511_s3 + $0x38] sm:$0xff] %v178_v56  ;;  %204 = vst [vmem:[%s511_s3 + $0x40] sm:$0xff] %v179_v57  ;;  %v156_v4 = vadd.f32 %v295_v30, %v104_v62  ;;  %v52_v7 = vunpack.c.l.bf16 %v331_v58  ;;  %v55_v8 = vunpack.c.l.bf16 %v26_v59  ;;  %v106_v9 = vmul.f32 %v281_v23, %v48_v0 }
  0x11   :  { %202 = vst [vmem:[%s511_s3 + $0x20] sm:$0xff] %v177_v60  ;;  %205 = vst [vmem:[%s511_s3 + $0x48] sm:$0xff] %v180_v61  ;;  %v107_v10 = vmul.f32 %v285_v25, %v49_v1  ;;  %v108_v11 = vmul.f32 %v289_v27, %v50_v2  ;;  %v109_v12 = vmul.f32 %v293_v29, %v51_v3  ;;  %v56_v35 = vunpack.c.h.bf16 %v26_v59  ;;  %v32_v61 = vld [vmem:[%s508_s0 + $0x80] sm:$0xff] }
  0x12   :  { %v181_v13 = vmax.f32 %v156_v4, 0.0  ;;  %v157_v14 = vadd.f32 %v301_v34, %v105_v5  ;;  %v110_v15 = vmul.f32 %v299_v33, %v52_v7  ;;  %v111_v16 = vmul.f32 %v281_v23, %v55_v8 }
  0x13   :  { %v158_v17 = vadd.f32 %v283_v24, %v106_v9  ;;  %v159_v18 = vadd.f32 %v287_v26, %v107_v10  ;;  %v160_v19 = vadd.f32 %v291_v28, %v108_v11  ;;  %v161_v20 = vadd.f32 %v295_v30, %v109_v12 }
  0x14   :  { %206 = vst [vmem:[%s511_s3 + $0x50] sm:$0xff] %v181_v13  ;;  %v182_v22 = vmax.f32 %v157_v14, 0.0  ;;  %v162_v31 = vadd.f32 %v301_v34, %v110_v15  ;;  %v163_v32 = vadd.f32 %v283_v24, %v111_v16  ;;  %v112_v45 = vmul.f32 %v285_v25, %v56_v35  ;;  %v33_v13 = vld [vmem:[%s508_s0 + $0x88] sm:$0xf] }
  0x15   :  { %v183_v38 = vmax.f32 %v158_v17, 0.0  ;;  %v184_v39 = vmax.f32 %v159_v18, 0.0  ;;  %v185_v40 = vmax.f32 %v160_v19, 0.0  ;;  %v186_v41 = vmax.f32 %v161_v20, 0.0 }
  0x16   :  { %207 = vst [vmem:[%s511_s3 + $0x58] sm:$0xff] %v182_v22  ;;  %v187_v43 = vmax.f32 %v162_v31, 0.0  ;;  %v188_v44 = vmax.f32 %v163_v32, 0.0  ;;  %v57_v46 = vunpack.c.l.bf16 %v27_v21  ;;  %v58_v48 = vunpack.c.h.bf16 %v27_v21 }
  0x17   :  { %208 = vst [vmem:[%s511_s3 + $0x70] sm:$0xff] %v183_v38  ;;  %209 = vst [vmem:[%s511_s3 + $0x78] sm:$0xff] %v184_v39  ;;  %v59_v49 = vunpack.c.l.bf16 %v387_v36  ;;  %v62_v50 = vunpack.c.l.bf16 %v30_v37  ;;  %v63_v51 = vunpack.c.h.bf16 %v30_v37  ;;  %v164_v52 = vadd.f32 %v287_v26, %v112_v45 }
  0x18   :  { %210 = vst [vmem:[%s511_s3 + $0x80] sm:$0xff] %v185_v40  ;;  %211 = vst [vmem:[%s511_s3 + $0x88] sm:$0xff] %v186_v41  ;;  %v113_v53 = vmul.f32 %v289_v27, %v57_v46  ;;  %v64_v54 = vunpack.c.l.bf16 %v31_v42  ;;  %v65_v55 = vunpack.c.h.bf16 %v31_v42  ;;  %v114_v56 = vmul.f32 %v293_v29, %v58_v48 }
  0x19   :  { %212 = vst [vmem:[%s511_s3 + $0x90] sm:$0xff] %v187_v43  ;;  %213 = vst [vmem:[%s511_s3 + $0xa8] sm:$0xff] %v188_v44  ;;  %v115_v57 = vmul.f32 %v299_v33, %v59_v49  ;;  %v116_v59 = vmul.f32 %v281_v23, %v62_v50  ;;  %v117_v60 = vmul.f32 %v285_v25, %v63_v51  ;;  %v189_v62 = vmax.f32 %v164_v52, 0.0 }
  0x1a   :  { %v165_v63 = vadd.f32 %v291_v28, %v113_v53  ;;  %v118_v0 = vmul.f32 %v289_v27, %v64_v54  ;;  %v119_v1 = vmul.f32 %v293_v29, %v65_v55  ;;  %v166_v2 = vadd.f32 %v295_v30, %v114_v56  ;;  %v17_v29 = vld [vmem:[%s508_s0 + $0x18] ss:$28 sps:$4 sm:$0xff]  }
  0x1b   :  { %v167_v3 = vadd.f32 %v301_v34, %v115_v57  ;;  %v168_v4 = vadd.f32 %v283_v24, %v116_v59  ;;  %v169_v23 = vadd.f32 %v287_v26, %v117_v60  ;;  %214 = vst [vmem:[%s511_s3 + $0xb0] sm:$0xff] %v189_v62  ;;  %v66_v27 = vunpack.c.l.bf16 %v32_v61  ;;  %v25_v26 = vld [vmem:[%s508_s0 + $0x50] ss:$28 sps:$4 sm:$0xff]  }
  0x1c   :  { %v190_v25 = vmax.f32 %v165_v63, 0.0  ;;  %v170_v5 = vadd.f32 %v291_v28, %v118_v0  ;;  %v171_v7 = vadd.f32 %v295_v30, %v119_v1  ;;  %v191_v8 = vmax.f32 %v166_v2, 0.0 }
  0x1d   :  { %v192_v9 = vmax.f32 %v167_v3, 0.0  ;;  %v193_v10 = vmax.f32 %v168_v4, 0.0  ;;  %v194_v24 = vmax.f32 %v169_v23, 0.0  ;;  %v120_v30 = vmul.f32 %v299_v33, %v66_v27 }
  0x1e   :  { %215 = vst [vmem:[%s511_s3 + $0xb8] sm:$0xff] %v190_v25  ;;  %v195_v28 = vmax.f32 %v170_v5, 0.0  ;;  %v196_v11 = vmax.f32 %v171_v7, 0.0  ;;  %v39_v12 = vunpack.c.h.bf16 %v266_v6  ;;  %216 = vst [vmem:[%s511_s3 + $0xc0] sm:$0xff] %v191_v8  ;;  %v40_v6 = vunpack.c.l.bf16 %v17_v29 }
  0x1f   :  { %217 = vst [vmem:[%s511_s3 + $0xc8] sm:$0xff] %v192_v9  ;;  %218 = vst [vmem:[%s511_s3 + $0xe0] sm:$0xff] %v193_v10  ;;  %v46_v33 = vunpack.c.h.bf16 %v318_v47  ;;  %v47_v14 = vunpack.c.h.bf16 %v17_v29  ;;  %v53_v15 = vunpack.c.h.bf16 %v331_v58  ;;  %v172_v16 = vadd.f32 %v301_v34, %v120_v30 }
  0x20   :  { %219 = vst [vmem:[%s511_s3 + $0xe8] sm:$0xff] %v194_v24  ;;  %220 = vst [vmem:[%s511_s3 + $0xf0] sm:$0xff] %v195_v28  ;;  %v54_v17 = vunpack.c.l.bf16 %v25_v26  ;;  %v60_v47 = vunpack.c.h.bf16 %v387_v36  ;;  %v61_v18 = vunpack.c.h.bf16 %v25_v26  ;;  %v67_v34 = vunpack.c.h.bf16 %v32_v61 }
  0x21   :  { %221 = vst [vmem:[%s511_s3 + $0xf8] sm:$0xff] %v196_v11  ;;  %223 = vst [vmem:[%s511_s3 + $0x28] sm:$0xff] %v39_v12  ;;  %v68_v58 = vunpack.c.l.bf16 %v33_v13  ;;  %v197_v19 = vmax.f32 %v172_v16, 0.0 }
  0x22   :  { %224 = vst [vmem:[%s511_s3 + $0x30] sm:$0xff] %v40_v6  ;;  %225 = vst [vmem:[%s511_s3 + $0x60] sm:$0xff] %v46_v33 }
  0x23   :  { %226 = vst [vmem:[%s511_s3 + $0x68] sm:$0xff] %v47_v14  ;;  %227 = vst [vmem:[%s511_s3 + $0x98] sm:$0xff] %v53_v15 }
  0x24   :  { %228 = vst [vmem:[%s511_s3 + $0xa0] sm:$0xff] %v54_v17  ;;  %229 = vst [vmem:[%s511_s3 + $0xd0] sm:$0xff] %v60_v47 }
  0x25   :  { %230 = vst [vmem:[%s511_s3 + $0xd8] sm:$0xff] %v61_v18  ;;  %231 = vst [vmem:[%s511_s3 + $0x108] sm:$0xff] %v67_v34 }
  0x26   :  { %232 = vst [vmem:[%s511_s3 + $0x110] sm:$0xff] %v68_v58  ;;  %222 = vst [vmem:[%s511_s3 + $0x100] sm:$0xff] %v197_v19 }

// kernel: mixed6a_forward.6
= control target key start
LH: loop header
LB: loop body
LE: loop exit
PB: predicated region body
PF: predicated region fallthrough
CT: control target
= control target key end

     0   :  { %s9994_s24 = smov 0   ;;  %s12868_s0 = inlined_call_operand.vmem [shape: bf16[2,4,25,256], index: 0, kind: input, shape index: {}]   ;;  %s12869_s1 = inlined_call_operand.vmem [shape: bf16[2,4,25,192], index: 1, kind: input, shape index: {}]   ;;  %s12870_s2 = inlined_call_operand.vmem [shape: bf16[9,256,384], index: 2, kind: input, shape index: {}]   ;;  %s12871_s3 = inlined_call_operand.vmem [shape: bf16[9,192,256], index: 3, kind: input, shape index: {}]   ;;  %s12872_s4 = inlined_call_operand.vmem [shape: f32[1,192], index: 4, kind: input, shape index: {}]   ;;  %s12873_s5 = inlined_call_operand.vmem [shape: f32[1,192], index: 5, kind: input, shape index: {}]   ;;  %s12874_s6 = inlined_call_operand.vmem [shape: bf16[2,19,896], index: 6, kind: output, shape index: {0}]   ;;  %s12875_s7 = inlined_call_operand.vmem [shape: f32[2,2,640], index: 7, kind: output, shape index: {1}]  }
   0x1 LB: > { %s7172_s25 = sadd.s32 4294967295, %s9951_s24   ;;  %p7176_p0 = scmp.ge.s32.totalorder %s9951_s24, 1  ;;  %s9951_s24 = sphi %s9994_s24, %s18_s24  }
   0x2   : > { %p250_p1 = scmp.lt.s32.totalorder %s9951_s24, 3 }
   0x4   : > { %p251_p2 = pnand %p7176_p0, %p250_p1 }
   0x6   : > { %254 = sbr.rel (%p251_p2) target bundleno = 919 (0x397), region = 44 }
   0xd   : > { %v9015_v0 = vld [vmem:[%s12870_s2 + $0x184] ss:$12 sps:$4 sm:$0xff]   ;;  %v9017_v1 = vld [vmem:[%s12870_s2 + $0x248] ss:$12 sps:$4 sm:$0xff]   ;;  %v9018_v2 = vld [vmem:[%s12870_s2 + $0x180] ss:$12 sps:$4 sm:$0xff]  }
   0xe   : > { %942 = vmatprep.subr.bf16.mxu0 %v9015_v0  ;;  %8618 = vmatprep.subr.bf16.mxu1 %v9017_v1  ;;  %v9019_v3 = vld [vmem:[%s12870_s2 + $0x188] ss:$12 sps:$4 sm:$0xff]   ;;  %v9022_v5 = vld [vmem:[%s12870_s2 + $0x260] ss:$12 sps:$4 sm:$0xff]   ;;  %v9023_v6 = vld [vmem:[%s12870_s2 + $0x198] ss:$12 sps:$4 sm:$0xff]  }
   0xf   : > { %943 = vmatpush1.bf16.msra.mxu0 %v9018_v2  ;;  %v9020_v4 = vld [vmem:[%s12870_s2 + $0x19c] ss:$12 sps:$4 sm:$0xff]   ;;  %8619 = vmatpush3.bf16.msra.mxu1 %v9019_v3  ;;  %v9024_v7 = vld [vmem:[%s12870_s2 + $0x1a0] ss:$12 sps:$4 sm:$0xff]   ;;  %v9027_v9 = vld [vmem:[%s12870_s2 + $0x278] ss:$12 sps:$4 sm:$0xff]  }
  0x10   : > { %944 = vmatprep.subr.bf16.mxu0 %v9020_v4  ;;  %8620 = vmatprep.subr.bf16.mxu1 %v9022_v5  ;;  %v9025_v8 = vld [vmem:[%s12870_s2 + $0x1b4] ss:$12 sps:$4 sm:$0xff]   ;;  %v9028_v10 = vld [vmem:[%s12870_s2 + $0x1b0] ss:$12 sps:$4 sm:$0xff]   ;;  %v9029_v11 = vld [vmem:[%s12870_s2 + $0x1b8] ss:$12 sps:$4 sm:$0xff]  }
  0x11   : > { %v9030_v12 = vld [vmem:[%s12870_s2 + $0x1cc] ss:$12 sps:$4 sm:$0xff]   ;;  %p292_p3 = scmp.lt.s32.totalorder %s7172_s25, 1  ;;  %v9032_v13 = vld [vmem:[%s12870_s2 + $0x290] ss:$12 sps:$4 sm:$0xff]   ;;  %vm1558_vm0 = vcmask 523264  }
  0x12   : > { %v9033_v14 = vld [vmem:[%s12870_s2 + $0x1c8] ss:$12 sps:$4 sm:$0xff]   ;;  %v9034_v15 = vld [vmem:[%s12870_s2 + $0x1d0] ss:$12 sps:$4 sm:$0xff]   ;;  %v9038_v18 = vld [vmem:[%s12870_s2 + $0x1e0] ss:$12 sps:$4 sm:$0xff]  }
  0x13   : > { %945 = vmatpush1.bf16.msra.mxu0 %v9023_v6  ;;  %8621 = vmatpush3.bf16.msra.mxu1 %v9024_v7  ;;  %v9035_v16 = vld [vmem:[%s12870_s2 + $0x1e4] ss:$12 sps:$4 sm:$0xff]   ;;  %v9037_v17 = vld [vmem:[%s12870_s2 + $0x2a8] ss:$12 sps:$4 sm:$0xff]   ;;  %s12941_s25 = smov (!%p292_p3, %s7172_s25), 1  ;;  %vm6095_vm6 = vcmask 1044480  }
  0x14   : > { %946 = vmatprep.subr.bf16.mxu0 %v9025_v8  ;;  %8622 = vmatprep.subr.bf16.mxu1 %v9027_v9  ;;  %v9039_v19 = vld [vmem:[%s12870_s2 + $0x1e8] ss:$12 sps:$4 sm:$0xff]   ;;  %v9042_v21 = vld [vmem:[%s12870_s2 + $0x2c0] ss:$12 sps:$4 sm:$0xff]   ;;  %v9043_v22 = vld [vmem:[%s12870_s2 + $0x1f8] ss:$12 sps:$4 sm:$0xff]  }
  0x15   : > { %v9040_v20 = vld [vmem:[%s12870_s2 + $0x1fc] ss:$12 sps:$4 sm:$0xff]   ;;  %v9044_v23 = vld [vmem:[%s12870_s2 + $0x200] ss:$12 sps:$4 sm:$0xff]   ;;  %s8607_s9 = sshll.u32 %s12941_s25, 7  ;;  %vm6690_vm7 = vcmask 1040384  }
  0x16   : > { %v9045_v24 = vld [vmem:[%s12870_s2 + $0x214] ss:$12 sps:$4 sm:$0xff]   ;;  %v9047_v25 = vld [vmem:[%s12870_s2 + $0x2d8] ss:$12 sps:$4 sm:$0xff]   ;;  %s10092_s16 = scalar_lea.vmem %s12868_s0, %s8607_s9  ;;  %v9048_v26 = vld [vmem:[%s12870_s2 + $0x210] ss:$12 sps:$4 sm:$0xff]   ;;  %s10337_s13 = scalar_lea.vmem %s12869_s1, %s8607_s9 }
  0x17   : > { %947 = vmatpush1.bf16.msra.mxu0 %v9028_v10  ;;  %8623 = vmatpush3.bf16.msra.mxu1 %v9029_v11  ;;  %v9049_v27 = vld [vmem:[%s12870_s2 + $0x218] ss:$12 sps:$4 sm:$0xff]   ;;  %v9052_v29 = vld [vmem:[%s12870_s2 + $0x2f0] ss:$12 sps:$4 sm:$0xff]   ;;  %v7184_v31 = vld [vmem:[%s10092_s16 + $0x28] sm:$0xff]  ;;  %vm6691_vm8 = vcmask 1044484  }
  0x18   : > { %948 = vmatprep.subr.bf16.mxu0 %v9030_v12  ;;  %8624 = vmatprep.subr.bf16.mxu1 %v9032_v13  ;;  %v9050_v28 = vld [vmem:[%s12870_s2 + $0x22c] ss:$12 sps:$4 sm:$0xff]   ;;  %v7183_v30 = vld [vmem:[%s10092_s16 + $0x20] sm:$0xff]  ;;  %v9053_v32 = vld [vmem:[%s12870_s2 + $0x228] ss:$12 sps:$4 sm:$0xff]   ;;  %vm6746_vm10 = vcmask 1041408  }
  0x19   : > { %v10111_v33 = vcombine.high %v7183_v30, %v7184_v31  ;;  %v9054_v34 = vld [vmem:[%s12870_s2 + $0x230] ss:$12 sps:$4 sm:$0xff]   ;;  %v9059_v36 = vld [vmem:[%s12870_s2 + $0xc8] ss:$12 sps:$4 sm:$0xff]   ;;  %v10124_v37 = vcombine.low %v7183_v30, %v7184_v31  ;;  %v9060_v38 = vld [vmem:[%s12870_s2 + $0x240] ss:$12 sps:$4 sm:$0xff]  }
  0x1a   : > { %v9056_v35 = vld [vmem:[%s12870_s2 + $0x244] ss:$12 sps:$4 sm:$0xff]   ;;  %v9061_v39 = vld [vmem:[%s12870_s2 + $0x8] ss:$12 sps:$4 sm:$0xff]   ;;  %v9064_v41 = vld [vmem:[%s12870_s2 + $0xe0] ss:$12 sps:$4 sm:$0xff]  }
  0x1b   : > { %949 = vmatpush1.bf16.msra.mxu0 %v9033_v14  ;;  %8625 = vmatpush3.bf16.msra.mxu1 %v9034_v15  ;;  %v9062_v40 = vld [vmem:[%s12870_s2 + $0x25c] ss:$12 sps:$4 sm:$0xff]   ;;  %v9065_v42 = vld [vmem:[%s12870_s2 + $0x258] ss:$12 sps:$4 sm:$0xff]   ;;  %v9066_v43 = vld [vmem:[%s12870_s2 + $0x20] ss:$12 sps:$4 sm:$0xff]  }
  0x1c   : > { %950 = vmatprep.subr.bf16.mxu0 %v9035_v16  ;;  %8626 = vmatprep.subr.bf16.mxu1 %v9037_v17  ;;  %v9067_v44 = vld [vmem:[%s12870_s2 + $0x274] ss:$12 sps:$4 sm:$0xff]   ;;  %v9069_v45 = vld [vmem:[%s12870_s2 + $0xf8] ss:$12 sps:$4 sm:$0xff]   ;;  %v9070_v46 = vld [vmem:[%s12870_s2 + $0x270] ss:$12 sps:$4 sm:$0xff]  }
  0x1d   : > { %1025 = vmatprep.mubr.bf16.mxu1 %v10111_v33  ;;  %974 = vmatprep.mubr.bf16.mxu0 %v10111_v33  ;;  %v9071_v47 = vld [vmem:[%s12870_s2 + $0x38] ss:$12 sps:$4 sm:$0xff]   ;;  %v9074_v49 = vld [vmem:[%s12870_s2 + $0x110] ss:$12 sps:$4 sm:$0xff]   ;;  %v9075_v50 = vld [vmem:[%s12870_s2 + $0x288] ss:$12 sps:$4 sm:$0xff]  }
  0x1e   : > { %v9072_v48 = vld [vmem:[%s12870_s2 + $0x28c] ss:$12 sps:$4 sm:$0xff]   ;;  %v9076_v51 = vld [vmem:[%s12870_s2 + $0x50] ss:$12 sps:$4 sm:$0xff]   ;;  %v9079_v53 = vld [vmem:[%s12870_s2 + $0x128] ss:$12 sps:$4 sm:$0xff]  }
  0x1f   : > { %951 = vmatpush1.bf16.msra.mxu0 %v9038_v18  ;;  %8627 = vmatpush3.bf16.msra.mxu1 %v9039_v19  ;;  %v9077_v52 = vld [vmem:[%s12870_s2 + $0x2a4] ss:$12 sps:$4 sm:$0xff]   ;;  %v9080_v55 = vld [vmem:[%s12870_s2 + $0x2a0] ss:$12 sps:$4 sm:$0xff]   ;;  %v9081_v56 = vld [vmem:[%s12870_s2 + $0x68] ss:$12 sps:$4 sm:$0xff]  }
  0x20   : > { %952 = vmatprep.subr.bf16.mxu0 %v9040_v20  ;;  %8628 = vmatprep.subr.bf16.mxu1 %v9042_v21  ;;  %v7185_v54 = vld [vmem:[%s10092_s16 + $0x30] sm:$0xff]  ;;  %v9082_v59 = vld [vmem:[%s12870_s2 + $0x2bc] ss:$12 sps:$4 sm:$0xff]   ;;  %v9084_v60 = vld [vmem:[%s12870_s2 + $0x140] ss:$12 sps:$4 sm:$0xff]   ;;  %s8998_s21 = smul.u32 84, %s12941_s25 }
  0x21   : > { %v10182_v57 = vcombine.high %v7185_v54, %v7185_v54  ;;  %v10184_v58 = vcombine.low %v7185_v54, %v7185_v54  ;;  %v9085_v61 = vld [vmem:[%s12870_s2 + $0x2b8] ss:$12 sps:$4 sm:$0xff]   ;;  %v9087_v62 = vld [vmem:[%s12870_s2 + $0x80] ss:$12 sps:$4 sm:$0xff]   ;;  %v9092_v1 = vld [vmem:[%s12870_s2 + $0x2d0] ss:$12 sps:$4 sm:$0xff]  }
  0x22   : > { %v9089_v63 = vld [vmem:[%s12870_s2 + $0x2d4] ss:$12 sps:$4 sm:$0xff]   ;;  %v9091_v0 = vld [vmem:[%s12870_s2 + $0x158] ss:$12 sps:$4 sm:$0xff]   ;;  %v314_v3 = vld [vmem:[%s10092_s16 + $0x8] sm:$0xff]  ;;  %vm6748_vm12 = vcmask 1045508   ;;  %s12674_s26 = scalar_lea.vmem %s12874_s6, %s8998_s21 }
  0x23   : > { %953 = vmatpush1.bf16.msra.mxu0 %v9043_v22  ;;  %8629 = vmatpush3.bf16.msra.mxu1 %v9044_v23  ;;  %v313_v2 = vld [vmem:[%s10092_s16] sm:$0xff]  ;;  %v9094_v5 = vld [vmem:[%s12870_s2 + $0x2ec] ss:$12 sps:$4 sm:$0xff]   ;;  %v9096_v7 = vld [vmem:[%s12870_s2 + $0x170] ss:$12 sps:$4 sm:$0xff]  }
  0x24   : > { %954 = vmatprep.subr.bf16.mxu0 %v9045_v24  ;;  %8630 = vmatprep.subr.bf16.mxu1 %v9047_v25  ;;  %v9093_v4 = vld [vmem:[%s12870_s2 + $0x98] ss:$12 sps:$4 sm:$0xff]   ;;  %v10217_v6 = vcombine.high %v313_v2, %v314_v3  ;;  %v9097_v8 = vld [vmem:[%s12870_s2 + $0x2e8] ss:$12 sps:$4 sm:$0xff]   ;;  %v9098_v9 = vld [vmem:[%s12870_s2 + $0xb0] ss:$12 sps:$4 sm:$0xff]   ;;  %v10239_v14 = vcombine.low %v313_v2, %v314_v3 }
  0x25   : > { %v9102_v10 = vld [vmem:[%s12870_s2 + $0x4] ss:$12 sps:$4 sm:$0xff]   ;;  %v9100_v13 = vld [vmem:[%s12870_s2] ss:$12 sps:$4 sm:$0xff]   ;;  %v9109_v16 = vld [vmem:[%s12870_s2 + $0x1c] ss:$12 sps:$4 sm:$0xff]  }
  0x26   : > { %v9106_v11 = vld [vmem:[%s12871_s3 + $0xc4] ss:$8 sps:$4 sm:$0xff]   ;;  %v315_v12 = vld [vmem:[%s10092_s16 + $0x10] sm:$0xff]  ;;  %v9104_v15 = vld [vmem:[%s12871_s3 + $0xc0] ss:$8 sps:$4 sm:$0xff]  }
  0x27   : > { %955 = vmatpush1.bf16.msra.mxu0 %v9048_v26  ;;  %8631 = vmatpush3.bf16.msra.mxu1 %v9049_v27  ;;  %v9112_v17 = vld [vmem:[%s12871_s3 + $0xd4] ss:$8 sps:$4 sm:$0xff]   ;;  %v10250_v18 = vcombine.high %v315_v12, %v315_v12  ;;  %v9107_v19 = vld [vmem:[%s12870_s2 + $0x18] ss:$12 sps:$4 sm:$0xff]   ;;  %v10271_v24 = vcombine.low %v315_v12, %v315_v12  ;;  %v9118_v25 = vld [vmem:[%s12871_s3 + $0xe0] ss:$8 sps:$4 sm:$0xff]  }
  0x28   : > { %956 = vmatprep.subr.bf16.mxu0 %v9050_v28  ;;  %8632 = vmatprep.subr.bf16.mxu1 %v9052_v29  ;;  %v9110_v20 = vld [vmem:[%s12871_s3 + $0xd0] ss:$8 sps:$4 sm:$0xff]   ;;  %v9116_v21 = vld [vmem:[%s12870_s2 + $0x34] ss:$12 sps:$4 sm:$0xff]   ;;  %v9120_v22 = vld [vmem:[%s12871_s3 + $0xe4] ss:$8 sps:$4 sm:$0xff]  }
  0x29   : > { %v9114_v23 = vld [vmem:[%s12870_s2 + $0x30] ss:$12 sps:$4 sm:$0xff]   ;;  %v9123_v26 = vld [vmem:[%s12870_s2 + $0x4c] ss:$12 sps:$4 sm:$0xff]   ;;  %v1886_v28 = vshrl.u32 %v10271_v24, 16  ;;  %v1870_v29 = vshll.u32 %v10271_v24, 16  ;;  %vm12659_vm11 = vmor %vm6690_vm7, %vm6691_vm8 }
  0x2a   : > { %v9126_v27 = vld [vmem:[%s12871_s3 + $0xf4] ss:$8 sps:$4 sm:$0xff]   ;;  %v341_v54 = vld [vmem:[%s12872_s4] sm:$0x3]  ;;  %v9148_v2 = vld [vmem:[%s12871_s3 + $0x130] ss:$8 sps:$4 sm:$0xff]  }
  0x2b   : > { %957 = vmatpush1.bf16.msra.mxu0 %v9053_v32  ;;  %8633 = vmatpush3.bf16.msra.mxu1 %v9054_v34  ;;  %v9121_v30 = vld [vmem:[%s12870_s2 + $0x48] ss:$12 sps:$4 sm:$0xff]   ;;  %v4655_v31 = vrot.slane %v1886_v28, 2  ;;  %v9124_v32 = vld [vmem:[%s12871_s3 + $0xf0] ss:$8 sps:$4 sm:$0xff]  }
  0x2c   : > { %958 = vmatprep.subr.bf16.mxu0 %v9056_v35  ;;  %8646 = vmatprep.subr.bf16.mxu1 %v9059_v36  ;;  %v9129_v34 = vld [vmem:[%s12870_s2 + $0x64] ss:$12 sps:$4 sm:$0xff]   ;;  %v4656_v35 = vrot.slane %v1870_v29, 3  ;;  %vm1861_vm1 = vsmask.f32 7424 }
  0x2d   : > { %v9132_v36 = vld [vmem:[%s12871_s3 + $0x104] ss:$8 sps:$4 sm:$0xff]   ;;  %vm2498_vm2 = vsmask.f32 3328  ;;  %vm2499_vm3 = vsmask.f32 7440 }
  0x2e   : > { %1026 = vmatmul.mubr.bf16.vlgmr.msra.gmra.mrb[0].mxu1 %v10124_v37  ;;  %v9153_v3 = vld [vmem:[%s12870_s2 + $0xc4] ss:$12 sps:$4 sm:$0xff]   ;;  %vm11045_vm4 = vmor %vm2498_vm2, %vm2499_vm3  ;;  %vm4651_vm5 = vsmask.f32 5376  ;;  %vm5258_vm9 = vsmask.f32 1280 }
  0x2f   : > { %959 = vmatpush1.bf16.msra.mxu0 %v9060_v38  ;;  %8647 = vmatpush3.bf16.msra.mxu1 %v9061_v39  ;;  %v12876_v38 = vlaneseq  ;;  %v10303_v39 = vor.u32 %v4656_v35, %v4655_v31  ;;  %v9168_v31 = vld [vmem:[%s12871_s3 + $0x164] ss:$8 sps:$4 sm:$0xff]   ;;  %vm12664_vm13 = vmand %vm6746_vm10, %vm5258_vm9  ;;  %vm5259_vm15 = vsmask.f32 5392 }
  0x30   : > { %960 = vmatprep.subr.bf16.mxu0 %v9062_v40  ;;  %8648 = vmatprep.subr.bf16.mxu1 %v9064_v41  ;;  %v9127_v40 = vld [vmem:[%s12870_s2 + $0x60] ss:$12 sps:$4 sm:$0xff]   ;;  %vm6749_vm14 = vmand %vm6748_vm12, %vm4651_vm5 }
  0x31   : > { %1033 = vmatprep.mubr.bf16.mxu1 %v10182_v57  ;;  %v9130_v41 = vld [vmem:[%s12871_s3 + $0x100] ss:$8 sps:$4 sm:$0xff]  }
  0x33   : > { %961 = vmatpush1.bf16.msra.mxu0 %v9065_v42  ;;  %8649 = vmatpush3.bf16.msra.mxu1 %v9066_v43  ;;  %v9135_v42 = vld [vmem:[%s12870_s2 + $0x7c] ss:$12 sps:$4 sm:$0xff]  }
  0x34   : > { %962 = vmatprep.subr.bf16.mxu0 %v9067_v44  ;;  %8650 = vmatprep.subr.bf16.mxu1 %v9069_v45  ;;  %v9138_v43 = vld [vmem:[%s12871_s3 + $0x114] ss:$8 sps:$4 sm:$0xff]   ;;  %v10318_v44 = vshrl.u32 %v12876_v38, 7  ;;  %v9133_v45 = vld [vmem:[%s12870_s2 + $0x78] ss:$12 sps:$4 sm:$0xff]  }
  0x35   : > { %v9353_v38 = vld [vmem:[%s12871_s3 + $0x230] ss:$8 sps:$4 sm:$0xff]  }
  0x36   : > { %1034 = vmatmul.mubr.bf16.gmra.mrb[4].mxu1 %v10184_v58  ;;  %12898 = vst [vmem:[#allocation2_spill] sm:$0xff] %v10318_v44 }
  0x37   : > { %963 = vmatpush1.bf16.msra.mxu0 %v9070_v46  ;;  %8651 = vmatpush3.bf16.msra.mxu1 %v9071_v47  ;;  %v9136_v46 = vld [vmem:[%s12871_s3 + $0x110] ss:$8 sps:$4 sm:$0xff]   ;;  %v9141_v47 = vld [vmem:[%s12870_s2 + $0x94] ss:$12 sps:$4 sm:$0xff]  }
  0x38   : > { %964 = vmatprep.subr.bf16.mxu0 %v9072_v48  ;;  %8652 = vmatprep.subr.bf16.mxu1 %v9074_v49  ;;  %v9144_v48 = vld [vmem:[%s12871_s3 + $0x124] ss:$8 sps:$4 sm:$0xff]   ;;  %v349_v49 = vsub.s32 1, %v10318_v44 }
  0x39   : > { %1397 = vmatprep.mubr.bf16.mxu1 %v10217_v6 }
  0x3b   : > { %965 = vmatpush1.bf16.msra.mxu0 %v9075_v50  ;;  %8653 = vmatpush3.bf16.msra.mxu1 %v9076_v51  ;;  %v9139_v50 = vld [vmem:[%s12870_s2 + $0x90] ss:$12 sps:$4 sm:$0xff]   ;;  %v9142_v51 = vld [vmem:[%s12871_s3 + $0x120] ss:$8 sps:$4 sm:$0xff]  }
  0x3c   : > { %966 = vmatprep.subr.bf16.mxu0 %v9077_v52  ;;  %8654 = vmatprep.subr.bf16.mxu1 %v9079_v53  ;;  %v9147_v52 = vld [vmem:[%s12870_s2 + $0xac] ss:$12 sps:$4 sm:$0xff]   ;;  %v9150_v53 = vld [vmem:[%s12871_s3 + $0x134] ss:$8 sps:$4 sm:$0xff]  }
  0x3f   : > { %967 = vmatpush1.bf16.msra.mxu0 %v9080_v55  ;;  %8655 = vmatpush3.bf16.msra.mxu1 %v9081_v56  ;;  %v361_v55 = vld [vmem:[%s12873_s5] sm:$0x3] }
  0x40   : > { %968 = vmatprep.subr.bf16.mxu0 %v9082_v59  ;;  %8656 = vmatprep.subr.bf16.mxu1 %v9084_v60  ;;  %v7192_v56 = vld [vmem:[%s10337_s13 + $0x20] sm:$0xff]  ;;  %v345_v59 = vsub.s32 0, %v10318_v44  ;;  %v10360_v60 = vrot.slane %v341_v54, %v349_v49 }
  0x43   : > { %969 = vmatpush1.bf16.msra.mxu0 %v9085_v61  ;;  %8657 = vmatpush3.bf16.msra.mxu1 %v9087_v62  ;;  %v7193_v61 = vld [vmem:[%s10337_s13 + $0x28] sm:$0xff] }
  0x44   : > { %970 = vmatprep.subr.bf16.mxu0 %v9089_v63  ;;  %8658 = vmatprep.subr.bf16.mxu1 %v9091_v0  ;;  %v9145_v62 = vld [vmem:[%s12870_s2 + $0xa8] ss:$12 sps:$4 sm:$0xff]   ;;  %v10366_v63 = vrot.slane %v361_v55, %v349_v49  ;;  %v399_v0 = vunpack.c.h.bf16 %v7192_v56  ;;  %v9175_v49 = vld [vmem:[%s12870_s2 + $0x120] ss:$12 sps:$4 sm:$0xff]  }
  0x47   : > { %971 = vmatpush1.bf16.msra.mxu0 %v9092_v1  ;;  %8659 = vmatpush3.bf16.msra.mxu1 %v9093_v4  ;;  %v401_v1 = vunpack.c.h.bf16 %v7193_v61  ;;  %v9156_v4 = vld [vmem:[%s12871_s3 + $0x144] ss:$8 sps:$4 sm:$0xff]  }
  0x48   : > { %972 = vmatprep.subr.bf16.mxu0 %v9094_v5  ;;  %8660 = vmatprep.subr.bf16.mxu1 %v9096_v7  ;;  %v407_v5 = vmul.f32 %v399_v0, %v10360_v60 }
  0x49   : > { %v409_v7 = vmul.f32 %v401_v1, %v10360_v60 }
  0x4a   : > { %v415_v12 = vadd.f32 %v407_v5, %v10366_v63 }
  0x4b   : > { %973 = vmatpush1.bf16.msra.mxu0 %v9097_v8  ;;  %8661 = vmatpush3.bf16.msra.mxu1 %v9098_v9  ;;  %v10379_v8 = vrot.slane %v341_v54, %v345_v59  ;;  %v9151_v9 = vld [vmem:[%s12870_s2 + $0xc0] ss:$12 sps:$4 sm:$0xff]   ;;  %v9181_v54 = vld [vmem:[%s12870_s2 + $0x138] ss:$12 sps:$4 sm:$0xff]  }
  0x4c   : > { %1314 = vmatprep.subr.bf16.mxu0 %v9102_v10  ;;  %1565 = vmatprep.subr.bf16.mxu1 %v9106_v11  ;;  %v398_v10 = vunpack.c.l.bf16 %v7192_v56  ;;  %v400_v11 = vunpack.c.l.bf16 %v7193_v61  ;;  %v9189_v56 = vld [vmem:[%s12870_s2 + $0x154] ss:$12 sps:$4 sm:$0xff]   ;;  %v7195_v61 = vld [vmem:[%s10337_s13 + $0x38] sm:$0x11] }
  0x4d   : > { %v405_v1 = vunpack.c.h.bf16 %v7195_v61 }
  0x4e   : > { %975 = vmatmul.mubr.bf16.vlgmr.msra.gmra.mrb[0].mxu0 %v10124_v37  ;;  %1398 = vmatmul.mubr.bf16.vlgmr.msra.gmra.mrb[8].mxu1 %v10239_v14 }
  0x4f   : > { %1315 = vmatpush1.bf16.msra.mxu0 %v9100_v13  ;;  %1566 = vmatpush1.bf16.msra.mxu1 %v9104_v15  ;;  %v417_v13 = vadd.f32 %v409_v7, %v10366_v63  ;;  %v9154_v15 = vld [vmem:[%s12871_s3 + $0x140] ss:$8 sps:$4 sm:$0xff]   ;;  %v413_v7 = vmul.f32 %v405_v1, %v10360_v60 }
  0x50   : > { %1316 = vmatprep.subr.bf16.mxu0 %v9109_v16  ;;  %1567 = vmatprep.subr.bf16.mxu1 %v9112_v17  ;;  %v9159_v16 = vld [vmem:[%s12870_s2 + $0xdc] ss:$12 sps:$4 sm:$0xff]  }
  0x51   : > { %1405 = vmatprep.mubr.bf16.mxu1 %v10250_v18  ;;  %984 = vmatprep.mubr.bf16.mxu0 %v10182_v57  ;;  %v9162_v17 = vld [vmem:[%s12871_s3 + $0x154] ss:$8 sps:$4 sm:$0xff]  }
  0x53   : > { %1317 = vmatpush1.bf16.msra.mxu0 %v9107_v19  ;;  %1568 = vmatpush1.bf16.msra.mxu1 %v9110_v20  ;;  %v423_v19 = vmax.f32 %v415_v12, 0.0  ;;  %v425_v20 = vmax.f32 %v417_v13, 0.0  ;;  %v9195_v12 = vld [vmem:[%s12870_s2 + $0x16c] ss:$12 sps:$4 sm:$0xff]   ;;  %v9193_v13 = vld [vmem:[%s12870_s2 + $0x168] ss:$12 sps:$4 sm:$0xff]  }
  0x54   : > { %1318 = vmatprep.subr.bf16.mxu0 %v9116_v21  ;;  %1569 = vmatprep.subr.bf16.mxu1 %v9120_v22  ;;  %v9157_v21 = vld [vmem:[%s12870_s2 + $0xd8] ss:$12 sps:$4 sm:$0xff]  }
  0x55   : > { %v9160_v22 = vld [vmem:[%s12871_s3 + $0x150] ss:$8 sps:$4 sm:$0xff]  }
  0x56   : > { %985 = vmatmul.mubr.bf16.gmra.mrb[4].mxu0 %v10184_v58  ;;  %1406 = vmatmul.mubr.bf16.gmra.mrb[12].mxu1 %v10271_v24 }
  0x57   : > { %1319 = vmatpush1.bf16.msra.mxu0 %v9114_v23  ;;  %1570 = vmatpush1.bf16.msra.mxu1 %v9118_v25  ;;  %v10401_v23 = vrot.slane %v361_v55, %v345_v59  ;;  %v10403_v25 = vpack.c.bf16 %v425_v20, %v423_v19  ;;  %v9184_v55 = vld [vmem:[%s12871_s3 + $0x10] ss:$8 sps:$4 sm:$0xff]  }
  0x58   : > { %1320 = vmatprep.subr.bf16.mxu0 %v9123_v26  ;;  %1571 = vmatprep.subr.bf16.mxu1 %v9126_v27  ;;  %v406_v26 = vmul.f32 %v398_v10, %v10379_v8  ;;  %v408_v27 = vmul.f32 %v400_v11, %v10379_v8  ;;  %v7194_v59 = vld [vmem:[%s10337_s13 + $0x30] sm:$0xff]  ;;  %v9190_v11 = vld [vmem:[%s12871_s3 + $0x20] ss:$8 sps:$4 sm:$0xff]  }
  0x59   : > { %1346 = vmatprep.mubr.bf16.mxu0 %v10217_v6  ;;  %7420 = vmatprep.mubr.msk.bf16.mxu1 %vm1558_vm0, %v10403_v25  ;;  %v403_v0 = vunpack.c.h.bf16 %v7194_v59 }
  0x5a   : > { %v414_v35 = vadd.f32 %v406_v26, %v10401_v23  ;;  %v12893_v26 = vshll.u32 %v10217_v6, 16 }
  0x5b   : > { %1321 = vmatpush1.bf16.msra.mxu0 %v9121_v30  ;;  %1572 = vmatpush1.bf16.msra.mxu1 %v9124_v32  ;;  %v9165_v30 = vld [vmem:[%s12870_s2 + $0xf4] ss:$12 sps:$4 sm:$0xff]   ;;  %v9163_v32 = vld [vmem:[%s12870_s2 + $0xf0] ss:$12 sps:$4 sm:$0xff]   ;;  %v411_v5 = vmul.f32 %v403_v0, %v10360_v60  ;;  %v9208_v0 = vld [vmem:[%s12870_s2 + $0x318] ss:$12 sps:$4 sm:$0xff]  }
  0x5c   : > { %1322 = vmatprep.subr.bf16.mxu0 %v9129_v34  ;;  %1573 = vmatprep.subr.bf16.mxu1 %v9132_v36  ;;  %v9166_v34 = vld [vmem:[%s12871_s3 + $0x160] ss:$8 sps:$4 sm:$0xff]   ;;  %v416_v36 = vadd.f32 %v408_v27, %v10401_v23 }
  0x5f   : > { %1323 = vmatpush1.bf16.msra.mxu0 %v9127_v40  ;;  %1574 = vmatpush1.bf16.msra.mxu1 %v9130_v41  ;;  %v9171_v40 = vld [vmem:[%s12870_s2 + $0x10c] ss:$12 sps:$4 sm:$0xff]   ;;  %v9174_v41 = vld [vmem:[%s12871_s3 + $0x174] ss:$8 sps:$4 sm:$0xff]  }
  0x60   : > { %1324 = vmatprep.subr.bf16.mxu0 %v9135_v42  ;;  %1575 = vmatprep.subr.bf16.mxu1 %v9138_v43  ;;  %v9169_v42 = vld [vmem:[%s12870_s2 + $0x108] ss:$12 sps:$4 sm:$0xff]   ;;  %v9172_v43 = vld [vmem:[%s12871_s3 + $0x170] ss:$8 sps:$4 sm:$0xff]  }
  0x63   : > { %1325 = vmatpush1.bf16.msra.mxu0 %v9133_v45  ;;  %1576 = vmatpush1.bf16.msra.mxu1 %v9136_v46  ;;  %v422_v45 = vmax.f32 %v414_v35, 0.0  ;;  %v424_v46 = vmax.f32 %v416_v36, 0.0  ;;  %v9204_v35 = vld [vmem:[%s12870_s2 + $0x304] ss:$12 sps:$4 sm:$0xff]  }
  0x64   : > { %1326 = vmatprep.subr.bf16.mxu0 %v9141_v47  ;;  %1577 = vmatprep.subr.bf16.mxu1 %v9144_v48  ;;  %v9177_v47 = vld [vmem:[%s12870_s2 + $0x124] ss:$12 sps:$4 sm:$0xff]  }
  0x65   : > { %v9180_v48 = vld [vmem:[%s12871_s3 + $0x4] ss:$8 sps:$4 sm:$0xff]  }
  0x67   : > { %1327 = vmatpush1.bf16.msra.mxu0 %v9139_v50  ;;  %1578 = vmatpush1.bf16.msra.mxu1 %v9142_v51  ;;  %v9178_v50 = vld [vmem:[%s12871_s3] ss:$8 sps:$4 sm:$0xff]   ;;  %v10447_v51 = vpack.c.bf16 %v424_v46, %v422_v45 }
  0x68   : > { %1328 = vmatprep.subr.bf16.mxu0 %v9147_v52  ;;  %1579 = vmatprep.subr.bf16.mxu1 %v9150_v53  ;;  %v9183_v52 = vld [vmem:[%s12870_s2 + $0x13c] ss:$12 sps:$4 sm:$0xff]  }
  0x69   : > { %v9186_v53 = vld [vmem:[%s12871_s3 + $0x14] ss:$8 sps:$4 sm:$0xff]  }
  0x6b   : > { %1329 = vmatpush1.bf16.msra.mxu0 %v9145_v62  ;;  %1580 = vmatpush1.bf16.msra.mxu1 %v9148_v2  ;;  %v9192_v62 = vld [vmem:[%s12871_s3 + $0x24] ss:$8 sps:$4 sm:$0xff]   ;;  %v402_v2 = vunpack.c.l.bf16 %v7194_v59 }
  0x6c   : > { %1330 = vmatprep.subr.bf16.mxu0 %v9153_v3  ;;  %1581 = vmatprep.subr.bf16.mxu1 %v9156_v4  ;;  %v404_v3 = vunpack.c.l.bf16 %v7195_v61  ;;  %v9187_v4 = vld [vmem:[%s12870_s2 + $0x150] ss:$12 sps:$4 sm:$0xff]  }
  0x6e   : > { %v412_v10 = vmul.f32 %v404_v3, %v10379_v8 }
  0x6f   : > { %1331 = vmatpush1.bf16.msra.mxu0 %v9151_v9  ;;  %1582 = vmatpush1.bf16.msra.mxu1 %v9154_v15  ;;  %v410_v9 = vmul.f32 %v402_v2, %v10379_v8  ;;  %v9198_v15 = vld [vmem:[%s12871_s3 + $0x34] ss:$8 sps:$4 sm:$0xff]  }
  0x70   : > { %1332 = vmatprep.subr.bf16.mxu0 %v9159_v16  ;;  %1583 = vmatprep.subr.bf16.mxu1 %v9162_v17  ;;  %v419_v16 = vadd.f32 %v411_v5, %v10366_v63  ;;  %v421_v17 = vadd.f32 %v413_v7, %v10366_v63  ;;  %v420_v20 = vadd.f32 %v412_v10, %v10401_v23  ;;  %v9216_v2 = vld [vmem:[%s12870_s2 + $0x334] ss:$12 sps:$4 sm:$0xff]   ;;  %v9213_v5 = vld [vmem:[%s12871_s3 + $0x64] ss:$8 sps:$4 sm:$0xff]  }
  0x71   : > { %v418_v19 = vadd.f32 %v410_v9, %v10401_v23  ;;  %v9211_v7 = vld [vmem:[%s12871_s3 + $0x60] ss:$8 sps:$4 sm:$0xff]   ;;  %v9214_v9 = vld [vmem:[%s12870_s2 + $0x330] ss:$12 sps:$4 sm:$0xff]   ;;  %v9222_v10 = vld [vmem:[%s12870_s2 + $0x34c] ss:$12 sps:$4 sm:$0xff]  }
  0x72   : > { %v427_v27 = vmax.f32 %v419_v16, 0.0  ;;  %v9228_v16 = vld [vmem:[%s12870_s2 + $0x364] ss:$12 sps:$4 sm:$0xff]  }
  0x73   : > { %1333 = vmatpush1.bf16.msra.mxu0 %v9157_v21  ;;  %1584 = vmatpush1.bf16.msra.mxu1 %v9160_v22  ;;  %v10494_v21 = vld [vmem:[%s10337_s13] sm:$0xff]  ;;  %v10497_v22 = vld [vmem:[%s10337_s13 + $0x8] sm:$0xff] }
  0x74   : > { %1334 = vmatprep.subr.bf16.mxu0 %v9165_v30  ;;  %1585 = vmatprep.subr.bf16.mxu1 %v9168_v31  ;;  %v429_v30 = vmax.f32 %v421_v17, 0.0  ;;  %v426_v31 = vmax.f32 %v418_v19, 0.0  ;;  %v334_v36 = vunpack.c.h.bf16 %v10494_v21  ;;  %v9225_v17 = vld [vmem:[%s12871_s3 + $0x84] ss:$8 sps:$4 sm:$0xff]   ;;  %v9223_v19 = vld [vmem:[%s12871_s3 + $0x80] ss:$8 sps:$4 sm:$0xff]  }
  0x76   : > { %v354_v45 = vmul.f32 %v10360_v60, %v334_v36 }
  0x77   : > { %1335 = vmatpush1.bf16.msra.mxu0 %v9163_v32  ;;  %1586 = vmatpush1.bf16.msra.mxu1 %v9166_v34  ;;  %v428_v32 = vmax.f32 %v420_v20, 0.0  ;;  %v9196_v34 = vld [vmem:[%s12871_s3 + $0x30] ss:$8 sps:$4 sm:$0xff]   ;;  %v9226_v20 = vld [vmem:[%s12870_s2 + $0x360] ss:$12 sps:$4 sm:$0xff]  }
  0x78   : > { %1336 = vmatprep.subr.bf16.mxu0 %v9171_v40  ;;  %1587 = vmatprep.subr.bf16.mxu1 %v9174_v41  ;;  %v336_v40 = vunpack.c.h.bf16 %v10497_v22  ;;  %v9201_v41 = vld [vmem:[%s12871_s3 + $0x44] ss:$8 sps:$4 sm:$0xff]  }
  0x7a   : > { %v356_v46 = vmul.f32 %v10360_v60, %v336_v40 }
  0x7b   : > { %1337 = vmatpush1.bf16.msra.mxu0 %v9169_v42  ;;  %1588 = vmatpush1.bf16.msra.mxu1 %v9172_v43  ;;  %v10511_v42 = vpack.c.bf16 %v429_v30, %v427_v27  ;;  %v10513_v43 = vpack.c.bf16 %v428_v32, %v426_v31  ;;  %v9234_v27 = vld [vmem:[%s12870_s2 + $0x37c] ss:$12 sps:$4 sm:$0xff]   ;;  %v333_v30 = vunpack.c.l.bf16 %v10494_v21  ;;  %v335_v31 = vunpack.c.l.bf16 %v10497_v22  ;;  %v331_v32 = vld [vmem:[%s10337_s13 + $0x10] sm:$0xff]  ;;  %v9232_v21 = vld [vmem:[%s12870_s2 + $0x378] ss:$12 sps:$4 sm:$0xff]  }
  0x7c   : > { %1338 = vmatprep.subr.bf16.mxu0 %v9177_v47  ;;  %1742 = vmatprep.subr.bf16.mxu1 %v9180_v48  ;;  %v12894_v47 = vshrl.u32 %v10217_v6, 16  ;;  %v9199_v48 = vld [vmem:[%s12871_s3 + $0x40] ss:$8 sps:$4 sm:$0xff]   ;;  %v338_v36 = vunpack.c.h.bf16 %v331_v32 }
  0x7d   : > { %v353_v22 = vmul.f32 %v10379_v8, %v333_v30  ;;  %v9250_v30 = vld [vmem:[%s12870_s2 + $0x3c8] ss:$12 sps:$4 sm:$0xff]  }
  0x7e   : > { %1598 = vmatmul.mubr.bf16.vlgmr.msra.gmra.mrb[16].mxu1 %v10447_v51 }
  0x7f   : > { %1339 = vmatpush1.bf16.msra.mxu0 %v9175_v49  ;;  %1743 = vmatpush1.bf16.msra.mxu1 %v9178_v50  ;;  %v9202_v49 = vld [vmem:[%s12870_s2 + $0x300] ss:$12 sps:$4 sm:$0xff]   ;;  %v1879_v50 = vrot.slane %v12893_v26, 1 }
  0x80   : > { %1340 = vmatprep.subr.bf16.mxu0 %v9183_v52  ;;  %1744 = vmatprep.subr.bf16.mxu1 %v9186_v53  ;;  %v12892_v52 = vshll.u32 %v10250_v18, 16  ;;  %v9210_v53 = vld [vmem:[%s12870_s2 + $0x31c] ss:$12 sps:$4 sm:$0xff]   ;;  %v11379_v26 = vld [vmem:[%s10337_s13 + $0x60] sm:$0xff] }
  0x81   : > { %7421 = vmatprep.mubr.msk.bf16.mxu1 %vm1558_vm0, %v10511_v42 }
  0x82   : > { %v10548_v1 = vrot.slane %v12892_v52, 1 }
  0x83   : > { %1341 = vmatpush1.bf16.msra.mxu0 %v9181_v54  ;;  %1745 = vmatpush1.bf16.msra.mxu1 %v9184_v55  ;;  %v374_v54 = vadd.f32 %v10366_v63, %v354_v45  ;;  %v376_v55 = vadd.f32 %v10366_v63, %v356_v46  ;;  %v9229_v46 = vld [vmem:[%s12871_s3 + $0x90] ss:$8 sps:$4 sm:$0xff]  }
  0x84   : > { %1342 = vmatprep.subr.bf16.mxu0 %v9189_v56  ;;  %1746 = vmatprep.subr.bf16.mxu1 %v9192_v62  ;;  %v9207_v56 = vld [vmem:[%s12871_s3 + $0x54] ss:$8 sps:$4 sm:$0xff]   ;;  %v9205_v62 = vld [vmem:[%s12871_s3 + $0x50] ss:$8 sps:$4 sm:$0xff]  }
  0x85   : > { %v382_v59 = vmax.f32 %v374_v54, 0.0  ;;  %v384_v61 = vmax.f32 %v376_v55, 0.0  ;;  %v9237_v54 = vld [vmem:[%s12871_s3 + $0xa4] ss:$8 sps:$4 sm:$0xff]   ;;  %v358_v55 = vmul.f32 %v10360_v60, %v338_v36 }
  0x86   : > { %1608 = vmatmul.mubr.bf16.gmra.mrb[20].mxu1 %v10513_v43  ;;  %v9247_v36 = vld [vmem:[%s12870_s2 + $0x3c0] ss:$12 sps:$4 sm:$0xff]  }
  0x87   : > { %1343 = vmatpush1.bf16.msra.mxu0 %v9187_v4  ;;  %1747 = vmatpush1.bf16.msra.mxu1 %v9190_v11  ;;  %v10553_v3 = vpack.c.bf16 %v384_v61, %v382_v59  ;;  %v1880_v4 = vor.u32 %v1879_v50, %v12894_v47 }
  0x88   : > { %1344 = vmatprep.subr.bf16.mxu0 %v9195_v12  ;;  %1748 = vmatprep.subr.bf16.mxu1 %v9198_v15  ;;  %v9219_v12 = vld [vmem:[%s12871_s3 + $0x74] ss:$8 sps:$4 sm:$0xff]  }
  0x89   : > { %7446 = vmatprep.mubr.msk.bf16.mxu1 %vm1558_vm0, %v10553_v3  ;;  %v10573_v11 = vsel %vm1861_vm1, %v1880_v4, %v10548_v1  ;;  %v9220_v15 = vld [vmem:[%s12870_s2 + $0x348] ss:$12 sps:$4 sm:$0xff]  }
  0x8b   : > { %1345 = vmatpush1.bf16.msra.mxu0 %v9193_v13  ;;  %1749 = vmatpush1.bf16.msra.mxu1 %v9196_v34  ;;  %v9217_v13 = vld [vmem:[%s12871_s3 + $0x70] ss:$8 sps:$4 sm:$0xff]  }
  0x8c   : > { %2152 = vmatprep.subr.bf16.mxu0 %v9204_v35  ;;  %1750 = vmatprep.subr.bf16.mxu1 %v9201_v41  ;;  %v332_v34 = vld [vmem:[%s10337_s13 + $0x18] sm:$0x11]  ;;  %v337_v41 = vunpack.c.l.bf16 %v331_v32 }
  0x8d   : > { %v9231_v35 = vld [vmem:[%s12871_s3 + $0x94] ss:$8 sps:$4 sm:$0xff]   ;;  %v340_v40 = vunpack.c.h.bf16 %v332_v34  ;;  %v339_v45 = vunpack.c.l.bf16 %v332_v34 }
  0x8e   : > { %1347 = vmatmul.mubr.bf16.vlgmr.msra.gmra.mrb[0].mxu0 %v10239_v14 }
  0x8f   : > { %2153 = vmatpush1.bf16.msra.mxu0 %v9202_v49  ;;  %1356 = vmatprep.mubr.bf16.mxu0 %v10250_v18  ;;  %v357_v49 = vmul.f32 %v10379_v8, %v337_v41  ;;  %v359_v50 = vmul.f32 %v10379_v8, %v339_v45  ;;  %v9251_v41 = vld [vmem:[%s12870_s2 + $0x308] ss:$12 sps:$4 sm:$0xff]  }
  0x90   : > { %1751 = vmatpush1.bf16.msra.mxu1 %v9199_v48  ;;  %2154 = vmatprep.subr.bf16.mxu0 %v9210_v53  ;;  %v355_v48 = vmul.f32 %v10379_v8, %v335_v31  ;;  %v9240_v53 = vld [vmem:[%s12870_s2 + $0x394] ss:$12 sps:$4 sm:$0xff]  }
  0x91   : > { %1752 = vmatprep.subr.bf16.mxu1 %v9207_v56  ;;  %v360_v56 = vmul.f32 %v10360_v60, %v340_v40  ;;  %v377_v59 = vadd.f32 %v10401_v23, %v357_v49  ;;  %v379_v61 = vadd.f32 %v10401_v23, %v359_v50  ;;  %v9252_v50 = vld [vmem:[%s12870_s2 + $0x3d8] ss:$12 sps:$4 sm:$0xff]  }
  0x92   : > { %v375_v4 = vadd.f32 %v10401_v23, %v355_v48 }
  0x93   : > { %2155 = vmatpush1.bf16.msra.mxu0 %v9208_v0  ;;  %v9238_v0 = vld [vmem:[%s12870_s2 + $0x390] ss:$12 sps:$4 sm:$0xff]  }
  0x94   : > { %1753 = vmatpush1.bf16.msra.mxu1 %v9205_v62  ;;  %2156 = vmatprep.subr.bf16.mxu0 %v9216_v2  ;;  %v9235_v62 = vld [vmem:[%s12871_s3 + $0xa0] ss:$8 sps:$4 sm:$0xff]   ;;  %v373_v2 = vadd.f32 %v10401_v23, %v353_v22 }
  0x95   : > { %1754 = vmatprep.subr.bf16.mxu1 %v9213_v5  ;;  %v385_v5 = vmax.f32 %v377_v59, 0.0  ;;  %v9255_v22 = vld [vmem:[%s12870_s2 + $0x3e0] ss:$12 sps:$4 sm:$0xff]   ;;  %v9261_v59 = vld [vmem:[%s12870_s2 + $0x338] ss:$12 sps:$4 sm:$0xff]  }
  0x96   : > { %1357 = vmatmul.mubr.bf16.gmra.mrb[4].mxu0 %v10271_v24 }
  0x97   : > { %2157 = vmatpush1.bf16.msra.mxu0 %v9214_v9  ;;  %2184 = vmatprep.mubr.bf16.mxu0 %v10573_v11  ;;  %v9246_v9 = vld [vmem:[%s12870_s2 + $0x3ac] ss:$12 sps:$4 sm:$0xff]  }
  0x98   : > { %1755 = vmatpush1.bf16.msra.mxu1 %v9211_v7  ;;  %2158 = vmatprep.subr.bf16.mxu0 %v9222_v10  ;;  %v387_v7 = vmax.f32 %v379_v61, 0.0  ;;  %v9243_v10 = vld [vmem:[%s12871_s3 + $0xb4] ss:$8 sps:$4 sm:$0xff]   ;;  %v9264_v61 = vld [vmem:[%s12870_s2 + $0x40c] ss:$12 sps:$4 sm:$0xff]  }
  0x99   : > { %1756 = vmatprep.subr.bf16.mxu1 %v9219_v12  ;;  %v378_v12 = vadd.f32 %v10366_v63, %v358_v55  ;;  %v9260_v55 = vld [vmem:[%s12870_s2 + $0x3f8] ss:$12 sps:$4 sm:$0xff]  }
  0x9b   : > { %2159 = vmatpush1.bf16.msra.mxu0 %v9220_v15  ;;  %v9241_v15 = vld [vmem:[%s12871_s3 + $0xb0] ss:$8 sps:$4 sm:$0xff]   ;;  %v386_v31 = vmax.f32 %v378_v12, 0.0 }
  0x9c   : > { %1757 = vmatpush1.bf16.msra.mxu1 %v9217_v13  ;;  %2160 = vmatprep.subr.bf16.mxu0 %v9228_v16  ;;  %v380_v13 = vadd.f32 %v10366_v63, %v360_v56  ;;  %v9244_v16 = vld [vmem:[%s12870_s2 + $0x3a8] ss:$12 sps:$4 sm:$0xff]   ;;  %v9257_v56 = vld [vmem:[%s12870_s2 + $0x3f0] ss:$12 sps:$4 sm:$0xff]   ;;  %v9272_v12 = vld [vmem:[%s12870_s2 + $0x438] ss:$12 sps:$4 sm:$0xff]  }
  0x9d   : > { %1758 = vmatprep.subr.bf16.mxu1 %v9225_v17  ;;  %v9249_v17 = vld [vmem:[%s12870_s2 + $0x3c4] ss:$12 sps:$4 sm:$0xff]  }
  0x9e   : > { %v388_v32 = vmax.f32 %v380_v13, 0.0  ;;  %v9276_v13 = vld [vmem:[%s12870_s2 + $0x380] ss:$12 sps:$4 sm:$0xff]  }
  0x9f   : > { %2161 = vmatpush1.bf16.msra.mxu0 %v9226_v20  ;;  %v383_v20 = vmax.f32 %v375_v4, 0.0  ;;  %v9269_v4 = vld [vmem:[%s12870_s2 + $0x424] ss:$12 sps:$4 sm:$0xff]  }
  0xa0   : > { %1759 = vmatpush1.bf16.msra.mxu1 %v9223_v19  ;;  %2162 = vmatprep.subr.bf16.mxu0 %v9234_v27  ;;  %v381_v19 = vmax.f32 %v373_v2, 0.0  ;;  %v10653_v27 = vpack.c.bf16 %v387_v7, %v385_v5  ;;  %v10678_v48 = vpack.c.bf16 %v388_v32, %v386_v31  ;;  %v9266_v2 = vld [vmem:[%s12870_s2 + $0x350] ss:$12 sps:$4 sm:$0xff]   ;;  %v9270_v5 = vld [vmem:[%s12870_s2 + $0x428] ss:$12 sps:$4 sm:$0xff]  }
  0xa1   : > { %1760 = vmatprep.subr.bf16.mxu1 %v9231_v35  ;;  %v9267_v7 = vld [vmem:[%s12870_s2 + $0x420] ss:$12 sps:$4 sm:$0xff]  }
  0xa2   : > { %v2307_v34 = vshrl.u32 %v10653_v27, 16  ;;  %v2293_v35 = vshll.u32 %v10653_v27, 16  ;;  %v10663_v40 = vpack.c.bf16 %v383_v20, %v381_v19  ;;  %v12891_v19 = vshrl.u32 %v10239_v14, 16  ;;  %v9277_v20 = vld [vmem:[%s12870_s2 + $0x450] ss:$12 sps:$4 sm:$0xff]  }
  0xa3   : > { %2163 = vmatpush1.bf16.msra.mxu0 %v9232_v21  ;;  %v9284_v32 = vld [vmem:[%s12870_s2 + $0x46c] ss:$12 sps:$4 sm:$0xff]  }
  0xa4   : > { %1761 = vmatpush1.bf16.msra.mxu1 %v9229_v46  ;;  %2164 = vmatprep.subr.bf16.mxu0 %v9240_v53  ;;  %v5062_v45 = vrot.slane %v2307_v34, 2  ;;  %v9254_v46 = vld [vmem:[%s12870_s2 + $0x3dc] ss:$12 sps:$4 sm:$0xff]   ;;  %v5063_v21 = vrot.slane %v2293_v35, 3  ;;  %v9256_v53 = vld [vmem:[%s12870_s2 + $0x320] ss:$12 sps:$4 sm:$0xff]  }
  0xa5   : > { %1762 = vmatprep.subr.bf16.mxu1 %v9237_v54  ;;  %v9259_v54 = vld [vmem:[%s12870_s2 + $0x3f4] ss:$12 sps:$4 sm:$0xff]  }
  0xa6   : > { %v10680_v49 = vor.u32 %v5063_v21, %v5062_v45  ;;  %v12895_v21 = vshrl.u32 %v10250_v18, 16 }
  0xa7   : > { %2165 = vmatpush1.bf16.msra.mxu0 %v9238_v0  ;;  %v9262_v0 = vld [vmem:[%s12870_s2 + $0x408] ss:$12 sps:$4 sm:$0xff]  }
  0xa8   : > { %1763 = vmatpush1.bf16.msra.mxu1 %v9235_v62  ;;  %2166 = vmatprep.subr.bf16.mxu0 %v9246_v9  ;;  %v9265_v62 = vld [vmem:[%s12870_s2 + $0x410] ss:$12 sps:$4 sm:$0xff]   ;;  %v9271_v9 = vld [vmem:[%s12870_s2 + $0x368] ss:$12 sps:$4 sm:$0xff]  }
  0xa9   : > { %1764 = vmatprep.subr.bf16.mxu1 %v9243_v10  ;;  %v9274_v10 = vld [vmem:[%s12870_s2 + $0x43c] ss:$12 sps:$4 sm:$0xff]  }
  0xab   : > { %2167 = vmatpush1.bf16.msra.mxu0 %v9244_v16  ;;  %v9279_v16 = vld [vmem:[%s12870_s2 + $0x454] ss:$12 sps:$4 sm:$0xff]  }
  0xac   : > { %1765 = vmatpush1.bf16.msra.mxu1 %v9241_v15  ;;  %2168 = vmatprep.subr.bf16.mxu0 %v9249_v17  ;;  %v12890_v15 = vshll.u32 %v10239_v14, 16  ;;  %v9280_v17 = vld [vmem:[%s12870_s2 + $0x458] ss:$12 sps:$4 sm:$0xff]  }
  0xad   : > { %8674 = vmatprep.subr.bf16.mxu1 %v9250_v30  ;;  %v9281_v30 = vld [vmem:[%s12870_s2 + $0x398] ss:$12 sps:$4 sm:$0xff]  }
  0xae   : > { %v1867_v31 = vrot.slane %v12890_v15, 1 }
  0xaf   : > { %1775 = vmatmul.mubr.bf16.vlgmr.msra.gmra.mrb[16].mxu1 %v10663_v40  ;;  %2169 = vmatpush1.bf16.msra.mxu0 %v9247_v36  ;;  %v9285_v36 = vld [vmem:[%s12870_s2 + $0x470] ss:$12 sps:$4 sm:$0xff]  }
  0xb0   : > { %8675 = vmatpush3.bf16.msra.mxu1 %v9251_v41  ;;  %2170 = vmatprep.subr.bf16.mxu0 %v9254_v46  ;;  %v9282_v41 = vld [vmem:[%s12870_s2 + $0x468] ss:$12 sps:$4 sm:$0xff]   ;;  %v1868_v45 = vor.u32 %v1867_v31, %v12891_v19  ;;  %v1872_v46 = vrot.slane %v1870_v29, 1 }
  0xb1   : > { %8676 = vmatprep.subr.bf16.mxu1 %v9255_v22  ;;  %7447 = vmatprep.mubr.msk.bf16.mxu1 %vm1558_vm0, %v10678_v48  ;;  %v9286_v22 = vld [vmem:[%s12870_s2 + $0x3b0] ss:$12 sps:$4 sm:$0xff]  }
  0xb2   : > { %v1873_v29 = vsel %vm1861_vm1, %v1868_v45, %v1872_v46  ;;  %v9307_v31 = vld [vmem:[%s12871_s3 + $0x1b4] ss:$8 sps:$4 sm:$0xff]   ;;  %v9313_v45 = vld [vmem:[%s12871_s3 + $0x1c4] ss:$8 sps:$4 sm:$0xff]  }
  0xb3   : > { %2171 = vmatpush1.bf16.msra.mxu0 %v9252_v50  ;;  %v9292_v50 = vld [vmem:[%s12870_s2 + $0x484] ss:$12 sps:$4 sm:$0xff]  }
  0xb4   : > { %8677 = vmatpush3.bf16.msra.mxu1 %v9256_v53  ;;  %2172 = vmatprep.subr.bf16.mxu0 %v9259_v54  ;;  %v9289_v53 = vld [vmem:[%s12871_s3 + $0x184] ss:$8 sps:$4 sm:$0xff]   ;;  %v12888_v54 = vshll.u32 %v10553_v3, 16 }
  0xb5   : > { %8678 = vmatprep.subr.bf16.mxu1 %v9260_v55  ;;  %v9287_v55 = vld [vmem:[%s12871_s3 + $0x180] ss:$8 sps:$4 sm:$0xff]  }
  0xb7   : > { %2173 = vmatpush1.bf16.msra.mxu0 %v9257_v56  ;;  %1785 = vmatmul.mubr.bf16.gmra.mrb[20].mxu1 %v10653_v27  ;;  %v9290_v56 = vld [vmem:[%s12870_s2 + $0x480] ss:$12 sps:$4 sm:$0xff]  }
  0xb8   : > { %8679 = vmatpush3.bf16.msra.mxu1 %v9261_v59  ;;  %2174 = vmatprep.subr.bf16.mxu0 %v9264_v61  ;;  %v12889_v59 = vshrl.u32 %v10553_v3, 16  ;;  %v9298_v61 = vld [vmem:[%s12870_s2 + $0x49c] ss:$12 sps:$4 sm:$0xff]  }
  0xb9   : > { %8680 = vmatprep.subr.bf16.mxu1 %v9265_v62  ;;  %2235 = vmatprep.mubr.bf16.mxu1 %v10573_v11  ;;  %v9275_v11 = vld [vmem:[%s12870_s2 + $0x440] ss:$12 sps:$4 sm:$0xff]   ;;  %v9295_v62 = vld [vmem:[%s12871_s3 + $0x194] ss:$8 sps:$4 sm:$0xff]  }
  0xbb   : > { %2175 = vmatpush1.bf16.msra.mxu0 %v9262_v0  ;;  %v1891_v0 = vor.u32 %v12895_v21, %v10548_v1  ;;  %v9304_v1 = vld [vmem:[%s12870_s2 + $0x4b4] ss:$12 sps:$4 sm:$0xff]  }
  0xbc   : > { %8681 = vmatpush3.bf16.msra.mxu1 %v9266_v2  ;;  %2176 = vmatprep.subr.bf16.mxu0 %v9269_v4  ;;  %v9293_v2 = vld [vmem:[%s12871_s3 + $0x190] ss:$8 sps:$4 sm:$0xff]   ;;  %v2301_v4 = vrot.slane %v12888_v54, 1 }
  0xbd   : > { %8682 = vmatprep.subr.bf16.mxu1 %v9270_v5  ;;  %v12884_v5 = vshll.u32 %v10678_v48, 16 }
  0xbf   : > { %2177 = vmatpush1.bf16.msra.mxu0 %v9267_v7  ;;  %v9296_v7 = vld [vmem:[%s12870_s2 + $0x498] ss:$12 sps:$4 sm:$0xff]  }
  0xc0   : > { %8683 = vmatpush3.bf16.msra.mxu1 %v9271_v9  ;;  %2178 = vmatprep.subr.bf16.mxu0 %v9274_v10  ;;  %v9301_v9 = vld [vmem:[%s12871_s3 + $0x1a4] ss:$8 sps:$4 sm:$0xff]   ;;  %v9302_v10 = vld [vmem:[%s12870_s2 + $0x4b0] ss:$12 sps:$4 sm:$0xff]  }
  0xc1   : > { %8684 = vmatprep.subr.bf16.mxu1 %v9275_v11  ;;  %v9299_v11 = vld [vmem:[%s12871_s3 + $0x1a0] ss:$8 sps:$4 sm:$0xff]  }
  0xc3   : > { %2179 = vmatpush1.bf16.msra.mxu0 %v9272_v12  ;;  %v2302_v12 = vor.u32 %v2301_v4, %v12889_v59  ;;  %v9331_v4 = vld [vmem:[%s12871_s3 + $0x1f4] ss:$8 sps:$4 sm:$0xff]  }
  0xc4   : > { %8685 = vmatpush3.bf16.msra.mxu1 %v9276_v13  ;;  %2180 = vmatprep.subr.bf16.mxu0 %v9279_v16  ;;  %v10823_v13 = vrot.slane %v12884_v5, 1  ;;  %v10826_v16 = vld [vmem:[%s10092_s16 + $0x40] sm:$0xff] }
  0xc5   : > { %8686 = vmatprep.subr.bf16.mxu1 %v9280_v17  ;;  %v1888_v17 = vor.u32 %v1886_v28, %v1872_v46  ;;  %v9305_v28 = vld [vmem:[%s12871_s3 + $0x1b0] ss:$8 sps:$4 sm:$0xff]   ;;  %v9311_v46 = vld [vmem:[%s12871_s3 + $0x1c0] ss:$8 sps:$4 sm:$0xff]  }
  0xc7   : > { %2181 = vmatpush1.bf16.msra.mxu0 %v9277_v20  ;;  %v10831_v20 = vld [vmem:[%s10092_s16 + $0x48] sm:$0xff] }
  0xc8   : > { %8687 = vmatpush3.bf16.msra.mxu1 %v9281_v30  ;;  %2182 = vmatprep.subr.bf16.mxu0 %v9284_v32  ;;  %v9310_v30 = vld [vmem:[%s12870_s2 + $0x4cc] ss:$12 sps:$4 sm:$0xff]   ;;  %v2306_v32 = vsel %vm1861_vm1, %v2302_v12, %v10823_v13  ;;  %v10843_v24 = vcombine.high %v10826_v16, %v10831_v20  ;;  %v9335_v12 = vld [vmem:[%s12871_s3 + $0x200] ss:$8 sps:$4 sm:$0xff]  }
  0xc9   : > { %8688 = vmatprep.subr.bf16.mxu1 %v9285_v36  ;;  %v9308_v36 = vld [vmem:[%s12870_s2 + $0x4c8] ss:$12 sps:$4 sm:$0xff]  }
  0xcb   : > { %2183 = vmatpush1.bf16.msra.mxu0 %v9282_v41  ;;  %v9316_v41 = vld [vmem:[%s12870_s2 + $0x4e4] ss:$12 sps:$4 sm:$0xff]  }
  0xcc   : > { %8689 = vmatpush3.bf16.msra.mxu1 %v9286_v22  ;;  %2874 = vmatprep.subr.bf16.mxu0 %v9292_v50  ;;  %v9314_v22 = vld [vmem:[%s12870_s2 + $0x4e0] ss:$12 sps:$4 sm:$0xff]   ;;  %v9322_v50 = vld [vmem:[%s12870_s2 + $0x4fc] ss:$12 sps:$4 sm:$0xff]  }
  0xcd   : > { %2441 = vmatprep.subr.bf16.mxu1 %v9289_v53  ;;  %v9319_v53 = vld [vmem:[%s12871_s3 + $0x1d4] ss:$8 sps:$4 sm:$0xff]  }
  0xce   : > { %2185 = vmatmul.mubr.bf16.vlgmr.msra.gmra.mrb[0].mxu0 %v1873_v29 }
  0xcf   : > { %2236 = vmatmul.mubr.bf16.vlgmr.msra.gmra.mrb[24].mxu1 %v1873_v29  ;;  %2875 = vmatpush1.bf16.msra.mxu0 %v9290_v56  ;;  %v9320_v29 = vld [vmem:[%s12870_s2 + $0x4f8] ss:$12 sps:$4 sm:$0xff]   ;;  %v9328_v56 = vld [vmem:[%s12870_s2 + $0x514] ss:$12 sps:$4 sm:$0xff]  }
  0xd0   : > { %2442 = vmatpush1.bf16.msra.mxu1 %v9287_v55  ;;  %2876 = vmatprep.subr.bf16.mxu0 %v9298_v61  ;;  %v9317_v55 = vld [vmem:[%s12871_s3 + $0x1d0] ss:$8 sps:$4 sm:$0xff]   ;;  %v9325_v61 = vld [vmem:[%s12871_s3 + $0x1e4] ss:$8 sps:$4 sm:$0xff]  }
  0xd1   : > { %2443 = vmatprep.subr.bf16.mxu1 %v9295_v62  ;;  %2243 = vmatprep.mubr.bf16.mxu1 %v1891_v0  ;;  %v9326_v62 = vld [vmem:[%s12870_s2 + $0x510] ss:$12 sps:$4 sm:$0xff]  }
  0xd2   : > { %2194 = vmatprep.mubr.bf16.mxu0 %v1891_v0  ;;  %v9323_v0 = vld [vmem:[%s12871_s3 + $0x1e0] ss:$8 sps:$4 sm:$0xff]  }
  0xd3   : > { %2877 = vmatpush1.bf16.msra.mxu0 %v9296_v7  ;;  %v9332_v7 = vld [vmem:[%s12870_s2 + $0x528] ss:$12 sps:$4 sm:$0xff]  }
  0xd4   : > { %2444 = vmatpush1.bf16.msra.mxu1 %v9293_v2  ;;  %2878 = vmatprep.subr.bf16.mxu0 %v9304_v1  ;;  %v9334_v2 = vld [vmem:[%s12870_s2 + $0x52c] ss:$12 sps:$4 sm:$0xff]  }
  0xd5   : > { %2445 = vmatprep.subr.bf16.mxu1 %v9301_v9  ;;  %v9329_v1 = vld [vmem:[%s12871_s3 + $0x1f0] ss:$8 sps:$4 sm:$0xff]  }
  0xd6   : > { %2195 = vmatmul.mubr.bf16.gmra.mrb[4].mxu0 %v1888_v17  ;;  %v9340_v9 = vld [vmem:[%s12870_s2 + $0x544] ss:$12 sps:$4 sm:$0xff]  }
  0xd7   : > { %2244 = vmatmul.mubr.bf16.gmra.mrb[28].mxu1 %v1888_v17  ;;  %2879 = vmatpush1.bf16.msra.mxu0 %v9302_v10  ;;  %v9337_v10 = vld [vmem:[%s12871_s3 + $0x204] ss:$8 sps:$4 sm:$0xff]   ;;  %v9346_v17 = vld [vmem:[%s12870_s2 + $0x55c] ss:$12 sps:$4 sm:$0xff]  }
  0xd8   : > { %2446 = vmatpush1.bf16.msra.mxu1 %v9299_v11  ;;  %2880 = vmatprep.subr.bf16.mxu0 %v9310_v30  ;;  %v9338_v11 = vld [vmem:[%s12870_s2 + $0x540] ss:$12 sps:$4 sm:$0xff]   ;;  %v9343_v30 = vld [vmem:[%s12871_s3 + $0x214] ss:$8 sps:$4 sm:$0xff]  }
  0xd9   : > { %2447 = vmatprep.subr.bf16.mxu1 %v9307_v31  ;;  %7608 = vmatprep.mubr.msk.bf16.mxu1 %vm1558_vm0, %v2306_v32  ;;  %v9344_v31 = vld [vmem:[%s12870_s2 + $0x558] ss:$12 sps:$4 sm:$0xff]  }
  0xda   : > { %2906 = vmatprep.mubr.bf16.mxu0 %v10843_v24  ;;  %v9341_v32 = vld [vmem:[%s12871_s3 + $0x210] ss:$8 sps:$4 sm:$0xff]  }
  0xdb   : > { %2881 = vmatpush1.bf16.msra.mxu0 %v9308_v36  ;;  %v12882_v36 = vshll.u32 %v10663_v40, 16 }
  0xdc   : > { %2448 = vmatpush1.bf16.msra.mxu1 %v9305_v28  ;;  %2882 = vmatprep.subr.bf16.mxu0 %v9316_v41  ;;  %v9352_v28 = vld [vmem:[%s12870_s2 + $0x574] ss:$12 sps:$4 sm:$0xff]   ;;  %v9349_v41 = vld [vmem:[%s12871_s3 + $0x224] ss:$8 sps:$4 sm:$0xff]  }
  0xdd   : > { %2449 = vmatprep.subr.bf16.mxu1 %v9313_v45  ;;  %v10933_v45 = vld [vmem:[%s10092_s16] sm:$0xff] }
  0xdf   : > { %2883 = vmatpush1.bf16.msra.mxu0 %v9314_v22  ;;  %v12880_v22 = vshll.u32 %v10933_v45, 16 }
  0xe0   : > { %2450 = vmatpush1.bf16.msra.mxu1 %v9311_v46  ;;  %2884 = vmatprep.subr.bf16.mxu0 %v9322_v50  ;;  %v12881_v46 = vshrl.u32 %v10933_v45, 16  ;;  %v10938_v50 = vld [vmem:[%s10092_s16 + $0x8] sm:$0xff] }
  0xe1   : > { %2451 = vmatprep.subr.bf16.mxu1 %v9319_v53  ;;  %v12878_v53 = vshll.u32 %v10938_v50, 16 }
  0xe3   : > { %2885 = vmatpush1.bf16.msra.mxu0 %v9320_v29  ;;  %v12879_v29 = vshrl.u32 %v10938_v50, 16 }
  0xe4   : > { %2452 = vmatpush1.bf16.msra.mxu1 %v9317_v55  ;;  %2886 = vmatprep.subr.bf16.mxu0 %v9328_v56  ;;  %v4552_v55 = vshrl.u32 %v10826_v16, 16  ;;  %v4555_v56 = vshll.u32 %v10826_v16, 16 }
  0xe5   : > { %2453 = vmatprep.subr.bf16.mxu1 %v9325_v61  ;;  %v9350_v61 = vld [vmem:[%s12870_s2 + $0x570] ss:$12 sps:$4 sm:$0xff]  }
  0xe7   : > { %2887 = vmatpush1.bf16.msra.mxu0 %v9326_v62  ;;  %v12883_v62 = vshrl.u32 %v10663_v40, 16 }
  0xe8   : > { %2454 = vmatpush1.bf16.msra.mxu1 %v9323_v0  ;;  %2888 = vmatprep.subr.bf16.mxu0 %v9334_v2  ;;  %v4561_v0 = vshll.u32 %v10831_v20, 16  ;;  %v4565_v2 = vshrl.u32 %v10831_v20, 16 }
  0xe9   : > { %2455 = vmatprep.subr.bf16.mxu1 %v9331_v4  ;;  %v9347_v4 = vld [vmem:[%s12871_s3 + $0x220] ss:$8 sps:$4 sm:$0xff]  }
  0xeb   : > { %2889 = vmatpush1.bf16.msra.mxu0 %v9332_v7  ;;  %v9358_v7 = vld [vmem:[%s12870_s2 + $0x58c] ss:$12 sps:$4 sm:$0xff]  }
  0xec   : > { %2456 = vmatpush1.bf16.msra.mxu1 %v9329_v1  ;;  %2890 = vmatprep.subr.bf16.mxu0 %v9340_v9  ;;  %v2290_v1 = vrot.slane %v12882_v36, 1  ;;  %v9355_v9 = vld [vmem:[%s12871_s3 + $0x234] ss:$8 sps:$4 sm:$0xff]  }
  0xed   : > { %2457 = vmatprep.subr.bf16.mxu1 %v9337_v10  ;;  %v2504_v10 = vrot.slane %v12881_v46, 4  ;;  %v11006_v36 = vld [vmem:[%s10092_s16 + $0x50] sm:$0xff] }
  0xef   : > { %2891 = vmatpush1.bf16.msra.mxu0 %v9338_v11  ;;  %v2507_v11 = vrot.slane %v12880_v22, 5 }
  0xf0   : > { %2458 = vmatpush1.bf16.msra.mxu1 %v9335_v12  ;;  %2892 = vmatprep.subr.bf16.mxu0 %v9346_v17  ;;  %v10967_v12 = vrot.slane %v12878_v53, 5  ;;  %v2517_v17 = vrot.slane %v12879_v29, 4  ;;  %v9361_v53 = vld [vmem:[%s12870_s2 + $0x5a4] ss:$12 sps:$4 sm:$0xff]   ;;  %v9367_v29 = vld [vmem:[%s12870_s2 + $0x560] ss:$12 sps:$4 sm:$0xff]  }
  0xf1   : > { %2459 = vmatprep.subr.bf16.mxu1 %v9343_v30  ;;  %v4554_v30 = vrot.slane %v4552_v55, 4  ;;  %v2291_v55 = vor.u32 %v2290_v1, %v12883_v62  ;;  %v9937_v62 = vld [vmem:[%s10092_s16 + $0x28] sm:$0xff] }
  0xf2   : > { %v1794_v5 = vmax.bf16 %v9937_v62, %v10938_v50 }
  0xf3   : > { %2893 = vmatpush1.bf16.msra.mxu0 %v9344_v31  ;;  %v4557_v31 = vrot.slane %v4555_v56, 5  ;;  %v2295_v56 = vrot.slane %v2293_v35, 1  ;;  %v2518_v35 = vor.u32 %v2517_v17, %v10967_v12 }
  0xf4   : > { %2460 = vmatpush1.bf16.msra.mxu1 %v9341_v32  ;;  %2894 = vmatprep.subr.bf16.mxu0 %v9352_v28  ;;  %v9356_v32 = vld [vmem:[%s12870_s2 + $0x588] ss:$12 sps:$4 sm:$0xff]   ;;  %v10974_v28 = vrot.slane %v4561_v0, 5 }
  0xf5   : > { %2461 = vmatprep.subr.bf16.mxu1 %v9349_v41  ;;  %v4567_v41 = vrot.slane %v4565_v2, 4  ;;  %v9362_v0 = vld [vmem:[%s12870_s2 + $0x548] ss:$12 sps:$4 sm:$0xff]   ;;  %v12887_v2 = vshrl.u32 %v10678_v48, 16  ;;  %v4558_v1 = vor.u32 %v4557_v31, %v4554_v30  ;;  %v2296_v46 = vsel %vm1861_vm1, %v2291_v55, %v2295_v56  ;;  %v9368_v55 = vld [vmem:[%s12870_s2 + $0x4a0] ss:$12 sps:$4 sm:$0xff]  }
  0xf6   : > { %v2519_v31 = vrot.slane %v2518_v35, 4 }
  0xf7   : > { %2895 = vmatpush1.bf16.msra.mxu0 %v9350_v61  ;;  %v9359_v61 = vld [vmem:[%s12870_s2 + $0x5a0] ss:$12 sps:$4 sm:$0xff]   ;;  %v4568_v22 = vor.u32 %v4567_v41, %v10974_v28  ;;  %v2312_v30 = vor.u32 %v12887_v2, %v10823_v13  ;;  %v9364_v41 = vld [vmem:[%s12870_s2 + $0x5b8] ss:$12 sps:$4 sm:$0xff]   ;;  %v9377_v2 = vld [vmem:[%s12870_s2 + $0x590] ss:$12 sps:$4 sm:$0xff]  }
  0xf8   : > { %2462 = vmatpush1.bf16.msra.mxu1 %v9347_v4  ;;  %2896 = vmatprep.subr.bf16.mxu0 %v9358_v7  ;;  %v9363_v4 = vld [vmem:[%s12870_s2 + $0x488] ss:$12 sps:$4 sm:$0xff]   ;;  %v2508_v7 = vor.u32 %v2507_v11, %v2504_v10 }
  0xf9   : > { %2463 = vmatprep.subr.bf16.mxu1 %v9355_v9  ;;  %v9366_v9 = vld [vmem:[%s12870_s2 + $0x5bc] ss:$12 sps:$4 sm:$0xff]   ;;  %v11009_v10 = vld [vmem:[%s10092_s16 + $0x10] sm:$0xff] }
  0xfa   : > { %v12885_v11 = vshll.u32 %v11009_v10, 16  ;;  %v12886_v17 = vshrl.u32 %v11009_v10, 16 }
  0xfb   : > { %2897 = vmatpush1.bf16.msra.mxu0 %v9356_v32  ;;  %v11017_v32 = vrot.slane %v4558_v1, 4 }
  0xfc   : > { %2464 = vmatpush1.bf16.msra.mxu1 %v9353_v38  ;;  %2898 = vmatprep.subr.bf16.mxu0 %v9361_v53  ;;  %v4571_v38 = vshll.u32 %v11006_v36, 16  ;;  %v2509_v53 = vrot.slane %v2508_v7, 4  ;;  %v4569_v7 = vrot.slane %v4568_v22, 4  ;;  %v2523_v35 = vrot.slane %v12885_v11, 5  ;;  %v9369_v22 = vld [vmem:[%s12870_s2 + $0x5d0] ss:$12 sps:$4 sm:$0xff]  }
  0xfd   : > { %8702 = vmatprep.subr.bf16.mxu1 %v9362_v0  ;;  %v9936_v0 = vld [vmem:[%s10092_s16 + $0x20] sm:$0xff]  ;;  %v2527_v1 = vrot.slane %v12886_v17, 4  ;;  %v4564_v11 = vsel %vm11045_vm4, %v11017_v32, %v10974_v28 }
  0xfe   : > { %v1793_v13 = vmax.bf16 %v9936_v0, %v10933_v45  ;;  %v9373_v0 = vld [vmem:[%s12870_s2 + $0x4b8] ss:$12 sps:$4 sm:$0xff]  }
  0xff   : > { %2474 = vmatmul.mubr.bf16.vlgmr.msra.gmra.mrb[16].mxu1 %v2296_v46  ;;  %2899 = vmatpush1.bf16.msra.mxu0 %v9359_v61  ;;  %v9371_v46 = vld [vmem:[%s12870_s2 + $0x5d4] ss:$12 sps:$4 sm:$0xff]   ;;  %v9372_v61 = vld [vmem:[%s12870_s2 + $0x578] ss:$12 sps:$4 sm:$0xff]   ;;  %v2528_v54 = vor.u32 %v2527_v1, %v2523_v35 }
 0x100   : > { %8703 = vmatpush3.bf16.msra.mxu1 %v9363_v4  ;;  %2900 = vmatprep.subr.bf16.mxu0 %v9366_v9  ;;  %v11049_v4 = vrot.slane %v4571_v38, 5  ;;  %v9376_v38 = vld [vmem:[%s12870_s2 + $0x5ec] ss:$12 sps:$4 sm:$0xff]  }
 0x101   : > { %8704 = vmatprep.subr.bf16.mxu1 %v9367_v29  ;;  %7609 = vmatprep.mubr.msk.bf16.mxu1 %vm1558_vm0, %v2312_v30  ;;  %v8634_v9 = vpop.f32.mrb[0].mxu1  ;;  %v2514_v29 = vsel %vm11045_vm4, %v2509_v53, %v10967_v12  ;;  %v2524_v30 = vsel %vm11045_vm4, %v2519_v31, %v2523_v35  ;;  %v2309_v12 = vor.u32 %v2307_v34, %v2295_v56  ;;  %v9374_v34 = vld [vmem:[%s12870_s2 + $0x5e8] ss:$12 sps:$4 sm:$0xff]   ;;  %v11080_v56 = vld [vmem:[%s10092_s16 + $0x60] sm:$0xff] }
 0x102   : > { %v8635_v17 = vpop.f32.mrb[1].mxu1  ;;  %v2533_v53 = vmax.bf16 %v2514_v29, %v1793_v13  ;;  %v2534_v31 = vmax.bf16 %v2524_v30, %v1794_v5  ;;  %v4574_v28 = vsel %vm11045_vm4, %v4569_v7, %v11049_v4 }
 0x103   : > { %2901 = vmatpush1.bf16.msra.mxu0 %v9364_v41  ;;  %v11074_v32 = vadd.f32 %v8635_v17, %v8634_v9  ;;  %v8637_v41 = vpop.f32.mrb[2].mxu1  ;;  %v11087_v17 = vld [vmem:[%s10092_s16 + $0x68] sm:$0xff]  ;;  %v2529_v9 = vrot.slane %v2528_v54, 4 }
 0x104   : > { %8705 = vmatpush3.bf16.msra.mxu1 %v9368_v55  ;;  %2902 = vmatprep.subr.bf16.mxu0 %v9371_v46  ;;  %v8638_v59 = vpop.f32.mrb[3].mxu1  ;;  %v3190_v5 = vmax.bf16 %v10826_v16, %v2533_v53  ;;  %v3191_v13 = vmax.bf16 %v10831_v20, %v2534_v31  ;;  %v4575_v55 = vshrl.u32 %v11006_v36, 16  ;;  %v9378_v46 = vld [vmem:[%s12870_s2 + $0x4d0] ss:$12 sps:$4 sm:$0xff]   ;;  %v11129_v53 = vcombine.high %v11006_v36, %v11006_v36  ;;  %v9390_v31 = vld [vmem:[%s12870_s2 + $0x500] ss:$12 sps:$4 sm:$0xff]  }
 0x105   : > { %8706 = vmatprep.subr.bf16.mxu1 %v9372_v61  ;;  %v11084_v7 = vadd.f32 %v8638_v59, %v8637_v41  ;;  %v9383_v61 = vld [vmem:[%s12870_s2 + $0x604] ss:$12 sps:$4 sm:$0xff]  }
 0x106   : > { %v3847_v35 = vmax.bf16 %v11080_v56, %v3190_v5  ;;  %v3848_v1 = vmax.bf16 %v11087_v17, %v3191_v13  ;;  %v9938_v59 = vld [vmem:[%s10092_s16 + $0x30] sm:$0xff]  ;;  %v4577_v54 = vrot.slane %v4575_v55, 4  ;;  %v9391_v41 = vld [vmem:[%s12870_s2 + $0x5d8] ss:$12 sps:$4 sm:$0xff]  }
 0x107   : > { %2903 = vmatpush1.bf16.msra.mxu0 %v9369_v22  ;;  %2484 = vmatmul.mubr.bf16.gmra.mrb[20].mxu1 %v2309_v12  ;;  %v1795_v62 = vmax.bf16 %v9938_v59, %v11009_v10  ;;  %v9380_v22 = vld [vmem:[%s12870_s2 + $0x5a8] ss:$12 sps:$4 sm:$0xff]   ;;  %v11144_v5 = vld [vmem:[%s10337_s13 + $0x40] sm:$0xff] }
 0x108   : > { %8707 = vmatpush3.bf16.msra.mxu1 %v9373_v0  ;;  %2904 = vmatprep.subr.bf16.mxu0 %v9376_v38  ;;  %v11104_v29 = vmax.bf16 %v4564_v11, %v3847_v35  ;;  %v11106_v30 = vmax.bf16 %v4574_v28, %v3848_v1  ;;  %v9381_v0 = vld [vmem:[%s12870_s2 + $0x600] ss:$12 sps:$4 sm:$0xff]   ;;  %v11113_v38 = vcombine.low %v10826_v16, %v10831_v20  ;;  %v9389_v11 = vld [vmem:[%s12870_s2 + $0x61c] ss:$12 sps:$4 sm:$0xff]   ;;  %v9387_v20 = vld [vmem:[%s12870_s2 + $0x618] ss:$12 sps:$4 sm:$0xff]  }
 0x109   : > { %8708 = vmatprep.subr.bf16.mxu1 %v9377_v2  ;;  %2957 = vmatprep.mubr.bf16.mxu1 %v10843_v24  ;;  %v9385_v2 = vld [vmem:[%s12870_s2 + $0x4e8] ss:$12 sps:$4 sm:$0xff]   ;;  %v2535_v12 = vmax.bf16 %v2529_v9, %v1795_v62  ;;  %v9386_v16 = vld [vmem:[%s12870_s2 + $0x5c0] ss:$12 sps:$4 sm:$0xff]   ;;  %v4578_v28 = vor.u32 %v4577_v54, %v11049_v4  ;;  %v8640_v4 = vpop.f32.mrb[4].mxu1  ;;  %v11159_v62 = vcombine.high %v11080_v56, %v11087_v17 }
 0x10a   : > { %12901 = vst [vmem:[#allocation3_spill] sm:$0xff] %v11106_v30  ;;  %v8641_v55 = vpop.f32.mrb[5].mxu1  ;;  %v9392_v35 = vld [vmem:[%s12870_s2 + $0x630] ss:$12 sps:$4 sm:$0xff]   ;;  %v9399_v54 = vld [vmem:[%s12870_s2 + $0x64c] ss:$12 sps:$4 sm:$0xff]  }
 0x10b   : > { %2905 = vmatpush1.bf16.msra.mxu0 %v9374_v34  ;;  %v9394_v34 = vld [vmem:[%s12870_s2 + $0x634] ss:$12 sps:$4 sm:$0xff]   ;;  %v3192_v13 = vmax.bf16 %v11006_v36, %v2535_v12  ;;  %v11155_v1 = vadd.f32 %v8641_v55, %v8640_v4  ;;  %v8643_v59 = vpop.f32.mrb[6].mxu1  ;;  %v9396_v12 = vld [vmem:[%s12870_s2 + $0x5f0] ss:$12 sps:$4 sm:$0xff]  }
 0x10c   : > { %8709 = vmatpush3.bf16.msra.mxu1 %v9378_v46  ;;  %3531 = vmatprep.subr.bf16.mxu0 %v9383_v61  ;;  %v11148_v46 = vld [vmem:[%s10337_s13 + $0x48] sm:$0xff]  ;;  %v11150_v61 = vrot.slane %v4578_v28, 4  ;;  %v11162_v9 = vld [vmem:[%s10092_s16 + $0x70] sm:$0xff]  ;;  %v3928_v59 = vshrl.u32 %v10843_v24, 16 }
 0x10d   : > { %8710 = vmatprep.subr.bf16.mxu1 %v9380_v22  ;;  %v9395_v22 = vld [vmem:[%s12870_s2 + $0x518] ss:$12 sps:$4 sm:$0xff]   ;;  %v9400_v28 = vld [vmem:[%s12870_s2 + $0x530] ss:$12 sps:$4 sm:$0xff]  }
 0x10e   : > { %2907 = vmatmul.mubr.bf16.vlgmr.msra.gmra.mrb[0].mxu0 %v11113_v38 }
 0x10f   : > { %3532 = vmatpush1.bf16.msra.mxu0 %v9381_v0  ;;  %2916 = vmatprep.mubr.bf16.mxu0 %v11129_v53  ;;  %v8644_v0 = vpop.f32.mrb[7].mxu1 }
 0x110   : > { %8711 = vmatpush3.bf16.msra.mxu1 %v9385_v2  ;;  %3533 = vmatprep.subr.bf16.mxu0 %v9389_v11  ;;  %v11172_v2 = vcombine.low %v11006_v36, %v11006_v36  ;;  %v11175_v11 = vmax.bf16 %v11162_v9, %v3192_v13  ;;  %v9397_v36 = vld [vmem:[%s12870_s2 + $0x648] ss:$12 sps:$4 sm:$0xff]   ;;  %v9403_v13 = vld [vmem:[%s12871_s3 + $0x244] ss:$8 sps:$4 sm:$0xff]  }
 0x111   : > { %8712 = vmatprep.subr.bf16.mxu1 %v9386_v16  ;;  %v440_v16 = vunpack.c.h.bf16 %v11144_v5  ;;  %v9404_v0 = vld [vmem:[%s12870_s2 + $0x660] ss:$12 sps:$4 sm:$0xff]  }
 0x113   : > { %3534 = vmatpush1.bf16.msra.mxu0 %v9387_v20  ;;  %v442_v20 = vunpack.c.h.bf16 %v11148_v46  ;;  %v448_v4 = vmul.f32 %v440_v16, %v10360_v60  ;;  %v3935_v16 = vshll.u32 %v11129_v53, 16 }
 0x114   : > { %8713 = vmatpush3.bf16.msra.mxu1 %v9390_v31  ;;  %3535 = vmatprep.subr.bf16.mxu0 %v9394_v34  ;;  %v9406_v34 = vld [vmem:[%s12870_s2 + $0x664] ss:$12 sps:$4 sm:$0xff]  }
 0x115   : > { %8714 = vmatprep.subr.bf16.mxu1 %v9391_v41  ;;  %v3930_v41 = vshll.u32 %v10843_v24, 16  ;;  %v450_v55 = vmul.f32 %v442_v20, %v10360_v60  ;;  %v9409_v24 = vld [vmem:[%s12871_s3 + $0x254] ss:$8 sps:$4 sm:$0xff]   ;;  %v456_v20 = vadd.f32 %v448_v4, %v10366_v63 }
 0x116   : > { %2917 = vmatmul.mubr.bf16.gmra.mrb[4].mxu0 %v11172_v2 }
 0x117   : > { %3536 = vmatpush1.bf16.msra.mxu0 %v9392_v35  ;;  %3563 = vmatprep.mubr.bf16.mxu0 %v11159_v62  ;;  %v9401_v35 = vld [vmem:[%s12871_s3 + $0x240] ss:$8 sps:$4 sm:$0xff]  }
 0x118   : > { %8715 = vmatpush3.bf16.msra.mxu1 %v9395_v22  ;;  %3537 = vmatprep.subr.bf16.mxu0 %v9399_v54  ;;  %v3932_v22 = vrot.slane %v3930_v41, 1  ;;  %v9412_v54 = vld [vmem:[%s12870_s2 + $0x67c] ss:$12 sps:$4 sm:$0xff]   ;;  %v3916_v41 = vshrl.u32 %v11113_v38, 16 }
 0x119   : > { %8716 = vmatprep.subr.bf16.mxu1 %v9396_v12 }
 0x11a   : > { %v3933_v12 = vor.u32 %v3932_v22, %v3928_v59  ;;  %v11222_v59 = vrot.slane %v3935_v16, 1  ;;  %v9420_v22 = vld [vmem:[%s12870_s2 + $0x694] ss:$12 sps:$4 sm:$0xff]  }
 0x11b   : > { %3538 = vmatpush1.bf16.msra.mxu0 %v9397_v36  ;;  %v458_v36 = vadd.f32 %v450_v55, %v10366_v63  ;;  %v3923_v55 = vshll.u32 %v11172_v2, 16 }
 0x11c   : > { %8717 = vmatpush3.bf16.msra.mxu1 %v9400_v28  ;;  %3539 = vmatprep.subr.bf16.mxu0 %v9406_v34  ;;  %v3918_v28 = vshll.u32 %v11113_v38, 16  ;;  %v9407_v34 = vld [vmem:[%s12871_s3 + $0x250] ss:$8 sps:$4 sm:$0xff]   ;;  %v11234_v16 = vsel %vm1861_vm1, %v3933_v12, %v11222_v59 }
 0x11d   : > { %3133 = vmatprep.subr.bf16.mxu1 %v9403_v13  ;;  %v9410_v13 = vld [vmem:[%s12870_s2 + $0x678] ss:$12 sps:$4 sm:$0xff]   ;;  %v9418_v12 = vld [vmem:[%s12870_s2 + $0x690] ss:$12 sps:$4 sm:$0xff]  }
 0x11e   : > { %v3920_v4 = vrot.slane %v3918_v28, 1  ;;  %v466_v28 = vmax.f32 %v458_v36, 0.0  ;;  %v9426_v36 = vld [vmem:[%s12870_s2 + $0x6ac] ss:$12 sps:$4 sm:$0xff]  }
 0x11f   : > { %2958 = vmatmul.mubr.bf16.vlgmr.msra.gmra.mrb[32].mxu1 %v11113_v38  ;;  %3540 = vmatpush1.bf16.msra.mxu0 %v9404_v0  ;;  %v9417_v38 = vld [vmem:[%s12871_s3 + $0x264] ss:$8 sps:$4 sm:$0xff]   ;;  %v464_v0 = vmax.f32 %v456_v20, 0.0  ;;  %v9415_v20 = vld [vmem:[%s12871_s3 + $0x260] ss:$8 sps:$4 sm:$0xff]  }
 0x120   : > { %3134 = vmatpush1.bf16.msra.mxu1 %v9401_v35  ;;  %3541 = vmatprep.subr.bf16.mxu0 %v9412_v54  ;;  %v3921_v31 = vor.u32 %v3920_v4, %v3916_v41  ;;  %v11240_v35 = vrot.slane %v3923_v55, 1  ;;  %v9421_v4 = vld [vmem:[%s12871_s3 + $0x270] ss:$8 sps:$4 sm:$0xff]   ;;  %v9424_v55 = vld [vmem:[%s12870_s2 + $0x6a8] ss:$12 sps:$4 sm:$0xff]  }
 0x121   : > { %3135 = vmatprep.subr.bf16.mxu1 %v9409_v24  ;;  %2965 = vmatprep.mubr.bf16.mxu1 %v11129_v53  ;;  %v8662_v54 = vpop.f32.mrb[8].mxu1 }
 0x122   : > { %v8663_v15 = vpop.f32.mrb[9].mxu1  ;;  %v11247_v24 = vsel %vm1861_vm1, %v3921_v31, %v11240_v35  ;;  %v11258_v31 = vpack.c.bf16 %v466_v28, %v464_v0  ;;  %v9430_v0 = vld [vmem:[%s12870_s2 + $0x6c0] ss:$12 sps:$4 sm:$0xff]  }
 0x123   : > { %3542 = vmatpush1.bf16.msra.mxu0 %v9410_v13  ;;  %v8664_v19 = vadd.f32 %v8663_v15, %v8662_v54  ;;  %v8665_v52 = vpop.f32.mrb[10].mxu1  ;;  %v9423_v13 = vld [vmem:[%s12871_s3 + $0x274] ss:$8 sps:$4 sm:$0xff]  }
 0x124   : > { %3136 = vmatpush1.bf16.msra.mxu1 %v9407_v34  ;;  %3543 = vmatprep.subr.bf16.mxu0 %v9420_v22  ;;  %v8666_v41 = vpop.f32.mrb[11].mxu1  ;;  %v9438_v54 = vld [vmem:[%s12870_s2 + $0x6dc] ss:$12 sps:$4 sm:$0xff]   ;;  %v4350_v21 = vshrl.u32 %v11258_v31, 16 }
 0x125   : > { %3137 = vmatprep.subr.bf16.mxu1 %v9417_v38  ;;  %v11261_v15 = vadd.f32 %v8664_v19, %v11074_v32  ;;  %v8667_v34 = vadd.f32 %v8666_v41, %v8665_v52  ;;  %v9432_v52 = vld [vmem:[%s12870_s2 + $0x6c4] ss:$12 sps:$4 sm:$0xff]  }
 0x126   : > { %v9429_v19 = vld [vmem:[%s12871_s3 + $0x284] ss:$8 sps:$4 sm:$0xff]  }
 0x127   : > { %2966 = vmatmul.mubr.bf16.gmra.mrb[36].mxu1 %v11172_v2  ;;  %3544 = vmatpush1.bf16.msra.mxu0 %v9418_v12  ;;  %v11271_v22 = vadd.f32 %v8667_v34, %v11084_v7  ;;  %v9427_v7 = vld [vmem:[%s12871_s3 + $0x280] ss:$8 sps:$4 sm:$0xff]   ;;  %v9436_v34 = vld [vmem:[%s12870_s2 + $0x6d8] ss:$12 sps:$4 sm:$0xff]  }
 0x128   : > { %3138 = vmatpush1.bf16.msra.mxu1 %v9415_v20  ;;  %3545 = vmatprep.subr.bf16.mxu0 %v9426_v36  ;;  %v9435_v20 = vld [vmem:[%s12871_s3 + $0x294] ss:$8 sps:$4 sm:$0xff]  }
 0x129   : > { %3139 = vmatprep.subr.bf16.mxu1 %v9423_v13  ;;  %7774 = vmatprep.mubr.msk.bf16.mxu1 %vm1558_vm0, %v11258_v31  ;;  %v8668_v32 = vpop.f32.mrb[12].mxu1  ;;  %v9433_v13 = vld [vmem:[%s12871_s3 + $0x290] ss:$8 sps:$4 sm:$0xff]  }
 0x12a   : > { %v8669_v38 = vpop.f32.mrb[13].mxu1 }
 0x12b   : > { %3546 = vmatpush1.bf16.msra.mxu0 %v9424_v55  ;;  %v8670_v28 = vadd.f32 %v8669_v38, %v8668_v32  ;;  %v8671_v12 = vpop.f32.mrb[14].mxu1  ;;  %v9439_v55 = vld [vmem:[%s12871_s3 + $0x2a0] ss:$8 sps:$4 sm:$0xff]   ;;  %v9450_v32 = vld [vmem:[%s12870_s2 + $0x70c] ss:$12 sps:$4 sm:$0xff]  }
 0x12c   : > { %3140 = vmatpush1.bf16.msra.mxu1 %v9421_v4  ;;  %3547 = vmatprep.subr.bf16.mxu0 %v9432_v52  ;;  %v8672_v36 = vpop.f32.mrb[15].mxu1  ;;  %v9444_v4 = vld [vmem:[%s12870_s2 + $0x6f4] ss:$12 sps:$4 sm:$0xff]   ;;  %v9442_v52 = vld [vmem:[%s12870_s2 + $0x6f0] ss:$12 sps:$4 sm:$0xff]  }
 0x12d   : > { %3141 = vmatprep.subr.bf16.mxu1 %v9429_v19  ;;  %v11294_v41 = vadd.f32 %v8670_v28, %v11155_v1  ;;  %v9441_v1 = vld [vmem:[%s12871_s3 + $0x2a4] ss:$8 sps:$4 sm:$0xff]   ;;  %v7198_v19 = vld [vmem:[%s10337_s13 + $0x50] sm:$0xff]  ;;  %v441_v28 = vunpack.c.l.bf16 %v11148_v46 }
 0x12e   : > { %v9447_v38 = vld [vmem:[%s12871_s3 + $0x2b4] ss:$8 sps:$4 sm:$0xff]   ;;  %v9445_v12 = vld [vmem:[%s12871_s3 + $0x2b0] ss:$8 sps:$4 sm:$0xff]   ;;  %v444_v46 = vunpack.c.h.bf16 %v7198_v19 }
 0x12f   : > { %3548 = vmatpush1.bf16.msra.mxu0 %v9430_v0  ;;  %v439_v0 = vunpack.c.l.bf16 %v11144_v5  ;;  %v9453_v5 = vld [vmem:[%s12871_s3 + $0x2c4] ss:$8 sps:$4 sm:$0xff]  }
 0x130   : > { %3142 = vmatpush1.bf16.msra.mxu1 %v9427_v7  ;;  %3549 = vmatprep.subr.bf16.mxu0 %v9438_v54  ;;  %v7199_v7 = vld [vmem:[%s10337_s13 + $0x58] sm:$0x11]  ;;  %v443_v54 = vunpack.c.l.bf16 %v7198_v19 }
 0x131   : > { %3143 = vmatprep.subr.bf16.mxu1 %v9435_v20  ;;  %v9448_v20 = vld [vmem:[%s12870_s2 + $0x708] ss:$12 sps:$4 sm:$0xff]   ;;  %v445_v36 = vunpack.c.l.bf16 %v7199_v7 }
 0x132   : > { %v9462_v19 = vld [vmem:[%s12870_s2 + $0x73c] ss:$12 sps:$4 sm:$0xff]  }
 0x133   : > { %3550 = vmatpush1.bf16.msra.mxu0 %v9436_v34  ;;  %v446_v34 = vunpack.c.h.bf16 %v7199_v7  ;;  %v9459_v7 = vld [vmem:[%s12871_s3 + $0x2d4] ss:$8 sps:$4 sm:$0xff]  }
 0x134   : > { %3144 = vmatpush1.bf16.msra.mxu1 %v9433_v13  ;;  %3551 = vmatprep.subr.bf16.mxu0 %v9444_v4  ;;  %v9456_v13 = vld [vmem:[%s12870_s2 + $0x724] ss:$12 sps:$4 sm:$0xff]   ;;  %v9451_v4 = vld [vmem:[%s12871_s3 + $0x2c0] ss:$8 sps:$4 sm:$0xff]  }
 0x135   : > { %3145 = vmatprep.subr.bf16.mxu1 %v9441_v1  ;;  %v447_v1 = vmul.f32 %v439_v0, %v10379_v8  ;;  %v452_v0 = vmul.f32 %v444_v46, %v10360_v60 }
 0x137   : > { %3552 = vmatpush1.bf16.msra.mxu0 %v9442_v52  ;;  %v451_v52 = vmul.f32 %v443_v54, %v10379_v8  ;;  %v9457_v54 = vld [vmem:[%s12871_s3 + $0x2d0] ss:$8 sps:$4 sm:$0xff]  }
 0x138   : > { %3146 = vmatpush1.bf16.msra.mxu1 %v9439_v55  ;;  %3553 = vmatprep.subr.bf16.mxu0 %v9450_v32  ;;  %v449_v55 = vmul.f32 %v441_v28, %v10379_v8  ;;  %v9454_v32 = vld [vmem:[%s12870_s2 + $0x720] ss:$12 sps:$4 sm:$0xff]   ;;  %v454_v28 = vmul.f32 %v446_v34, %v10360_v60 }
 0x139   : > { %3147 = vmatprep.subr.bf16.mxu1 %v9447_v38  ;;  %v453_v38 = vmul.f32 %v445_v36, %v10379_v8  ;;  %v9468_v34 = vld [vmem:[%s12870_s2 + $0x754] ss:$12 sps:$4 sm:$0xff]  }
 0x13a   : > { %v457_v36 = vadd.f32 %v449_v55, %v10401_v23  ;;  %v460_v55 = vadd.f32 %v452_v0, %v10366_v63  ;;  %v9474_v0 = vld [vmem:[%s12870_s2 + $0x76c] ss:$12 sps:$4 sm:$0xff]  }
 0x13b   : > { %3554 = vmatpush1.bf16.msra.mxu0 %v9448_v20  ;;  %v455_v20 = vadd.f32 %v447_v1, %v10401_v23  ;;  %v461_v46 = vadd.f32 %v453_v38, %v10401_v23  ;;  %v9466_v1 = vld [vmem:[%s12870_s2 + $0x750] ss:$12 sps:$4 sm:$0xff]  }
 0x13c   : > { %3148 = vmatpush1.bf16.msra.mxu1 %v9445_v12  ;;  %3555 = vmatprep.subr.bf16.mxu0 %v9456_v13  ;;  %v9460_v12 = vld [vmem:[%s12870_s2 + $0x738] ss:$12 sps:$4 sm:$0xff]   ;;  %v459_v13 = vadd.f32 %v451_v52, %v10401_v23  ;;  %v462_v52 = vadd.f32 %v454_v28, %v10366_v63  ;;  %v9471_v28 = vld [vmem:[%s12871_s3 + $0x2f4] ss:$8 sps:$4 sm:$0xff]  }
 0x13d   : > { %3149 = vmatprep.subr.bf16.mxu1 %v9453_v5  ;;  %v9465_v5 = vld [vmem:[%s12871_s3 + $0x2e4] ss:$8 sps:$4 sm:$0xff]   ;;  %v463_v38 = vmax.f32 %v455_v20, 0.0  ;;  %v469_v47 = vmax.f32 %v461_v46, 0.0  ;;  %v468_v20 = vmax.f32 %v460_v55, 0.0 }
 0x13e   : > { %v9477_v55 = vld [vmem:[%s12870_s2 + $0x6c8] ss:$12 sps:$4 sm:$0xff]  }
 0x13f   : > { %3556 = vmatpush1.bf16.msra.mxu0 %v9454_v32  ;;  %v9463_v32 = vld [vmem:[%s12871_s3 + $0x2e0] ss:$8 sps:$4 sm:$0xff]  }
 0x140   : > { %3150 = vmatpush1.bf16.msra.mxu1 %v9451_v4  ;;  %3557 = vmatprep.subr.bf16.mxu0 %v9462_v19  ;;  %v465_v4 = vmax.f32 %v457_v36, 0.0  ;;  %v467_v19 = vmax.f32 %v459_v13, 0.0  ;;  %v470_v36 = vmax.f32 %v462_v52, 0.0  ;;  %v481_v13 = vunpack.c.h.bf16 %v11379_v26 }
 0x141   : > { %3151 = vmatprep.subr.bf16.mxu1 %v9459_v7  ;;  %v11382_v7 = vld [vmem:[%s10337_s13 + $0x68] sm:$0xff]  ;;  %v4352_v52 = vshll.u32 %v11258_v31, 16  ;;  %v9485_v31 = vld [vmem:[%s12871_s3 + $0x314] ss:$8 sps:$4 sm:$0xff]  }
 0x142   : > { %v471_v46 = vpack.c.bf16 %v465_v4, %v463_v38 }
 0x143   : > { %3558 = vmatpush1.bf16.msra.mxu0 %v9460_v12  ;;  %v483_v12 = vunpack.c.h.bf16 %v11382_v7 }
 0x144   : > { %3152 = vmatpush1.bf16.msra.mxu1 %v9457_v54  ;;  %3559 = vmatprep.subr.bf16.mxu0 %v9468_v34  ;;  %v9472_v54 = vld [vmem:[%s12870_s2 + $0x768] ss:$12 sps:$4 sm:$0xff]   ;;  %v11395_v34 = vpack.c.bf16 %v469_v47, %v467_v19  ;;  %v9480_v47 = vld [vmem:[%s12871_s3 + $0x304] ss:$8 sps:$4 sm:$0xff]   ;;  %v4341_v4 = vshll.u32 %v471_v46, 16  ;;  %v489_v19 = vmul.f32 %v481_v13, %v10360_v60 }
 0x145   : > { %3153 = vmatprep.subr.bf16.mxu1 %v9465_v5  ;;  %v9469_v5 = vld [vmem:[%s12871_s3 + $0x2f0] ss:$8 sps:$4 sm:$0xff]  }
 0x146   : > { %v4346_v38 = vshll.u32 %v11395_v34, 16 }
 0x147   : > { %3560 = vmatpush1.bf16.msra.mxu0 %v9466_v1  ;;  %v11406_v1 = vcombine.low %v11080_v56, %v11087_v17  ;;  %v9478_v56 = vld [vmem:[%s12871_s3 + $0x300] ss:$8 sps:$4 sm:$0xff]  }
 0x148   : > { %3154 = vmatpush1.bf16.msra.mxu1 %v9463_v32  ;;  %3561 = vmatprep.subr.bf16.mxu0 %v9474_v0  ;;  %v11411_v32 = vpack.c.bf16 %v470_v36, %v468_v20  ;;  %v491_v0 = vmul.f32 %v483_v12, %v10360_v60  ;;  %v9481_v17 = vld [vmem:[%s12870_s2 + $0x608] ss:$12 sps:$4 sm:$0xff]   ;;  %v9482_v36 = vld [vmem:[%s12870_s2 + $0x6e0] ss:$12 sps:$4 sm:$0xff]   ;;  %v4339_v12 = vshrl.u32 %v471_v46, 16 }
 0x149   : > { %3155 = vmatprep.subr.bf16.mxu1 %v9471_v28  ;;  %v4354_v28 = vrot.slane %v4352_v52, 1  ;;  %v11434_v52 = vrot.slane %v4346_v38, 1 }
 0x14a   : > { %v4356_v20 = vshll.u32 %v11411_v32, 16  ;;  %v499_v30 = vadd.f32 %v491_v0, %v10366_v63 }
 0x14b   : > { %3562 = vmatpush1.bf16.msra.mxu0 %v9472_v54  ;;  %v4355_v13 = vor.u32 %v4354_v28, %v4350_v21  ;;  %v11432_v54 = vcombine.high %v11162_v9, %v11162_v9  ;;  %v9486_v21 = vld [vmem:[%s12870_s2 + $0x620] ss:$12 sps:$4 sm:$0xff]   ;;  %v11464_v28 = vcombine.low %v11162_v9, %v11162_v9  ;;  %v9492_v9 = vld [vmem:[%s12870_s2 + $0x710] ss:$12 sps:$4 sm:$0xff]  }
 0x14c   : > { %3156 = vmatpush1.bf16.msra.mxu1 %v9469_v5  ;;  %8730 = vmatprep.subr.bf16.mxu0 %v9477_v55  ;;  %v11436_v44 = vrot.slane %v4356_v20, 1  ;;  %v4343_v5 = vrot.slane %v4341_v4, 1  ;;  %v497_v55 = vadd.f32 %v489_v19, %v10366_v63  ;;  %v9483_v4 = vld [vmem:[%s12871_s3 + $0x310] ss:$8 sps:$4 sm:$0xff]   ;;  %v9490_v19 = vld [vmem:[%s12871_s3 + $0x324] ss:$8 sps:$4 sm:$0xff]  }
 0x14d   : > { %3790 = vmatprep.subr.bf16.mxu1 %v9480_v47  ;;  %v9491_v20 = vld [vmem:[%s12870_s2 + $0x638] ss:$12 sps:$4 sm:$0xff]  }
 0x14e   : > { %3564 = vmatmul.mubr.bf16.vlgmr.msra.gmra.mrb[0].mxu0 %v11406_v1  ;;  %v11446_v47 = vsel %vm1861_vm1, %v4355_v13, %v11436_v44  ;;  %v4344_v38 = vor.u32 %v4343_v5, %v4339_v12  ;;  %v9496_v13 = vld [vmem:[%s12870_s2 + $0x650] ss:$12 sps:$4 sm:$0xff]   ;;  %v9497_v5 = vld [vmem:[%s12870_s2 + $0x728] ss:$12 sps:$4 sm:$0xff]  }
 0x14f   : > { %3166 = vmatmul.mubr.bf16.vlgmr.msra.gmra.mrb[16].mxu1 %v471_v46  ;;  %8731 = vmatpush3.bf16.msra.mxu0 %v9481_v17  ;;  %v9487_v46 = vld [vmem:[%s12870_s2 + $0x6f8] ss:$12 sps:$4 sm:$0xff]   ;;  %v507_v17 = vmax.f32 %v499_v30, 0.0  ;;  %v9495_v30 = vld [vmem:[%s12871_s3 + $0x334] ss:$8 sps:$4 sm:$0xff]  }
 0x150   : > { %3791 = vmatpush1.bf16.msra.mxu1 %v9478_v56  ;;  %8732 = vmatprep.subr.bf16.mxu0 %v9482_v36  ;;  %v11460_v0 = vsel %vm1861_vm1, %v4344_v38, %v11434_v52  ;;  %v505_v56 = vmax.f32 %v497_v55, 0.0  ;;  %v9488_v36 = vld [vmem:[%s12871_s3 + $0x320] ss:$8 sps:$4 sm:$0xff]   ;;  %v9493_v12 = vld [vmem:[%s12871_s3 + $0x330] ss:$8 sps:$4 sm:$0xff]   ;;  %vm12693_vm1 = vmor %vm5258_vm9, %vm5259_vm15  ;;  %vm6864_vm15 = vcmask 1042432  }
 0x151   : > { %3792 = vmatprep.subr.bf16.mxu1 %v9485_v31  ;;  %3573 = vmatprep.mubr.bf16.mxu0 %v11432_v54  ;;  %v9500_v55 = vld [vmem:[%s12871_s3 + $0x344] ss:$8 sps:$4 sm:$0xff]  }
 0x152   : > { %7775 = vmatprep.mubr.msk.bf16.mxu1 %vm1558_vm0, %v11411_v32  ;;  %v513_v31 = vpack.c.bf16 %v507_v17, %v505_v56  ;;  %v9502_v38 = vld [vmem:[%s12870_s2 + $0x740] ss:$12 sps:$4 sm:$0xff]   ;;  %v9509_v56 = vld [vmem:[%s12870_s2 + $0x758] ss:$12 sps:$4 sm:$0xff]  }
 0x153   : > { %8733 = vmatpush3.bf16.msra.mxu0 %v9486_v21  ;;  %v9498_v21 = vld [vmem:[%s12871_s3 + $0x340] ss:$8 sps:$4 sm:$0xff]   ;;  %v9512_v17 = vld [vmem:[%s12871_s3 + $0x364] ss:$8 sps:$4 sm:$0xff]  }
 0x154   : > { %3793 = vmatpush1.bf16.msra.mxu1 %v9483_v4  ;;  %8734 = vmatprep.subr.bf16.mxu0 %v9487_v46  ;;  %v9505_v4 = vld [vmem:[%s12871_s3 + $0x354] ss:$8 sps:$4 sm:$0xff]   ;;  %v9506_v46 = vld [vmem:[%s12870_s2 + $0x680] ss:$12 sps:$4 sm:$0xff]  }
 0x155   : > { %3794 = vmatprep.subr.bf16.mxu1 %v9490_v19  ;;  %v9503_v19 = vld [vmem:[%s12871_s3 + $0x350] ss:$8 sps:$4 sm:$0xff]  }
 0x156   : > { %3574 = vmatmul.mubr.bf16.gmra.mrb[4].mxu0 %v11464_v28 }
 0x157   : > { %8735 = vmatpush3.bf16.msra.mxu0 %v9491_v20  ;;  %3614 = vmatprep.mubr.bf16.mxu0 %v11159_v62  ;;  %v9501_v62 = vld [vmem:[%s12870_s2 + $0x668] ss:$12 sps:$4 sm:$0xff]   ;;  %v9513_v20 = vld [vmem:[%s12870_s2 + $0x698] ss:$12 sps:$4 sm:$0xff]  }
 0x158   : > { %3795 = vmatpush1.bf16.msra.mxu1 %v9488_v36  ;;  %8736 = vmatprep.subr.bf16.mxu0 %v9492_v9  ;;  %v9510_v36 = vld [vmem:[%s12871_s3 + $0x360] ss:$8 sps:$4 sm:$0xff]   ;;  %v9514_v9 = vld [vmem:[%s12870_s2 + $0x770] ss:$12 sps:$4 sm:$0xff]  }
 0x159   : > { %3796 = vmatprep.subr.bf16.mxu1 %v9495_v30  ;;  %3176 = vmatmul.mubr.bf16.gmra.mrb[20].mxu1 %v11395_v34  ;;  %v9517_v30 = vld [vmem:[%s12871_s3 + $0x374] ss:$8 sps:$4 sm:$0xff]  }
 0x15a   : > { %7940 = vmatprep.mubr.msk.bf16.mxu1 %vm1558_vm0, %v513_v31  ;;  %v9515_v31 = vld [vmem:[%s12871_s3 + $0x370] ss:$8 sps:$4 sm:$0xff]  }
 0x15b   : > { %8737 = vmatpush3.bf16.msra.mxu0 %v9496_v13  ;;  %v9518_v13 = vld [vmem:[%s12870_s2 + $0x6b0] ss:$12 sps:$4 sm:$0xff]  }
 0x15c   : > { %3797 = vmatpush1.bf16.msra.mxu1 %v9493_v12  ;;  %8738 = vmatprep.subr.bf16.mxu0 %v9497_v5  ;;  %v9524_v12 = vld [vmem:[%s12870_s2 + $0x784] ss:$12 sps:$4 sm:$0xff]  }
 0x15d   : > { %3798 = vmatprep.subr.bf16.mxu1 %v9500_v55  ;;  %v9521_v5 = vld [vmem:[%s12871_s3 + $0x384] ss:$8 sps:$4 sm:$0xff]   ;;  %v7202_v55 = vld [vmem:[%s10337_s13 + $0x70] sm:$0xff] }
 0x15f   : > { %8739 = vmatpush3.bf16.msra.mxu0 %v9501_v62  ;;  %v7203_v62 = vld [vmem:[%s10337_s13 + $0x78] sm:$0x11] }
 0x160   : > { %3799 = vmatpush1.bf16.msra.mxu1 %v9498_v21  ;;  %8740 = vmatprep.subr.bf16.mxu0 %v9502_v38  ;;  %v9522_v21 = vld [vmem:[%s12870_s2 + $0x780] ss:$12 sps:$4 sm:$0xff]   ;;  %v480_v38 = vunpack.c.l.bf16 %v11379_v26  ;;  %v9525_v26 = vld [vmem:[%s12871_s3 + $0x390] ss:$8 sps:$4 sm:$0xff]  }
 0x161   : > { %3800 = vmatprep.subr.bf16.mxu1 %v9505_v4  ;;  %v482_v4 = vunpack.c.l.bf16 %v11382_v7  ;;  %v9528_v7 = vld [vmem:[%s12870_s2 + $0x798] ss:$12 sps:$4 sm:$0xff]  }
 0x163   : > { %8741 = vmatpush3.bf16.msra.mxu0 %v9506_v46  ;;  %v9519_v46 = vld [vmem:[%s12871_s3 + $0x380] ss:$8 sps:$4 sm:$0xff]  }
 0x164   : > { %3801 = vmatpush1.bf16.msra.mxu1 %v9503_v19  ;;  %8742 = vmatprep.subr.bf16.mxu0 %v9509_v56  ;;  %v9530_v19 = vld [vmem:[%s12870_s2 + $0x79c] ss:$12 sps:$4 sm:$0xff]  }
 0x165   : > { %3802 = vmatprep.subr.bf16.mxu1 %v9512_v17  ;;  %v9527_v56 = vld [vmem:[%s12871_s3 + $0x394] ss:$8 sps:$4 sm:$0xff]   ;;  %v485_v17 = vunpack.c.h.bf16 %v7202_v55 }
 0x167   : > { %8743 = vmatpush3.bf16.msra.mxu0 %v9513_v20  ;;  %v487_v20 = vunpack.c.h.bf16 %v7203_v62 }
 0x168   : > { %3803 = vmatpush1.bf16.msra.mxu1 %v9510_v36  ;;  %8744 = vmatprep.subr.bf16.mxu0 %v9514_v9  ;;  %v488_v36 = vmul.f32 %v480_v38, %v10379_v8  ;;  %v490_v9 = vmul.f32 %v482_v4, %v10379_v8  ;;  %v484_v38 = vunpack.c.l.bf16 %v7202_v55  ;;  %v486_v4 = vunpack.c.l.bf16 %v7203_v62  ;;  %v9537_v55 = vld [vmem:[%s12871_s3 + $0x3b0] ss:$8 sps:$4 sm:$0xff]   ;;  %v9540_v62 = vld [vmem:[%s12870_s2 + $0x7c8] ss:$12 sps:$4 sm:$0xff]  }
 0x169   : > { %3804 = vmatprep.subr.bf16.mxu1 %v9517_v30  ;;  %v9533_v30 = vld [vmem:[%s12871_s3 + $0x3a4] ss:$8 sps:$4 sm:$0xff]  }
 0x16b   : > { %8745 = vmatpush3.bf16.msra.mxu0 %v9518_v13  ;;  %v495_v13 = vmul.f32 %v487_v20, %v10360_v60 }
 0x16c   : > { %3805 = vmatpush1.bf16.msra.mxu1 %v9515_v31  ;;  %4205 = vmatprep.subr.bf16.mxu0 %v9524_v12  ;;  %v493_v31 = vmul.f32 %v485_v17, %v10360_v60  ;;  %v9534_v12 = vld [vmem:[%s12870_s2 + $0x7b0] ss:$12 sps:$4 sm:$0xff]   ;;  %v9542_v60 = vld [vmem:[%s12870_s2 + $0x7cc] ss:$12 sps:$4 sm:$0xff]  }
 0x16d   : > { %3806 = vmatprep.subr.bf16.mxu1 %v9521_v5  ;;  %v496_v5 = vadd.f32 %v488_v36, %v10401_v23 }
 0x16e   : > { %3615 = vmatmul.mubr.bf16.vlgmr.msra.gmra.mrb[8].mxu0 %v11406_v1  ;;  %v9536_v1 = vld [vmem:[%s12870_s2 + $0x7b4] ss:$12 sps:$4 sm:$0xff]  }
 0x16f   : > { %4206 = vmatpush1.bf16.msra.mxu0 %v9522_v21  ;;  %3622 = vmatprep.mubr.bf16.mxu0 %v11432_v54  ;;  %v9531_v54 = vld [vmem:[%s12871_s3 + $0x3a0] ss:$8 sps:$4 sm:$0xff]   ;;  %v498_v21 = vadd.f32 %v490_v9, %v10401_v23  ;;  %v504_v17 = vmax.f32 %v496_v5, 0.0 }
 0x170   : > { %3807 = vmatpush1.bf16.msra.mxu1 %v9519_v46  ;;  %4207 = vmatprep.subr.bf16.mxu0 %v9530_v19  ;;  %v9539_v46 = vld [vmem:[%s12871_s3 + $0x3b4] ss:$8 sps:$4 sm:$0xff]   ;;  %v501_v19 = vadd.f32 %v493_v31, %v10366_v63 }
 0x171   : > { %3808 = vmatprep.subr.bf16.mxu1 %v9527_v56  ;;  %v503_v56 = vadd.f32 %v495_v13, %v10366_v63  ;;  %v506_v20 = vmax.f32 %v498_v21, 0.0  ;;  %v9545_v63 = vld [vmem:[%s12870_s2 + $0x7e4] ss:$12 sps:$4 sm:$0xff]  }
 0x172   : > { %v509_v36 = vmax.f32 %v501_v19, 0.0  ;;  %v9548_v21 = vld [vmem:[%s12870_s2 + $0x7f8] ss:$12 sps:$4 sm:$0xff]   ;;  %v9553_v19 = vld [vmem:[%s12870_s2 + $0x810] ss:$12 sps:$4 sm:$0xff]  }
 0x173   : > { %4208 = vmatpush1.bf16.msra.mxu0 %v9528_v7  ;;  %v494_v7 = vmul.f32 %v486_v4, %v10379_v8  ;;  %v511_v9 = vmax.f32 %v503_v56, 0.0  ;;  %v9552_v4 = vld [vmem:[%s12870_s2 + $0x7a0] ss:$12 sps:$4 sm:$0xff]  }
 0x174   : > { %3809 = vmatpush1.bf16.msra.mxu1 %v9525_v26  ;;  %4209 = vmatprep.subr.bf16.mxu0 %v9536_v1  ;;  %v492_v26 = vmul.f32 %v484_v38, %v10379_v8  ;;  %v9543_v1 = vld [vmem:[%s12870_s2 + $0x7e0] ss:$12 sps:$4 sm:$0xff]   ;;  %v512_v8 = vpack.c.bf16 %v506_v20, %v504_v17  ;;  %v9561_v17 = vld [vmem:[%s12870_s2 + $0x890] ss:$12 sps:$4 sm:$0xff]   ;;  %v9558_v20 = vld [vmem:[%s12870_s2 + $0x828] ss:$12 sps:$4 sm:$0xff]  }
 0x175   : > { %3810 = vmatprep.subr.bf16.mxu1 %v9533_v30  ;;  %v9547_v30 = vld [vmem:[%s12870_s2 + $0x788] ss:$12 sps:$4 sm:$0xff]   ;;  %v502_v13 = vadd.f32 %v494_v7, %v10401_v23  ;;  %v515_v5 = vpack.c.bf16 %v511_v9, %v509_v36  ;;  %v9565_v7 = vld [vmem:[%s12870_s2 + $0x844] ss:$12 sps:$4 sm:$0xff]  }
 0x176   : > { %3623 = vmatmul.mubr.bf16.gmra.mrb[12].mxu0 %v11464_v28  ;;  %v9546_v28 = vld [vmem:[%s12870_s2 + $0x848] ss:$12 sps:$4 sm:$0xff]   ;;  %v500_v31 = vadd.f32 %v492_v26, %v10401_v23  ;;  %v9562_v26 = vld [vmem:[%s12870_s2 + $0x7d0] ss:$12 sps:$4 sm:$0xff]  }
 0x177   : > { %4210 = vmatpush1.bf16.msra.mxu0 %v9534_v12  ;;  %4237 = vmatprep.mubr.bf16.mxu0 %v11234_v16  ;;  %v9551_v12 = vld [vmem:[%s12870_s2 + $0x860] ss:$12 sps:$4 sm:$0xff]   ;;  %v510_v23 = vmax.f32 %v502_v13, 0.0  ;;  %v9567_v36 = vld [vmem:[%s12870_s2 + $0x7e8] ss:$12 sps:$4 sm:$0xff]  }
 0x178   : > { %3811 = vmatpush1.bf16.msra.mxu1 %v9531_v54  ;;  %4211 = vmatprep.subr.bf16.mxu0 %v9542_v60  ;;  %v9550_v54 = vld [vmem:[%s12870_s2 + $0x7fc] ss:$12 sps:$4 sm:$0xff]   ;;  %v508_v38 = vmax.f32 %v500_v31, 0.0  ;;  %v9555_v60 = vld [vmem:[%s12870_s2 + $0x814] ss:$12 sps:$4 sm:$0xff]  }
 0x179   : > { %3812 = vmatprep.subr.bf16.mxu1 %v9539_v46  ;;  %v9556_v46 = vld [vmem:[%s12870_s2 + $0x878] ss:$12 sps:$4 sm:$0xff]   ;;  %v9570_v9 = vld [vmem:[%s12870_s2 + $0x85c] ss:$12 sps:$4 sm:$0xff]  }
 0x17a   : > { %v514_v56 = vpack.c.bf16 %v510_v23, %v508_v38  ;;  %v9576_v31 = vld [vmem:[%s12870_s2 + $0x8d8] ss:$12 sps:$4 sm:$0xff]   ;;  %v9573_v13 = vld [vmem:[%s12870_s2 + $0x870] ss:$12 sps:$4 sm:$0xff]  }
 0x17b   : > { %4212 = vmatpush1.bf16.msra.mxu0 %v9540_v62  ;;  %v9560_v62 = vld [vmem:[%s12870_s2 + $0x82c] ss:$12 sps:$4 sm:$0xff]   ;;  %v9582_v38 = vld [vmem:[%s12870_s2 + $0x830] ss:$12 sps:$4 sm:$0xff]  }
 0x17c   : > { %3813 = vmatpush1.bf16.msra.mxu1 %v9537_v55  ;;  %4213 = vmatprep.subr.bf16.mxu0 %v9545_v63  ;;  %v9557_v55 = vld [vmem:[%s12870_s2 + $0x7b8] ss:$12 sps:$4 sm:$0xff]   ;;  %v9566_v63 = vld [vmem:[%s12870_s2 + $0x8a8] ss:$12 sps:$4 sm:$0xff]  }
 0x17d   : > { %8758 = vmatprep.subr.bf16.mxu1 %v9546_v28  ;;  %v9563_v28 = vld [vmem:[%s12870_s2 + $0x840] ss:$12 sps:$4 sm:$0xff]   ;;  %v9585_v23 = vld [vmem:[%s12870_s2 + $0x8a4] ss:$12 sps:$4 sm:$0xff]  }
 0x17f   : > { %3823 = vmatmul.mubr.bf16.vlgmr.msra.gmra.mrb[16].mxu1 %v512_v8  ;;  %4214 = vmatpush1.bf16.msra.mxu0 %v9543_v1  ;;  %v9568_v1 = vld [vmem:[%s12870_s2 + $0x858] ss:$12 sps:$4 sm:$0xff]   ;;  %v9572_v8 = vld [vmem:[%s12870_s2 + $0x800] ss:$12 sps:$4 sm:$0xff]  }
 0x180   : > { %8759 = vmatpush3.bf16.msra.mxu1 %v9547_v30  ;;  %4215 = vmatprep.subr.bf16.mxu0 %v9550_v54  ;;  %v9575_v30 = vld [vmem:[%s12870_s2 + $0x874] ss:$12 sps:$4 sm:$0xff]   ;;  %v9577_v54 = vld [vmem:[%s12870_s2 + $0x818] ss:$12 sps:$4 sm:$0xff]  }
 0x181   : > { %8760 = vmatprep.subr.bf16.mxu1 %v9551_v12  ;;  %7941 = vmatprep.mubr.msk.bf16.mxu1 %vm1558_vm0, %v515_v5  ;;  %v9580_v12 = vld [vmem:[%s12870_s2 + $0x88c] ss:$12 sps:$4 sm:$0xff]   ;;  %v9581_v5 = vld [vmem:[%s12870_s2 + $0x8f0] ss:$12 sps:$4 sm:$0xff]  }
 0x183   : > { %4216 = vmatpush1.bf16.msra.mxu0 %v9548_v21  ;;  %v9578_v21 = vld [vmem:[%s12870_s2 + $0x888] ss:$12 sps:$4 sm:$0xff]  }
 0x184   : > { %8761 = vmatpush3.bf16.msra.mxu1 %v9552_v4  ;;  %4217 = vmatprep.subr.bf16.mxu0 %v9555_v60  ;;  %v9588_v4 = vld [vmem:[%s12871_s3 + $0x3c4] ss:$8 sps:$4 sm:$0xff]   ;;  %v3942_v60 = vshrl.u32 %v11129_v53, 16  ;;  %v9594_v53 = vld [vmem:[%s12871_s3 + $0x3d4] ss:$8 sps:$4 sm:$0xff]  }
 0x185   : > { %8762 = vmatprep.subr.bf16.mxu1 %v9556_v46  ;;  %v9583_v46 = vld [vmem:[%s12870_s2 + $0x8a0] ss:$12 sps:$4 sm:$0xff]  }
 0x187   : > { %4218 = vmatpush1.bf16.msra.mxu0 %v9553_v19  ;;  %3833 = vmatmul.mubr.bf16.gmra.mrb[20].mxu1 %v514_v56  ;;  %v9586_v19 = vld [vmem:[%s12871_s3 + $0x3c0] ss:$8 sps:$4 sm:$0xff]  }
 0x188   : > { %8763 = vmatpush3.bf16.msra.mxu1 %v9557_v55  ;;  %4219 = vmatprep.subr.bf16.mxu0 %v9560_v62  ;;  %v9591_v56 = vld [vmem:[%s12870_s2 + $0x8bc] ss:$12 sps:$4 sm:$0xff]   ;;  %v3944_v55 = vor.u32 %v3942_v60, %v11222_v59  ;;  %v9589_v62 = vld [vmem:[%s12870_s2 + $0x8b8] ss:$12 sps:$4 sm:$0xff]  }
 0x189   : > { %8764 = vmatprep.subr.bf16.mxu1 %v9561_v17  ;;  %4288 = vmatprep.mubr.bf16.mxu1 %v11234_v16  ;;  %v9571_v16 = vld [vmem:[%s12870_s2 + $0x8c0] ss:$12 sps:$4 sm:$0xff]   ;;  %v3939_v17 = vshrl.u32 %v11172_v2, 16  ;;  %v9595_v2 = vld [vmem:[%s12870_s2 + $0x8d0] ss:$12 sps:$4 sm:$0xff]  }
 0x18a   : > { %v9600_v59 = vld [vmem:[%s12871_s3 + $0x3e4] ss:$8 sps:$4 sm:$0xff]  }
 0x18b   : > { %4220 = vmatpush1.bf16.msra.mxu0 %v9558_v20  ;;  %v9592_v20 = vld [vmem:[%s12871_s3 + $0x3d0] ss:$8 sps:$4 sm:$0xff]  }
 0x18c   : > { %8765 = vmatpush3.bf16.msra.mxu1 %v9562_v26  ;;  %4221 = vmatprep.subr.bf16.mxu0 %v9565_v7  ;;  %v9597_v26 = vld [vmem:[%s12870_s2 + $0x8d4] ss:$12 sps:$4 sm:$0xff]  }
 0x18d   : > { %8766 = vmatprep.subr.bf16.mxu1 %v9566_v63 }
 0x18f   : > { %4222 = vmatpush1.bf16.msra.mxu0 %v9563_v28  ;;  %v11742_v28 = vor.u32 %v3939_v17, %v11240_v35 }
 0x190   : > { %8767 = vmatpush3.bf16.msra.mxu1 %v9567_v36  ;;  %4223 = vmatprep.subr.bf16.mxu0 %v9570_v9  ;;  %v9598_v36 = vld [vmem:[%s12871_s3 + $0x3e0] ss:$8 sps:$4 sm:$0xff]  }
 0x191   : > { %8768 = vmatprep.subr.bf16.mxu1 %v9571_v16 }
 0x193   : > { %4224 = vmatpush1.bf16.msra.mxu0 %v9568_v1  ;;  %v9603_v1 = vld [vmem:[%s12870_s2 + $0x8ec] ss:$12 sps:$4 sm:$0xff]  }
 0x194   : > { %8769 = vmatpush3.bf16.msra.mxu1 %v9572_v8  ;;  %4225 = vmatprep.subr.bf16.mxu0 %v9575_v30  ;;  %v9606_v30 = vld [vmem:[%s12871_s3 + $0x3f4] ss:$8 sps:$4 sm:$0xff]  }
 0x195   : > { %8770 = vmatprep.subr.bf16.mxu1 %v9576_v31 }
 0x197   : > { %4226 = vmatpush1.bf16.msra.mxu0 %v9573_v13  ;;  %v9601_v13 = vld [vmem:[%s12870_s2 + $0x8e8] ss:$12 sps:$4 sm:$0xff]  }
 0x198   : > { %8771 = vmatpush3.bf16.msra.mxu1 %v9577_v54  ;;  %4227 = vmatprep.subr.bf16.mxu0 %v9580_v12  ;;  %v9604_v54 = vld [vmem:[%s12871_s3 + $0x3f0] ss:$8 sps:$4 sm:$0xff]  }
 0x199   : > { %8772 = vmatprep.subr.bf16.mxu1 %v9581_v5  ;;  %v9609_v5 = vld [vmem:[%s12871_s3 + $0x404] ss:$8 sps:$4 sm:$0xff]  }
 0x19b   : > { %4228 = vmatpush1.bf16.msra.mxu0 %v9578_v21 }
 0x19c   : > { %8773 = vmatpush3.bf16.msra.mxu1 %v9582_v38  ;;  %4229 = vmatprep.subr.bf16.mxu0 %v9585_v23  ;;  %v9610_v38 = vld [vmem:[%s12870_s2 + $0x900] ss:$12 sps:$4 sm:$0xff]   ;;  %v9618_v23 = vld [vmem:[%s12870_s2 + $0x91c] ss:$12 sps:$4 sm:$0xff]  }
 0x19d   : > { %4494 = vmatprep.subr.bf16.mxu1 %v9588_v4  ;;  %v12902_v4 = vshrl.u32 %v10250_v18, 16 }
 0x19f   : > { %4289 = vmatmul.mubr.bf16.vlgmr.msra.gmra.mrb[40].mxu1 %v11247_v24  ;;  %4230 = vmatpush1.bf16.msra.mxu0 %v9583_v46  ;;  %v4662_v60 = vrot.slane %v12902_v4, 2  ;;  %v9648_v4 = vld [vmem:[%s12870_s2 + $0x994] ss:$12 sps:$4 sm:$0xff]  }
 0x1a0   : > { %4495 = vmatpush1.bf16.msra.mxu1 %v9586_v19  ;;  %4231 = vmatprep.subr.bf16.mxu0 %v9591_v56  ;;  %v12903_v56 = vshrl.u32 %v10217_v6, 16 }
 0x1a1   : > { %4496 = vmatprep.subr.bf16.mxu1 %v9594_v53  ;;  %4296 = vmatprep.mubr.bf16.mxu1 %v3944_v55 }
 0x1a2   : > { %v8690_v7 = vpop.f32.mrb[24].mxu1  ;;  %v4659_v53 = vrot.slane %v12903_v56, 2  ;;  %v9651_v56 = vld [vmem:[%s12871_s3 + $0x474] ss:$8 sps:$4 sm:$0xff]  }
 0x1a3   : > { %v8691_v63 = vpop.f32.mrb[25].mxu1  ;;  %4232 = vmatpush1.bf16.msra.mxu0 %v9589_v62  ;;  %v12904_v62 = vshll.u32 %v10217_v6, 16 }
 0x1a4   : > { %v8692_v9 = vadd.f32 %v8691_v63, %v8690_v7  ;;  %v8693_v16 = vpop.f32.mrb[26].mxu1  ;;  %4497 = vmatpush1.bf16.msra.mxu1 %v9592_v20  ;;  %4233 = vmatprep.subr.bf16.mxu0 %v9597_v26  ;;  %v12905_v20 = vshll.u32 %v10250_v18, 16  ;;  %v9613_v18 = vld [vmem:[%s12871_s3 + $0x410] ss:$8 sps:$4 sm:$0xff]  }
 0x1a5   : > { %v8694_v8 = vpop.f32.mrb[27].mxu1  ;;  %4498 = vmatprep.subr.bf16.mxu1 %v9600_v59  ;;  %v4660_v17 = vrot.slane %v12904_v62, 3  ;;  %v9615_v59 = vld [vmem:[%s12871_s3 + $0x414] ss:$8 sps:$4 sm:$0xff]  }
 0x1a6   : > { %v11754_v35 = vadd.f32 %v8692_v9, %v11261_v15  ;;  %v8695_v31 = vadd.f32 %v8694_v8, %v8693_v16  ;;  %v9612_v15 = vld [vmem:[%s12870_s2 + $0x904] ss:$12 sps:$4 sm:$0xff]   ;;  %v4663_v26 = vrot.slane %v12905_v20, 3  ;;  %v9619_v16 = vld [vmem:[%s12871_s3 + $0x420] ss:$8 sps:$4 sm:$0xff]  }
 0x1a7   : > { %4297 = vmatmul.mubr.bf16.gmra.mrb[44].mxu1 %v11742_v28  ;;  %4234 = vmatpush1.bf16.msra.mxu0 %v9595_v2  ;;  %v9616_v2 = vld [vmem:[%s12870_s2 + $0x918] ss:$12 sps:$4 sm:$0xff]   ;;  %v9652_v62 = vld [vmem:[%s12870_s2 + $0x9a8] ss:$12 sps:$4 sm:$0xff]   ;;  %v9655_v20 = vld [vmem:[%s12870_s2 + $0x9c0] ss:$12 sps:$4 sm:$0xff]  }
 0x1a8   : > { %v11764_v12 = vadd.f32 %v8695_v31, %v11271_v22  ;;  %4499 = vmatpush1.bf16.msra.mxu1 %v9598_v36  ;;  %4235 = vmatprep.subr.bf16.mxu0 %v9603_v1  ;;  %v9607_v22 = vld [vmem:[%s12871_s3 + $0x400] ss:$8 sps:$4 sm:$0xff]   ;;  %v9621_v36 = vld [vmem:[%s12871_s3 + $0x424] ss:$8 sps:$4 sm:$0xff]   ;;  %v11810_v9 = vor.u32 %v4663_v26, %v4662_v60  ;;  %v9625_v31 = vld [vmem:[%s12871_s3 + $0x430] ss:$8 sps:$4 sm:$0xff]  }
 0x1a9   : > { %4500 = vmatprep.subr.bf16.mxu1 %v9606_v30  ;;  %8102 = vmatprep.mubr.msk.bf16.mxu1 %vm1558_vm0, %v11446_v47  ;;  %v9630_v1 = vld [vmem:[%s12870_s2 + $0x94c] ss:$12 sps:$4 sm:$0xff]   ;;  %v9627_v30 = vld [vmem:[%s12871_s3 + $0x434] ss:$8 sps:$4 sm:$0xff]  }
 0x1aa   : > { %v8696_v21 = vpop.f32.mrb[28].mxu1  ;;  %v9645_v60 = vld [vmem:[%s12871_s3 + $0x464] ss:$8 sps:$4 sm:$0xff]   ;;  %v9658_v26 = vld [vmem:[%s12870_s2 + $0x9c8] ss:$12 sps:$4 sm:$0xff]  }
 0x1ab   : > { %v8697_v46 = vpop.f32.mrb[29].mxu1  ;;  %4236 = vmatpush1.bf16.msra.mxu0 %v9601_v13  ;;  %v9628_v13 = vld [vmem:[%s12870_s2 + $0x948] ss:$12 sps:$4 sm:$0xff]  }
 0x1ac   : > { %v8698_v19 = vadd.f32 %v8697_v46, %v8696_v21  ;;  %4501 = vmatpush1.bf16.msra.mxu1 %v9604_v54  ;;  %4926 = vmatprep.subr.bf16.mxu0 %v9612_v15  ;;  %v8699_v47 = vpop.f32.mrb[30].mxu1  ;;  %v9636_v54 = vld [vmem:[%s12870_s2 + $0x964] ss:$12 sps:$4 sm:$0xff]   ;;  %v9642_v21 = vld [vmem:[%s12870_s2 + $0x97c] ss:$12 sps:$4 sm:$0xff]  }
 0x1ad   : > { %4502 = vmatprep.subr.bf16.mxu1 %v9609_v5  ;;  %v8700_v7 = vpop.f32.mrb[31].mxu1  ;;  %v9633_v15 = vld [vmem:[%s12871_s3 + $0x444] ss:$8 sps:$4 sm:$0xff]   ;;  %v9643_v46 = vld [vmem:[%s12871_s3 + $0x460] ss:$8 sps:$4 sm:$0xff]  }
 0x1ae   : > { %v11795_v63 = vadd.f32 %v8698_v19, %v11294_v41  ;;  %4238 = vmatmul.mubr.bf16.vlgmr.msra.gmra.mrb[0].mxu0 %v11247_v24  ;;  %v9624_v24 = vld [vmem:[%s12870_s2 + $0x934] ss:$12 sps:$4 sm:$0xff]   ;;  %v4661_v41 = vor.u32 %v4660_v17, %v4659_v53  ;;  %v9646_v19 = vld [vmem:[%s12870_s2 + $0x990] ss:$12 sps:$4 sm:$0xff]   ;;  %v9654_v47 = vld [vmem:[%s12870_s2 + $0x9ac] ss:$12 sps:$4 sm:$0xff]  }
 0x1af   : > { %4927 = vmatpush1.bf16.msra.mxu0 %v9610_v38  ;;  %4247 = vmatprep.mubr.bf16.mxu0 %v3944_v55  ;;  %v9622_v55 = vld [vmem:[%s12870_s2 + $0x930] ss:$12 sps:$4 sm:$0xff]   ;;  %v9634_v5 = vld [vmem:[%s12870_s2 + $0x960] ss:$12 sps:$4 sm:$0xff]   ;;  %v9659_v7 = vld [vmem:[%s12870_s2 + $0x908] ss:$12 sps:$4 sm:$0xff]  }
 0x1b0   : > { %4503 = vmatpush1.bf16.msra.mxu1 %v9607_v22  ;;  %4928 = vmatprep.subr.bf16.mxu0 %v9618_v23  ;;  %v11823_v8 = vsel %vm4651_vm5, %v4661_v41, %v11810_v9  ;;  %v9639_v22 = vld [vmem:[%s12871_s3 + $0x454] ss:$8 sps:$4 sm:$0xff]   ;;  %v9637_v38 = vld [vmem:[%s12871_s3 + $0x450] ss:$8 sps:$4 sm:$0xff]   ;;  %v9664_v41 = vld [vmem:[%s12870_s2 + $0x920] ss:$12 sps:$4 sm:$0xff]  }
 0x1b1   : > { %4504 = vmatprep.subr.bf16.mxu1 %v9615_v59  ;;  %v9640_v23 = vld [vmem:[%s12870_s2 + $0x978] ss:$12 sps:$4 sm:$0xff]   ;;  %v4363_v59 = vshrl.u32 %v11411_v32, 16 }
 0x1b2   : > { %v9649_v53 = vld [vmem:[%s12871_s3 + $0x470] ss:$8 sps:$4 sm:$0xff]  }
 0x1b3   : > { %4929 = vmatpush1.bf16.msra.mxu0 %v9616_v2  ;;  %v9657_v17 = vld [vmem:[%s12870_s2 + $0x9c4] ss:$12 sps:$4 sm:$0xff]   ;;  %v9662_v2 = vld [vmem:[%s12870_s2 + $0x9dc] ss:$12 sps:$4 sm:$0xff]  }
 0x1b4   : > { %4505 = vmatpush1.bf16.msra.mxu1 %v9613_v18  ;;  %4930 = vmatprep.subr.bf16.mxu0 %v9624_v24  ;;  %v9663_v18 = vld [vmem:[%s12870_s2 + $0x9e0] ss:$12 sps:$4 sm:$0xff]   ;;  %v9660_v32 = vld [vmem:[%s12870_s2 + $0x9d8] ss:$12 sps:$4 sm:$0xff]   ;;  %v4360_v24 = vshrl.u32 %v11395_v34, 16 }
 0x1b5   : > { %4506 = vmatprep.subr.bf16.mxu1 %v9621_v36  ;;  %v4365_v36 = vor.u32 %v4363_v59, %v11436_v44  ;;  %v9665_v44 = vld [vmem:[%s12870_s2 + $0x9f0] ss:$12 sps:$4 sm:$0xff]  }
 0x1b6   : > { %4248 = vmatmul.mubr.bf16.gmra.mrb[4].mxu0 %v11742_v28  ;;  %v9631_v28 = vld [vmem:[%s12871_s3 + $0x440] ss:$8 sps:$4 sm:$0xff]   ;;  %v4362_v34 = vor.u32 %v4360_v24, %v11434_v52  ;;  %v9674_v52 = vld [vmem:[%s12870_s2 + $0x950] ss:$12 sps:$4 sm:$0xff]   ;;  %v5372_v24 = vshrl.u32 %v10182_v57, 16 }
 0x1b7   : > { %4931 = vmatpush1.bf16.msra.mxu0 %v9622_v55  ;;  %4958 = vmatprep.mubr.bf16.mxu0 %v11823_v8  ;;  %v9667_v55 = vld [vmem:[%s12870_s2 + $0x9f4] ss:$12 sps:$4 sm:$0xff]   ;;  %v9700_v59 = vld [vmem:[%s12870_s2 + $0xa84] ss:$12 sps:$4 sm:$0xff]  }
 0x1b8   : > { %4507 = vmatpush1.bf16.msra.mxu1 %v9619_v16  ;;  %4932 = vmatprep.subr.bf16.mxu0 %v9630_v1  ;;  %v9669_v16 = vld [vmem:[%s12870_s2 + $0x938] ss:$12 sps:$4 sm:$0xff]  }
 0x1b9   : > { %4508 = vmatprep.subr.bf16.mxu1 %v9627_v30  ;;  %v9672_v1 = vld [vmem:[%s12870_s2 + $0xa0c] ss:$12 sps:$4 sm:$0xff]   ;;  %v9670_v30 = vld [vmem:[%s12870_s2 + $0xa08] ss:$12 sps:$4 sm:$0xff]  }
 0x1bb   : > { %4933 = vmatpush1.bf16.msra.mxu0 %v9628_v13  ;;  %v9677_v13 = vld [vmem:[%s12870_s2 + $0xa24] ss:$12 sps:$4 sm:$0xff]  }
 0x1bc   : > { %4509 = vmatpush1.bf16.msra.mxu1 %v9625_v31  ;;  %4934 = vmatprep.subr.bf16.mxu0 %v9636_v54  ;;  %v9673_v31 = vld [vmem:[%s12870_s2 + $0xa10] ss:$12 sps:$4 sm:$0xff]   ;;  %v9675_v54 = vld [vmem:[%s12870_s2 + $0xa20] ss:$12 sps:$4 sm:$0xff]  }
 0x1bd   : > { %4510 = vmatprep.subr.bf16.mxu1 %v9633_v15  ;;  %v9678_v15 = vld [vmem:[%s12870_s2 + $0xa28] ss:$12 sps:$4 sm:$0xff]  }
 0x1bf   : > { %4935 = vmatpush1.bf16.msra.mxu0 %v9634_v5  ;;  %v9682_v5 = vld [vmem:[%s12870_s2 + $0xa3c] ss:$12 sps:$4 sm:$0xff]  }
 0x1c0   : > { %4511 = vmatpush1.bf16.msra.mxu1 %v9631_v28  ;;  %4936 = vmatprep.subr.bf16.mxu0 %v9642_v21  ;;  %v9679_v28 = vld [vmem:[%s12870_s2 + $0x968] ss:$12 sps:$4 sm:$0xff]   ;;  %v9680_v21 = vld [vmem:[%s12870_s2 + $0xa38] ss:$12 sps:$4 sm:$0xff]  }
 0x1c1   : > { %4512 = vmatprep.subr.bf16.mxu1 %v9639_v22  ;;  %v12906_v22 = vshrl.u32 %v10239_v14, 16 }
 0x1c3   : > { %4937 = vmatpush1.bf16.msra.mxu0 %v9640_v23  ;;  %v9684_v23 = vld [vmem:[%s12870_s2 + $0x980] ss:$12 sps:$4 sm:$0xff]  }
 0x1c4   : > { %4513 = vmatpush1.bf16.msra.mxu1 %v9637_v38  ;;  %4938 = vmatprep.subr.bf16.mxu0 %v9648_v4  ;;  %v4652_v38 = vrot.slane %v12906_v22, 2  ;;  %v9687_v4 = vld [vmem:[%s12870_s2 + $0xa54] ss:$12 sps:$4 sm:$0xff]   ;;  %v9709_v22 = vld [vmem:[%s12871_s3 + $0x4a4] ss:$8 sps:$4 sm:$0xff]  }
 0x1c5   : > { %4514 = vmatprep.subr.bf16.mxu1 %v9645_v60  ;;  %v9685_v60 = vld [vmem:[%s12870_s2 + $0xa50] ss:$12 sps:$4 sm:$0xff]  }
 0x1c7   : > { %4939 = vmatpush1.bf16.msra.mxu0 %v9646_v19  ;;  %v12907_v19 = vshll.u32 %v10239_v14, 16 }
 0x1c8   : > { %4515 = vmatpush1.bf16.msra.mxu1 %v9643_v46  ;;  %4940 = vmatprep.subr.bf16.mxu0 %v9654_v47  ;;  %v9688_v46 = vld [vmem:[%s12870_s2 + $0xa58] ss:$12 sps:$4 sm:$0xff]  }
 0x1c9   : > { %4516 = vmatprep.subr.bf16.mxu1 %v9651_v56  ;;  %v4653_v47 = vrot.slane %v12907_v19, 3  ;;  %v9689_v56 = vld [vmem:[%s12870_s2 + $0x998] ss:$12 sps:$4 sm:$0xff]  }
 0x1cb   : > { %4941 = vmatpush1.bf16.msra.mxu0 %v9652_v62  ;;  %v9690_v62 = vld [vmem:[%s12870_s2 + $0xa68] ss:$12 sps:$4 sm:$0xff]  }
 0x1cc   : > { %4517 = vmatpush1.bf16.msra.mxu1 %v9649_v53  ;;  %4942 = vmatprep.subr.bf16.mxu0 %v9657_v17  ;;  %v9692_v53 = vld [vmem:[%s12870_s2 + $0xa6c] ss:$12 sps:$4 sm:$0xff]   ;;  %v9693_v17 = vld [vmem:[%s12870_s2 + $0xa70] ss:$12 sps:$4 sm:$0xff]  }
 0x1cd   : > { %8786 = vmatprep.subr.bf16.mxu1 %v9658_v26  ;;  %v9694_v26 = vld [vmem:[%s12870_s2 + $0x9b0] ss:$12 sps:$4 sm:$0xff]  }
 0x1cf   : > { %4527 = vmatmul.mubr.bf16.vlgmr.msra.gmra.mrb[16].mxu1 %v11460_v0  ;;  %4943 = vmatpush1.bf16.msra.mxu0 %v9655_v20  ;;  %v9668_v0 = vld [vmem:[%s12870_s2 + $0x9f8] ss:$12 sps:$4 sm:$0xff]   ;;  %v4654_v20 = vor.u32 %v4653_v47, %v4652_v38 }
 0x1d0   : > { %8787 = vmatpush3.bf16.msra.mxu1 %v9659_v7  ;;  %4944 = vmatprep.subr.bf16.mxu0 %v9662_v2  ;;  %v9697_v7 = vld [vmem:[%s12871_s3 + $0x484] ss:$8 sps:$4 sm:$0xff]  }
 0x1d1   : > { %8788 = vmatprep.subr.bf16.mxu1 %v9663_v18  ;;  %8103 = vmatprep.mubr.msk.bf16.mxu1 %vm1558_vm0, %v4365_v36  ;;  %v9698_v2 = vld [vmem:[%s12870_s2 + $0xa80] ss:$12 sps:$4 sm:$0xff]   ;;  %v4658_v18 = vsel %vm4651_vm5, %v4654_v20, %v10303_v39  ;;  %v5364_v36 = vshrl.u32 %v10111_v33, 16 }
 0x1d3   : > { %4945 = vmatpush1.bf16.msra.mxu0 %v9660_v32  ;;  %v5367_v32 = vshll.u32 %v10111_v33, 16  ;;  %v9704_v33 = vld [vmem:[%s12870_s2 + $0xa98] ss:$12 sps:$4 sm:$0xff]  }
 0x1d4   : > { %8789 = vmatpush3.bf16.msra.mxu1 %v9664_v41  ;;  %4946 = vmatprep.subr.bf16.mxu0 %v9667_v55  ;;  %v5375_v41 = vshll.u32 %v10182_v57, 16  ;;  %v9695_v55 = vld [vmem:[%s12871_s3 + $0x480] ss:$8 sps:$4 sm:$0xff]   ;;  %v9701_v57 = vld [vmem:[%s12871_s3 + $0x490] ss:$8 sps:$4 sm:$0xff]  }
 0x1d5   : > { %8790 = vmatprep.subr.bf16.mxu1 %v9668_v0  ;;  %v9703_v0 = vld [vmem:[%s12871_s3 + $0x494] ss:$8 sps:$4 sm:$0xff]  }
 0x1d7   : > { %4947 = vmatpush1.bf16.msra.mxu0 %v9665_v44  ;;  %4537 = vmatmul.mubr.bf16.gmra.mrb[20].mxu1 %v4362_v34  ;;  %v9706_v44 = vld [vmem:[%s12870_s2 + $0xa9c] ss:$12 sps:$4 sm:$0xff]   ;;  %v9712_v34 = vld [vmem:[%s12870_s2 + $0xab4] ss:$12 sps:$4 sm:$0xff]  }
 0x1d8   : > { %8791 = vmatpush3.bf16.msra.mxu1 %v9669_v16  ;;  %4948 = vmatprep.subr.bf16.mxu0 %v9672_v1  ;;  %v12908_v16 = vshrl.u32 %v10553_v3, 16 }
 0x1d9   : > { %8792 = vmatprep.subr.bf16.mxu1 %v9673_v31  ;;  %5009 = vmatprep.mubr.bf16.mxu1 %v11823_v8  ;;  %v9683_v8 = vld [vmem:[%s12870_s2 + $0xa40] ss:$12 sps:$4 sm:$0xff]  }
 0x1da   : > { %v5066_v1 = vrot.slane %v12908_v16, 2 }
 0x1db   : > { %4949 = vmatpush1.bf16.msra.mxu0 %v9670_v30  ;;  %v12909_v30 = vshll.u32 %v10553_v3, 16 }
 0x1dc   : > { %8793 = vmatpush3.bf16.msra.mxu1 %v9674_v52  ;;  %4950 = vmatprep.subr.bf16.mxu0 %v9677_v13  ;;  %v12910_v52 = vshrl.u32 %v10678_v48, 16 }
 0x1dd   : > { %8794 = vmatprep.subr.bf16.mxu1 %v9678_v15  ;;  %v5067_v31 = vrot.slane %v12909_v30, 3  ;;  %v9725_v30 = vld [vmem:[%s12871_s3 + $0x4d0] ss:$8 sps:$4 sm:$0xff]  }
 0x1de   : > { %v5069_v13 = vrot.slane %v12910_v52, 2  ;;  %v9734_v52 = vld [vmem:[%s12870_s2 + $0xb10] ss:$12 sps:$4 sm:$0xff]  }
 0x1df   : > { %4951 = vmatpush1.bf16.msra.mxu0 %v9675_v54  ;;  %v12911_v54 = vshll.u32 %v10678_v48, 16 }
 0x1e0   : > { %8795 = vmatpush3.bf16.msra.mxu1 %v9679_v28  ;;  %4952 = vmatprep.subr.bf16.mxu0 %v9682_v5  ;;  %v5366_v28 = vrot.slane %v5364_v36, 2  ;;  %v5369_v5 = vrot.slane %v5367_v32, 3  ;;  %v9713_v36 = vld [vmem:[%s12871_s3 + $0x4b0] ss:$8 sps:$4 sm:$0xff]   ;;  %v9721_v32 = vld [vmem:[%s12871_s3 + $0x4c4] ss:$8 sps:$4 sm:$0xff]  }
 0x1e1   : > { %8796 = vmatprep.subr.bf16.mxu1 %v9683_v8  ;;  %v5070_v15 = vrot.slane %v12911_v54, 3  ;;  %v5377_v8 = vrot.slane %v5375_v41, 3  ;;  %v9722_v41 = vld [vmem:[%s12870_s2 + $0xae0] ss:$12 sps:$4 sm:$0xff]  }
 0x1e2   : > { %v9742_v54 = vld [vmem:[%s12870_s2 + $0xb2c] ss:$12 sps:$4 sm:$0xff]  }
 0x1e3   : > { %4953 = vmatpush1.bf16.msra.mxu0 %v9680_v21  ;;  %v5374_v21 = vrot.slane %v5372_v24, 2  ;;  %v12045_v19 = vor.u32 %v5070_v15, %v5069_v13  ;;  %v9731_v13 = vld [vmem:[%s12871_s3 + $0x4e0] ss:$8 sps:$4 sm:$0xff]   ;;  %v9739_v15 = vld [vmem:[%s12871_s3 + $0x4f4] ss:$8 sps:$4 sm:$0xff]  }
 0x1e4   : > { %8797 = vmatpush3.bf16.msra.mxu1 %v9684_v23  ;;  %4954 = vmatprep.subr.bf16.mxu0 %v9687_v4  ;;  %v9707_v23 = vld [vmem:[%s12871_s3 + $0x4a0] ss:$8 sps:$4 sm:$0xff]   ;;  %v9710_v4 = vld [vmem:[%s12870_s2 + $0xab0] ss:$12 sps:$4 sm:$0xff]  }
 0x1e5   : > { %8798 = vmatprep.subr.bf16.mxu1 %v9688_v46  ;;  %v5068_v46 = vor.u32 %v5067_v31, %v5066_v1  ;;  %v9728_v1 = vld [vmem:[%s12870_s2 + $0xaf8] ss:$12 sps:$4 sm:$0xff]   ;;  %v9736_v31 = vld [vmem:[%s12870_s2 + $0xb14] ss:$12 sps:$4 sm:$0xff]  }
 0x1e7   : > { %4955 = vmatpush1.bf16.msra.mxu0 %v9685_v60  ;;  %v9718_v60 = vld [vmem:[%s12870_s2 + $0xacc] ss:$12 sps:$4 sm:$0xff]  }
 0x1e8   : > { %8799 = vmatpush3.bf16.msra.mxu1 %v9689_v56  ;;  %4956 = vmatprep.subr.bf16.mxu0 %v9692_v53  ;;  %v5370_v56 = vor.u32 %v5369_v5, %v5366_v28  ;;  %v12048_v53 = vor.u32 %v5377_v8, %v5374_v21  ;;  %v9740_v28 = vld [vmem:[%s12870_s2 + $0xb28] ss:$12 sps:$4 sm:$0xff]   ;;  %v9737_v5 = vld [vmem:[%s12871_s3 + $0x4f0] ss:$8 sps:$4 sm:$0xff]   ;;  %v9745_v8 = vld [vmem:[%s12871_s3 + $0x504] ss:$8 sps:$4 sm:$0xff]  }
 0x1e9   : > { %8800 = vmatprep.subr.bf16.mxu1 %v9693_v17  ;;  %v9748_v21 = vld [vmem:[%s12870_s2 + $0xb44] ss:$12 sps:$4 sm:$0xff]  }
 0x1eb   : > { %4957 = vmatpush1.bf16.msra.mxu0 %v9690_v62 }
 0x1ec   : > { %8801 = vmatpush3.bf16.msra.mxu1 %v9694_v26  ;;  %5640 = vmatprep.subr.bf16.mxu0 %v9700_v59  ;;  %v9715_v26 = vld [vmem:[%s12871_s3 + $0x4b4] ss:$8 sps:$4 sm:$0xff]  }
 0x1ed   : > { %5201 = vmatprep.subr.bf16.mxu1 %v9697_v7 }
 0x1ee   : > { %4959 = vmatmul.mubr.bf16.vlgmr.msra.gmra.mrb[0].mxu0 %v4658_v18 }
 0x1ef   : > { %5010 = vmatmul.mubr.bf16.vlgmr.msra.gmra.mrb[48].mxu1 %v4658_v18  ;;  %5641 = vmatpush1.bf16.msra.mxu0 %v9698_v2  ;;  %v9716_v2 = vld [vmem:[%s12870_s2 + $0xac8] ss:$12 sps:$4 sm:$0xff]   ;;  %v12065_v18 = vsel %vm4651_vm5, %v5370_v56, %v12048_v53  ;;  %v9757_v56 = vld [vmem:[%s12871_s3 + $0x524] ss:$8 sps:$4 sm:$0xff]  }
 0x1f0   : > { %5202 = vmatpush1.bf16.msra.mxu1 %v9695_v55  ;;  %5642 = vmatprep.subr.bf16.mxu0 %v9706_v44  ;;  %v9719_v44 = vld [vmem:[%s12871_s3 + $0x4c0] ss:$8 sps:$4 sm:$0xff]  }
 0x1f1   : > { %5203 = vmatprep.subr.bf16.mxu1 %v9703_v0  ;;  %5017 = vmatprep.mubr.bf16.mxu1 %v11810_v9  ;;  %v9730_v0 = vld [vmem:[%s12870_s2 + $0xafc] ss:$12 sps:$4 sm:$0xff]  }
 0x1f2   : > { %v8718_v38 = vpop.f32.mrb[32].mxu1  ;;  %4968 = vmatprep.mubr.bf16.mxu0 %v11810_v9  ;;  %v5072_v9 = vsel %vm4651_vm5, %v5068_v46, %v12045_v19  ;;  %v9749_v46 = vld [vmem:[%s12871_s3 + $0x510] ss:$8 sps:$4 sm:$0xff]  }
 0x1f3   : > { %v8719_v47 = vpop.f32.mrb[33].mxu1  ;;  %5643 = vmatpush1.bf16.msra.mxu0 %v9704_v33 }
 0x1f4   : > { %v8720_v62 = vadd.f32 %v8719_v47, %v8718_v38  ;;  %v8721_v17 = vpop.f32.mrb[34].mxu1  ;;  %5204 = vmatpush1.bf16.msra.mxu1 %v9701_v57  ;;  %5644 = vmatprep.subr.bf16.mxu0 %v9712_v34  ;;  %v9727_v57 = vld [vmem:[%s12871_s3 + $0x4d4] ss:$8 sps:$4 sm:$0xff]   ;;  %v9743_v38 = vld [vmem:[%s12871_s3 + $0x500] ss:$8 sps:$4 sm:$0xff]  }
 0x1f5   : > { %v8722_v20 = vpop.f32.mrb[35].mxu1  ;;  %5205 = vmatprep.subr.bf16.mxu1 %v9709_v22  ;;  %v9746_v22 = vld [vmem:[%s12870_s2 + $0xb40] ss:$12 sps:$4 sm:$0xff]  }
 0x1f6   : > { %v12054_v59 = vadd.f32 %v8720_v62, %v11754_v35  ;;  %v8723_v7 = vadd.f32 %v8722_v20, %v8721_v17  ;;  %4969 = vmatmul.mubr.bf16.gmra.mrb[4].mxu0 %v10303_v39  ;;  %v9760_v47 = vld [vmem:[%s12870_s2 + $0xb74] ss:$12 sps:$4 sm:$0xff]   ;;  %v9758_v62 = vld [vmem:[%s12870_s2 + $0xb70] ss:$12 sps:$4 sm:$0xff]   ;;  %v9766_v20 = vld [vmem:[%s12870_s2 + $0xb8c] ss:$12 sps:$4 sm:$0xff]  }
 0x1f7   : > { %5018 = vmatmul.mubr.bf16.gmra.mrb[52].mxu1 %v10303_v39  ;;  %5645 = vmatpush1.bf16.msra.mxu0 %v9710_v4  ;;  %v9724_v39 = vld [vmem:[%s12870_s2 + $0xae4] ss:$12 sps:$4 sm:$0xff]   ;;  %v9751_v4 = vld [vmem:[%s12871_s3 + $0x514] ss:$8 sps:$4 sm:$0xff]   ;;  %v9755_v17 = vld [vmem:[%s12871_s3 + $0x520] ss:$8 sps:$4 sm:$0xff]  }
 0x1f8   : > { %v12068_v35 = vadd.f32 %v8723_v7, %v11764_v12  ;;  %5206 = vmatpush1.bf16.msra.mxu1 %v9707_v23  ;;  %5646 = vmatprep.subr.bf16.mxu0 %v9718_v60  ;;  %v9754_v23 = vld [vmem:[%s12870_s2 + $0xb5c] ss:$12 sps:$4 sm:$0xff]   ;;  %v9752_v60 = vld [vmem:[%s12870_s2 + $0xb58] ss:$12 sps:$4 sm:$0xff]  }
 0x1f9   : > { %5207 = vmatprep.subr.bf16.mxu1 %v9715_v26  ;;  %8264 = vmatprep.mubr.msk.bf16.mxu1 %vm1558_vm0, %v5072_v9  ;;  %v12912_v26 = vshrl.u32 %v10663_v40, 16  ;;  %v12913_v9 = vshll.u32 %v10663_v40, 16 }
 0x1fa   : > { %v8724_v24 = vpop.f32.mrb[36].mxu1  ;;  %5672 = vmatprep.mubr.bf16.mxu0 %v12065_v18 }
 0x1fb   : > { %v8725_v12 = vpop.f32.mrb[37].mxu1  ;;  %5647 = vmatpush1.bf16.msra.mxu0 %v9716_v2  ;;  %v5059_v7 = vrot.slane %v12912_v26, 2  ;;  %v5060_v2 = vrot.slane %v12913_v9, 3  ;;  %v9792_v26 = vld [vmem:[%s12870_s2 + $0xbc0] ss:$12 sps:$4 sm:$0xff]  }
 0x1fc   : > { %v8726_v55 = vadd.f32 %v8725_v12, %v8724_v24  ;;  %5208 = vmatpush1.bf16.msra.mxu1 %v9713_v36  ;;  %5648 = vmatprep.subr.bf16.mxu0 %v9724_v39  ;;  %v8727_v33 = vpop.f32.mrb[38].mxu1  ;;  %v9763_v36 = vld [vmem:[%s12871_s3 + $0x534] ss:$8 sps:$4 sm:$0xff]   ;;  %v9769_v24 = vld [vmem:[%s12870_s2 + $0xba4] ss:$12 sps:$4 sm:$0xff]  }
 0x1fd   : > { %5209 = vmatprep.subr.bf16.mxu1 %v9721_v32  ;;  %v8728_v34 = vpop.f32.mrb[39].mxu1  ;;  %v9764_v39 = vld [vmem:[%s12870_s2 + $0xb88] ss:$12 sps:$4 sm:$0xff]   ;;  %v9761_v32 = vld [vmem:[%s12871_s3 + $0x530] ss:$8 sps:$4 sm:$0xff]   ;;  %v5061_v12 = vor.u32 %v5060_v2, %v5059_v7 }
 0x1fe   : > { %v12094_v16 = vadd.f32 %v8726_v55, %v11795_v63  ;;  %v9733_v63 = vld [vmem:[%s12871_s3 + $0x4e4] ss:$8 sps:$4 sm:$0xff]   ;;  %v9774_v33 = vld [vmem:[%s12870_s2 + $0xbbc] ss:$12 sps:$4 sm:$0xff]   ;;  %v9800_v2 = vld [vmem:[%s12870_s2 + $0xc34] ss:$12 sps:$4 sm:$0xff]  }
 0x1ff   : > { %5649 = vmatpush1.bf16.msra.mxu0 %v9722_v41  ;;  %v9770_v41 = vld [vmem:[%s12870_s2 + $0xb48] ss:$12 sps:$4 sm:$0xff]   ;;  %v9767_v55 = vld [vmem:[%s12870_s2 + $0xba0] ss:$12 sps:$4 sm:$0xff]   ;;  %v9772_v34 = vld [vmem:[%s12870_s2 + $0xbb8] ss:$12 sps:$4 sm:$0xff]  }
 0x200   : > { %5210 = vmatpush1.bf16.msra.mxu1 %v9719_v44  ;;  %5650 = vmatprep.subr.bf16.mxu0 %v9730_v0  ;;  %v5065_v44 = vsel %vm4651_vm5, %v5061_v12, %v10680_v49  ;;  %v9771_v0 = vld [vmem:[%s12870_s2 + $0xa88] ss:$12 sps:$4 sm:$0xff]   ;;  %v9793_v7 = vld [vmem:[%s12870_s2 + $0xc18] ss:$12 sps:$4 sm:$0xff]   ;;  %v9796_v9 = vld [vmem:[%s12870_s2 + $0xb00] ss:$12 sps:$4 sm:$0xff]  }
 0x201   : > { %5211 = vmatprep.subr.bf16.mxu1 %v9727_v57  ;;  %v9775_v57 = vld [vmem:[%s12870_s2 + $0xb60] ss:$12 sps:$4 sm:$0xff]   ;;  %v9801_v12 = vld [vmem:[%s12870_s2 + $0xb18] ss:$12 sps:$4 sm:$0xff]  }
 0x203   : > { %5651 = vmatpush1.bf16.msra.mxu0 %v9728_v1  ;;  %v5347_v1 = vshrl.u32 %v10124_v37, 16 }
 0x204   : > { %5212 = vmatpush1.bf16.msra.mxu1 %v9725_v30  ;;  %5652 = vmatprep.subr.bf16.mxu0 %v9736_v31  ;;  %v5350_v30 = vshll.u32 %v10124_v37, 16  ;;  %v5355_v31 = vshrl.u32 %v10184_v58, 16  ;;  %v9777_v37 = vld [vmem:[%s12870_s2 + $0xbd0] ss:$12 sps:$4 sm:$0xff]  }
 0x205   : > { %5213 = vmatprep.subr.bf16.mxu1 %v9733_v63  ;;  %v5358_v63 = vshll.u32 %v10184_v58, 16  ;;  %v5349_v58 = vrot.slane %v5347_v1, 2  ;;  %v5793_v1 = vshll.u32 %v10403_v25, 16 }
 0x207   : > { %5653 = vmatpush1.bf16.msra.mxu0 %v9734_v52  ;;  %v9776_v52 = vld [vmem:[%s12870_s2 + $0xaa0] ss:$12 sps:$4 sm:$0xff]  }
 0x208   : > { %5214 = vmatpush1.bf16.msra.mxu1 %v9731_v13  ;;  %5654 = vmatprep.subr.bf16.mxu0 %v9742_v54  ;;  %v9779_v13 = vld [vmem:[%s12870_s2 + $0xbd4] ss:$12 sps:$4 sm:$0xff]   ;;  %v9780_v54 = vld [vmem:[%s12870_s2 + $0xb78] ss:$12 sps:$4 sm:$0xff]  }
 0x209   : > { %5215 = vmatprep.subr.bf16.mxu1 %v9739_v15  ;;  %v5352_v15 = vrot.slane %v5350_v30, 3  ;;  %v5797_v30 = vshrl.u32 %v10511_v42, 16 }
 0x20b   : > { %5655 = vmatpush1.bf16.msra.mxu0 %v9740_v28  ;;  %v5357_v28 = vrot.slane %v5355_v31, 2  ;;  %v5800_v31 = vshll.u32 %v10511_v42, 16 }
 0x20c   : > { %5216 = vmatpush1.bf16.msra.mxu1 %v9737_v5  ;;  %5656 = vmatprep.subr.bf16.mxu0 %v9748_v21  ;;  %v5360_v5 = vrot.slane %v5358_v63, 3  ;;  %v9781_v21 = vld [vmem:[%s12870_s2 + $0xab8] ss:$12 sps:$4 sm:$0xff]   ;;  %v9810_v63 = vld [vmem:[%s12870_s2 + $0xc60] ss:$12 sps:$4 sm:$0xff]  }
 0x20d   : > { %5217 = vmatprep.subr.bf16.mxu1 %v9745_v8  ;;  %v9785_v8 = vld [vmem:[%s12870_s2 + $0xb90] ss:$12 sps:$4 sm:$0xff]  }
 0x20f   : > { %5657 = vmatpush1.bf16.msra.mxu0 %v9746_v22  ;;  %v9782_v22 = vld [vmem:[%s12870_s2 + $0xbe8] ss:$12 sps:$4 sm:$0xff]  }
 0x210   : > { %5218 = vmatpush1.bf16.msra.mxu1 %v9743_v38  ;;  %5658 = vmatprep.subr.bf16.mxu0 %v9754_v23  ;;  %v5353_v38 = vor.u32 %v5352_v15, %v5349_v58  ;;  %v12231_v23 = vor.u32 %v5360_v5, %v5357_v28  ;;  %v5802_v58 = vrot.slane %v5800_v31, 3  ;;  %v9816_v15 = vld [vmem:[%s12870_s2 + $0xc78] ss:$12 sps:$4 sm:$0xff]   ;;  %v9824_v5 = vld [vmem:[%s12870_s2 + $0xc94] ss:$12 sps:$4 sm:$0xff]  }
 0x211   : > { %5219 = vmatprep.subr.bf16.mxu1 %v9751_v4  ;;  %v9786_v4 = vld [vmem:[%s12870_s2 + $0xad0] ss:$12 sps:$4 sm:$0xff]   ;;  %v9843_v31 = vld [vmem:[%s12871_s3 + $0x5a0] ss:$8 sps:$4 sm:$0xff]  }
 0x212   : > { %v9813_v28 = vld [vmem:[%s12871_s3 + $0x550] ss:$8 sps:$4 sm:$0xff]  }
 0x213   : > { %5659 = vmatpush1.bf16.msra.mxu0 %v9752_v60  ;;  %v9790_v60 = vld [vmem:[%s12870_s2 + $0xc04] ss:$12 sps:$4 sm:$0xff]  }
 0x214   : > { %5220 = vmatpush1.bf16.msra.mxu1 %v9749_v46  ;;  %5660 = vmatprep.subr.bf16.mxu0 %v9760_v47  ;;  %v9787_v46 = vld [vmem:[%s12870_s2 + $0xba8] ss:$12 sps:$4 sm:$0xff]   ;;  %v12245_v47 = vld [vmem:[%s10092_s16 + $0x18] sm:$0x11] }
 0x215   : > { %5221 = vmatprep.subr.bf16.mxu1 %v9757_v56  ;;  %v5362_v56 = vsel %vm4651_vm5, %v5353_v38, %v12231_v23 }
 0x217   : > { %5661 = vmatpush1.bf16.msra.mxu0 %v9758_v62  ;;  %v9791_v62 = vld [vmem:[%s12870_s2 + $0xae8] ss:$12 sps:$4 sm:$0xff]  }
 0x218   : > { %5222 = vmatpush1.bf16.msra.mxu1 %v9755_v17  ;;  %5662 = vmatprep.subr.bf16.mxu0 %v9766_v20  ;;  %v12259_v17 = vld [vmem:[%s10092_s16 + $0x10] sm:$0xff] }
 0x219   : > { %5223 = vmatprep.subr.bf16.mxu1 %v9763_v36  ;;  %v8493_v20 = vcombine.high %v12259_v17, %v12245_v47  ;;  %v6099_v36 = vrot.slane %v10217_v6, 3  ;;  %v9805_v6 = vld [vmem:[%s12870_s2 + $0xc4c] ss:$12 sps:$4 sm:$0xff]  }
 0x21b   : > { %5663 = vmatpush1.bf16.msra.mxu0 %v9764_v39  ;;  %v12277_v39 = vrot.slane %v8493_v20, 3  ;;  %v9827_v20 = vld [vmem:[%s12871_s3 + $0x574] ss:$8 sps:$4 sm:$0xff]  }
 0x21c   : > { %5224 = vmatpush1.bf16.msra.mxu1 %v9761_v32  ;;  %5664 = vmatprep.subr.bf16.mxu0 %v9769_v24  ;;  %v9797_v32 = vld [vmem:[%s12870_s2 + $0xbd8] ss:$12 sps:$4 sm:$0xff]   ;;  %v9798_v24 = vld [vmem:[%s12870_s2 + $0xc30] ss:$12 sps:$4 sm:$0xff]  }
 0x21d   : > { %8814 = vmatprep.subr.bf16.mxu1 %v9770_v41  ;;  %v12293_v41 = vsel %vm6095_vm6, %v6099_v36, %v12277_v39 }
 0x21f   : > { %5234 = vmatmul.mubr.bf16.vlgmr.msra.gmra.mrb[16].mxu1 %v5065_v44  ;;  %5665 = vmatpush1.bf16.msra.mxu0 %v9767_v55  ;;  %v9802_v55 = vld [vmem:[%s12870_s2 + $0xbf0] ss:$12 sps:$4 sm:$0xff]   ;;  %v9803_v44 = vld [vmem:[%s12870_s2 + $0xc48] ss:$12 sps:$4 sm:$0xff]  }
 0x220   : > { %8815 = vmatpush3.bf16.msra.mxu1 %v9771_v0  ;;  %5666 = vmatprep.subr.bf16.mxu0 %v9774_v33  ;;  %v9806_v0 = vld [vmem:[%s12870_s2 + $0xb30] ss:$12 sps:$4 sm:$0xff]  }
 0x221   : > { %8816 = vmatprep.subr.bf16.mxu1 %v9775_v57  ;;  %8265 = vmatprep.mubr.msk.bf16.mxu1 %vm1558_vm0, %v12045_v19  ;;  %v9784_v19 = vld [vmem:[%s12870_s2 + $0xbec] ss:$12 sps:$4 sm:$0xff]   ;;  %v9812_v33 = vld [vmem:[%s12870_s2 + $0xc64] ss:$12 sps:$4 sm:$0xff]  }
 0x222   : > { %v9809_v57 = vld [vmem:[%s12871_s3 + $0x544] ss:$8 sps:$4 sm:$0xff]  }
 0x223   : > { %5667 = vmatpush1.bf16.msra.mxu0 %v9772_v34  ;;  %v5790_v34 = vshrl.u32 %v10403_v25, 16  ;;  %v9815_v25 = vld [vmem:[%s12871_s3 + $0x554] ss:$8 sps:$4 sm:$0xff]  }
 0x224   : > { %8817 = vmatpush3.bf16.msra.mxu1 %v9776_v52  ;;  %5668 = vmatprep.subr.bf16.mxu0 %v9779_v13  ;;  %v9807_v52 = vld [vmem:[%s12871_s3 + $0x540] ss:$8 sps:$4 sm:$0xff]  }
 0x225   : > { %8818 = vmatprep.subr.bf16.mxu1 %v9780_v54  ;;  %v9818_v13 = vld [vmem:[%s12870_s2 + $0xc7c] ss:$12 sps:$4 sm:$0xff]   ;;  %v5792_v42 = vrot.slane %v5790_v34, 2  ;;  %v5795_v54 = vrot.slane %v5793_v1, 3  ;;  %v9837_v34 = vld [vmem:[%s12871_s3 + $0x590] ss:$8 sps:$4 sm:$0xff]  }
 0x226   : > { %v9845_v1 = vld [vmem:[%s12871_s3 + $0x5a4] ss:$8 sps:$4 sm:$0xff]  }
 0x227   : > { %5669 = vmatpush1.bf16.msra.mxu0 %v9777_v37  ;;  %5244 = vmatmul.mubr.bf16.gmra.mrb[20].mxu1 %v10680_v49  ;;  %v9788_v49 = vld [vmem:[%s12870_s2 + $0xc00] ss:$12 sps:$4 sm:$0xff]   ;;  %v5799_v37 = vrot.slane %v5797_v30, 2  ;;  %v9846_v30 = vld [vmem:[%s12870_s2 + $0xcf0] ss:$12 sps:$4 sm:$0xff]  }
 0x228   : > { %8819 = vmatpush3.bf16.msra.mxu1 %v9781_v21  ;;  %5670 = vmatprep.subr.bf16.mxu0 %v9784_v19  ;;  %v9821_v19 = vld [vmem:[%s12871_s3 + $0x564] ss:$8 sps:$4 sm:$0xff]  }
 0x229   : > { %8820 = vmatprep.subr.bf16.mxu1 %v9785_v8  ;;  %5723 = vmatprep.mubr.bf16.mxu1 %v12065_v18  ;;  %v9795_v18 = vld [vmem:[%s12870_s2 + $0xc1c] ss:$12 sps:$4 sm:$0xff]   ;;  %v12341_v38 = vor.u32 %v5802_v58, %v5799_v37  ;;  %v9858_v37 = vld [vmem:[%s12870_s2 + $0xd20] ss:$12 sps:$4 sm:$0xff]  }
 0x22a   : > { %v9855_v58 = vld [vmem:[%s12871_s3 + $0x5c0] ss:$8 sps:$4 sm:$0xff]  }
 0x22b   : > { %5671 = vmatpush1.bf16.msra.mxu0 %v9782_v22  ;;  %v5796_v22 = vor.u32 %v5795_v54, %v5792_v42  ;;  %v9860_v42 = vld [vmem:[%s12870_s2 + $0xd24] ss:$12 sps:$4 sm:$0xff]  }
 0x22c   : > { %8821 = vmatpush3.bf16.msra.mxu1 %v9786_v4  ;;  %6362 = vmatprep.subr.bf16.mxu0 %v9790_v60  ;;  %v9857_v54 = vld [vmem:[%s12871_s3 + $0x5c4] ss:$8 sps:$4 sm:$0xff]  }
 0x22d   : > { %8822 = vmatprep.subr.bf16.mxu1 %v9787_v46  ;;  %v9822_v46 = vld [vmem:[%s12870_s2 + $0xc90] ss:$12 sps:$4 sm:$0xff]  }
 0x22e   : > { %5673 = vmatmul.mubr.bf16.vlgmr.msra.gmra.mrb[0].mxu0 %v5362_v56 }
 0x22f   : > { %6363 = vmatpush1.bf16.msra.mxu0 %v9788_v49  ;;  %5682 = vmatprep.mubr.bf16.mxu0 %v12048_v53 }
 0x230   : > { %8823 = vmatpush3.bf16.msra.mxu1 %v9791_v62  ;;  %6364 = vmatprep.subr.bf16.mxu0 %v9795_v18 }
 0x231   : > { %8824 = vmatprep.subr.bf16.mxu1 %v9792_v26  ;;  %v5804_v26 = vsel %vm4651_vm5, %v5796_v22, %v12341_v38  ;;  %v9872_v22 = vld [vmem:[%s12870_s2 + $0xd54] ss:$12 sps:$4 sm:$0xff]  }
 0x233   : > { %6365 = vmatpush1.bf16.msra.mxu0 %v9793_v7 }
 0x234   : > { %8825 = vmatpush3.bf16.msra.mxu1 %v9796_v9  ;;  %6366 = vmatprep.subr.bf16.mxu0 %v9800_v2  ;;  %v9825_v9 = vld [vmem:[%s12871_s3 + $0x570] ss:$8 sps:$4 sm:$0xff]  }
 0x235   : > { %8826 = vmatprep.subr.bf16.mxu1 %v9797_v32  ;;  %v9836_v2 = vld [vmem:[%s12870_s2 + $0xcc4] ss:$12 sps:$4 sm:$0xff]  }
 0x236   : > { %5683 = vmatmul.mubr.bf16.gmra.mrb[4].mxu0 %v12231_v23 }
 0x237   : > { %6367 = vmatpush1.bf16.msra.mxu0 %v9798_v24  ;;  %6394 = vmatprep.mubr.bf16.mxu0 %v12293_v41  ;;  %v9834_v24 = vld [vmem:[%s12870_s2 + $0xcc0] ss:$12 sps:$4 sm:$0xff]  }
 0x238   : > { %8827 = vmatpush3.bf16.msra.mxu1 %v9801_v12  ;;  %6368 = vmatprep.subr.bf16.mxu0 %v9805_v6  ;;  %v9831_v6 = vld [vmem:[%s12871_s3 + $0x580] ss:$8 sps:$4 sm:$0xff]  }
 0x239   : > { %8828 = vmatprep.subr.bf16.mxu1 %v9802_v55  ;;  %v9842_v55 = vld [vmem:[%s12870_s2 + $0xcdc] ss:$12 sps:$4 sm:$0xff]  }
 0x23b   : > { %6369 = vmatpush1.bf16.msra.mxu0 %v9803_v44 }
 0x23c   : > { %8829 = vmatpush3.bf16.msra.mxu1 %v9806_v0  ;;  %6370 = vmatprep.subr.bf16.mxu0 %v9812_v33  ;;  %v9839_v33 = vld [vmem:[%s12871_s3 + $0x594] ss:$8 sps:$4 sm:$0xff]  }
 0x23d   : > { %5933 = vmatprep.subr.bf16.mxu1 %v9809_v57  ;;  %v9840_v57 = vld [vmem:[%s12870_s2 + $0xcd8] ss:$12 sps:$4 sm:$0xff]  }
 0x23f   : > { %5724 = vmatmul.mubr.bf16.vlgmr.msra.gmra.mrb[56].mxu1 %v5362_v56  ;;  %6371 = vmatpush1.bf16.msra.mxu0 %v9810_v63  ;;  %v9830_v56 = vld [vmem:[%s12870_s2 + $0xcac] ss:$12 sps:$4 sm:$0xff]  }
 0x240   : > { %5934 = vmatpush1.bf16.msra.mxu1 %v9807_v52  ;;  %6372 = vmatprep.subr.bf16.mxu0 %v9818_v13  ;;  %v9854_v63 = vld [vmem:[%s12870_s2 + $0xd0c] ss:$12 sps:$4 sm:$0xff]   ;;  %v9851_v52 = vld [vmem:[%s12871_s3 + $0x5b4] ss:$8 sps:$4 sm:$0xff]  }
 0x241   : > { %v8746_v21 = vpop.f32.mrb[8].mxu0  ;;  %5935 = vmatprep.subr.bf16.mxu1 %v9815_v25  ;;  %5731 = vmatprep.mubr.bf16.mxu1 %v12048_v53  ;;  %v9819_v53 = vld [vmem:[%s12871_s3 + $0x560] ss:$8 sps:$4 sm:$0xff]   ;;  %v9849_v25 = vld [vmem:[%s12871_s3 + $0x5b0] ss:$8 sps:$4 sm:$0xff]  }
 0x242   : > { %v8747_v8 = vpop.f32.mrb[9].mxu0  ;;  %v9852_v13 = vld [vmem:[%s12870_s2 + $0xd08] ss:$12 sps:$4 sm:$0xff]  }
 0x243   : > { %v8748_v4 = vadd.f32 %v8747_v8, %v8746_v21  ;;  %v8749_v60 = vpop.f32.mrb[10].mxu0  ;;  %6373 = vmatpush1.bf16.msra.mxu0 %v9816_v15  ;;  %v9866_v15 = vld [vmem:[%s12870_s2 + $0xd3c] ss:$12 sps:$4 sm:$0xff]   ;;  %v5785_v21 = vshll.u32 %v10513_v43, 16  ;;  %v9861_v8 = vld [vmem:[%s12871_s3 + $0x5d0] ss:$8 sps:$4 sm:$0xff]  }
 0x244   : > { %5936 = vmatpush1.bf16.msra.mxu1 %v9813_v28  ;;  %v8750_v49 = vpop.f32.mrb[11].mxu0  ;;  %6374 = vmatprep.subr.bf16.mxu0 %v9824_v5  ;;  %v9863_v28 = vld [vmem:[%s12871_s3 + $0x5d4] ss:$8 sps:$4 sm:$0xff]   ;;  %v5782_v5 = vshrl.u32 %v10513_v43, 16  ;;  %v9869_v43 = vld [vmem:[%s12871_s3 + $0x5e4] ss:$8 sps:$4 sm:$0xff]  }
 0x245   : > { %v12353_v62 = vadd.f32 %v8748_v4, %v12054_v59  ;;  %v8751_v18 = vadd.f32 %v8750_v49, %v8749_v60  ;;  %5937 = vmatprep.subr.bf16.mxu1 %v9821_v19  ;;  %v9828_v59 = vld [vmem:[%s12870_s2 + $0xca8] ss:$12 sps:$4 sm:$0xff]   ;;  %v9864_v19 = vld [vmem:[%s12870_s2 + $0xd38] ss:$12 sps:$4 sm:$0xff]   ;;  %v5774_v4 = vshrl.u32 %v10447_v51, 16  ;;  %v5777_v60 = vshll.u32 %v10447_v51, 16 }
 0x246   : > { %v5787_v49 = vrot.slane %v5785_v21, 3  ;;  %v9867_v51 = vld [vmem:[%s12871_s3 + $0x5e0] ss:$8 sps:$4 sm:$0xff]  }
 0x247   : > { %v12361_v7 = vadd.f32 %v8751_v18, %v12068_v35  ;;  %5732 = vmatmul.mubr.bf16.gmra.mrb[60].mxu1 %v12231_v23  ;;  %6375 = vmatpush1.bf16.msra.mxu0 %v9822_v46  ;;  %v9833_v35 = vld [vmem:[%s12871_s3 + $0x584] ss:$8 sps:$4 sm:$0xff]   ;;  %v5784_v46 = vrot.slane %v5782_v5, 2  ;;  %v9900_v5 = vld [vmem:[%s12870_s2 + $0xc50] ss:$12 sps:$4 sm:$0xff]  }
 0x248   : > { %5938 = vmatpush1.bf16.msra.mxu1 %v9819_v53  ;;  %6376 = vmatprep.subr.bf16.mxu0 %v9830_v56  ;;  %v9870_v53 = vld [vmem:[%s12870_s2 + $0xd50] ss:$12 sps:$4 sm:$0xff]   ;;  %v8492_v56 = vcombine.low %v12259_v17, %v12245_v47  ;;  %v9878_v18 = vld [vmem:[%s12870_s2 + $0xd6c] ss:$12 sps:$4 sm:$0xff]  }
 0x249   : > { %v8752_v36 = vpop.f32.mrb[12].mxu0  ;;  %5939 = vmatprep.subr.bf16.mxu1 %v9827_v20  ;;  %8426 = vmatprep.mubr.msk.bf16.mxu1 %vm1558_vm0, %v5804_v26  ;;  %v5776_v20 = vrot.slane %v5774_v4, 2  ;;  %v5779_v26 = vrot.slane %v5777_v60, 3  ;;  %v9905_v4 = vld [vmem:[%s12870_s2 + $0xc68] ss:$12 sps:$4 sm:$0xff]  }
 0x24a   : > { %v8753_v23 = vpop.f32.mrb[13].mxu0 }
 0x24b   : > { %v8754_v32 = vadd.f32 %v8753_v23, %v8752_v36  ;;  %6377 = vmatpush1.bf16.msra.mxu0 %v9828_v59  ;;  %v8755_v12 = vpop.f32.mrb[14].mxu0  ;;  %v9875_v59 = vld [vmem:[%s12871_s3 + $0x5f4] ss:$8 sps:$4 sm:$0xff]   ;;  %v12474_v36 = vrot.slane %v8492_v56, 3 }
 0x24c   : > { %5940 = vmatpush1.bf16.msra.mxu1 %v9825_v9  ;;  %6378 = vmatprep.subr.bf16.mxu0 %v9836_v2  ;;  %v8756_v44 = vpop.f32.mrb[15].mxu0  ;;  %v9876_v9 = vld [vmem:[%s12870_s2 + $0xd68] ss:$12 sps:$4 sm:$0xff]   ;;  %v6096_v2 = vrot.slane %v10239_v14, 3  ;;  %v9884_v12 = vld [vmem:[%s12871_s3 + $0x604] ss:$8 sps:$4 sm:$0xff]  }
 0x24d   : > { %v12387_v0 = vadd.f32 %v8754_v32, %v12094_v16  ;;  %5941 = vmatprep.subr.bf16.mxu1 %v9833_v35  ;;  %v9848_v16 = vld [vmem:[%s12870_s2 + $0xcf4] ss:$12 sps:$4 sm:$0xff]   ;;  %v9873_v35 = vld [vmem:[%s12871_s3 + $0x5f0] ss:$8 sps:$4 sm:$0xff]   ;;  %v5780_v32 = vor.u32 %v5779_v26, %v5776_v20 }
 0x24e   : > { %v9881_v23 = vld [vmem:[%s12870_s2 + $0xcc8] ss:$12 sps:$4 sm:$0xff]   ;;  %v12487_v14 = vsel %vm6095_vm6, %v6096_v2, %v12474_v36  ;;  %v9907_v20 = vld [vmem:[%s12871_s3 + $0x650] ss:$8 sps:$4 sm:$0xff]  }
 0x24f   : > { %6379 = vmatpush1.bf16.msra.mxu0 %v9834_v24  ;;  %v5788_v24 = vor.u32 %v5787_v49, %v5784_v46  ;;  %v9906_v46 = vld [vmem:[%s12870_s2 + $0xd40] ss:$12 sps:$4 sm:$0xff]   ;;  %v9911_v26 = vld [vmem:[%s12870_s2 + $0xd58] ss:$12 sps:$4 sm:$0xff]   ;;  %v9916_v2 = vld [vmem:[%s12870_s2 + $0xd70] ss:$12 sps:$4 sm:$0xff]  }
 0x250   : > { %5942 = vmatpush1.bf16.msra.mxu1 %v9831_v6  ;;  %6380 = vmatprep.subr.bf16.mxu0 %v9842_v55  ;;  %v9885_v6 = vld [vmem:[%s12870_s2 + $0xc08] ss:$12 sps:$4 sm:$0xff]  }
 0x251   : > { %5943 = vmatprep.subr.bf16.mxu1 %v9839_v33  ;;  %v9882_v55 = vld [vmem:[%s12871_s3 + $0x600] ss:$8 sps:$4 sm:$0xff]   ;;  %v5789_v44 = vsel %vm4651_vm5, %v5780_v32, %v5788_v24  ;;  %v9917_v32 = vld [vmem:[%s12871_s3 + $0x670] ss:$8 sps:$4 sm:$0xff]  }
 0x252   : > { %v9886_v33 = vld [vmem:[%s12870_s2 + $0xce0] ss:$12 sps:$4 sm:$0xff]  }
 0x253   : > { %6381 = vmatpush1.bf16.msra.mxu0 %v9840_v57  ;;  %v9889_v57 = vld [vmem:[%s12871_s3 + $0x614] ss:$8 sps:$4 sm:$0xff]  }
 0x254   : > { %5944 = vmatpush1.bf16.msra.mxu1 %v9837_v34  ;;  %6382 = vmatprep.subr.bf16.mxu0 %v9848_v16  ;;  %v9890_v34 = vld [vmem:[%s12870_s2 + $0xc20] ss:$12 sps:$4 sm:$0xff]   ;;  %v9887_v16 = vld [vmem:[%s12871_s3 + $0x610] ss:$8 sps:$4 sm:$0xff]  }
 0x255   : > { %5945 = vmatprep.subr.bf16.mxu1 %v9845_v1  ;;  %v9891_v1 = vld [vmem:[%s12870_s2 + $0xcf8] ss:$12 sps:$4 sm:$0xff]  }
 0x257   : > { %6383 = vmatpush1.bf16.msra.mxu0 %v9846_v30  ;;  %v9894_v30 = vld [vmem:[%s12871_s3 + $0x624] ss:$8 sps:$4 sm:$0xff]  }
 0x258   : > { %5946 = vmatpush1.bf16.msra.mxu1 %v9843_v31  ;;  %6384 = vmatprep.subr.bf16.mxu0 %v9854_v63 }
 0x259   : > { %5947 = vmatprep.subr.bf16.mxu1 %v9851_v52  ;;  %v9895_v52 = vld [vmem:[%s12870_s2 + $0xc38] ss:$12 sps:$4 sm:$0xff]  }
 0x25b   : > { %6385 = vmatpush1.bf16.msra.mxu0 %v9852_v13  ;;  %v6502_v13 = vrot.slane %v10553_v3, 3  ;;  %v9899_v3 = vld [vmem:[%s12871_s3 + $0x634] ss:$8 sps:$4 sm:$0xff]  }
 0x25c   : > { %5948 = vmatpush1.bf16.msra.mxu1 %v9849_v25  ;;  %6386 = vmatprep.subr.bf16.mxu0 %v9860_v42  ;;  %v6503_v25 = vrot.slane %v10678_v48, 3  ;;  %v12915_v48 = vshll.u32 %v11009_v10, 16 }
 0x25d   : > { %5949 = vmatprep.subr.bf16.mxu1 %v9857_v54 }
 0x25e   : > { %v6504_v21 = vsel %vm6095_vm6, %v6502_v13, %v6503_v25 }
 0x25f   : > { %6387 = vmatpush1.bf16.msra.mxu0 %v9858_v37  ;;  %v9892_v37 = vld [vmem:[%s12871_s3 + $0x620] ss:$8 sps:$4 sm:$0xff]  }
 0x260   : > { %5950 = vmatpush1.bf16.msra.mxu1 %v9855_v58  ;;  %6388 = vmatprep.subr.bf16.mxu0 %v9866_v15 }
 0x261   : > { %5951 = vmatprep.subr.bf16.mxu1 %v9863_v28 }
 0x263   : > { %6389 = vmatpush1.bf16.msra.mxu0 %v9864_v19 }
 0x264   : > { %5952 = vmatpush1.bf16.msra.mxu1 %v9861_v8  ;;  %6390 = vmatprep.subr.bf16.mxu0 %v9872_v22  ;;  %v9901_v8 = vld [vmem:[%s12870_s2 + $0xd28] ss:$12 sps:$4 sm:$0xff]  }
 0x265   : > { %5953 = vmatprep.subr.bf16.mxu1 %v9869_v43  ;;  %v9902_v43 = vld [vmem:[%s12871_s3 + $0x640] ss:$8 sps:$4 sm:$0xff]  }
 0x267   : > { %6391 = vmatpush1.bf16.msra.mxu0 %v9870_v53  ;;  %v9909_v53 = vld [vmem:[%s12871_s3 + $0x654] ss:$8 sps:$4 sm:$0xff]  }
 0x268   : > { %5954 = vmatpush1.bf16.msra.mxu1 %v9867_v51  ;;  %6392 = vmatprep.subr.bf16.mxu0 %v9878_v18  ;;  %v9910_v18 = vld [vmem:[%s12870_s2 + $0xc80] ss:$12 sps:$4 sm:$0xff]  }
 0x269   : > { %5955 = vmatprep.subr.bf16.mxu1 %v9875_v59  ;;  %v9915_v59 = vld [vmem:[%s12870_s2 + $0xc98] ss:$12 sps:$4 sm:$0xff]  }
 0x26b   : > { %6393 = vmatpush1.bf16.msra.mxu0 %v9876_v9  ;;  %v9912_v9 = vld [vmem:[%s12871_s3 + $0x660] ss:$8 sps:$4 sm:$0xff]  }
 0x26c   : > { %5956 = vmatpush1.bf16.msra.mxu1 %v9873_v35  ;;  %8842 = vmatprep.subr.bf16.mxu0 %v9881_v23  ;;  %v9919_v35 = vld [vmem:[%s12871_s3 + $0x674] ss:$8 sps:$4 sm:$0xff]  }
 0x26d   : > { %6633 = vmatprep.subr.bf16.mxu1 %v9884_v12  ;;  %v9920_v23 = vld [vmem:[%s12870_s2 + $0xcb0] ss:$12 sps:$4 sm:$0xff]   ;;  %v9921_v12 = vld [vmem:[%s12871_s3 + $0x680] ss:$8 sps:$4 sm:$0xff]  }
 0x26e   : > { %6395 = vmatmul.mubr.bf16.vlgmr.msra.gmra.mrb[0].mxu0 %v12487_v14 }
 0x26f   : > { %5966 = vmatmul.mubr.bf16.vlgmr.msra.gmra.mrb[16].mxu1 %v5789_v44  ;;  %8843 = vmatpush3.bf16.msra.mxu0 %v9885_v6  ;;  %v9926_v6 = vld [vmem:[%s12871_s3 + $0x694] ss:$8 sps:$4 sm:$0xff]   ;;  %v9929_v44 = vld [vmem:[%s12871_s3 + $0x6a4] ss:$8 sps:$4 sm:$0xff]  }
 0x270   : > { %6634 = vmatpush1.bf16.msra.mxu1 %v9882_v55  ;;  %8844 = vmatprep.subr.bf16.mxu0 %v9886_v33  ;;  %v9924_v55 = vld [vmem:[%s12871_s3 + $0x690] ss:$8 sps:$4 sm:$0xff]   ;;  %v9927_v33 = vld [vmem:[%s12871_s3 + $0x6a0] ss:$8 sps:$4 sm:$0xff]  }
 0x271   : > { %6635 = vmatprep.subr.bf16.mxu1 %v9889_v57  ;;  %6404 = vmatprep.mubr.bf16.mxu0 %v12277_v39  ;;  %v6499_v57 = vrot.slane %v10663_v40, 3 }
 0x272   : > { %v8774_v31 = vpop.f32.mrb[40].mxu1  ;;  %8427 = vmatprep.mubr.msk.bf16.mxu1 %vm1558_vm0, %v12341_v38  ;;  %v9896_v38 = vld [vmem:[%s12870_s2 + $0xd10] ss:$12 sps:$4 sm:$0xff]  }
 0x273   : > { %v8775_v63 = vpop.f32.mrb[41].mxu1  ;;  %8845 = vmatpush3.bf16.msra.mxu0 %v9890_v34  ;;  %v6500_v34 = vrot.slane %v10653_v27, 3  ;;  %v9940_v27 = vld [vmem:[%s10092_s16 + $0x30] sm:$0xff] }
 0x274   : > { %v8776_v42 = vadd.f32 %v8775_v63, %v8774_v31  ;;  %v8777_v54 = vpop.f32.mrb[42].mxu1  ;;  %6636 = vmatpush1.bf16.msra.mxu1 %v9887_v16  ;;  %8846 = vmatprep.subr.bf16.mxu0 %v9891_v1  ;;  %v6010_v13 = vshrl.u32 %v9940_v27, 16 }
 0x275   : > { %v8778_v58 = vpop.f32.mrb[43].mxu1  ;;  %6637 = vmatprep.subr.bf16.mxu1 %v9894_v30  ;;  %v6501_v16 = vsel %vm6095_vm6, %v6499_v57, %v6500_v34  ;;  %v9943_v57 = vld [vmem:[%s10092_s16 + $0x8] sm:$0xff] }
 0x276   : > { %v12533_v15 = vadd.f32 %v8776_v42, %v12353_v62  ;;  %v8779_v28 = vadd.f32 %v8778_v58, %v8777_v54  ;;  %6405 = vmatmul.mubr.bf16.gmra.mrb[4].mxu0 %v12474_v36  ;;  %v9897_v62 = vld [vmem:[%s12871_s3 + $0x630] ss:$8 sps:$4 sm:$0xff]   ;;  %v6013_v42 = vshll.u32 %v9940_v27, 16  ;;  %v12914_v54 = vshrl.u32 %v11009_v10, 16 }
 0x277   : > { %8847 = vmatpush3.bf16.msra.mxu0 %v9895_v52  ;;  %6445 = vmatprep.mubr.bf16.mxu0 %v12293_v41  ;;  %v9904_v41 = vld [vmem:[%s12871_s3 + $0x644] ss:$8 sps:$4 sm:$0xff]  }
 0x278   : > { %v12544_v19 = vadd.f32 %v8779_v28, %v12361_v7  ;;  %6638 = vmatpush1.bf16.msra.mxu1 %v9892_v37  ;;  %8848 = vmatprep.subr.bf16.mxu0 %v9896_v38  ;;  %v5270_v37 = vrot.slane %v12914_v54, 6 }
 0x279   : > { %6639 = vmatprep.subr.bf16.mxu1 %v9899_v3  ;;  %5976 = vmatmul.mubr.bf16.gmra.mrb[20].mxu1 %v5788_v24  ;;  %v9923_v24 = vld [vmem:[%s12871_s3 + $0x684] ss:$8 sps:$4 sm:$0xff]  }
 0x27a   : > { %v8780_v22 = vpop.f32.mrb[44].mxu1  ;;  %8590 = vmatprep.mubr.msk.bf16.mxu1 %vm1558_vm0, %v6504_v21 }
 0x27b   : > { %v8781_v7 = vpop.f32.mrb[45].mxu1  ;;  %8849 = vmatpush3.bf16.msra.mxu0 %v9900_v5  ;;  %v6015_v5 = vrot.slane %v6013_v42, 7 }
 0x27c   : > { %v8782_v60 = vadd.f32 %v8781_v7, %v8780_v22  ;;  %6640 = vmatpush1.bf16.msra.mxu1 %v9897_v62  ;;  %8850 = vmatprep.subr.bf16.mxu0 %v9901_v8  ;;  %v8783_v49 = vpop.f32.mrb[46].mxu1  ;;  %v9941_v7 = vld [vmem:[%s10092_s16 + $0x20] sm:$0xff] }
 0x27d   : > { %6641 = vmatprep.subr.bf16.mxu1 %v9904_v41  ;;  %v8784_v56 = vpop.f32.mrb[47].mxu1 }
 0x27e   : > { %v12569_v51 = vadd.f32 %v8782_v60, %v12387_v0  ;;  %v9914_v0 = vld [vmem:[%s12871_s3 + $0x664] ss:$8 sps:$4 sm:$0xff]   ;;  %v5994_v60 = vshll.u32 %v9941_v7, 16 }
 0x27f   : > { %8851 = vmatpush3.bf16.msra.mxu0 %v9905_v4  ;;  %v5991_v4 = vshrl.u32 %v9941_v7, 16 }
 0x280   : > { %6642 = vmatpush1.bf16.msra.mxu1 %v9902_v43  ;;  %8852 = vmatprep.subr.bf16.mxu0 %v9906_v46  ;;  %v9942_v43 = vld [vmem:[%s10092_s16 + $0x28] sm:$0xff] }
 0x281   : > { %6643 = vmatprep.subr.bf16.mxu1 %v9909_v53  ;;  %v6000_v46 = vshrl.u32 %v9942_v43, 16  ;;  %v6003_v49 = vshll.u32 %v9942_v43, 16  ;;  %v12916_v53 = vmax.bf16 %v11150_v61, %v11175_v11 }
 0x283   : > { %8853 = vmatpush3.bf16.msra.mxu0 %v9910_v18 }
 0x284   : > { %6644 = vmatpush1.bf16.msra.mxu1 %v9907_v20  ;;  %8854 = vmatprep.subr.bf16.mxu0 %v9911_v26  ;;  %v6701_v20 = vrot.slane %v12245_v47, 7  ;;  %v5993_v26 = vrot.slane %v5991_v4, 6  ;;  %v12921_v47 = vshrl.u32 %v10933_v45, 16 }
 0x285   : > { %6645 = vmatprep.subr.bf16.mxu1 %v9914_v0  ;;  %v5996_v0 = vrot.slane %v5994_v60, 7 }
 0x287   : > { %8855 = vmatpush3.bf16.msra.mxu0 %v9915_v59  ;;  %v6002_v59 = vrot.slane %v6000_v46, 6 }
 0x288   : > { %6646 = vmatpush1.bf16.msra.mxu1 %v9912_v9  ;;  %8856 = vmatprep.subr.bf16.mxu0 %v9916_v2  ;;  %v6005_v9 = vrot.slane %v6003_v49, 7 }
 0x289   : > { %6647 = vmatprep.subr.bf16.mxu1 %v9919_v35  ;;  %v5261_v35 = vrot.slane %v12921_v47, 6 }
 0x28b   : > { %8857 = vmatpush3.bf16.msra.mxu0 %v9920_v23  ;;  %v12922_v23 = vshll.u32 %v10933_v45, 16 }
 0x28c   : > { %6648 = vmatpush1.bf16.msra.mxu1 %v9917_v32 }
 0x28d   : > { %6649 = vmatprep.subr.bf16.mxu1 %v9923_v24  ;;  %v5262_v32 = vrot.slane %v12922_v23, 7  ;;  %v12923_v24 = vshrl.u32 %v10938_v50, 16 }
 0x28e   : > { %6446 = vmatmul.mubr.bf16.vlgmr.msra.gmra.mrb[16].mxu0 %v12487_v14  ;;  %v9930_v14 = vld [vmem:[%s12871_s3 + $0x6b0] ss:$8 sps:$4 sm:$0xff]  }
 0x28f   : > { %6453 = vmatprep.mubr.bf16.mxu0 %v12277_v39  ;;  %v9932_v39 = vld [vmem:[%s12871_s3 + $0x6b4] ss:$8 sps:$4 sm:$0xff]  }
 0x290   : > { %6650 = vmatpush1.bf16.msra.mxu1 %v9921_v12  ;;  %v5265_v12 = vrot.slane %v12923_v24, 6 }
 0x291   : > { %6651 = vmatprep.subr.bf16.mxu1 %v9926_v6  ;;  %v12924_v6 = vshll.u32 %v10938_v50, 16 }
 0x294   : > { %6652 = vmatpush1.bf16.msra.mxu1 %v9924_v55  ;;  %v5266_v55 = vrot.slane %v12924_v6, 7 }
 0x295   : > { %6653 = vmatprep.subr.bf16.mxu1 %v9929_v44  ;;  %v5997_v44 = vor.u32 %v5996_v0, %v5993_v26 }
 0x296   : > { %6454 = vmatmul.mubr.bf16.gmra.mrb[20].mxu0 %v12474_v36  ;;  %v5267_v50 = vor.u32 %v5266_v55, %v5265_v12 }
 0x298   : > { %6654 = vmatpush1.bf16.msra.mxu1 %v9927_v33  ;;  %v6006_v33 = vor.u32 %v6005_v9, %v6002_v59 }
 0x299   : > { %6655 = vmatprep.subr.bf16.mxu1 %v9932_v39  ;;  %v6784_v39 = vld [vmem:[%s12674_s26 + $0x4c] sm:$0x33] }
 0x29c   : > { %6656 = vmatpush1.bf16.msra.mxu1 %v9930_v14  ;;  %v5263_v14 = vor.u32 %v5262_v32, %v5261_v35 }
 0x29f   : > { %6666 = vmatmul.mubr.bf16.vlgmr.msra.gmra.mrb[16].mxu1 %v6501_v16 }
 0x2a0   : > { %8591 = vmatprep.mubr.msk.bf16.mxu1 %vm1558_vm0, %v6503_v25  ;;  %v5271_v25 = vrot.slane %v12915_v48, 7  ;;  %vm12688_vm0 = vmor %vm6749_vm14, %vm12664_vm13 }
 0x2a2   : > { %v12645_v28 = vor.u32 %v5271_v25, %v5270_v37 }
 0x2a4   : > { %v5274_v22 = vrot.slane %v12645_v28, 4 }
 0x2a6   : > { %v5280_v56 = vmax.bf16 %v5274_v22, %v12916_v53 }
 0x2a7   : > { %6676 = vmatmul.mubr.bf16.gmra.mrb[20].mxu1 %v6500_v34  ;;  %v6695_v34 = vrot.slane %v9943_v57, 7 }
 0x2a9   : > { %v6697_v42 = vrot.slane %v6695_v34, 4 }
 0x2c2   : > { %v8802_v36 = vpop.f32.mrb[48].mxu1 }
 0x2c3   : > { %v8803_v1 = vpop.f32.mrb[49].mxu1 }
 0x2c4   : > { %v8804_v30 = vadd.f32 %v8803_v1, %v8802_v36  ;;  %v8805_v31 = vpop.f32.mrb[50].mxu1  ;;  %v5998_v1 = vrot.slane %v5997_v44, 4 }
 0x2c5   : > { %v8806_v63 = vpop.f32.mrb[51].mxu1 }
 0x2c6   : > { %v12635_v52 = vadd.f32 %v8804_v30, %v12533_v15  ;;  %v8807_v40 = vadd.f32 %v8806_v63, %v8805_v31  ;;  %v6012_v15 = vrot.slane %v6010_v13, 6  ;;  %v6008_v30 = vrot.slane %v6006_v33, 4  ;;  %v9944_v63 = vld [vmem:[%s10092_s16] sm:$0xff]  ;;  %s8999_s16 = smul.u32 10, %s12941_s25 }
 0x2c7   : > { %v5264_v31 = vrot.slane %v5263_v14, 4  ;;  %v5269_v13 = vrot.slane %v5267_v50, 4  ;;  %v6007_v37 = vsel %vm12693_vm1, %v5998_v1, %v6006_v33 }
 0x2c8   : > { %v12643_v38 = vadd.f32 %v8807_v40, %v12544_v19  ;;  %v6016_v10 = vor.u32 %v6015_v5, %v6012_v15  ;;  %v6698_v19 = vrot.slane %v12259_v17, 7  ;;  %v8592_v40 = vrot.slane %v9944_v63, 11  ;;  %v12930_v17 = vld [vmem:[#allocation2_spill] sm:$0xff]  ;;  %s12851_s28 = scalar_lea.vmem %s12875_s7, %s8999_s16 }
 0x2c9   : > { %v5268_v54 = vsel %vm12693_vm1, %v5264_v31, %v5267_v50  ;;  %v5273_v48 = vsel %vm12693_vm1, %v5269_v13, %v12645_v28  ;;  %v6789_v26 = vadd.s32 8, %v12930_v17 }
 0x2ca   : > { %v8808_v58 = vpop.f32.mrb[52].mxu1  ;;  %v6700_v18 = vrot.slane %v6698_v19, 4  ;;  %v5278_v25 = vmax.bf16 %v5268_v54, %v11104_v29  ;;  %v6696_v5 = vsel %vm12659_vm11, %v8592_v40, %v6695_v34 }
 0x2cb   : > { %v8809_v3 = vpop.f32.mrb[53].mxu1  ;;  %v12729_v0 = vmul.u32.u64.low 3435973837, %v12930_v17  ;;  %v12730_v59 = vmul.u32.u64.high 3435973837, %v12930_v17, %v12729_v0 }
 0x2cc   : > { %v8810_v21 = vadd.f32 %v8809_v3, %v8808_v58  ;;  %v8811_v62 = vpop.f32.mrb[54].mxu1  ;;  %v6702_v11 = vsel %vm12659_vm11, %v6700_v18, %v6701_v20  ;;  %v6017_v58 = vsel %vm12693_vm1, %v6008_v30, %v6016_v10  ;;  %v12929_v3 = vld [vmem:[#allocation3_spill] sm:$0xff] }
 0x2cd   : > { %v8812_v8 = vpop.f32.mrb[55].mxu1  ;;  %v5279_v15 = vmax.bf16 %v5273_v48, %v12929_v3  ;;  %v6699_v62 = vsel %vm12659_vm11, %v6697_v42, %v6698_v19 }
 0x2ce   : > { %v12648_v41 = vadd.f32 %v8810_v21, %v12569_v51  ;;  %v6018_v51 = vrot.slane %v6016_v10, 4  ;;  %v6022_v21 = vmax.bf16 %v6007_v37, %v5278_v25 }
 0x2cf   : > { %v6023_v8 = vmax.bf16 %v6017_v58, %v5279_v15 }
 0x2d0   : > { %v6024_v2 = vmax.bf16 %v6018_v51, %v5280_v56  ;;  %v6706_v22 = vmax.bf16 %v6696_v5, %v6022_v21 }
 0x2d1   : > { %v6707_v7 = vmax.bf16 %v6699_v62, %v6023_v8 }
 0x2d2   : > { %v6708_v16 = vmax.bf16 %v6702_v11, %v6024_v2  ;;  %6782 = vst [vmem:[%s12674_s26 + $0x14] sm:$0xff] %v6706_v22  ;;  %v6797_v2 = vshrl.u32 %v12730_v59, 2 }
 0x2d3   : > { %6783 = vst [vmem:[%s12674_s26 + $0x30] sm:$0xff] %v6707_v7 }
 0x2d4   : > { %v6785_v27 = vsel %vm12688_vm0, %v6708_v16, %v6784_v39 }
 0x2d5   : > { %6786 = vst [vmem:[%s12674_s26 + $0x4c] sm:$0x33] %v6785_v27 }
 0x312   : > { %v8830_v28 = vpop.f32.mrb[56].mxu1 }
 0x313   : > { %v8831_v4 = vpop.f32.mrb[57].mxu1 }
 0x314   : > { %v8832_v29 = vadd.f32 %v8831_v4, %v8830_v28  ;;  %v8833_v60 = vpop.f32.mrb[58].mxu1  ;;  %v6751_v4 = vld [vmem:[%s12674_s26 + $0x38] sm:$0x33] }
 0x315   : > { %v8834_v43 = vpop.f32.mrb[59].mxu1 }
 0x316   : > { %v12719_v10 = vadd.f32 %v8832_v29, %v12635_v52  ;;  %v8835_v46 = vadd.f32 %v8834_v43, %v8833_v60  ;;  %v12732_v52 = vmul.u32.u64.low 3435973837, %v6789_v26  ;;  %v12733_v9 = vmul.u32.u64.high 3435973837, %v6789_v26, %v12732_v52 }
 0x318   : > { %v12722_v49 = vadd.f32 %v8835_v46, %v12643_v38  ;;  %v6790_v38 = vadd.s32 16, %v12930_v17  ;;  %v6808_v35 = vshrl.u32 %v12733_v9, 2 }
 0x31a   : > { %v8836_v53 = vpop.f32.mrb[60].mxu1  ;;  %v12737_v11 = vmul.u32.u64.low 3435973837, %v6790_v38  ;;  %v12738_v47 = vmul.u32.u64.high 3435973837, %v6790_v38, %v12737_v11  ;;  %v6809_v23 = vmul.u32 5, %v6808_v35 }
 0x31b   : > { %v8837_v56 = vpop.f32.mrb[61].mxu1 }
 0x31c   : > { %v8838_v19 = vadd.f32 %v8837_v56, %v8836_v53  ;;  %v8839_v51 = vpop.f32.mrb[62].mxu1  ;;  %v6819_v24 = vshrl.u32 %v12738_v47, 2  ;;  %v6810_v12 = vsub.s32 %v6789_v26, %v6809_v23 }
 0x31d   : > { %v8840_v18 = vpop.f32.mrb[63].mxu1 }
 0x31e   : > { %v12725_v20 = vadd.f32 %v8838_v19, %v12648_v41  ;;  %v6798_v41 = vmul.u32 5, %v6797_v2  ;;  %v6820_v6 = vmul.u32 5, %v6819_v24  ;;  %vm6825_vm4 = vcmp.ne.s32.totalorder %v6810_v12, 0 }
 0x31f   : > { %vm6828_vm5 = vcmp.lt.s32.totalorder %v6810_v12, 0  ;;  %v6834_v44 = vadd.s32 5, %v6810_v12 }
 0x320   : > { %v6799_v32 = vsub.s32 %v12930_v17, %v6798_v41  ;;  %v6821_v33 = vsub.s32 %v6790_v38, %v6820_v6  ;;  %vm6831_vm7 = vmand %vm6828_vm5, %vm6825_vm4 }
 0x321   : > { %v6837_v14 = vsel %vm6831_vm7, %v6834_v44, %v6810_v12 }
 0x322   : > { %vm6824_vm2 = vcmp.ne.s32.totalorder %v6799_v32, 0  ;;  %vm6827_vm3 = vcmp.lt.s32.totalorder %v6799_v32, 0  ;;  %v6833_v55 = vadd.s32 5, %v6799_v32  ;;  %vm6826_vm8 = vcmp.ne.s32.totalorder %v6821_v33, 0 }
 0x323   : > { %vm6830_vm6 = vmand %vm6827_vm3, %vm6824_vm2  ;;  %vm6829_vm9 = vcmp.lt.s32.totalorder %v6821_v33, 0  ;;  %v6835_v34 = vadd.s32 5, %v6821_v33  ;;  %vm12747_vm11 = vcmp.lt.s32.totalorder %v6837_v14, 4 }
 0x324   : > { %v6836_v39 = vsel %vm6830_vm6, %v6833_v55, %v6799_v32  ;;  %vm12751_vm12 = vmand %vm6829_vm9, %vm6826_vm8 }
 0x325   : > { %vm12743_vm10 = vcmp.lt.s32.totalorder %v6836_v39, 4  ;;  %v6838_v54 = vsel %vm12751_vm12, %v6835_v34, %v6821_v33 }
 0x326   : > { %vm12767_vm14 = vcmp.lt.s32.totalorder %v6838_v54, 4 }
 0x341   : > { %v6396_v16 = vpop.f32.mrb[0].mxu0 }
 0x342   : > { %v6848_v1 = vsel %vm12743_vm10, %v6396_v16, 0.0  ;;  %v6398_v30 = vpop.f32.mrb[1].mxu0 }
 0x343   : > { %v8609_v31 = vpack.c.bf16 %v6398_v30, %v6396_v16  ;;  %v6849_v63 = vsel %vm12743_vm10, %v6398_v30, 0.0  ;;  %v6400_v40 = vpop.f32.mrb[2].mxu0  ;;  %v6963_v27 = vmul.f32 %v6848_v1, %v6848_v1 }
 0x344   : > { %v6851_v13 = vsel %vm12747_vm11, %v6400_v40, 0.0  ;;  %v6402_v42 = vpop.f32.mrb[3].mxu0  ;;  %v6964_v3 = vmul.f32 %v6849_v63, %v6849_v63 }
 0x345   : > { %6742 = vst [vmem:[%s12674_s26] sm:$0xff] %v8609_v31  ;;  %v6863_v37 = vadd.f32 %v6851_v13, %v6848_v1  ;;  %v6966_v48 = vmul.f32 %v6851_v13, %v6851_v13  ;;  %v8611_v25 = vpack.c.bf16 %v6402_v42, %v6400_v40  ;;  %v6852_v58 = vsel %vm12747_vm11, %v6402_v42, 0.0 }
 0x346   : > { %v6873_v15 = vadd.f32 %v6852_v58, %v6849_v63  ;;  %v6967_v5 = vmul.f32 %v6852_v58, %v6852_v58 }
 0x347   : > { %v6972_v21 = vadd.f32 %v6966_v48, %v6963_v27  ;;  %6744 = vst [vmem:[%s12674_s26 + $0x1c] sm:$0xff] %v8611_v25 }
 0x348   : > { %v6981_v8 = vadd.f32 %v6967_v5, %v6964_v3 }
 0x349   : > { %v6406_v22 = vpop.f32.mrb[4].mxu0 }
 0x34a   : > { %v6854_v7 = vsel %vm12767_vm14, %v6406_v22, 0.0  ;;  %v6408_v28 = vpop.f32.mrb[5].mxu0 }
 0x34b   : > { %v6865_v29 = vsel %vm6864_vm15, %v6854_v7, 0.0  ;;  %v6969_v60 = vmul.f32 %v6854_v7, %v6854_v7  ;;  %v8613_v43 = vpack.c.bf16 %v6408_v28, %v6406_v22  ;;  %v6855_v46 = vsel %vm12767_vm14, %v6408_v28, 0.0  ;;  %v6410_v53 = vpop.f32.mrb[6].mxu0 }
 0x34c   : > { %v6866_v56 = vadd.f32 %v6865_v29, %v6863_v37  ;;  %v6874_v19 = vsel %vm6864_vm15, %v6855_v46, 0.0  ;;  %v6970_v51 = vmul.f32 %v6855_v46, %v6855_v46  ;;  %v6411_v18 = vpop.f32.mrb[7].mxu0  ;;  %v9953_v53 = vmov 1966171168  }
 0x34d   : > { %v6973_v26 = vsel %vm6864_vm15, %v6969_v60, 0.0  ;;  %v6752_v0 = vsel %vm12688_vm0, %v8613_v43, %v6751_v4  ;;  %v6875_v59 = vadd.f32 %v6874_v19, %v6873_v15  ;;  %v6754_v18 = vld [vmem:[%s12674_s26 + $0x40] sm:$0x3] }
 0x34e   : > { %v6867_v52 = vrot.slane %v6866_v56, 4  ;;  %v6974_v9 = vadd.f32 %v6973_v26, %v6972_v21  ;;  %6753 = vst [vmem:[%s12674_s26 + $0x38] sm:$0x33] %v6752_v0  ;;  %v6982_v38 = vsel %vm6864_vm15, %v6970_v51, 0.0 }
 0x34f   : > { %v6876_v2 = vrot.slane %v6875_v59, 4  ;;  %v6983_v11 = vadd.f32 %v6982_v38, %v6981_v8 }
 0x350   : > { %v6868_v47 = vadd.f32 %v6867_v52, %v6866_v56  ;;  %v6975_v35 = vrot.slane %v6974_v9, 4  ;;  %v6896_v56 = vunpack.c.l.s4 %v9953_v53 }
 0x351   : > { %v6877_v41 = vadd.f32 %v6876_v2, %v6875_v59  ;;  %v6984_v23 = vrot.slane %v6983_v11, 4 }
 0x352   : > { %v6869_v32 = vrot.slane %v6868_v47, 2  ;;  %v6976_v24 = vadd.f32 %v6975_v35, %v6974_v9  ;;  %v6897_v59 = vunpack.c.0.s8 %v6896_v56 }
 0x353   : > { %v6878_v12 = vrot.slane %v6877_v41, 2  ;;  %v6985_v6 = vadd.f32 %v6984_v23, %v6983_v11 }
 0x354   : > { %v6870_v55 = vadd.f32 %v6869_v32, %v6868_v47  ;;  %v6977_v44 = vrot.slane %v6976_v24, 2  ;;  %v12815_v32 = vsub.s32 %v6897_v59, %v12930_v17 }
 0x355   : > { %v6879_v33 = vadd.f32 %v6878_v12, %v6877_v41  ;;  %v6986_v39 = vrot.slane %v6985_v6, 2 }
 0x356   : > { %v6871_v14 = vrot.slane %v6870_v55, 1  ;;  %v6978_v34 = vadd.f32 %v6977_v44, %v6976_v24 }
 0x357   : > { %v6880_v16 = vrot.slane %v6879_v33, 1  ;;  %v6987_v50 = vadd.f32 %v6986_v39, %v6985_v6 }
 0x358   : > { %v12783_v1 = vadd.f32 %v6871_v14, %v6870_v55  ;;  %v6979_v30 = vrot.slane %v6978_v34, 1 }
 0x359   : > { %v12785_v31 = vadd.f32 %v6880_v16, %v6879_v33  ;;  %v6988_v63 = vrot.slane %v6987_v50, 1 }
 0x35a   : > { %v12787_v40 = vadd.f32 %v6979_v30, %v6978_v34 }
 0x35b   : > { %v6894_v27 = vcombine.low %v12783_v1, %v12785_v31  ;;  %v12791_v13 = vadd.f32 %v6988_v63, %v6987_v50 }
 0x35d   : > { %v7002_v42 = vcombine.low %v12787_v40, %v12791_v13 }
 0x361   : > { %v8858_v54 = vpop.f32.mrb[16].mxu0 }
 0x362   : > { %v8859_v37 = vpop.f32.mrb[17].mxu0 }
 0x363   : > { %v8860_v48 = vadd.f32 %v8859_v37, %v8858_v54  ;;  %v8861_v25 = vpop.f32.mrb[18].mxu0 }
 0x364   : > { %v8862_v58 = vpop.f32.mrb[19].mxu0 }
 0x365   : > { %v6463_v3 = vadd.f32 %v8860_v48, %v12719_v10  ;;  %v8863_v15 = vadd.f32 %v8862_v58, %v8861_v25 }
 0x367   : > { %v8610_v5 = vpack.c.bf16 %v6463_v3, %v6463_v3  ;;  %v6850_v21 = vsel %vm12743_vm10, %v6463_v3, 0.0  ;;  %v6466_v8 = vadd.f32 %v8863_v15, %v12722_v49  ;;  %v6901_v15 = vrot.slane %v6894_v27, %v12815_v32 }
 0x368   : > { %v6965_v4 = vmul.f32 %v6850_v21, %v6850_v21 }
 0x369   : > { %6743 = vst [vmem:[%s12674_s26 + $0x8] sm:$0xf] %v8610_v5  ;;  %v8612_v22 = vpack.c.bf16 %v6466_v8, %v6466_v8  ;;  %v6853_v7 = vsel %vm12747_vm11, %v6466_v8, 0.0  ;;  %v8864_v28 = vpop.f32.mrb[20].mxu0 }
 0x36a   : > { %v6882_v29 = vadd.f32 %v6853_v7, %v6850_v21  ;;  %v6968_v60 = vmul.f32 %v6853_v7, %v6853_v7  ;;  %v8865_v43 = vpop.f32.mrb[21].mxu0 }
 0x36b   : > { %6745 = vst [vmem:[%s12674_s26 + $0x24] sm:$0xf] %v8612_v22  ;;  %v8866_v10 = vadd.f32 %v8865_v43, %v8864_v28  ;;  %v8867_v46 = vpop.f32.mrb[22].mxu0  ;;  %v6779_v22 = vld [vmem:[%s12674_s26 + $0x44] sm:$0x33] }
 0x36c   : > { %v6990_v19 = vadd.f32 %v6968_v60, %v6965_v4  ;;  %v8868_v51 = vpop.f32.mrb[23].mxu0 }
 0x36d   : > { %v6469_v49 = vadd.f32 %v8866_v10, %v12725_v20 }
 0x36f   : > { %v8614_v26 = vpack.c.bf16 %v6469_v49, %v6469_v49  ;;  %v6856_v0 = vsel %vm12767_vm14, %v6469_v49, 0.0 }
 0x370   : > { %v6883_v52 = vsel %vm6864_vm15, %v6856_v0, 0.0  ;;  %v6971_v9 = vmul.f32 %v6856_v0, %v6856_v0 }
 0x371   : > { %v6755_v38 = vsel %vm12664_vm13, %v8614_v26, %v6754_v18  ;;  %v6884_v2 = vadd.f32 %v6883_v52, %v6882_v29  ;;  %v7009_v26 = vrot.slane %v7002_v42, %v12815_v32 }
 0x372   : > { %6756 = vst [vmem:[%s12674_s26 + $0x40] sm:$0x3] %v6755_v38  ;;  %v6991_v11 = vsel %vm6864_vm15, %v6971_v9, 0.0  ;;  %v6667_v47 = vpop.f32.mrb[16].mxu1 }
 0x373   : > { %v6885_v35 = vrot.slane %v6884_v2, 4  ;;  %v6992_v20 = vadd.f32 %v6991_v11, %v6990_v19  ;;  %v6857_v41 = vsel %vm12743_vm10, %v6667_v47, 0.0  ;;  %v6669_v23 = vpop.f32.mrb[17].mxu1 }
 0x374   : > { %v7028_v24 = vmul.f32 %v6857_v41, %v6857_v41  ;;  %v8615_v12 = vpack.c.bf16 %v6669_v23, %v6667_v47  ;;  %v6858_v61 = vsel %vm12743_vm10, %v6669_v23, 0.0  ;;  %v6671_v6 = vpop.f32.mrb[18].mxu1 }
 0x375   : > { %v6886_v55 = vadd.f32 %v6885_v35, %v6884_v2  ;;  %v6993_v44 = vrot.slane %v6992_v20, 4  ;;  %v7029_v33 = vmul.f32 %v6858_v61, %v6858_v61  ;;  %v6859_v39 = vsel %vm12747_vm11, %v6671_v6, 0.0  ;;  %v6673_v14 = vpop.f32.mrb[19].mxu1 }
 0x376   : > { %6777 = vst [vmem:[%s12674_s26 + $0xc] sm:$0xff] %v8615_v12  ;;  %v6923_v34 = vadd.f32 %v6859_v39, %v6857_v41  ;;  %v7030_v16 = vmul.f32 %v6859_v39, %v6859_v39  ;;  %v8616_v50 = vpack.c.bf16 %v6673_v14, %v6671_v6  ;;  %v6860_v17 = vsel %vm12747_vm11, %v6673_v14, 0.0 }
 0x377   : > { %v6887_v30 = vrot.slane %v6886_v55, 2  ;;  %v6994_v57 = vadd.f32 %v6993_v44, %v6992_v20  ;;  %v6932_v63 = vadd.f32 %v6860_v17, %v6858_v61  ;;  %v7031_v54 = vmul.f32 %v6860_v17, %v6860_v17 }
 0x378   : > { %v7034_v37 = vadd.f32 %v7030_v16, %v7028_v24  ;;  %6778 = vst [vmem:[%s12674_s26 + $0x28] sm:$0xff] %v8616_v50  ;;  %v12939_v2 = vlaneseq }
 0x379   : > { %v6888_v48 = vadd.f32 %v6887_v30, %v6886_v55  ;;  %v6995_v25 = vrot.slane %v6994_v57, 2  ;;  %v7043_v58 = vadd.f32 %v7031_v54, %v7029_v33 }
 0x37a   : > { %v6677_v3 = vpop.f32.mrb[20].mxu1  ;;  %vm6920_vm13 = vcmp.lt.s32.totalorder %v12939_v2, 384 }
 0x37b   : > { %v6889_v5 = vrot.slane %v6888_v48, 1  ;;  %v6996_v36 = vadd.f32 %v6995_v25, %v6994_v57  ;;  %v6861_v21 = vsel %vm12767_vm14, %v6677_v3, 0.0  ;;  %v6679_v8 = vpop.f32.mrb[21].mxu1 }
 0x37c   : > { %v6924_v7 = vsel %vm6864_vm15, %v6861_v21, 0.0  ;;  %v7032_v28 = vmul.f32 %v6861_v21, %v6861_v21  ;;  %v8617_v4 = vpack.c.bf16 %v6679_v8, %v6677_v3  ;;  %v6862_v29 = vsel %vm12767_vm14, %v6679_v8, 0.0  ;;  %v6681_v60 = vpop.f32.mrb[22].mxu1 }
 0x37d   : > { %v6890_v43 = vadd.f32 %v6889_v5, %v6888_v48  ;;  %v6997_v1 = vrot.slane %v6996_v36, 1  ;;  %v6925_v31 = vadd.f32 %v6924_v7, %v6923_v34  ;;  %v6933_v27 = vsel %vm6864_vm15, %v6862_v29, 0.0  ;;  %v6682_v10 = vpop.f32.mrb[23].mxu1 }
 0x37e   : > { %v7035_v46 = vsel %vm6864_vm15, %v7032_v28, 0.0  ;;  %v6780_v53 = vsel %vm12688_vm0, %v8617_v4, %v6779_v22  ;;  %v6934_v56 = vadd.f32 %v6933_v27, %v6932_v63  ;;  %v7033_v19 = vmul.f32 %v6862_v29, %v6862_v29 }
 0x37f   : > { %v6908_v51 = vrot.slane %v6890_v43, %v12815_v32  ;;  %v6998_v62 = vadd.f32 %v6997_v1, %v6996_v36  ;;  %v6926_v49 = vrot.slane %v6925_v31, 4  ;;  %v7036_v18 = vadd.f32 %v7035_v46, %v7034_v37  ;;  %6781 = vst [vmem:[%s12674_s26 + $0x44] sm:$0x33] %v6780_v53 }
 0x380   : > { %v6935_v0 = vrot.slane %v6934_v56, 4  ;;  %v7044_v59 = vsel %vm6864_vm15, %v7033_v19, 0.0  ;;  %vm6959_vm0 = vcmp.lt.s32.totalorder %v12939_v2, 256 }
 0x381   : > { %v6909_v52 = vcombine.low %v6901_v15, %v6908_v51  ;;  %v7016_v45 = vrot.slane %v6998_v62, %v12815_v32  ;;  %v6927_v9 = vadd.f32 %v6926_v49, %v6925_v31  ;;  %v7037_v38 = vrot.slane %v7036_v18, 4 }
 0x382   : > { %v6936_v11 = vadd.f32 %v6935_v0, %v6934_v56  ;;  %v7045_v40 = vadd.f32 %v7044_v59, %v7043_v58 }
 0x383   : > { %v6916_v13 = vrot.slane %v6909_v52, %v12815_v32  ;;  %v7017_v42 = vcombine.low %v7009_v26, %v7016_v45  ;;  %v6928_v47 = vrot.slane %v6927_v9, 2  ;;  %v7038_v35 = vadd.f32 %v7037_v38, %v7036_v18 }
 0x384   : > { %v6937_v20 = vrot.slane %v6936_v11, 2  ;;  %v7046_v41 = vrot.slane %v7045_v40, 4 }
 0x385   : > { %6922 = vst.msk [vmem:[%s12851_s28] ss:$2 sm:$0x7] %vm6920_vm13, %v6916_v13  ;;  %v7024_v23 = vrot.slane %v7017_v42, %v12815_v32  ;;  %v6929_v24 = vadd.f32 %v6928_v47, %v6927_v9  ;;  %v7039_v12 = vrot.slane %v7038_v35, 2 }
 0x386   : > { %v6938_v61 = vadd.f32 %v6937_v20, %v6936_v11  ;;  %v7047_v6 = vadd.f32 %v7046_v41, %v7045_v40 }
 0x387   : > { %8603 = vst.msk [vmem:[%s12851_s28 + $0x1] ss:$2 sm:$0x7] %vm6920_vm13, %v7024_v23  ;;  %v6930_v55 = vrot.slane %v6929_v24, 1  ;;  %v7040_v44 = vadd.f32 %v7039_v12, %v7038_v35 }
 0x388   : > { %v6939_v33 = vrot.slane %v6938_v61, 1  ;;  %v7048_v39 = vrot.slane %v7047_v6, 2 }
 0x389   : > { %v6931_v14 = vadd.f32 %v6930_v55, %v6929_v24  ;;  %v7041_v34 = vrot.slane %v7040_v44, 1 }
 0x38a   : > { %v6940_v16 = vadd.f32 %v6939_v33, %v6938_v61  ;;  %v7049_v50 = vadd.f32 %v7048_v39, %v7047_v6 }
 0x38b   : > { %v7042_v17 = vadd.f32 %v7041_v34, %v7040_v44 }
 0x38c   : > { %v6943_v30 = vcombine.low %v6931_v14, %v6940_v16  ;;  %v7050_v57 = vrot.slane %v7049_v50, 1 }
 0x38e   : > { %v6950_v63 = vrot.slane %v6943_v30, %v12815_v32  ;;  %v7051_v54 = vadd.f32 %v7050_v57, %v7049_v50 }
 0x390   : > { %v6957_v37 = vrot.slane %v6950_v63, %v12815_v32  ;;  %v7054_v48 = vcombine.low %v7042_v17, %v7051_v54 }
 0x392   : > { %8602 = vst.msk [vmem:[%s12851_s28 + $0x6] ss:$2 sm:$0x3] %vm6959_vm0, %v6957_v37  ;;  %v7061_v25 = vrot.slane %v7054_v48, %v12815_v32 }
 0x394   : > { %v7068_v58 = vrot.slane %v7061_v25, %v12815_v32 }
 0x396   : > { %8604 = vst.msk [vmem:[%s12851_s28 + $0x7] ss:$2 sm:$0x3] %vm6959_vm0, %v7068_v58 }
 0x397 PF: > { %s18_s24 = sadd.s32 1, %s9951_s24  }
 0x398   : > { %p15_p4 = scmp.ge.s32.totalorder %s18_s24, 4  }
 0x39a   :  { %17 = sbr.rel (!%p15_p4) target bundleno = 1 (0x1), region = 114 }

</bundles_post_ra>
